<compile_context>
chip_gen: v6e
topology: v6e:2x2x1
jax: 0.10.0
libtpu: 0.0.40
codegen_flags: <defaults>
</compile_context>

<pallas_src>
import math
from functools import partial

import jax
import jax.numpy as jnp
from jax.experimental import pallas as pl
from jax.experimental.pallas import tpu as pltpu

# ---- ViT-S / 'vits-mae-hoi' hyper-parameters -------------------------------
IMG = 32                 # small demo image (real MVP uses 224)
PATCH = 16
NUM_PATCHES = (IMG // PATCH) ** 2          # 4
SEQ = NUM_PATCHES + 1                      # +1 cls token -> 5
EMBED_DIM = 384                            # == MVPEncoder.latent_dim
NUM_HEADS = 6
HEAD_DIM = EMBED_DIM // NUM_HEADS          # 64
HP = 128                                   # head dim padded to one 128-lane group
QKV_COLS = 3 * NUM_HEADS * HP              # 2304: q0..q5 | k0..k5 | v0..v5
ATTN_COLS = NUM_HEADS * HP                 # 768
MLP_DIM = 4 * EMBED_DIM                    # 1536
DEPTH = 2                                  # real vits-mae-hoi has 12 blocks
LN_EPS = 1e-6                              # timm ViT LayerNorm eps
WEIGHT_DTYPE = jnp.bfloat16                # frozen weights streamed as bf16
# TODO(synk): quantize frozen weights to int8 (v5e/v6e MXU) or fp8-e4m3 (v7x)
# with per-output-channel scales -> ~2x less HBM weight streaming per block
# (also recovers the extra bytes added by the 64->128 head-lane padding).

# rows of the packed per-block vector array ([DEPTH, 8, QKV_COLS], f32)
VROW_LN1_G, VROW_LN1_B = 0, 1
VROW_LN2_G, VROW_LN2_B = 2, 3
VROW_PROJ_B, VROW_FC2_B = 4, 5
VROW_QKV_B, VROW_FC1_B = 6, 7


def _round_up(x, m):
    return ((x + m - 1) // m) * m


# ----------------------------- fused kernel ---------------------------------
def _encoder_kernel(
    # inputs (weights bf16, everything else f32)
    patches_ref, pw_ref, base_ref,
    qkvw_ref, projw_ref, fc1w_ref, fc2w_ref, vecs_ref,
    lnfg_ref, lnfb_ref,
    # output
    out_ref,
    # scratch (resident in VMEM across grid steps / within a step)
    seq_ref, qkv_scr, attn_scr,
    *, batch, seq_len, t_pad,
):
    d = pl.program_id(0)                     # block index == grid step
    m_pad = batch * t_pad

    def layernorm(x, g, b):
        mu = jnp.mean(x, axis=-1, keepdims=True)
        xc = x - mu
        var = jnp.mean(xc * xc, axis=-1, keepdims=True)
        return xc * jax.lax.rsqrt(var + LN_EPS) * g + b

    def matmul(x, w, b):
        # bf16 x bf16 on the MXU, f32 accumulation.
        return jnp.dot(x.astype(w.dtype), w,
                       preferred_element_type=jnp.float32) + b

    def gelu(x):                             # exact erf-GELU (torch.nn.GELU)
        # TODO(synk): tanh-approx GELU would move the polynomial onto the EUP
        # slot, at a small fidelity cost vs. the frozen PyTorch encoder.
        return 0.5 * x * (1.0 + jax.lax.erf(x * (1.0 / math.sqrt(2.0))))

    # ---- grid step 0: PatchEmbed + [cls] + pos-embed into the resident seq --
    # patches_ref rows are pre-placed at the (padded) token positions with the
    # cls/pad rows zeroed; base_ref carries cls+pos / pos+patch_bias rows, so a
    # single matmul+add builds the full padded sequence [B*t_pad, D].
    @pl.when(d == 0)
    def _():
        seq_ref[...] = matmul(patches_ref[...], pw_ref[...], base_ref[...])

    # ---- one transformer block per grid step --------------------------------
    # single [8, QKV_COLS] DMA carries all per-block LN params + biases
    vec = vecs_ref[0]                                        # [8, 2304] f32
    ln1_g = vec[VROW_LN1_G:VROW_LN1_G + 1, :EMBED_DIM]
    ln1_b = vec[VROW_LN1_B:VROW_LN1_B + 1, :EMBED_DIM]
    ln2_g = vec[VROW_LN2_G:VROW_LN2_G + 1, :EMBED_DIM]
    ln2_b = vec[VROW_LN2_B:VROW_LN2_B + 1, :EMBED_DIM]
    proj_b = vec[VROW_PROJ_B:VROW_PROJ_B + 1, :EMBED_DIM]
    fc2_b = vec[VROW_FC2_B:VROW_FC2_B + 1, :EMBED_DIM]
    qkv_b = vec[VROW_QKV_B:VROW_QKV_B + 1, :]
    fc1_b = vec[VROW_FC1_B:VROW_FC1_B + 1, :MLP_DIM]

    x = seq_ref[...]                                         # [m_pad, D] f32

    # --- MHSA (head-padded layout: every slice starts at a multiple of 128) ---
    h = layernorm(x, ln1_g, ln1_b)
    qkv_scr[...] = matmul(h, qkvw_ref[0], qkv_b)             # [m_pad, 2304] f32

    scale = HEAD_DIM ** -0.5                                 # real head dim (64)
    # mask padded key tokens (softmax only over the seq_len real tokens)
    key_valid = jax.lax.broadcasted_iota(jnp.int32, (t_pad, t_pad), 1) < seq_len

    # NUM_HEADS=6 static iterations; each head's result is stored straight into
    # the attn scratch (no concatenates, per-iteration temporaries die at the
    # ref store).  For many more heads, switch to lax.fori_loop(unroll=True).
    for hh in range(NUM_HEADS):
        q = qkv_scr[:, hh * HP:(hh + 1) * HP]
        k = qkv_scr[:, (NUM_HEADS + hh) * HP:(NUM_HEADS + hh + 1) * HP]
        v = qkv_scr[:, (2 * NUM_HEADS + hh) * HP:(2 * NUM_HEADS + hh + 1) * HP]
        q = q.reshape(batch, t_pad, HP)                      # sublane-split: free
        k = k.reshape(batch, t_pad, HP)
        v = v.reshape(batch, t_pad, HP)
        s = jnp.einsum('bqd,bkd->bqk',
                       q.astype(jnp.bfloat16), k.astype(jnp.bfloat16),
                       preferred_element_type=jnp.float32) * scale
        s = jnp.where(key_valid, s, -1e30)
        s = s - jnp.max(s, axis=-1, keepdims=True)           # stable softmax
        p = jnp.exp(s)
        p = p * pl.reciprocal(jnp.sum(p, axis=-1, keepdims=True), approx=True)
        o = jnp.einsum('bqk,bkd->bqd',
                       p.astype(jnp.bfloat16), v.astype(jnp.bfloat16),
                       preferred_element_type=jnp.float32)
        attn_scr[:, hh * HP:(hh + 1) * HP] = o.reshape(m_pad, HP)

    # padded v lanes are zero and the matching proj_w rows are zero -> exact
    x = x + matmul(attn_scr[...], projw_ref[0], proj_b)

    # --- MLP ---
    h = layernorm(x, ln2_g, ln2_b)
    h = gelu(matmul(h, fc1w_ref[0], fc1_b))
    x = x + matmul(h, fc2w_ref[0], fc2_b)

    seq_ref[...] = x

    # ---- last grid step: final LayerNorm, one lane-dense [m_pad, 384] store.
    # NOTE: out_ref uses a constant index_map, so it stays VMEM-resident across
    # the whole grid; if an M-tile axis is ever added, init/writeback per step.
    @pl.when(d == pl.num_programs(0) - 1)
    def _():
        out_ref[...] = layernorm(x, lnfg_ref[...], lnfb_ref[...]).astype(out_ref.dtype)


# --------------------------- parameters (synthetic) --------------------------
def init_params(key):
    """Dense 'checkpoint-like' parameters (timm ViT-S layout), frozen."""
    def nrm(k, shape, std=0.02, dtype=jnp.float32):
        return (std * jax.random.normal(k, shape, jnp.float32)).astype(dtype)

    keys = jax.random.split(key, 7)
    w = WEIGHT_DTYPE
    return {
        # Conv2d(3, D, 16, 16) weight stored pre-transposed/flattened [C*p*p, D]
        "patch_w": nrm(keys[0], (3 * PATCH * PATCH, EMBED_DIM), dtype=w),
        "patch_b": jnp.zeros((1, EMBED_DIM), jnp.float32),
        "cls": nrm(keys[1], (1, EMBED_DIM)),
        "pos": nrm(keys[2], (SEQ, EMBED_DIM)),
        "ln_f_g": jnp.ones((1, EMBED_DIM), jnp.float32),
        "ln_f_b": jnp.zeros((1, EMBED_DIM), jnp.float32),
        # per-block params stacked on a leading DEPTH axis
        "ln1_g": jnp.ones((DEPTH, EMBED_DIM), jnp.float32),
        "ln1_b": jnp.zeros((DEPTH, EMBED_DIM), jnp.float32),
        "qkv_w": nrm(keys[3], (DEPTH, EMBED_DIM, 3 * EMBED_DIM), dtype=w),
        "qkv_b": jnp.zeros((DEPTH, 3 * EMBED_DIM), jnp.float32),
        "proj_w": nrm(keys[4], (DEPTH, EMBED_DIM, EMBED_DIM), dtype=w),
        "proj_b": jnp.zeros((DEPTH, EMBED_DIM), jnp.float32),
        "ln2_g": jnp.ones((DEPTH, EMBED_DIM), jnp.float32),
        "ln2_b": jnp.zeros((DEPTH, EMBED_DIM), jnp.float32),
        "fc1_w": nrm(keys[5], (DEPTH, EMBED_DIM, MLP_DIM), dtype=w),
        "fc1_b": jnp.zeros((DEPTH, MLP_DIM), jnp.float32),
        "fc2_w": nrm(keys[6], (DEPTH, MLP_DIM, EMBED_DIM), dtype=w),
        "fc2_b": jnp.zeros((DEPTH, EMBED_DIM), jnp.float32),
    }


def pack_params_for_kernel(params):
    """One-time re-layout of the frozen weights for the kernel:
       - QKV columns head-padded 64->128 lanes (q0..q5|k0..k5|v0..v5),
       - proj rows head-padded with zero rows (folds the un-pad into the matmul),
       - all tiny per-block vectors packed into one [DEPTH, 8, QKV_COLS] array."""
    def pad_qkv_cols(a):            # [..., 3*EMBED_DIM] -> [..., QKV_COLS]
        lead = a.shape[:-1]
        a = a.reshape(lead + (3, NUM_HEADS, HEAD_DIM))
        a = jnp.pad(a, [(0, 0)] * len(lead) + [(0, 0), (0, 0), (0, HP - HEAD_DIM)])
        return a.reshape(lead + (QKV_COLS,))

    def pad_proj_rows(a):           # [DEPTH, EMBED_DIM, D] -> [DEPTH, ATTN_COLS, D]
        dpt, _, d_out = a.shape
        a = a.reshape(dpt, NUM_HEADS, HEAD_DIM, d_out)
        a = jnp.pad(a, [(0, 0), (0, 0), (0, HP - HEAD_DIM), (0, 0)])
        return a.reshape(dpt, ATTN_COLS, d_out)

    def row(v):                     # [DEPTH, n] -> [DEPTH, QKV_COLS] f32
        v = v.astype(jnp.float32)
        return jnp.pad(v, [(0, 0), (0, QKV_COLS - v.shape[-1])])

    vecs = jnp.stack([
        row(params["ln1_g"]), row(params["ln1_b"]),
        row(params["ln2_g"]), row(params["ln2_b"]),
        row(params["proj_b"]), row(params["fc2_b"]),
        row(pad_qkv_cols(params["qkv_b"])), row(params["fc1_b"]),
    ], axis=1)                      # [DEPTH, 8, QKV_COLS]

    return {
        "patch_w": params["patch_w"].astype(WEIGHT_DTYPE),
        "patch_b": params["patch_b"],
        "cls": params["cls"],
        "pos": params["pos"],
        "ln_f_g": params["ln_f_g"],
        "ln_f_b": params["ln_f_b"],
        "qkv_w": pad_qkv_cols(params["qkv_w"]).astype(WEIGHT_DTYPE),
        "proj_w": pad_proj_rows(params["proj_w"]).astype(WEIGHT_DTYPE),
        "fc1_w": params["fc1_w"].astype(WEIGHT_DTYPE),
        "fc2_w": params["fc2_w"].astype(WEIGHT_DTYPE),
        "vecs": vecs,
    }


# ------------------------------- forward pass --------------------------------
def mvp_encoder_forward(x, kp):
    """x: NCHW float32 image [B, 3, H, W] -> features [B, 384] (normed cls token).
    `kp` = pack_params_for_kernel(init_params(...))."""
    B, C, H, W = x.shape
    p = PATCH
    nh, nw = H // p, W // p
    n_patches = nh * nw
    seq_len = n_patches + 1
    t_pad = _round_up(seq_len, 8)            # pad tokens to the 8-sublane granule
    m_pad = B * t_pad
    D = EMBED_DIM
    # NOTE(perf): at these demo sizes M = B*t_pad = 16 -> the kernel is bound by
    # weight streaming + fixed per-step overhead; raise B until M >= 128 (v5e) /
    # 256-512 (v6e/v7x) for MXU-bound per-image throughput.

    # PatchEmbed unfold: Conv2d(3, D, 16, 16) == matmul over (C, ph, pw) patches.
    # Rows are placed directly at their padded token slots (cls row 0 and pad
    # rows are zero) so the kernel builds the whole sequence with one matmul.
    patches = (x.reshape(B, C, nh, p, nw, p)
                 .transpose(0, 2, 4, 1, 3, 5)
                 .reshape(B, n_patches, C * p * p))
    patches_pad = (jnp.zeros((B, t_pad, C * p * p), jnp.float32)
                   .at[:, 1:1 + n_patches, :].set(patches)
                   .reshape(m_pad, C * p * p))               # lane axis = 768

    # per-token additive base: row0 = cls + pos0; patch rows = pos + patch_bias;
    # pad rows = 0.  (tiny XLA glue, fused by XLA)
    pos = kp["pos"]
    base = (jnp.zeros((t_pad, D), jnp.float32)
            .at[0:1].set(kp["cls"] + pos[0:1])
            .at[1:seq_len].set(pos[1:seq_len] + kp["patch_b"]))
    base = jnp.tile(base, (B, 1))                            # [m_pad, D]

    full = lambda a: pl.BlockSpec(a.shape, lambda d: (0,) * a.ndim)
    stacked = lambda a: pl.BlockSpec((1,) + a.shape[1:],
                                     lambda d: (d,) + (0,) * (a.ndim - 1))

    operands = (
        patches_pad, kp["patch_w"], base,
        kp["qkv_w"], kp["proj_w"], kp["fc1_w"], kp["fc2_w"], kp["vecs"],
        kp["ln_f_g"], kp["ln_f_b"],
    )
    in_specs = [
        full(patches_pad), full(kp["patch_w"]), full(base),
        stacked(kp["qkv_w"]), stacked(kp["proj_w"]),
        stacked(kp["fc1_w"]), stacked(kp["fc2_w"]), stacked(kp["vecs"]),
        full(kp["ln_f_g"]), full(kp["ln_f_b"]),
    ]

    kernel = partial(_encoder_kernel, batch=B, seq_len=seq_len, t_pad=t_pad)

    out = pl.pallas_call(
        kernel,
        out_shape=jax.ShapeDtypeStruct((m_pad, D), jnp.float32),
        grid_spec=pltpu.PrefetchScalarGridSpec(
            num_scalar_prefetch=0,
            grid=(DEPTH,),                      # one step per transformer block
            in_specs=in_specs,
            out_specs=pl.BlockSpec((m_pad, D), lambda d: (0, 0)),
            scratch_shapes=[
                pltpu.VMEM((m_pad, D), jnp.float32),          # resident sequence
                pltpu.VMEM((m_pad, QKV_COLS), jnp.float32),   # head-padded QKV
                pltpu.VMEM((m_pad, ATTN_COLS), jnp.float32),  # per-head outputs
            ],
        ),
        compiler_params=pltpu.CompilerParams(
            # sequence carried in scratch across block steps -> sequential axis
            dimension_semantics=("arbitrary",),
            # NOTE: re-derive per generation at production sizes (v7x: 64 MiB
            # physical VMEM -> needs an M-tile grid axis; v5e/v6e: 128 MiB).
            vmem_limit_bytes=32 * 1024 * 1024,
        ),
    )(*operands)

    # cls token per batch (row 0 of each padded token group)
    return out.reshape(B, t_pad, D)[:, 0, :]


# ---------------------- pure-JAX reference (dense layout) --------------------
def reference_forward(x, params):
    """Pure-JAX reference using the dense (checkpoint) weight layout, with the
    same precision choices as the kernel (bf16 weights / matmul inputs, f32
    accumulation) — validates the head-padding / vector-packing re-layout."""
    B, C, H, W = x.shape
    p = PATCH
    nh, nw = H // p, W // p
    n_patches = nh * nw
    S = n_patches + 1

    def mm(a, w, b):
        w = w.astype(WEIGHT_DTYPE)
        return jnp.dot(a.astype(w.dtype), w, preferred_element_type=jnp.float32) + b

    def ln(v, g, b):
        mu = jnp.mean(v, axis=-1, keepdims=True)
        vc = v - mu
        var = jnp.mean(vc * vc, axis=-1, keepdims=True)
        return vc * jax.lax.rsqrt(var + LN_EPS) * g + b

    def gelu(v):
        return 0.5 * v * (1.0 + jax.lax.erf(v * (1.0 / math.sqrt(2.0))))

    patches = (x.reshape(B, C, nh, p, nw, p).transpose(0, 2, 4, 1, 3, 5)
                 .reshape(B, n_patches, C * p * p))
    tok = mm(patches, params["patch_w"], params["patch_b"])
    cls = jnp.broadcast_to(params["cls"], (B, 1, EMBED_DIM))
    seq = jnp.concatenate([cls, tok], axis=1) + params["pos"][None, :S]

    for d in range(DEPTH):
        h = ln(seq, params["ln1_g"][d], params["ln1_b"][d])
        qkv = mm(h, params["qkv_w"][d], params["qkv_b"][d])       # [B,S,3D]
        qkv = qkv.reshape(B, S, 3, NUM_HEADS, HEAD_DIM)
        q = qkv[:, :, 0].transpose(0, 2, 1, 3)
        k = qkv[:, :, 1].transpose(0, 2, 1, 3)
        v = qkv[:, :, 2].transpose(0, 2, 1, 3)
        s = jnp.einsum('bhqd,bhkd->bhqk',
                       q.astype(jnp.bfloat16), k.astype(jnp.bfloat16),
                       preferred_element_type=jnp.float32) * (HEAD_DIM ** -0.5)
        pr = jax.nn.softmax(s, axis=-1)
        o = jnp.einsum('bhqk,bhkd->bhqd',
                       pr.astype(jnp.bfloat16), v.astype(jnp.bfloat16),
                       preferred_element_type=jnp.float32)
        o = o.transpose(0, 2, 1, 3).reshape(B, S, EMBED_DIM)
        seq = seq + mm(o, params["proj_w"][d], params["proj_b"][d])
        h = ln(seq, params["ln2_g"][d], params["ln2_b"][d])
        h = gelu(mm(h, params["fc1_w"][d], params["fc1_b"][d]))
        seq = seq + mm(h, params["fc2_w"][d], params["fc2_b"][d])

    seq = ln(seq, params["ln_f_g"], params["ln_f_b"])
    return seq[:, 0, :]


# ---------------------------------- main --------------------------------------
if __name__ == "__main__":
    key = jax.random.PRNGKey(0)
    kx, kparm = jax.random.split(key)
    x = jax.random.normal(kx, (2, 3, IMG, IMG), jnp.float32)   # NCHW, like PyTorch
    params = init_params(kparm)
    kp = pack_params_for_kernel(params)                        # one-time re-layout

    fwd = jax.jit(mvp_encoder_forward)
    z = fwd(x, kp)
    jax.block_until_ready(z)

    assert z.shape == (2, EMBED_DIM), z.shape
    assert z.dtype == jnp.float32
    assert bool(jnp.all(jnp.isfinite(z)))

    # correctness vs. the dense-layout pure-JAX reference (same bf16/f32 choices)
    z_ref = jax.jit(reference_forward)(x, params)
    jax.block_until_ready(z_ref)
    err = float(jnp.max(jnp.abs(z - z_ref)))
    assert err < 5e-2, f"kernel vs reference mismatch: max abs err {err}"

    print("KERNEL_OK")
</pallas_src>

<mosaic_0001>
module attributes {stable_mosaic.version = 11 : i64} {
  func.func @_encoder_kernel(%arg0: i32, %arg1: memref<16x768xf32, #tpu.memory_space<vmem>>, %arg2: memref<768x384xbf16, #tpu.memory_space<vmem>>, %arg3: memref<16x384xf32, #tpu.memory_space<vmem>>, %arg4: memref<1x384x2304xbf16, #tpu.memory_space<vmem>>, %arg5: memref<1x768x384xbf16, #tpu.memory_space<vmem>>, %arg6: memref<1x384x1536xbf16, #tpu.memory_space<vmem>>, %arg7: memref<1x1536x384xbf16, #tpu.memory_space<vmem>>, %arg8: memref<1x8x2304xf32, #tpu.memory_space<vmem>>, %arg9: memref<1x384xf32, #tpu.memory_space<vmem>>, %arg10: memref<1x384xf32, #tpu.memory_space<vmem>>, %arg11: memref<16x384xf32, #tpu.memory_space<vmem>>, %arg12: memref<16x384xf32, #tpu.memory_space<vmem>>, %arg13: memref<16x2304xf32, #tpu.memory_space<vmem>>, %arg14: memref<16x768xf32, #tpu.memory_space<vmem>>) attributes {dimension_semantics = [#tpu.dimension_semantics<arbitrary>], iteration_bounds = array<i64: 2>, scalar_prefetch = 0 : i64, scratch_operands = 3 : i64, tpu.core_type = #tpu.core_type<tc>, window_params = [{pipeline_mode = #tpu.pipeline_mode<synchronous>, transform_indices = @transform_0, window_bounds = array<i64: 16, 768>}, {pipeline_mode = #tpu.pipeline_mode<synchronous>, transform_indices = @transform_1, window_bounds = array<i64: 768, 384>}, {pipeline_mode = #tpu.pipeline_mode<synchronous>, transform_indices = @transform_2, window_bounds = array<i64: 16, 384>}, {transform_indices = @transform_3, window_bounds = array<i64: 1, 384, 2304>}, {transform_indices = @transform_4, window_bounds = array<i64: 1, 768, 384>}, {transform_indices = @transform_5, window_bounds = array<i64: 1, 384, 1536>}, {transform_indices = @transform_6, window_bounds = array<i64: 1, 1536, 384>}, {transform_indices = @transform_7, window_bounds = array<i64: 1, 8, 2304>}, {pipeline_mode = #tpu.pipeline_mode<synchronous>, transform_indices = @transform_8, window_bounds = array<i64: 1, 384>}, {pipeline_mode = #tpu.pipeline_mode<synchronous>, transform_indices = @transform_9, window_bounds = array<i64: 1, 384>}, {pipeline_mode = #tpu.pipeline_mode<synchronous>, transform_indices = @transform_10, window_bounds = array<i64: 16, 384>}]} {
    %c0_i32 = arith.constant 0 : i32
    %0 = arith.cmpi eq, %arg0, %c0_i32 : i32
    %1 = arith.extui %0 : i1 to i32
    %c0_i32_0 = arith.constant 0 : i32
    %2 = arith.cmpi ne, %1, %c0_i32_0 : i32
    scf.if %2 {
      %c0_107 = arith.constant 0 : index
      %c0_108 = arith.constant 0 : index
      %277 = vector.load %arg1[%c0_107, %c0_108] : memref<16x768xf32, #tpu.memory_space<vmem>>, vector<16x768xf32>
      %c0_109 = arith.constant 0 : index
      %c0_110 = arith.constant 0 : index
      %278 = vector.load %arg2[%c0_109, %c0_110] : memref<768x384xbf16, #tpu.memory_space<vmem>>, vector<768x384xbf16>
      %c0_111 = arith.constant 0 : index
      %c0_112 = arith.constant 0 : index
      %279 = vector.load %arg3[%c0_111, %c0_112] : memref<16x384xf32, #tpu.memory_space<vmem>>, vector<16x384xf32>
      %280 = arith.truncf %277 : vector<16x768xf32> to vector<16x768xbf16>
      %cst_113 = arith.constant dense<0.000000e+00> : vector<16x384xf32>
      %281 = tpu.matmul %280, %278, %cst_113 {dimension_numbers = #tpu.dot_dimension_numbers<[1], [0], [0], [1], [0, 0, 1, 1], [], []>} : vector<16x768xbf16>, vector<768x384xbf16>, vector<16x384xf32> -> vector<16x384xf32>
      %282 = arith.addf %281, %279 : vector<16x384xf32>
      %c0_114 = arith.constant 0 : index
      %c0_115 = arith.constant 0 : index
      %283 = vector.load %arg12[%c0_114, %c0_115] : memref<16x384xf32, #tpu.memory_space<vmem>>, vector<16x384xf32>
      tpu.vector_store %arg12[%c0_114, %c0_115], %282 {strides = array<i32>} : memref<16x384xf32, #tpu.memory_space<vmem>>, vector<16x384xf32>,
    } else {
    }
    %c0 = arith.constant 0 : index
    %c0_1 = arith.constant 0 : index
    %c0_2 = arith.constant 0 : index
    %3 = vector.load %arg8[%c0, %c0_1, %c0_2] : memref<1x8x2304xf32, #tpu.memory_space<vmem>>, vector<1x8x2304xf32>
    %4 = vector.shape_cast %3 : vector<1x8x2304xf32> to vector<8x2304xf32>
    %5 = vector.extract_strided_slice %4 {offsets = [0, 0], sizes = [1, 384], strides = [1, 1]} : vector<8x2304xf32> to vector<1x384xf32>
    %6 = vector.extract_strided_slice %4 {offsets = [1, 0], sizes = [1, 384], strides = [1, 1]} : vector<8x2304xf32> to vector<1x384xf32>
    %7 = vector.extract_strided_slice %4 {offsets = [2, 0], sizes = [1, 384], strides = [1, 1]} : vector<8x2304xf32> to vector<1x384xf32>
    %8 = vector.extract_strided_slice %4 {offsets = [3, 0], sizes = [1, 384], strides = [1, 1]} : vector<8x2304xf32> to vector<1x384xf32>
    %9 = vector.extract_strided_slice %4 {offsets = [4, 0], sizes = [1, 384], strides = [1, 1]} : vector<8x2304xf32> to vector<1x384xf32>
    %10 = vector.extract_strided_slice %4 {offsets = [5, 0], sizes = [1, 384], strides = [1, 1]} : vector<8x2304xf32> to vector<1x384xf32>
    %11 = vector.extract_strided_slice %4 {offsets = [6, 0], sizes = [1, 2304], strides = [1, 1]} : vector<8x2304xf32> to vector<1x2304xf32>
    %12 = vector.extract_strided_slice %4 {offsets = [7, 0], sizes = [1, 1536], strides = [1, 1]} : vector<8x2304xf32> to vector<1x1536xf32>
    %c0_3 = arith.constant 0 : index
    %c0_4 = arith.constant 0 : index
    %13 = vector.load %arg12[%c0_3, %c0_4] : memref<16x384xf32, #tpu.memory_space<vmem>>, vector<16x384xf32>
    %cst = arith.constant dense<0.000000e+00> : vector<16xf32>
    %14 = vector.multi_reduction <add>, %13, %cst [1] : vector<16x384xf32> to vector<16xf32>
    %15 = vector.shape_cast %14 : vector<16xf32> to vector<16x1xf32>
    %cst_5 = arith.constant 3.840000e+02 : f32
    %16 = vector.broadcast %cst_5 : f32 to vector<16x1xf32>
    %17 = arith.divf %15, %16 : vector<16x1xf32>
    %18 = vector.broadcast %17 : vector<16x1xf32> to vector<16x384xf32>
    %19 = arith.subf %13, %18 : vector<16x384xf32>
    %20 = arith.mulf %19, %19 : vector<16x384xf32>
    %cst_6 = arith.constant dense<0.000000e+00> : vector<16xf32>
    %21 = vector.multi_reduction <add>, %20, %cst_6 [1] : vector<16x384xf32> to vector<16xf32>
    %22 = vector.shape_cast %21 : vector<16xf32> to vector<16x1xf32>
    %cst_7 = arith.constant 3.840000e+02 : f32
    %23 = vector.broadcast %cst_7 : f32 to vector<16x1xf32>
    %24 = arith.divf %22, %23 : vector<16x1xf32>
    %cst_8 = arith.constant 9.99999997E-7 : f32
    %25 = vector.broadcast %cst_8 : f32 to vector<16x1xf32>
    %26 = arith.addf %24, %25 : vector<16x1xf32>
    %27 = math.rsqrt %26 : vector<16x1xf32>
    %28 = vector.broadcast %27 : vector<16x1xf32> to vector<16x384xf32>
    %29 = arith.mulf %19, %28 : vector<16x384xf32>
    %30 = vector.broadcast %5 : vector<1x384xf32> to vector<16x384xf32>
    %31 = arith.mulf %29, %30 : vector<16x384xf32>
    %32 = vector.broadcast %6 : vector<1x384xf32> to vector<16x384xf32>
    %33 = arith.addf %31, %32 : vector<16x384xf32>
    %c0_9 = arith.constant 0 : index
    %c0_10 = arith.constant 0 : index
    %c0_11 = arith.constant 0 : index
    %34 = vector.load %arg4[%c0_9, %c0_10, %c0_11] : memref<1x384x2304xbf16, #tpu.memory_space<vmem>>, vector<1x384x2304xbf16>
    %35 = vector.shape_cast %34 : vector<1x384x2304xbf16> to vector<384x2304xbf16>
    %36 = arith.truncf %33 : vector<16x384xf32> to vector<16x384xbf16>
    %cst_12 = arith.constant dense<0.000000e+00> : vector<16x2304xf32>
    %37 = tpu.matmul %36, %35, %cst_12 {dimension_numbers = #tpu.dot_dimension_numbers<[1], [0], [0], [1], [0, 0, 1, 1], [], []>} : vector<16x384xbf16>, vector<384x2304xbf16>, vector<16x2304xf32> -> vector<16x2304xf32>
    %38 = vector.broadcast %11 : vector<1x2304xf32> to vector<16x2304xf32>
    %39 = arith.addf %37, %38 : vector<16x2304xf32>
    %c0_13 = arith.constant 0 : index
    %c0_14 = arith.constant 0 : index
    %40 = vector.load %arg13[%c0_13, %c0_14] : memref<16x2304xf32, #tpu.memory_space<vmem>>, vector<16x2304xf32>
    tpu.vector_store %arg13[%c0_13, %c0_14], %39 {strides = array<i32>} : memref<16x2304xf32, #tpu.memory_space<vmem>>, vector<16x2304xf32>,
    %41 = tpu.iota {dimensions = array<i32: 1>} : vector<8x8xi32>
    %c5_i32 = arith.constant 5 : i32
    %42 = vector.broadcast %c5_i32 : i32 to vector<8x8xi32>
    %43 = arith.cmpi slt, %41, %42 : vector<8x8xi32>
    %c0_15 = arith.constant 0 : index
    %c0_16 = arith.constant 0 : index
    %44 = vector.load %arg13[%c0_15, %c0_16] : memref<16x2304xf32, #tpu.memory_space<vmem>>, vector<16x128xf32>
    %c0_17 = arith.constant 0 : index
    %c768 = arith.constant 768 : index
    %45 = vector.load %arg13[%c0_17, %c768] : memref<16x2304xf32, #tpu.memory_space<vmem>>, vector<16x128xf32>
    %c0_18 = arith.constant 0 : index
    %c1536 = arith.constant 1536 : index
    %46 = vector.load %arg13[%c0_18, %c1536] : memref<16x2304xf32, #tpu.memory_space<vmem>>, vector<16x128xf32>
    %47 = vector.shape_cast %44 : vector<16x128xf32> to vector<2x8x128xf32>
    %48 = vector.shape_cast %45 : vector<16x128xf32> to vector<2x8x128xf32>
    %49 = vector.shape_cast %46 : vector<16x128xf32> to vector<2x8x128xf32>
    %50 = arith.truncf %47 : vector<2x8x128xf32> to vector<2x8x128xbf16>
    %51 = arith.truncf %48 : vector<2x8x128xf32> to vector<2x8x128xbf16>
    "tpu.trace_start"() <{level = 10 : i32, message = "bqd,bkd->bqk"}> : () -> ()
    %cst_19 = arith.constant dense<0.000000e+00> : vector<2x8x8xf32>
    %52 = tpu.matmul %50, %51, %cst_19 {dimension_numbers = #tpu.dot_dimension_numbers<[2], [2], [1], [1], [0, 0, 0, 1, 1, 1], [0], [0]>} : vector<2x8x128xbf16>, vector<2x8x128xbf16>, vector<2x8x8xf32> -> vector<2x8x8xf32>
    "tpu.trace_stop"() : () -> ()
    %cst_20 = arith.constant 1.250000e-01 : f32
    %53 = vector.broadcast %cst_20 : f32 to vector<2x8x8xf32>
    %54 = arith.mulf %52, %53 : vector<2x8x8xf32>
    %cst_21 = arith.constant -1.000000e+30 : f32
    %55 = vector.shape_cast %43 : vector<8x8xi1> to vector<1x8x8xi1>
    %56 = vector.broadcast %55 : vector<1x8x8xi1> to vector<2x8x8xi1>
    %57 = vector.broadcast %cst_21 : f32 to vector<2x8x8xf32>
    %58 = arith.select %56, %54, %57 : vector<2x8x8xi1>, vector<2x8x8xf32>
    %cst_22 = arith.constant dense<0xFF800000> : vector<2x8xf32>
    %59 = vector.multi_reduction <maximumf>, %58, %cst_22 [2] : vector<2x8x8xf32> to vector<2x8xf32>
    %60 = vector.shape_cast %59 : vector<2x8xf32> to vector<2x8x1xf32>
    %61 = vector.broadcast %60 : vector<2x8x1xf32> to vector<2x8x8xf32>
    %62 = arith.subf %58, %61 : vector<2x8x8xf32>
    %63 = math.exp %62 : vector<2x8x8xf32>
    %cst_23 = arith.constant dense<0.000000e+00> : vector<2x8xf32>
    %64 = vector.multi_reduction <add>, %63, %cst_23 [2] : vector<2x8x8xf32> to vector<2x8xf32>
    %65 = vector.shape_cast %64 : vector<2x8xf32> to vector<2x8x1xf32>
    %66 = tpu.reciprocal %65 {approx = true} : vector<2x8x1xf32> -> vector<2x8x1xf32>
    %67 = vector.broadcast %66 : vector<2x8x1xf32> to vector<2x8x8xf32>
    %68 = arith.mulf %63, %67 : vector<2x8x8xf32>
    %69 = arith.truncf %68 : vector<2x8x8xf32> to vector<2x8x8xbf16>
    %70 = arith.truncf %49 : vector<2x8x128xf32> to vector<2x8x128xbf16>
    "tpu.trace_start"() <{level = 10 : i32, message = "bqk,bkd->bqd"}> : () -> ()
    %cst_24 = arith.constant dense<0.000000e+00> : vector<2x8x128xf32>
    %71 = tpu.matmul %69, %70, %cst_24 {dimension_numbers = #tpu.dot_dimension_numbers<[2], [1], [1], [2], [0, 0, 0, 1, 1, 2], [0], [0]>} : vector<2x8x8xbf16>, vector<2x8x128xbf16>, vector<2x8x128xf32> -> vector<2x8x128xf32>
    "tpu.trace_stop"() : () -> ()
    %72 = vector.shape_cast %71 : vector<2x8x128xf32> to vector<16x128xf32>
    %c0_25 = arith.constant 0 : index
    %c0_26 = arith.constant 0 : index
    %73 = vector.load %arg14[%c0_25, %c0_26] : memref<16x768xf32, #tpu.memory_space<vmem>>, vector<16x128xf32>
    tpu.vector_store %arg14[%c0_25, %c0_26], %72 {strides = array<i32>} : memref<16x768xf32, #tpu.memory_space<vmem>>, vector<16x128xf32>,
    %c0_27 = arith.constant 0 : index
    %c128 = arith.constant 128 : index
    %74 = vector.load %arg13[%c0_27, %c128] : memref<16x2304xf32, #tpu.memory_space<vmem>>, vector<16x128xf32>
    %c0_28 = arith.constant 0 : index
    %c896 = arith.constant 896 : index
    %75 = vector.load %arg13[%c0_28, %c896] : memref<16x2304xf32, #tpu.memory_space<vmem>>, vector<16x128xf32>
    %c0_29 = arith.constant 0 : index
    %c1664 = arith.constant 1664 : index
    %76 = vector.load %arg13[%c0_29, %c1664] : memref<16x2304xf32, #tpu.memory_space<vmem>>, vector<16x128xf32>
    %77 = vector.shape_cast %74 : vector<16x128xf32> to vector<2x8x128xf32>
    %78 = vector.shape_cast %75 : vector<16x128xf32> to vector<2x8x128xf32>
    %79 = vector.shape_cast %76 : vector<16x128xf32> to vector<2x8x128xf32>
    %80 = arith.truncf %77 : vector<2x8x128xf32> to vector<2x8x128xbf16>
    %81 = arith.truncf %78 : vector<2x8x128xf32> to vector<2x8x128xbf16>
    "tpu.trace_start"() <{level = 10 : i32, message = "bqd,bkd->bqk"}> : () -> ()
    %cst_30 = arith.constant dense<0.000000e+00> : vector<2x8x8xf32>
    %82 = tpu.matmul %80, %81, %cst_30 {dimension_numbers = #tpu.dot_dimension_numbers<[2], [2], [1], [1], [0, 0, 0, 1, 1, 1], [0], [0]>} : vector<2x8x128xbf16>, vector<2x8x128xbf16>, vector<2x8x8xf32> -> vector<2x8x8xf32>
    "tpu.trace_stop"() : () -> ()
    %cst_31 = arith.constant 1.250000e-01 : f32
    %83 = vector.broadcast %cst_31 : f32 to vector<2x8x8xf32>
    %84 = arith.mulf %82, %83 : vector<2x8x8xf32>
    %cst_32 = arith.constant -1.000000e+30 : f32
    %85 = vector.shape_cast %43 : vector<8x8xi1> to vector<1x8x8xi1>
    %86 = vector.broadcast %85 : vector<1x8x8xi1> to vector<2x8x8xi1>
    %87 = vector.broadcast %cst_32 : f32 to vector<2x8x8xf32>
    %88 = arith.select %86, %84, %87 : vector<2x8x8xi1>, vector<2x8x8xf32>
    %cst_33 = arith.constant dense<0xFF800000> : vector<2x8xf32>
    %89 = vector.multi_reduction <maximumf>, %88, %cst_33 [2] : vector<2x8x8xf32> to vector<2x8xf32>
    %90 = vector.shape_cast %89 : vector<2x8xf32> to vector<2x8x1xf32>
    %91 = vector.broadcast %90 : vector<2x8x1xf32> to vector<2x8x8xf32>
    %92 = arith.subf %88, %91 : vector<2x8x8xf32>
    %93 = math.exp %92 : vector<2x8x8xf32>
    %cst_34 = arith.constant dense<0.000000e+00> : vector<2x8xf32>
    %94 = vector.multi_reduction <add>, %93, %cst_34 [2] : vector<2x8x8xf32> to vector<2x8xf32>
    %95 = vector.shape_cast %94 : vector<2x8xf32> to vector<2x8x1xf32>
    %96 = tpu.reciprocal %95 {approx = true} : vector<2x8x1xf32> -> vector<2x8x1xf32>
    %97 = vector.broadcast %96 : vector<2x8x1xf32> to vector<2x8x8xf32>
    %98 = arith.mulf %93, %97 : vector<2x8x8xf32>
    %99 = arith.truncf %98 : vector<2x8x8xf32> to vector<2x8x8xbf16>
    %100 = arith.truncf %79 : vector<2x8x128xf32> to vector<2x8x128xbf16>
    "tpu.trace_start"() <{level = 10 : i32, message = "bqk,bkd->bqd"}> : () -> ()
    %cst_35 = arith.constant dense<0.000000e+00> : vector<2x8x128xf32>
    %101 = tpu.matmul %99, %100, %cst_35 {dimension_numbers = #tpu.dot_dimension_numbers<[2], [1], [1], [2], [0, 0, 0, 1, 1, 2], [0], [0]>} : vector<2x8x8xbf16>, vector<2x8x128xbf16>, vector<2x8x128xf32> -> vector<2x8x128xf32>
    "tpu.trace_stop"() : () -> ()
    %102 = vector.shape_cast %101 : vector<2x8x128xf32> to vector<16x128xf32>
    %c0_36 = arith.constant 0 : index
    %c128_37 = arith.constant 128 : index
    %103 = vector.load %arg14[%c0_36, %c128_37] : memref<16x768xf32, #tpu.memory_space<vmem>>, vector<16x128xf32>
    tpu.vector_store %arg14[%c0_36, %c128_37], %102 {strides = array<i32>} : memref<16x768xf32, #tpu.memory_space<vmem>>, vector<16x128xf32>,
    %c0_38 = arith.constant 0 : index
    %c256 = arith.constant 256 : index
    %104 = vector.load %arg13[%c0_38, %c256] : memref<16x2304xf32, #tpu.memory_space<vmem>>, vector<16x128xf32>
    %c0_39 = arith.constant 0 : index
    %c1024 = arith.constant 1024 : index
    %105 = vector.load %arg13[%c0_39, %c1024] : memref<16x2304xf32, #tpu.memory_space<vmem>>, vector<16x128xf32>
    %c0_40 = arith.constant 0 : index
    %c1792 = arith.constant 1792 : index
    %106 = vector.load %arg13[%c0_40, %c1792] : memref<16x2304xf32, #tpu.memory_space<vmem>>, vector<16x128xf32>
    %107 = vector.shape_cast %104 : vector<16x128xf32> to vector<2x8x128xf32>
    %108 = vector.shape_cast %105 : vector<16x128xf32> to vector<2x8x128xf32>
    %109 = vector.shape_cast %106 : vector<16x128xf32> to vector<2x8x128xf32>
    %110 = arith.truncf %107 : vector<2x8x128xf32> to vector<2x8x128xbf16>
    %111 = arith.truncf %108 : vector<2x8x128xf32> to vector<2x8x128xbf16>
    "tpu.trace_start"() <{level = 10 : i32, message = "bqd,bkd->bqk"}> : () -> ()
    %cst_41 = arith.constant dense<0.000000e+00> : vector<2x8x8xf32>
    %112 = tpu.matmul %110, %111, %cst_41 {dimension_numbers = #tpu.dot_dimension_numbers<[2], [2], [1], [1], [0, 0, 0, 1, 1, 1], [0], [0]>} : vector<2x8x128xbf16>, vector<2x8x128xbf16>, vector<2x8x8xf32> -> vector<2x8x8xf32>
    "tpu.trace_stop"() : () -> ()
    %cst_42 = arith.constant 1.250000e-01 : f32
    %113 = vector.broadcast %cst_42 : f32 to vector<2x8x8xf32>
    %114 = arith.mulf %112, %113 : vector<2x8x8xf32>
    %cst_43 = arith.constant -1.000000e+30 : f32
    %115 = vector.shape_cast %43 : vector<8x8xi1> to vector<1x8x8xi1>
    %116 = vector.broadcast %115 : vector<1x8x8xi1> to vector<2x8x8xi1>
    %117 = vector.broadcast %cst_43 : f32 to vector<2x8x8xf32>
    %118 = arith.select %116, %114, %117 : vector<2x8x8xi1>, vector<2x8x8xf32>
    %cst_44 = arith.constant dense<0xFF800000> : vector<2x8xf32>
    %119 = vector.multi_reduction <maximumf>, %118, %cst_44 [2] : vector<2x8x8xf32> to vector<2x8xf32>
    %120 = vector.shape_cast %119 : vector<2x8xf32> to vector<2x8x1xf32>
    %121 = vector.broadcast %120 : vector<2x8x1xf32> to vector<2x8x8xf32>
    %122 = arith.subf %118, %121 : vector<2x8x8xf32>
    %123 = math.exp %122 : vector<2x8x8xf32>
    %cst_45 = arith.constant dense<0.000000e+00> : vector<2x8xf32>
    %124 = vector.multi_reduction <add>, %123, %cst_45 [2] : vector<2x8x8xf32> to vector<2x8xf32>
    %125 = vector.shape_cast %124 : vector<2x8xf32> to vector<2x8x1xf32>
    %126 = tpu.reciprocal %125 {approx = true} : vector<2x8x1xf32> -> vector<2x8x1xf32>
    %127 = vector.broadcast %126 : vector<2x8x1xf32> to vector<2x8x8xf32>
    %128 = arith.mulf %123, %127 : vector<2x8x8xf32>
    %129 = arith.truncf %128 : vector<2x8x8xf32> to vector<2x8x8xbf16>
    %130 = arith.truncf %109 : vector<2x8x128xf32> to vector<2x8x128xbf16>
    "tpu.trace_start"() <{level = 10 : i32, message = "bqk,bkd->bqd"}> : () -> ()
    %cst_46 = arith.constant dense<0.000000e+00> : vector<2x8x128xf32>
    %131 = tpu.matmul %129, %130, %cst_46 {dimension_numbers = #tpu.dot_dimension_numbers<[2], [1], [1], [2], [0, 0, 0, 1, 1, 2], [0], [0]>} : vector<2x8x8xbf16>, vector<2x8x128xbf16>, vector<2x8x128xf32> -> vector<2x8x128xf32>
    "tpu.trace_stop"() : () -> ()
    %132 = vector.shape_cast %131 : vector<2x8x128xf32> to vector<16x128xf32>
    %c0_47 = arith.constant 0 : index
    %c256_48 = arith.constant 256 : index
    %133 = vector.load %arg14[%c0_47, %c256_48] : memref<16x768xf32, #tpu.memory_space<vmem>>, vector<16x128xf32>
    tpu.vector_store %arg14[%c0_47, %c256_48], %132 {strides = array<i32>} : memref<16x768xf32, #tpu.memory_space<vmem>>, vector<16x128xf32>,
    %c0_49 = arith.constant 0 : index
    %c384 = arith.constant 384 : index
    %134 = vector.load %arg13[%c0_49, %c384] : memref<16x2304xf32, #tpu.memory_space<vmem>>, vector<16x128xf32>
    %c0_50 = arith.constant 0 : index
    %c1152 = arith.constant 1152 : index
    %135 = vector.load %arg13[%c0_50, %c1152] : memref<16x2304xf32, #tpu.memory_space<vmem>>, vector<16x128xf32>
    %c0_51 = arith.constant 0 : index
    %c1920 = arith.constant 1920 : index
    %136 = vector.load %arg13[%c0_51, %c1920] : memref<16x2304xf32, #tpu.memory_space<vmem>>, vector<16x128xf32>
    %137 = vector.shape_cast %134 : vector<16x128xf32> to vector<2x8x128xf32>
    %138 = vector.shape_cast %135 : vector<16x128xf32> to vector<2x8x128xf32>
    %139 = vector.shape_cast %136 : vector<16x128xf32> to vector<2x8x128xf32>
    %140 = arith.truncf %137 : vector<2x8x128xf32> to vector<2x8x128xbf16>
    %141 = arith.truncf %138 : vector<2x8x128xf32> to vector<2x8x128xbf16>
    "tpu.trace_start"() <{level = 10 : i32, message = "bqd,bkd->bqk"}> : () -> ()
    %cst_52 = arith.constant dense<0.000000e+00> : vector<2x8x8xf32>
    %142 = tpu.matmul %140, %141, %cst_52 {dimension_numbers = #tpu.dot_dimension_numbers<[2], [2], [1], [1], [0, 0, 0, 1, 1, 1], [0], [0]>} : vector<2x8x128xbf16>, vector<2x8x128xbf16>, vector<2x8x8xf32> -> vector<2x8x8xf32>
    "tpu.trace_stop"() : () -> ()
    %cst_53 = arith.constant 1.250000e-01 : f32
    %143 = vector.broadcast %cst_53 : f32 to vector<2x8x8xf32>
    %144 = arith.mulf %142, %143 : vector<2x8x8xf32>
    %cst_54 = arith.constant -1.000000e+30 : f32
    %145 = vector.shape_cast %43 : vector<8x8xi1> to vector<1x8x8xi1>
    %146 = vector.broadcast %145 : vector<1x8x8xi1> to vector<2x8x8xi1>
    %147 = vector.broadcast %cst_54 : f32 to vector<2x8x8xf32>
    %148 = arith.select %146, %144, %147 : vector<2x8x8xi1>, vector<2x8x8xf32>
    %cst_55 = arith.constant dense<0xFF800000> : vector<2x8xf32>
    %149 = vector.multi_reduction <maximumf>, %148, %cst_55 [2] : vector<2x8x8xf32> to vector<2x8xf32>
    %150 = vector.shape_cast %149 : vector<2x8xf32> to vector<2x8x1xf32>
    %151 = vector.broadcast %150 : vector<2x8x1xf32> to vector<2x8x8xf32>
    %152 = arith.subf %148, %151 : vector<2x8x8xf32>
    %153 = math.exp %152 : vector<2x8x8xf32>
    %cst_56 = arith.constant dense<0.000000e+00> : vector<2x8xf32>
    %154 = vector.multi_reduction <add>, %153, %cst_56 [2] : vector<2x8x8xf32> to vector<2x8xf32>
    %155 = vector.shape_cast %154 : vector<2x8xf32> to vector<2x8x1xf32>
    %156 = tpu.reciprocal %155 {approx = true} : vector<2x8x1xf32> -> vector<2x8x1xf32>
    %157 = vector.broadcast %156 : vector<2x8x1xf32> to vector<2x8x8xf32>
    %158 = arith.mulf %153, %157 : vector<2x8x8xf32>
    %159 = arith.truncf %158 : vector<2x8x8xf32> to vector<2x8x8xbf16>
    %160 = arith.truncf %139 : vector<2x8x128xf32> to vector<2x8x128xbf16>
    "tpu.trace_start"() <{level = 10 : i32, message = "bqk,bkd->bqd"}> : () -> ()
    %cst_57 = arith.constant dense<0.000000e+00> : vector<2x8x128xf32>
    %161 = tpu.matmul %159, %160, %cst_57 {dimension_numbers = #tpu.dot_dimension_numbers<[2], [1], [1], [2], [0, 0, 0, 1, 1, 2], [0], [0]>} : vector<2x8x8xbf16>, vector<2x8x128xbf16>, vector<2x8x128xf32> -> vector<2x8x128xf32>
    "tpu.trace_stop"() : () -> ()
    %162 = vector.shape_cast %161 : vector<2x8x128xf32> to vector<16x128xf32>
    %c0_58 = arith.constant 0 : index
    %c384_59 = arith.constant 384 : index
    %163 = vector.load %arg14[%c0_58, %c384_59] : memref<16x768xf32, #tpu.memory_space<vmem>>, vector<16x128xf32>
    tpu.vector_store %arg14[%c0_58, %c384_59], %162 {strides = array<i32>} : memref<16x768xf32, #tpu.memory_space<vmem>>, vector<16x128xf32>,
    %c0_60 = arith.constant 0 : index
    %c512 = arith.constant 512 : index
    %164 = vector.load %arg13[%c0_60, %c512] : memref<16x2304xf32, #tpu.memory_space<vmem>>, vector<16x128xf32>
    %c0_61 = arith.constant 0 : index
    %c1280 = arith.constant 1280 : index
    %165 = vector.load %arg13[%c0_61, %c1280] : memref<16x2304xf32, #tpu.memory_space<vmem>>, vector<16x128xf32>
    %c0_62 = arith.constant 0 : index
    %c2048 = arith.constant 2048 : index
    %166 = vector.load %arg13[%c0_62, %c2048] : memref<16x2304xf32, #tpu.memory_space<vmem>>, vector<16x128xf32>
    %167 = vector.shape_cast %164 : vector<16x128xf32> to vector<2x8x128xf32>
    %168 = vector.shape_cast %165 : vector<16x128xf32> to vector<2x8x128xf32>
    %169 = vector.shape_cast %166 : vector<16x128xf32> to vector<2x8x128xf32>
    %170 = arith.truncf %167 : vector<2x8x128xf32> to vector<2x8x128xbf16>
    %171 = arith.truncf %168 : vector<2x8x128xf32> to vector<2x8x128xbf16>
    "tpu.trace_start"() <{level = 10 : i32, message = "bqd,bkd->bqk"}> : () -> ()
    %cst_63 = arith.constant dense<0.000000e+00> : vector<2x8x8xf32>
    %172 = tpu.matmul %170, %171, %cst_63 {dimension_numbers = #tpu.dot_dimension_numbers<[2], [2], [1], [1], [0, 0, 0, 1, 1, 1], [0], [0]>} : vector<2x8x128xbf16>, vector<2x8x128xbf16>, vector<2x8x8xf32> -> vector<2x8x8xf32>
    "tpu.trace_stop"() : () -> ()
    %cst_64 = arith.constant 1.250000e-01 : f32
    %173 = vector.broadcast %cst_64 : f32 to vector<2x8x8xf32>
    %174 = arith.mulf %172, %173 : vector<2x8x8xf32>
    %cst_65 = arith.constant -1.000000e+30 : f32
    %175 = vector.shape_cast %43 : vector<8x8xi1> to vector<1x8x8xi1>
    %176 = vector.broadcast %175 : vector<1x8x8xi1> to vector<2x8x8xi1>
    %177 = vector.broadcast %cst_65 : f32 to vector<2x8x8xf32>
    %178 = arith.select %176, %174, %177 : vector<2x8x8xi1>, vector<2x8x8xf32>
    %cst_66 = arith.constant dense<0xFF800000> : vector<2x8xf32>
    %179 = vector.multi_reduction <maximumf>, %178, %cst_66 [2] : vector<2x8x8xf32> to vector<2x8xf32>
    %180 = vector.shape_cast %179 : vector<2x8xf32> to vector<2x8x1xf32>
    %181 = vector.broadcast %180 : vector<2x8x1xf32> to vector<2x8x8xf32>
    %182 = arith.subf %178, %181 : vector<2x8x8xf32>
    %183 = math.exp %182 : vector<2x8x8xf32>
    %cst_67 = arith.constant dense<0.000000e+00> : vector<2x8xf32>
    %184 = vector.multi_reduction <add>, %183, %cst_67 [2] : vector<2x8x8xf32> to vector<2x8xf32>
    %185 = vector.shape_cast %184 : vector<2x8xf32> to vector<2x8x1xf32>
    %186 = tpu.reciprocal %185 {approx = true} : vector<2x8x1xf32> -> vector<2x8x1xf32>
    %187 = vector.broadcast %186 : vector<2x8x1xf32> to vector<2x8x8xf32>
    %188 = arith.mulf %183, %187 : vector<2x8x8xf32>
    %189 = arith.truncf %188 : vector<2x8x8xf32> to vector<2x8x8xbf16>
    %190 = arith.truncf %169 : vector<2x8x128xf32> to vector<2x8x128xbf16>
    "tpu.trace_start"() <{level = 10 : i32, message = "bqk,bkd->bqd"}> : () -> ()
    %cst_68 = arith.constant dense<0.000000e+00> : vector<2x8x128xf32>
    %191 = tpu.matmul %189, %190, %cst_68 {dimension_numbers = #tpu.dot_dimension_numbers<[2], [1], [1], [2], [0, 0, 0, 1, 1, 2], [0], [0]>} : vector<2x8x8xbf16>, vector<2x8x128xbf16>, vector<2x8x128xf32> -> vector<2x8x128xf32>
    "tpu.trace_stop"() : () -> ()
    %192 = vector.shape_cast %191 : vector<2x8x128xf32> to vector<16x128xf32>
    %c0_69 = arith.constant 0 : index
    %c512_70 = arith.constant 512 : index
    %193 = vector.load %arg14[%c0_69, %c512_70] : memref<16x768xf32, #tpu.memory_space<vmem>>, vector<16x128xf32>
    tpu.vector_store %arg14[%c0_69, %c512_70], %192 {strides = array<i32>} : memref<16x768xf32, #tpu.memory_space<vmem>>, vector<16x128xf32>,
    %c0_71 = arith.constant 0 : index
    %c640 = arith.constant 640 : index
    %194 = vector.load %arg13[%c0_71, %c640] : memref<16x2304xf32, #tpu.memory_space<vmem>>, vector<16x128xf32>
    %c0_72 = arith.constant 0 : index
    %c1408 = arith.constant 1408 : index
    %195 = vector.load %arg13[%c0_72, %c1408] : memref<16x2304xf32, #tpu.memory_space<vmem>>, vector<16x128xf32>
    %c0_73 = arith.constant 0 : index
    %c2176 = arith.constant 2176 : index
    %196 = vector.load %arg13[%c0_73, %c2176] : memref<16x2304xf32, #tpu.memory_space<vmem>>, vector<16x128xf32>
    %197 = vector.shape_cast %194 : vector<16x128xf32> to vector<2x8x128xf32>
    %198 = vector.shape_cast %195 : vector<16x128xf32> to vector<2x8x128xf32>
    %199 = vector.shape_cast %196 : vector<16x128xf32> to vector<2x8x128xf32>
    %200 = arith.truncf %197 : vector<2x8x128xf32> to vector<2x8x128xbf16>
    %201 = arith.truncf %198 : vector<2x8x128xf32> to vector<2x8x128xbf16>
    "tpu.trace_start"() <{level = 10 : i32, message = "bqd,bkd->bqk"}> : () -> ()
    %cst_74 = arith.constant dense<0.000000e+00> : vector<2x8x8xf32>
    %202 = tpu.matmul %200, %201, %cst_74 {dimension_numbers = #tpu.dot_dimension_numbers<[2], [2], [1], [1], [0, 0, 0, 1, 1, 1], [0], [0]>} : vector<2x8x128xbf16>, vector<2x8x128xbf16>, vector<2x8x8xf32> -> vector<2x8x8xf32>
    "tpu.trace_stop"() : () -> ()
    %cst_75 = arith.constant 1.250000e-01 : f32
    %203 = vector.broadcast %cst_75 : f32 to vector<2x8x8xf32>
    %204 = arith.mulf %202, %203 : vector<2x8x8xf32>
    %cst_76 = arith.constant -1.000000e+30 : f32
    %205 = vector.shape_cast %43 : vector<8x8xi1> to vector<1x8x8xi1>
    %206 = vector.broadcast %205 : vector<1x8x8xi1> to vector<2x8x8xi1>
    %207 = vector.broadcast %cst_76 : f32 to vector<2x8x8xf32>
    %208 = arith.select %206, %204, %207 : vector<2x8x8xi1>, vector<2x8x8xf32>
    %cst_77 = arith.constant dense<0xFF800000> : vector<2x8xf32>
    %209 = vector.multi_reduction <maximumf>, %208, %cst_77 [2] : vector<2x8x8xf32> to vector<2x8xf32>
    %210 = vector.shape_cast %209 : vector<2x8xf32> to vector<2x8x1xf32>
    %211 = vector.broadcast %210 : vector<2x8x1xf32> to vector<2x8x8xf32>
    %212 = arith.subf %208, %211 : vector<2x8x8xf32>
    %213 = math.exp %212 : vector<2x8x8xf32>
    %cst_78 = arith.constant dense<0.000000e+00> : vector<2x8xf32>
    %214 = vector.multi_reduction <add>, %213, %cst_78 [2] : vector<2x8x8xf32> to vector<2x8xf32>
    %215 = vector.shape_cast %214 : vector<2x8xf32> to vector<2x8x1xf32>
    %216 = tpu.reciprocal %215 {approx = true} : vector<2x8x1xf32> -> vector<2x8x1xf32>
    %217 = vector.broadcast %216 : vector<2x8x1xf32> to vector<2x8x8xf32>
    %218 = arith.mulf %213, %217 : vector<2x8x8xf32>
    %219 = arith.truncf %218 : vector<2x8x8xf32> to vector<2x8x8xbf16>
    %220 = arith.truncf %199 : vector<2x8x128xf32> to vector<2x8x128xbf16>
    "tpu.trace_start"() <{level = 10 : i32, message = "bqk,bkd->bqd"}> : () -> ()
    %cst_79 = arith.constant dense<0.000000e+00> : vector<2x8x128xf32>
    %221 = tpu.matmul %219, %220, %cst_79 {dimension_numbers = #tpu.dot_dimension_numbers<[2], [1], [1], [2], [0, 0, 0, 1, 1, 2], [0], [0]>} : vector<2x8x8xbf16>, vector<2x8x128xbf16>, vector<2x8x128xf32> -> vector<2x8x128xf32>
    "tpu.trace_stop"() : () -> ()
    %222 = vector.shape_cast %221 : vector<2x8x128xf32> to vector<16x128xf32>
    %c0_80 = arith.constant 0 : index
    %c640_81 = arith.constant 640 : index
    %223 = vector.load %arg14[%c0_80, %c640_81] : memref<16x768xf32, #tpu.memory_space<vmem>>, vector<16x128xf32>
    tpu.vector_store %arg14[%c0_80, %c640_81], %222 {strides = array<i32>} : memref<16x768xf32, #tpu.memory_space<vmem>>, vector<16x128xf32>,
    %c0_82 = arith.constant 0 : index
    %c0_83 = arith.constant 0 : index
    %224 = vector.load %arg14[%c0_82, %c0_83] : memref<16x768xf32, #tpu.memory_space<vmem>>, vector<16x768xf32>
    %c0_84 = arith.constant 0 : index
    %c0_85 = arith.constant 0 : index
    %c0_86 = arith.constant 0 : index
    %225 = vector.load %arg5[%c0_84, %c0_85, %c0_86] : memref<1x768x384xbf16, #tpu.memory_space<vmem>>, vector<1x768x384xbf16>
    %226 = vector.shape_cast %225 : vector<1x768x384xbf16> to vector<768x384xbf16>
    %227 = arith.truncf %224 : vector<16x768xf32> to vector<16x768xbf16>
    %cst_87 = arith.constant dense<0.000000e+00> : vector<16x384xf32>
    %228 = tpu.matmul %227, %226, %cst_87 {dimension_numbers = #tpu.dot_dimension_numbers<[1], [0], [0], [1], [0, 0, 1, 1], [], []>} : vector<16x768xbf16>, vector<768x384xbf16>, vector<16x384xf32> -> vector<16x384xf32>
    %229 = vector.broadcast %9 : vector<1x384xf32> to vector<16x384xf32>
    %230 = arith.addf %228, %229 : vector<16x384xf32>
    %231 = arith.addf %13, %230 : vector<16x384xf32>
    %cst_88 = arith.constant dense<0.000000e+00> : vector<16xf32>
    %232 = vector.multi_reduction <add>, %231, %cst_88 [1] : vector<16x384xf32> to vector<16xf32>
    %233 = vector.shape_cast %232 : vector<16xf32> to vector<16x1xf32>
    %cst_89 = arith.constant 3.840000e+02 : f32
    %234 = vector.broadcast %cst_89 : f32 to vector<16x1xf32>
    %235 = arith.divf %233, %234 : vector<16x1xf32>
    %236 = vector.broadcast %235 : vector<16x1xf32> to vector<16x384xf32>
    %237 = arith.subf %231, %236 : vector<16x384xf32>
    %238 = arith.mulf %237, %237 : vector<16x384xf32>
    %cst_90 = arith.constant dense<0.000000e+00> : vector<16xf32>
    %239 = vector.multi_reduction <add>, %238, %cst_90 [1] : vector<16x384xf32> to vector<16xf32>
    %240 = vector.shape_cast %239 : vector<16xf32> to vector<16x1xf32>
    %cst_91 = arith.constant 3.840000e+02 : f32
    %241 = vector.broadcast %cst_91 : f32 to vector<16x1xf32>
    %242 = arith.divf %240, %241 : vector<16x1xf32>
    %cst_92 = arith.constant 9.99999997E-7 : f32
    %243 = vector.broadcast %cst_92 : f32 to vector<16x1xf32>
    %244 = arith.addf %242, %243 : vector<16x1xf32>
    %245 = math.rsqrt %244 : vector<16x1xf32>
    %246 = vector.broadcast %245 : vector<16x1xf32> to vector<16x384xf32>
    %247 = arith.mulf %237, %246 : vector<16x384xf32>
    %248 = vector.broadcast %7 : vector<1x384xf32> to vector<16x384xf32>
    %249 = arith.mulf %247, %248 : vector<16x384xf32>
    %250 = vector.broadcast %8 : vector<1x384xf32> to vector<16x384xf32>
    %251 = arith.addf %249, %250 : vector<16x384xf32>
    %c0_93 = arith.constant 0 : index
    %c0_94 = arith.constant 0 : index
    %c0_95 = arith.constant 0 : index
    %252 = vector.load %arg6[%c0_93, %c0_94, %c0_95] : memref<1x384x1536xbf16, #tpu.memory_space<vmem>>, vector<1x384x1536xbf16>
    %253 = vector.shape_cast %252 : vector<1x384x1536xbf16> to vector<384x1536xbf16>
    %254 = arith.truncf %251 : vector<16x384xf32> to vector<16x384xbf16>
    %cst_96 = arith.constant dense<0.000000e+00> : vector<16x1536xf32>
    %255 = tpu.matmul %254, %253, %cst_96 {dimension_numbers = #tpu.dot_dimension_numbers<[1], [0], [0], [1], [0, 0, 1, 1], [], []>} : vector<16x384xbf16>, vector<384x1536xbf16>, vector<16x1536xf32> -> vector<16x1536xf32>
    %256 = vector.broadcast %12 : vector<1x1536xf32> to vector<16x1536xf32>
    %257 = arith.addf %255, %256 : vector<16x1536xf32>
    %cst_97 = arith.constant 5.000000e-01 : f32
    %258 = vector.broadcast %cst_97 : f32 to vector<16x1536xf32>
    %259 = arith.mulf %258, %257 : vector<16x1536xf32>
    %cst_98 = arith.constant 0.707106769 : f32
    %260 = vector.broadcast %cst_98 : f32 to vector<16x1536xf32>
    %261 = arith.mulf %257, %260 : vector<16x1536xf32>
    %262 = math.erf %261 : vector<16x1536xf32>
    %cst_99 = arith.constant 1.000000e+00 : f32
    %263 = vector.broadcast %cst_99 : f32 to vector<16x1536xf32>
    %264 = arith.addf %263, %262 : vector<16x1536xf32>
    %265 = arith.mulf %259, %264 : vector<16x1536xf32>
    %c0_100 = arith.constant 0 : index
    %c0_101 = arith.constant 0 : index
    %c0_102 = arith.constant 0 : index
    %266 = vector.load %arg7[%c0_100, %c0_101, %c0_102] : memref<1x1536x384xbf16, #tpu.memory_space<vmem>>, vector<1x1536x384xbf16>
    %267 = vector.shape_cast %266 : vector<1x1536x384xbf16> to vector<1536x384xbf16>
    %268 = arith.truncf %265 : vector<16x1536xf32> to vector<16x1536xbf16>
    %cst_103 = arith.constant dense<0.000000e+00> : vector<16x384xf32>
    %269 = tpu.matmul %268, %267, %cst_103 {dimension_numbers = #tpu.dot_dimension_numbers<[1], [0], [0], [1], [0, 0, 1, 1], [], []>} : vector<16x1536xbf16>, vector<1536x384xbf16>, vector<16x384xf32> -> vector<16x384xf32>
    %270 = vector.broadcast %10 : vector<1x384xf32> to vector<16x384xf32>
    %271 = arith.addf %269, %270 : vector<16x384xf32>
    %272 = arith.addf %231, %271 : vector<16x384xf32>
    %c0_104 = arith.constant 0 : index
    %c0_105 = arith.constant 0 : index
    %273 = vector.load %arg12[%c0_104, %c0_105] : memref<16x384xf32, #tpu.memory_space<vmem>>, vector<16x384xf32>
    tpu.vector_store %arg12[%c0_104, %c0_105], %272 {strides = array<i32>} : memref<16x384xf32, #tpu.memory_space<vmem>>, vector<16x384xf32>,
    %c1_i32 = arith.constant 1 : i32
    %274 = arith.cmpi eq, %arg0, %c1_i32 : i32
    %275 = arith.extui %274 : i1 to i32
    %c0_i32_106 = arith.constant 0 : i32
    %276 = arith.cmpi ne, %275, %c0_i32_106 : i32
    scf.if %276 {
      %c0_107 = arith.constant 0 : index
      %c0_108 = arith.constant 0 : index
      %277 = vector.load %arg9[%c0_107, %c0_108] : memref<1x384xf32, #tpu.memory_space<vmem>>, vector<1x384xf32>
      %c0_109 = arith.constant 0 : index
      %c0_110 = arith.constant 0 : index
      %278 = vector.load %arg10[%c0_109, %c0_110] : memref<1x384xf32, #tpu.memory_space<vmem>>, vector<1x384xf32>
      %cst_111 = arith.constant dense<0.000000e+00> : vector<16xf32>
      %279 = vector.multi_reduction <add>, %272, %cst_111 [1] : vector<16x384xf32> to vector<16xf32>
      %280 = vector.shape_cast %279 : vector<16xf32> to vector<16x1xf32>
      %cst_112 = arith.constant 3.840000e+02 : f32
      %281 = vector.broadcast %cst_112 : f32 to vector<16x1xf32>
      %282 = arith.divf %280, %281 : vector<16x1xf32>
      %283 = vector.broadcast %282 : vector<16x1xf32> to vector<16x384xf32>
      %284 = arith.subf %272, %283 : vector<16x384xf32>
      %285 = arith.mulf %284, %284 : vector<16x384xf32>
      %cst_113 = arith.constant dense<0.000000e+00> : vector<16xf32>
      %286 = vector.multi_reduction <add>, %285, %cst_113 [1] : vector<16x384xf32> to vector<16xf32>
      %287 = vector.shape_cast %286 : vector<16xf32> to vector<16x1xf32>
      %cst_114 = arith.constant 3.840000e+02 : f32
      %288 = vector.broadcast %cst_114 : f32 to vector<16x1xf32>
      %289 = arith.divf %287, %288 : vector<16x1xf32>
      %cst_115 = arith.constant 9.99999997E-7 : f32
      %290 = vector.broadcast %cst_115 : f32 to vector<16x1xf32>
      %291 = arith.addf %289, %290 : vector<16x1xf32>
      %292 = math.rsqrt %291 : vector<16x1xf32>
      %293 = vector.broadcast %292 : vector<16x1xf32> to vector<16x384xf32>
      %294 = arith.mulf %284, %293 : vector<16x384xf32>
      %295 = vector.broadcast %277 : vector<1x384xf32> to vector<16x384xf32>
      %296 = arith.mulf %294, %295 : vector<16x384xf32>
      %297 = vector.broadcast %278 : vector<1x384xf32> to vector<16x384xf32>
      %298 = arith.addf %296, %297 : vector<16x384xf32>
      %c0_116 = arith.constant 0 : index
      %c0_117 = arith.constant 0 : index
      %299 = vector.load %arg11[%c0_116, %c0_117] : memref<16x384xf32, #tpu.memory_space<vmem>>, vector<16x384xf32>
      tpu.vector_store %arg11[%c0_116, %c0_117], %298 {strides = array<i32>} : memref<16x384xf32, #tpu.memory_space<vmem>>, vector<16x384xf32>,
    } else {
    }
    return
  }
  func.func @transform_0(%arg0: i32) -> (i32, i32) {
    %c0_i32 = arith.constant 0 : i32
    %c0_i32_0 = arith.constant 0 : i32
    %c0_i32_1 = arith.constant 0 : i32
    return %c0_i32, %c0_i32_0 : i32, i32
  }
  func.func @transform_1(%arg0: i32) -> (i32, i32) {
    %c0_i32 = arith.constant 0 : i32
    %c0_i32_0 = arith.constant 0 : i32
    %c0_i32_1 = arith.constant 0 : i32
    return %c0_i32, %c0_i32_0 : i32, i32
  }
  func.func @transform_2(%arg0: i32) -> (i32, i32) {
    %c0_i32 = arith.constant 0 : i32
    %c0_i32_0 = arith.constant 0 : i32
    %c0_i32_1 = arith.constant 0 : i32
    return %c0_i32, %c0_i32_0 : i32, i32
  }
  func.func @transform_3(%arg0: i32) -> (i32, i32, i32) {
    %c0_i32 = arith.constant 0 : i32
    %c0_i32_0 = arith.constant 0 : i32
    %c0_i32_1 = arith.constant 0 : i32
    return %arg0, %c0_i32, %c0_i32_0 : i32, i32, i32
  }
  func.func @transform_4(%arg0: i32) -> (i32, i32, i32) {
    %c0_i32 = arith.constant 0 : i32
    %c0_i32_0 = arith.constant 0 : i32
    %c0_i32_1 = arith.constant 0 : i32
    return %arg0, %c0_i32, %c0_i32_0 : i32, i32, i32
  }
  func.func @transform_5(%arg0: i32) -> (i32, i32, i32) {
    %c0_i32 = arith.constant 0 : i32
    %c0_i32_0 = arith.constant 0 : i32
    %c0_i32_1 = arith.constant 0 : i32
    return %arg0, %c0_i32, %c0_i32_0 : i32, i32, i32
  }
  func.func @transform_6(%arg0: i32) -> (i32, i32, i32) {
    %c0_i32 = arith.constant 0 : i32
    %c0_i32_0 = arith.constant 0 : i32
    %c0_i32_1 = arith.constant 0 : i32
    return %arg0, %c0_i32, %c0_i32_0 : i32, i32, i32
  }
  func.func @transform_7(%arg0: i32) -> (i32, i32, i32) {
    %c0_i32 = arith.constant 0 : i32
    %c0_i32_0 = arith.constant 0 : i32
    %c0_i32_1 = arith.constant 0 : i32
    return %arg0, %c0_i32, %c0_i32_0 : i32, i32, i32
  }
  func.func @transform_8(%arg0: i32) -> (i32, i32) {
    %c0_i32 = arith.constant 0 : i32
    %c0_i32_0 = arith.constant 0 : i32
    %c0_i32_1 = arith.constant 0 : i32
    return %c0_i32, %c0_i32_0 : i32, i32
  }
  func.func @transform_9(%arg0: i32) -> (i32, i32) {
    %c0_i32 = arith.constant 0 : i32
    %c0_i32_0 = arith.constant 0 : i32
    %c0_i32_1 = arith.constant 0 : i32
    return %c0_i32, %c0_i32_0 : i32, i32
  }
  func.func @transform_10(%arg0: i32) -> (i32, i32) {
    %c0_i32 = arith.constant 0 : i32
    %c0_i32_0 = arith.constant 0 : i32
    %c0_i32_1 = arith.constant 0 : i32
    return %c0_i32, %c0_i32_0 : i32, i32
  }
}

</mosaic_0001>

<bundles_post_ra>
// kernel: mvp_encoder_forward.1
= control target key start
LH: loop header
LB: loop body
LE: loop exit
PB: predicated region body
PF: predicated region fallthrough
CT: control target
= control target key end

     0   :  { %s19692_s0 = inlined_call_operand.vmem [shape: f32[16,768], index: 0, kind: input, shape index: {}]   ;;  %s19693_s1 = inlined_call_operand.hbm [shape: bf16[768,384], index: 1, kind: input, shape index: {}]   ;;  %s19694_s2 = inlined_call_operand.vmem [shape: f32[16,384], index: 2, kind: input, shape index: {}]   ;;  %s19695_s3 = inlined_call_operand.hbm [shape: bf16[2,384,2304], index: 3, kind: input, shape index: {}]   ;;  %s19696_s4 = inlined_call_operand.hbm [shape: bf16[2,768,384], index: 4, kind: input, shape index: {}]   ;;  %s19697_s5 = inlined_call_operand.hbm [shape: bf16[2,384,1536], index: 5, kind: input, shape index: {}]   ;;  %s19698_s6 = inlined_call_operand.hbm [shape: bf16[2,1536,384], index: 6, kind: input, shape index: {}]   ;;  %s19699_s7 = inlined_call_operand.hbm [shape: f32[2,8,2304], index: 7, kind: input, shape index: {}]   ;;  %s19700_s8 = inlined_call_operand.hbm [shape: f32[1,384], index: 8, kind: input, shape index: {}]   ;;  %s19701_s9 = inlined_call_operand.hbm [shape: f32[1,384], index: 9, kind: input, shape index: {}]   ;;  %s19702_s10 = inlined_call_operand.vmem [shape: f32[16,384], index: 10, kind: output, shape index: {}]  }
   0x1   :  { %19717 = sst [smem:[#allocation27_spill]] %s19694_s2 }
   0x2   :  { %19718 = sst [smem:[#allocation28_spill]] %s19695_s3 }
   0x3   :  { %19719 = sst [smem:[#allocation29_spill]] %s19700_s8 }
   0x4   :  { %19720 = sst [smem:[#allocation30_spill]] %s19702_s10 }
   0x5   :  { %15 = vsyncpa [#allocation6], 0 }
   0x6   :  { %16 = vsyncpa [#allocation8], 0 }
   0x7   :  { %18 = vsyncpa [#allocation8 + $0x1], 0 }
   0x8   :  { %19 = vsyncpa [#allocation11], 0 }
   0x9   :  { %21 = vsyncpa [#allocation11 + $0x1], 0 }
   0xa   :  { %22 = vsyncpa [#allocation14], 0 }
   0xb   :  { %24 = vsyncpa [#allocation14 + $0x1], 0 }
   0xc   :  { %25 = vsyncpa [#allocation17], 0  ;;  %s17355_s13 = smov 0   ;;  %s17357_s14 = smov 0  }
   0xd   :  { %s17359_s15 = smov 0   ;;  %s17361_s16 = smov 0  }
   0xe LB: > { %19721 = sst [smem:[#allocation24_spill]] %s17277_s15  ;;  %s17374_s17 = sadd.s32 4294967295, %s17281_s16   ;;  %s17281_s16 = sphi %s17361_s16, %s19751_s16   ;;  %s17277_s15 = sphi %s17359_s15, %s19753_s15   ;;  %s17273_s14 = sphi %s17357_s14, %s19755_s14   ;;  %s17269_s13 = sphi %s17355_s13, %s19754_s13  }
   0xf   : > { %s17377_s18 = sadd.s32 1, %s17281_s16   ;;  %s101_s20 = sadd.s32 1, %s17277_s15 }
  0x10   : > { %19722 = sst [smem:[#allocation25_spill]] %s17377_s18  ;;  %s98_s19 = ssub.s32 %s17281_s16, %s17377_s18 }
  0x11   : > { %p99_p0 = scmp.eq.s32.totalorder %s98_s19, 0  ;;  %p108_p1 = scmp.ne.s32.totalorder %s17277_s15, %s17273_s14 }
  0x12   : > { %p109_p2 = scmp.eq.s32.totalorder %s17281_s16, 0  ;;  %p114_p3 = scmp.ne.s32.totalorder %s17273_s14, %s17269_s13 }
  0x13   : > { %s17387_s21 = scalar_select %p99_p0, %s17277_s15, %s101_s20  }
  0x14   : > { %p17389_p4 = por %p109_p2, %p108_p1  ;;  %p19706_p5 = scmp.eq.s32.totalorder %s17374_s17, 0 }
  0x15   : > { %19723 = sst [smem:[#allocation26_spill]] %s17387_s21  ;;  %p13131_p6 = scmp.ge.s32.totalorder %s17281_s16, 1 }
  0x16   : > { %p292_p7 = scmp.lt.s32.totalorder %s17281_s16, 3  ;;  %p17398_p8 = por %p19706_p5, %p114_p3 }
  0x17   : > { %s17283_s25 = smov [#allocation15]   ;;  %p14978_p12 = scmp.lt.s32.totalorder %s17281_s16, 2 }
  0x18   : > { %s19725_s23 = scalar_select %p17398_p8, 1, 0 }
  0x19   : > { %p17403_p10 = pnand %p13131_p6, %p292_p7  ;;  %s324_s26 = sshll.u32 %s17283_s25, 4  ;;  %s325_s26 = int_to_ptr.vmem [resolvable:$true] %s324_s26 }
  0x1a   : > { %s17411_s27 = sand.u32 1, %s17281_s16   ;;  %s17420_s29 = sand.u32 1, %s17277_s15  }
  0x1b   : > { %s19726_s24 = scalar_select %p17403_p10, 1, 0 }
  0x1c   : > { %p14949_p11 = pneg %p17403_p10  ;;  %s14914_s30 = smul.u32 55296, %s17281_s16 }
  0x1d   : > { %s14913_s11 = smul.u32 3456, %s17420_s29  ;;  %s17020_s12 = scalar_lea.vmem %s325_s26, 48 }
  0x1e   : > { %p17415_p13 = pnand %p14949_p11, %p19706_p5  ;;  %p17021_p1 = scmp.ne.s32.totalorder %s325_s26, %s17020_s12 }
  0x1f   : > { %s17027_s13 = scalar_lea.vmem %s325_s26, 64  ;;  %p17028_p6 = scmp.lt.s32.totalorder %s325_s26, %s325_s26 }
  0x20   : > { %s19727_s28 = scalar_select %p17415_p13, 1, 0 }
  0x21   : > { %p19707_p0 = pneg %p17415_p13  ;;  %p17029_p7 = scmp.lt.s32.totalorder %s17027_s13, %s17020_s12 }
  0x23   : > { %p17023_p2 = pnand %p17021_p1, %p19707_p0  ;;  %p17030_p11 = por %p17029_p7, %p17028_p6 }
  0x25   : > { %p17024_p3 = pneg %p17023_p2 }
  0x27   : > { %p17031_p9 = pnand %p17030_p11, %p17024_p3 }
  0x29   : > { %17034 = shalt.err (!%p17031_p9)
}
  0x2a   : > { %s19728_s8 = sld [smem:[#allocation29_spill]]  ;;  %s350_s12 = scalar_lea.vmem [#allocation7], %s14913_s11 }
  0x2b   : > { %s19729_s3 = sld [smem:[#allocation28_spill]]  ;;  %s357_s13 = sshll.u32 %s350_s12, 4  ;;  %s17447_s13 = int_to_ptr.vmem [resolvable:$true] %s357_s13 }
  0x2c   : > { %p17443_p9 = pnand %p14978_p12, %p17389_p4 }
  0x2e   : > { %p17454_p2 = pneg %p17443_p9 }
  0x30   : > { %14955 = dma.hbm_to_vmem [thread:$0]  (!%p17415_p13), %s19728_s8, 48, %s325_s26, [#allocation14]  }
  0x31   : > { %s17437_s15 = scalar_lea.hbm %s19729_s3, %s14914_s30  ;;  %s17040_s11 = scalar_lea.hbm %s19729_s3, 110592 }
  0x32   : > { %s17035_s19 = scalar_lea.hbm %s17437_s15, 55296  ;;  %p17041_p4 = scmp.lt.s32.totalorder %s17437_s15, %s19729_s3 }
  0x33   : > { %p17036_p1 = scmp.ne.s32.totalorder %s17437_s15, %s17035_s19  ;;  %p17042_p12 = scmp.lt.s32.totalorder %s17040_s11, %s17035_s19 }
  0x35   : > { %p17038_p3 = pnand %p17454_p2, %p17036_p1  ;;  %p17043_p7 = por %p17042_p12, %p17041_p4 }
  0x37   : > { %p17039_p6 = pneg %p17038_p3 }
  0x39   : > { %p17044_p11 = pnand %p17043_p7, %p17039_p6 }
  0x3b   : > { %17047 = shalt.err (!%p17044_p11)
}
  0x3c   : > { %s17048_s12 = scalar_lea.vmem %s17447_s13, 55296  ;;  %s17284_s26 = smov [#allocation7]  }
  0x3d   : > { %p17049_p5 = scmp.ne.s32.totalorder %s17447_s13, %s17048_s12  ;;  %s17053_s22 = sshll.u32 %s17284_s26, 4  ;;  %s17054_s22 = int_to_ptr.vmem [resolvable:$false] %s17053_s22 }
  0x3e   : > { %s17055_s30 = scalar_lea.vmem %s17054_s22, 110592  ;;  %p17056_p0 = scmp.lt.s32.totalorder %s17447_s13, %s17054_s22 }
  0x3f   : > { %p17051_p1 = pnand %p17049_p5, %p17454_p2  ;;  %p17057_p8 = scmp.lt.s32.totalorder %s17055_s30, %s17048_s12 }
  0x41   : > { %p17052_p3 = pneg %p17051_p1  ;;  %p17058_p10 = por %p17057_p8, %p17056_p0 }
  0x43   : > { %p17059_p13 = pnand %p17058_p10, %p17052_p3 }
  0x45   : > { %17062 = shalt.err (!%p17059_p13)
}
  0x46   : > { %s17285_s19 = smov 1152   ;;  %s17286_s11 = smov 72  }
  0x47   : > { %s19732_s26 = scalar_lea.sflag [#allocation8], %s17411_s27  ;;  %s19715_s20 = smul.u32 2304, %s17420_s29 }
  0x48   : > { %14962 = dma.hbm_to_vmem [thread:$0]  (!%p17443_p9), %s17437_s15, 55296, %s17447_s13, %s19732_s26, %s17285_s19, %s17285_s19, %s17286_s11  }
  0x49   : > { %s19716_s25 = smul.u32 36864, %s17281_s16  ;;  %s392_s3 = scalar_lea.vmem [#allocation10], %s19715_s20 }
  0x4a   : > { %s399_s8 = sshll.u32 %s392_s3, 4  ;;  %s19714_s10 = scalar_lea.sflag [#allocation11], %s17411_s27  ;;  %s17489_s8 = int_to_ptr.vmem [resolvable:$true] %s399_s8 }
  0x4b   : > { %s17485_s30 = scalar_lea.hbm %s19697_s5, %s19716_s25  ;;  %s17068_s19 = scalar_lea.hbm %s19697_s5, 73728 }
  0x4c   : > { %s17063_s2 = scalar_lea.hbm %s17485_s30, 36864  ;;  %p17069_p13 = scmp.lt.s32.totalorder %s17485_s30, %s19697_s5 }
  0x4d   : > { %p17064_p5 = scmp.ne.s32.totalorder %s17485_s30, %s17063_s2  ;;  %p17070_p0 = scmp.lt.s32.totalorder %s17068_s19, %s17063_s2 }
  0x4f   : > { %p17066_p8 = pnand %p17064_p5, %p17454_p2  ;;  %p17071_p6 = por %p17070_p0, %p17069_p13 }
  0x51   : > { %p17067_p10 = pneg %p17066_p8 }
  0x53   : > { %p17072_p4 = pnand %p17071_p6, %p17067_p10 }
  0x55   : > { %17075 = shalt.err (!%p17072_p4)
}
  0x56   : > { %s17076_s3 = scalar_lea.vmem %s17489_s8, 36864  ;;  %s17287_s12 = smov [#allocation10]  }
  0x57   : > { %p17077_p12 = scmp.ne.s32.totalorder %s17489_s8, %s17076_s3  ;;  %s17081_s22 = sshll.u32 %s17287_s12, 4  ;;  %s17082_s22 = int_to_ptr.vmem [resolvable:$false] %s17081_s22 }
  0x58   : > { %s17083_s15 = scalar_lea.vmem %s17082_s22, 73728  ;;  %p17084_p1 = scmp.lt.s32.totalorder %s17489_s8, %s17082_s22 }
  0x59   : > { %p17079_p7 = pnand %p17077_p12, %p17454_p2  ;;  %p17085_p3 = scmp.lt.s32.totalorder %s17083_s15, %s17076_s3 }
  0x5b   : > { %p17080_p11 = pneg %p17079_p7  ;;  %p17086_p5 = por %p17085_p3, %p17084_p1 }
  0x5d   : > { %p17087_p8 = pnand %p17086_p5, %p17080_p11 }
  0x5f   : > { %17090 = shalt.err (!%p17087_p8)
}
  0x60   : > { %s17288_s2 = smov 768   ;;  %s17289_s13 = smov 48  }
  0x61   : > { %14968 = dma.hbm_to_vmem [thread:$0]  (!%p17443_p9), %s17485_s30, 36864, %s17489_s8, %s19714_s10, %s17288_s2, %s17288_s2, %s17289_s13  }
  0x62   : > { %s17290_s19 = smov [#allocation5]   ;;  %p19733_p13 = scmp.ne.s32.totalorder %s19727_s28, 0 }
  0x63   : > { %s307_s11 = sshll.u32 %s17290_s19, 4  ;;  %s308_s11 = int_to_ptr.vmem [resolvable:$true] %s307_s11 }
  0x64   : > { %s17102_s26 = scalar_lea.vmem %s308_s11, 18432  ;;  %p19734_p0 = pneg %p19733_p13 }
  0x65   : > { %p17103_p10 = scmp.ne.s32.totalorder %s308_s11, %s17102_s26  ;;  %p17110_p12 = scmp.lt.s32.totalorder %s308_s11, %s308_s11 }
  0x66   : > { %p17111_p7 = scmp.lt.s32.totalorder %s17102_s26, %s17102_s26 }
  0x67   : > { %p17105_p6 = pnand %p17103_p10, %p19734_p0 }
  0x68   : > { %p17112_p11 = por %p17111_p7, %p17110_p12 }
  0x69   : > { %p17106_p4 = pneg %p17105_p6 }
  0x6b   : > { %p17113_p1 = pnand %p17112_p11, %p17106_p4 }
  0x6d   : > { %17116 = shalt.err (!%p17113_p1)
}
  0x6e   : > { %s17291_s3 = smov 192   ;;  %s17292_s8 = smov 12  }
  0x6f   : > { %14952 = dma.hbm_to_vmem [thread:$0]  (!%p19733_p13), %s19693_s1, 18432, %s308_s11, [#allocation6], %s17291_s3, %s17291_s3, %s17292_s8  }
  0x70   : > { %s14915_s22 = smul.u32 1152, %s17420_s29  ;;  %s17293_s15 = smov [#allocation16]  }
  0x71   : > { %s335_s2 = sshll.u32 %s17293_s15, 4  ;;  %s14916_s13 = smul.u32 18432, %s17281_s16  ;;  %s336_s2 = int_to_ptr.vmem [resolvable:$true] %s335_s2 }
  0x72   : > { %s17128_s19 = scalar_lea.vmem %s336_s2, 48  ;;  %p19735_p5 = pmov %p19734_p0 }
  0x73   : > { %p17129_p3 = scmp.ne.s32.totalorder %s336_s2, %s17128_s19  ;;  %s17135_s26 = scalar_lea.vmem %s336_s2, 64 }
  0x74   : > { %p17136_p0 = scmp.lt.s32.totalorder %s336_s2, %s336_s2  ;;  %p17137_p6 = scmp.lt.s32.totalorder %s17135_s26, %s17128_s19 }
  0x75   : > { %p17131_p8 = pnand %p17129_p3, %p19735_p5 }
  0x76   : > { %p17138_p4 = por %p17137_p6, %p17136_p0 }
  0x77   : > { %p17132_p10 = pneg %p17131_p8 }
  0x79   : > { %p17139_p12 = pnand %p17138_p4, %p17132_p10 }
  0x7b   : > { %17142 = shalt.err (!%p17139_p12)
}
  0x7c   : > { %14958 = dma.hbm_to_vmem [thread:$0]  (!%p19733_p13), %s19701_s9, 48, %s336_s2, [#allocation17]  }
  0x7d   : > { %s17538_s10 = scalar_lea.hbm %s19696_s4, %s14916_s13  ;;  %s371_s20 = scalar_lea.vmem [#allocation9], %s14915_s22 }
  0x7e   : > { %s378_s19 = sshll.u32 %s371_s20, 4  ;;  %s17143_s26 = scalar_lea.hbm %s17538_s10, 18432  ;;  %s379_s19 = int_to_ptr.vmem [resolvable:$true] %s378_s19 }
  0x7f   : > { %p17144_p7 = scmp.ne.s32.totalorder %s17538_s10, %s17143_s26  ;;  %s17148_s2 = scalar_lea.hbm %s19696_s4, 36864 }
  0x80   : > { %p17149_p13 = scmp.lt.s32.totalorder %s17538_s10, %s19696_s4  ;;  %p17150_p3 = scmp.lt.s32.totalorder %s17148_s2, %s17143_s26 }
  0x81   : > { %p17146_p11 = pnand %p17144_p7, %p17454_p2 }
  0x82   : > { %p17151_p5 = por %p17150_p3, %p17149_p13 }
  0x83   : > { %p17147_p1 = pneg %p17146_p11 }
  0x85   : > { %p17152_p8 = pnand %p17151_p5, %p17147_p1 }
  0x87   : > { %17155 = shalt.err (!%p17152_p8)
}
  0x88   : > { %s17156_s22 = scalar_lea.vmem %s379_s19, 18432  ;;  %s17294_s20 = smov [#allocation9]  }
  0x89   : > { %p17157_p10 = scmp.ne.s32.totalorder %s379_s19, %s17156_s22  ;;  %s17161_s13 = sshll.u32 %s17294_s20, 4  ;;  %s17162_s13 = int_to_ptr.vmem [resolvable:$false] %s17161_s13 }
  0x8a   : > { %s17163_s12 = scalar_lea.vmem %s17162_s13, 36864  ;;  %p17164_p4 = scmp.lt.s32.totalorder %s379_s19, %s17162_s13 }
  0x8b   : > { %p17159_p0 = pnand %p17157_p10, %p17454_p2  ;;  %p17165_p12 = scmp.lt.s32.totalorder %s17163_s12, %s17156_s22 }
  0x8d   : > { %p17160_p6 = pneg %p17159_p0  ;;  %p17166_p7 = por %p17165_p12, %p17164_p4 }
  0x8f   : > { %p17167_p11 = pnand %p17166_p7, %p17160_p6 }
  0x91   : > { %17170 = shalt.err (!%p17167_p11)
}
  0x92   : > { %s19736_s25 = scalar_lea.sflag [#allocation8], %s17411_s27  ;;  %s19737_s15 = smul.u32 36864, %s17281_s16 }
  0x93   : > { %14965 = dma.hbm_to_vmem [thread:$0]  (!%p17443_p9), %s17538_s10, 18432, %s379_s19, %s19736_s25, %s17291_s3, %s17291_s3, %s17292_s8  }
  0x94   : > { %s17566_s11 = scalar_lea.hbm %s19698_s6, %s19737_s15  ;;  %s19738_s2 = smul.u32 2304, %s17420_s29 }
  0x95   : > { %s17171_s20 = scalar_lea.hbm %s17566_s11, 36864  ;;  %s17176_s19 = scalar_lea.hbm %s19698_s6, 73728 }
  0x96   : > { %s413_s30 = scalar_lea.vmem [#allocation12], %s19738_s2  ;;  %p17172_p1 = scmp.ne.s32.totalorder %s17566_s11, %s17171_s20 }
  0x97   : > { %s420_s22 = sshll.u32 %s413_s30, 4  ;;  %p17177_p5 = scmp.lt.s32.totalorder %s17566_s11, %s19698_s6  ;;  %s421_s22 = int_to_ptr.vmem [resolvable:$true] %s420_s22 }
  0x98   : > { %p17174_p13 = pnand %p17172_p1, %p17454_p2  ;;  %p17178_p8 = scmp.lt.s32.totalorder %s17176_s19, %s17171_s20 }
  0x9a   : > { %p17175_p3 = pneg %p17174_p13  ;;  %p17179_p10 = por %p17178_p8, %p17177_p5 }
  0x9c   : > { %p17180_p0 = pnand %p17179_p10, %p17175_p3 }
  0x9e   : > { %17183 = shalt.err (!%p17180_p0)
}
  0x9f   : > { %s17184_s15 = scalar_lea.vmem %s421_s22, 36864  ;;  %s17295_s26 = smov [#allocation12]  }
  0xa0   : > { %p17185_p6 = scmp.ne.s32.totalorder %s421_s22, %s17184_s15  ;;  %s17189_s28 = sshll.u32 %s17295_s26, 4  ;;  %s17190_s28 = int_to_ptr.vmem [resolvable:$false] %s17189_s28 }
  0xa1   : > { %s17191_s2 = scalar_lea.vmem %s17190_s28, 73728  ;;  %p17192_p7 = scmp.lt.s32.totalorder %s421_s22, %s17190_s28 }
  0xa2   : > { %p17187_p4 = pnand %p17185_p6, %p17454_p2  ;;  %p17193_p11 = scmp.lt.s32.totalorder %s17191_s2, %s17184_s15 }
  0xa4   : > { %p17188_p12 = pneg %p17187_p4  ;;  %p17194_p1 = por %p17193_p11, %p17192_p7 }
  0xa6   : > { %p17195_p13 = pnand %p17194_p1, %p17188_p12 }
  0xa8   : > { %17198 = shalt.err (!%p17195_p13)
}
  0xa9   : > { %s19739_s30 = scalar_lea.sflag [#allocation11], %s17411_s27  ;;  %s14921_s20 = smul.u32 144, %s17420_s29 }
  0xaa   : > { %14971 = dma.hbm_to_vmem [thread:$0]  (!%p17443_p9), %s17566_s11, 36864, %s421_s22, %s19739_s30, %s17291_s3, %s17291_s3, %s17292_s8  }
  0xab   : > { %s14922_s13 = smul.u32 2304, %s17281_s16  ;;  %s434_s25 = scalar_lea.vmem [#allocation13], %s14921_s20 }
  0xac   : > { %s442_s15 = sshll.u32 %s434_s25, 4  ;;  %s431_s26 = scalar_lea.sflag [#allocation14], %s17411_s27  ;;  %s443_s15 = int_to_ptr.vmem [resolvable:$true] %s442_s15 }
  0xad   : > { %s17596_s12 = scalar_lea.hbm %s19699_s7, %s14922_s13  ;;  %s17204_s16 = scalar_lea.hbm %s19699_s7, 4608 }
  0xae   : > { %s17199_s28 = scalar_lea.hbm %s17596_s12, 2304  ;;  %p17205_p10 = scmp.lt.s32.totalorder %s17596_s12, %s19699_s7 }
  0xaf   : > { %p17200_p3 = scmp.ne.s32.totalorder %s17596_s12, %s17199_s28  ;;  %p17206_p0 = scmp.lt.s32.totalorder %s17204_s16, %s17199_s28 }
  0xb1   : > { %p17202_p5 = pnand %p17200_p3, %p17454_p2  ;;  %p17207_p6 = por %p17206_p0, %p17205_p10 }
  0xb3   : > { %p17203_p8 = pneg %p17202_p5 }
  0xb5   : > { %p17208_p4 = pnand %p17207_p6, %p17203_p8 }
  0xb7   : > { %17211 = shalt.err (!%p17208_p4)
}
  0xb8   : > { %s17212_s22 = scalar_lea.vmem %s443_s15, 2304  ;;  %s17296_s27 = smov [#allocation13]  }
  0xb9   : > { %p17213_p12 = scmp.ne.s32.totalorder %s443_s15, %s17212_s22  ;;  %s17217_s2 = sshll.u32 %s17296_s27, 4  ;;  %s17218_s2 = int_to_ptr.vmem [resolvable:$false] %s17217_s2 }
  0xba   : > { %s17219_s30 = scalar_lea.vmem %s17218_s2, 4608  ;;  %p17220_p1 = scmp.lt.s32.totalorder %s443_s15, %s17218_s2 }
  0xbb   : > { %p17215_p7 = pnand %p17213_p12, %p17454_p2  ;;  %p17221_p13 = scmp.lt.s32.totalorder %s17219_s30, %s17212_s22 }
  0xbd   : > { %p17216_p11 = pneg %p17215_p7  ;;  %p17222_p3 = por %p17221_p13, %p17220_p1 }
  0xbf   : > { %p17223_p5 = pnand %p17222_p3, %p17216_p11 }
  0xc1   : > { %17226 = shalt.err (!%p17223_p5)
}
  0xc2   : > { %14974 = dma.hbm_to_vmem [thread:$0]  (!%p17443_p9), %s17596_s12, 2304, %s443_s15, %s431_s26  }
  0xc3   : > { %p19740_p8 = scmp.ne.s32.totalorder %s19726_s24, 0 }
  0xc4   : > { %p19741_p10 = scmp.eq.s32.totalorder (!%p19740_p8), %s17374_s17, 0 }
  0xc5   : > { %451 = sbr.rel (%p19740_p8) target bundleno = 6276 (0x1884), region = 60 }
  0xca   : > { %17244 = dma.done.wait (%p19741_p10), [#allocation6], 18432   ;;  %p19742_p2 = pmov %p19741_p10 }
  0xcb   : > { %s457_s21 = sand.u32 1, %s17374_s17   ;;  %s459_s20 = sand.u32 1, %s17273_s14  }
  0xcc   : > { %17246 = vsyncadd (%p19742_p2), [#allocation6], 4294948864  ;;  %s14923_s13 = smul.u32 3456, %s459_s20  ;;  %s458_s10 = scalar_lea.sflag [#allocation8], %s457_s21 }
  0xcd   : > { %p19743_p0 = scmp.ne.s32.totalorder %s19725_s23, 0 }
  0xce   : > { %s17623_s19 = scalar_lea.vmem [#allocation7], %s14923_s13 }
  0xcf   : > { %17248 = dma.done.wait (%p19743_p0), %s458_s10, 73728  }
  0xd0   : > { %17250 = vsyncadd (%p19743_p0), %s458_s10, 4294893568  ;;  %s14924_s18 = smul.u32 1152, %s459_s20  ;;  %s476_s25 = scalar_lea.sflag [#allocation11], %s457_s21 }
  0xd1   : > { %s14925_s24 = smul.u32 2304, %s459_s20 }
  0xd2   : > { %s17629_s12 = scalar_lea.vmem [#allocation9], %s14924_s18 }
  0xd3   : > { %s17631_s15 = scalar_lea.vmem [#allocation10], %s14925_s24 }
  0xd4   : > { %17252 = dma.done.wait (%p19743_p0), %s476_s25, 73728  }
  0xd5   : > { %17254 = vsyncadd (%p19743_p0), %s476_s25, 4294893568  ;;  %s14926_s26 = smul.u32 144, %s459_s20  ;;  %s17637_s28 = scalar_lea.vmem [#allocation12], %s14925_s24 }
  0xd6   : > { %s494_s3 = scalar_lea.sflag [#allocation14], %s457_s21 }
  0xd7   : > { %s17639_s29 = scalar_lea.vmem [#allocation13], %s14926_s26 }
  0xd8   : > { %17256 = dma.done.wait (%p19743_p0), %s494_s3, 2304  }
  0xd9   : > { %17258 = vsyncadd (%p19743_p0), %s494_s3, 4294964992  ;;  %p19744_p9 = pmov %p19742_p2 }
  0xda   : > { %p19745_p6 = pmov %p19742_p2 }
  0xdb   : > { %17260 = dma.done.wait (%p19744_p9), [#allocation14], 48  }
  0xdc   : > { %17262 = vsyncadd (%p19745_p6), [#allocation14], 4294967248  ;;  %p19746_p4 = pmov %p19742_p2 }
  0xdd   : > { %p19747_p12 = pmov %p19742_p2 }
  0xde   : > { %17264 = dma.done.wait (%p19746_p4), [#allocation17], 48  }
  0xdf   : > { %17266 = vsyncadd (%p19747_p12), [#allocation17], 4294967248  ;;  %p19748_p7 = scmp.ne.s32.totalorder %s17374_s17, 0 }
  0xe0   : > { %s19749_s20 = sld [smem:[#allocation27_spill]] (!%p19748_p7) }
  0xe1   : > { %561 = sbr.rel (%p19748_p7) target bundleno = 595 (0x253), region = 96 }
  0xe6   : > { %v15026_v0 = vld [vmem:[#allocation5 + $0xac] ss:$12 sps:$4 sm:$0xff]   ;;  %v15030_v2 = vld [vmem:[#allocation5 + $0xa8] ss:$12 sps:$4 sm:$0xff]   ;;  %v15036_v6 = vld [vmem:[#allocation5 + $0x90] ss:$12 sps:$4 sm:$0xff]  }
  0xe7   : > { %v15028_v1 = vld [vmem:[#allocation5 + $0x22c] ss:$12 sps:$4 sm:$0xff]   ;;  %1546 = vmatprep.subr.bf16.mxu0 %v15026_v0  ;;  %v15031_v3 = vld [vmem:[#allocation5 + $0x228] ss:$12 sps:$4 sm:$0xff]   ;;  %v15037_v7 = vld [vmem:[#allocation5 + $0x210] ss:$12 sps:$4 sm:$0xff]  }
  0xe8   : > { %1589 = vmatprep.subr.bf16.mxu1 %v15028_v1  ;;  %v15032_v4 = vld [vmem:[#allocation5 + $0x94] ss:$12 sps:$4 sm:$0xff]   ;;  %1547 = vmatpush1.bf16.msra.mxu0 %v15030_v2  ;;  %v15038_v8 = vld [vmem:[#allocation5 + $0x7c] ss:$12 sps:$4 sm:$0xff]   ;;  %v15042_v10 = vld [vmem:[#allocation5 + $0x78] ss:$12 sps:$4 sm:$0xff]  }
  0xe9   : > { %1590 = vmatpush1.bf16.msra.mxu1 %v15031_v3  ;;  %v15034_v5 = vld [vmem:[#allocation5 + $0x214] ss:$12 sps:$4 sm:$0xff]   ;;  %1548 = vmatprep.subr.bf16.mxu0 %v15032_v4  ;;  %v15040_v9 = vld [vmem:[#allocation5 + $0x1fc] ss:$12 sps:$4 sm:$0xff]   ;;  %v15043_v11 = vld [vmem:[#allocation5 + $0x1f8] ss:$12 sps:$4 sm:$0xff]  }
  0xea   : > { %1591 = vmatprep.subr.bf16.mxu1 %v15034_v5  ;;  %v15044_v12 = vld [vmem:[#allocation5 + $0x64] ss:$12 sps:$4 sm:$0xff]   ;;  %v15048_v14 = vld [vmem:[#allocation5 + $0x60] ss:$12 sps:$4 sm:$0xff]   ;;  %v15054_v18 = vld [vmem:[#allocation5 + $0x48] ss:$12 sps:$4 sm:$0xff]  }
  0xeb   : > { %v15046_v13 = vld [vmem:[#allocation5 + $0x1e4] ss:$12 sps:$4 sm:$0xff]   ;;  %v15049_v15 = vld [vmem:[#allocation5 + $0x1e0] ss:$12 sps:$4 sm:$0xff]   ;;  %v15055_v19 = vld [vmem:[#allocation5 + $0x1c8] ss:$12 sps:$4 sm:$0xff]  }
  0xec   : > { %1549 = vmatpush1.bf16.msra.mxu0 %v15036_v6  ;;  %v15050_v16 = vld [vmem:[#allocation5 + $0x4c] ss:$12 sps:$4 sm:$0xff]   ;;  %v15056_v20 = vld [vmem:[#allocation5 + $0x34] ss:$12 sps:$4 sm:$0xff]   ;;  %v15060_v22 = vld [vmem:[#allocation5 + $0x30] ss:$12 sps:$4 sm:$0xff]  }
  0xed   : > { %1592 = vmatpush1.bf16.msra.mxu1 %v15037_v7  ;;  %1550 = vmatprep.subr.bf16.mxu0 %v15038_v8  ;;  %v15052_v17 = vld [vmem:[#allocation5 + $0x1cc] ss:$12 sps:$4 sm:$0xff]   ;;  %v15058_v21 = vld [vmem:[#allocation5 + $0x1b4] ss:$12 sps:$4 sm:$0xff]   ;;  %v15061_v23 = vld [vmem:[#allocation5 + $0x1b0] ss:$12 sps:$4 sm:$0xff]  }
  0xee   : > { %1593 = vmatprep.subr.bf16.mxu1 %v15040_v9  ;;  %v15062_v24 = vld [vmem:[#allocation5 + $0x1c] ss:$12 sps:$4 sm:$0xff]   ;;  %v15066_v26 = vld [vmem:[#allocation5 + $0x18] ss:$12 sps:$4 sm:$0xff]   ;;  %v15072_v30 = vld [vmem:[#allocation5] ss:$12 sps:$4 sm:$0xff]  }
  0xef   : > { %v15064_v25 = vld [vmem:[#allocation5 + $0x19c] ss:$12 sps:$4 sm:$0xff]   ;;  %v15067_v27 = vld [vmem:[#allocation5 + $0x198] ss:$12 sps:$4 sm:$0xff]   ;;  %v15073_v31 = vld [vmem:[#allocation5 + $0x180] ss:$12 sps:$4 sm:$0xff]  }
  0xf0   : > { %1551 = vmatpush1.bf16.msra.mxu0 %v15042_v10  ;;  %v15068_v28 = vld [vmem:[#allocation5 + $0x4] ss:$12 sps:$4 sm:$0xff]   ;;  %v15074_v32 = vld [vmem:[#allocation5 + $0x16c] ss:$12 sps:$4 sm:$0xff]   ;;  %v15078_v34 = vld [vmem:[#allocation5 + $0x168] ss:$12 sps:$4 sm:$0xff]  }
  0xf1   : > { %1594 = vmatpush1.bf16.msra.mxu1 %v15043_v11  ;;  %1552 = vmatprep.subr.bf16.mxu0 %v15044_v12  ;;  %v15070_v29 = vld [vmem:[#allocation5 + $0x184] ss:$12 sps:$4 sm:$0xff]   ;;  %v15076_v33 = vld [vmem:[#allocation5 + $0x2ec] ss:$12 sps:$4 sm:$0xff]   ;;  %v15079_v35 = vld [vmem:[#allocation5 + $0x2e8] ss:$12 sps:$4 sm:$0xff]  }
  0xf2   : > { %1595 = vmatprep.subr.bf16.mxu1 %v15046_v13  ;;  %v15080_v36 = vld [vmem:[#allocation5 + $0x154] ss:$12 sps:$4 sm:$0xff]   ;;  %v15084_v38 = vld [vmem:[#allocation5 + $0x150] ss:$12 sps:$4 sm:$0xff]   ;;  %v15090_v42 = vld [vmem:[#allocation5 + $0x138] ss:$12 sps:$4 sm:$0xff]  }
  0xf3   : > { %v15082_v37 = vld [vmem:[#allocation5 + $0x2d4] ss:$12 sps:$4 sm:$0xff]   ;;  %v15085_v39 = vld [vmem:[#allocation5 + $0x2d0] ss:$12 sps:$4 sm:$0xff]   ;;  %v15091_v43 = vld [vmem:[#allocation5 + $0x2b8] ss:$12 sps:$4 sm:$0xff]  }
  0xf4   : > { %1553 = vmatpush1.bf16.msra.mxu0 %v15048_v14  ;;  %v15086_v40 = vld [vmem:[#allocation5 + $0x13c] ss:$12 sps:$4 sm:$0xff]   ;;  %v15092_v44 = vld [vmem:[#allocation5 + $0x124] ss:$12 sps:$4 sm:$0xff]   ;;  %v15096_v47 = vld [vmem:[#allocation5 + $0x120] ss:$12 sps:$4 sm:$0xff]  }
  0xf5   : > { %1596 = vmatpush1.bf16.msra.mxu1 %v15049_v15  ;;  %1554 = vmatprep.subr.bf16.mxu0 %v15050_v16  ;;  %v15088_v41 = vld [vmem:[#allocation5 + $0x2bc] ss:$12 sps:$4 sm:$0xff]   ;;  %v15094_v45 = vld [vmem:[#allocation5 + $0x2a4] ss:$12 sps:$4 sm:$0xff]   ;;  %v15097_v48 = vld [vmem:[#allocation5 + $0x2a0] ss:$12 sps:$4 sm:$0xff]  }
  0xf6   : > { %1597 = vmatprep.subr.bf16.mxu1 %v15052_v17  ;;  %v563_v46 = vld [vmem:[%s19692_s0 + $0x8] sm:$0xff]  ;;  %v569_v49 = vld [vmem:[%s19692_s0 + $0x38] sm:$0xff]  ;;  %v15104_v58 = vld [vmem:[#allocation5 + $0xf4] ss:$12 sps:$4 sm:$0xff]  }
  0xf7   : > { %v17661_v50 = vpack.c.bf16 %v569_v49, %v563_v46  ;;  %v565_v51 = vld [vmem:[%s19692_s0 + $0x18] sm:$0xff]  ;;  %v571_v52 = vld [vmem:[%s19692_s0 + $0x48] sm:$0xff]  ;;  %v15106_v59 = vld [vmem:[#allocation5 + $0x274] ss:$12 sps:$4 sm:$0xff]  }
  0xf8   : > { %1555 = vmatpush1.bf16.msra.mxu0 %v15054_v18  ;;  %v15098_v53 = vld [vmem:[#allocation5 + $0x10c] ss:$12 sps:$4 sm:$0xff]   ;;  %v17669_v55 = vpack.c.bf16 %v571_v52, %v565_v51  ;;  %v15102_v56 = vld [vmem:[#allocation5 + $0x108] ss:$12 sps:$4 sm:$0xff]   ;;  %v15108_v60 = vld [vmem:[#allocation5 + $0xf0] ss:$12 sps:$4 sm:$0xff]  }
  0xf9   : > { %1598 = vmatpush1.bf16.msra.mxu1 %v15055_v19  ;;  %1556 = vmatprep.subr.bf16.mxu0 %v15056_v20  ;;  %v15100_v54 = vld [vmem:[#allocation5 + $0x28c] ss:$12 sps:$4 sm:$0xff]   ;;  %v15103_v57 = vld [vmem:[#allocation5 + $0x288] ss:$12 sps:$4 sm:$0xff]   ;;  %v15109_v61 = vld [vmem:[#allocation5 + $0x270] ss:$12 sps:$4 sm:$0xff]  }
  0xfa   : > { %1599 = vmatprep.subr.bf16.mxu1 %v15058_v21  ;;  %1578 = vmatprep.mubr.bf16.mxu0 %v17661_v50  ;;  %v15110_v62 = vld [vmem:[#allocation5 + $0xdc] ss:$12 sps:$4 sm:$0xff]   ;;  %v15114_v0 = vld [vmem:[#allocation5 + $0xd8] ss:$12 sps:$4 sm:$0xff]   ;;  %v15120_v4 = vld [vmem:[#allocation5 + $0xc0] ss:$12 sps:$4 sm:$0xff]  }
  0xfb   : > { %1621 = vmatprep.mubr.bf16.mxu1 %v17669_v55  ;;  %v15112_v63 = vld [vmem:[#allocation5 + $0x25c] ss:$12 sps:$4 sm:$0xff]   ;;  %v15115_v1 = vld [vmem:[#allocation5 + $0x258] ss:$12 sps:$4 sm:$0xff]   ;;  %v15121_v5 = vld [vmem:[#allocation5 + $0x240] ss:$12 sps:$4 sm:$0xff]  }
  0xfc   : > { %1557 = vmatpush1.bf16.msra.mxu0 %v15060_v22  ;;  %v15116_v2 = vld [vmem:[#allocation5 + $0xc4] ss:$12 sps:$4 sm:$0xff]   ;;  %v15124_v8 = vld [vmem:[#allocation5 + $0x3ac] ss:$12 sps:$4 sm:$0xff]   ;;  %v15122_v12 = vld [vmem:[#allocation5 + $0x3a8] ss:$12 sps:$4 sm:$0xff]  }
  0xfd   : > { %1600 = vmatpush1.bf16.msra.mxu1 %v15061_v23  ;;  %1558 = vmatprep.subr.bf16.mxu0 %v15062_v24  ;;  %v15118_v3 = vld [vmem:[#allocation5 + $0x244] ss:$12 sps:$4 sm:$0xff]   ;;  %v15129_v16 = vld [vmem:[#allocation5 + $0x394] ss:$12 sps:$4 sm:$0xff]   ;;  %v15134_v20 = vld [vmem:[#allocation5 + $0x37c] ss:$12 sps:$4 sm:$0xff]  }
  0xfe   : > { %1601 = vmatprep.subr.bf16.mxu1 %v15064_v25  ;;  %v562_v6 = vld [vmem:[%s19692_s0] sm:$0xff]  ;;  %v568_v7 = vld [vmem:[%s19692_s0 + $0x30] sm:$0xff] }
  0xff   : > { %v564_v9 = vld [vmem:[%s19692_s0 + $0x10] sm:$0xff]  ;;  %v570_v10 = vld [vmem:[%s19692_s0 + $0x40] sm:$0xff]  ;;  %v17685_v13 = vpack.c.bf16 %v568_v7, %v562_v6  ;;  %v15194_v7 = vld [vmem:[#allocation5 + $0x3dc] ss:$12 sps:$4 sm:$0xff]  }
 0x100   : > { %1559 = vmatpush1.bf16.msra.mxu0 %v15066_v26  ;;  %v15125_v11 = vld [vmem:[#allocation5 + $0x170] ss:$12 sps:$4 sm:$0xff]   ;;  %v17687_v14 = vpack.c.bf16 %v570_v10, %v564_v9  ;;  %v15130_v17 = vld [vmem:[#allocation5 + $0x158] ss:$12 sps:$4 sm:$0xff]   ;;  %v15135_v21 = vld [vmem:[#allocation5 + $0x140] ss:$12 sps:$4 sm:$0xff]  }
 0x101   : > { %1602 = vmatpush1.bf16.msra.mxu1 %v15067_v27  ;;  %1560 = vmatprep.subr.bf16.mxu0 %v15068_v28  ;;  %v15126_v15 = vld [vmem:[#allocation5 + $0xb0] ss:$12 sps:$4 sm:$0xff]   ;;  %v15131_v19 = vld [vmem:[#allocation5 + $0x98] ss:$12 sps:$4 sm:$0xff]   ;;  %v15136_v23 = vld [vmem:[#allocation5 + $0x80] ss:$12 sps:$4 sm:$0xff]  }
 0x102   : > { %1603 = vmatprep.subr.bf16.mxu1 %v15070_v29  ;;  %v15127_v18 = vld [vmem:[#allocation5 + $0x390] ss:$12 sps:$4 sm:$0xff]   ;;  %v15132_v22 = vld [vmem:[#allocation5 + $0x378] ss:$12 sps:$4 sm:$0xff]   ;;  %v15140_v25 = vld [vmem:[#allocation5 + $0x128] ss:$12 sps:$4 sm:$0xff]  }
 0x103   : > { %v15139_v24 = vld [vmem:[#allocation5 + $0x364] ss:$12 sps:$4 sm:$0xff]   ;;  %v15137_v26 = vld [vmem:[#allocation5 + $0x360] ss:$12 sps:$4 sm:$0xff]   ;;  %v15141_v27 = vld [vmem:[#allocation5 + $0x68] ss:$12 sps:$4 sm:$0xff]  }
 0x104   : > { %1561 = vmatpush1.bf16.msra.mxu0 %v15072_v30  ;;  %v15144_v28 = vld [vmem:[#allocation5 + $0x34c] ss:$12 sps:$4 sm:$0xff]   ;;  %v15145_v29 = vld [vmem:[#allocation5 + $0x110] ss:$12 sps:$4 sm:$0xff]   ;;  %v15142_v30 = vld [vmem:[#allocation5 + $0x348] ss:$12 sps:$4 sm:$0xff]  }
 0x105   : > { %1604 = vmatpush1.bf16.msra.mxu1 %v15073_v31  ;;  %1562 = vmatprep.subr.bf16.mxu0 %v15074_v32  ;;  %v15146_v31 = vld [vmem:[#allocation5 + $0x50] ss:$12 sps:$4 sm:$0xff]   ;;  %v15149_v32 = vld [vmem:[#allocation5 + $0x334] ss:$12 sps:$4 sm:$0xff]   ;;  %v15170_v49 = vld [vmem:[#allocation5 + $0x2d8] ss:$12 sps:$4 sm:$0xff]  }
 0x106   : > { %1605 = vmatprep.subr.bf16.mxu1 %v15076_v33  ;;  %v15150_v33 = vld [vmem:[#allocation5 + $0xf8] ss:$12 sps:$4 sm:$0xff]   ;;  %v15162_v46 = vld [vmem:[#allocation5 + $0x468] ss:$12 sps:$4 sm:$0xff]   ;;  %v15167_v51 = vld [vmem:[#allocation5 + $0x450] ss:$12 sps:$4 sm:$0xff]  }
 0x107   : > { %v15171_v52 = vld [vmem:[#allocation5 + $0x218] ss:$12 sps:$4 sm:$0xff]   ;;  %v15196_v10 = vld [vmem:[#allocation5 + $0x1a0] ss:$12 sps:$4 sm:$0xff]  }
 0x108   : > { %1563 = vmatpush2.bf16.msra.mxu0 %v15078_v34  ;;  %v15147_v34 = vld [vmem:[#allocation5 + $0x330] ss:$12 sps:$4 sm:$0xff]   ;;  %v15191_v6 = vld [vmem:[#allocation5 + $0x1b8] ss:$12 sps:$4 sm:$0xff]  }
 0x109   : > { %1606 = vmatpush2.bf16.msra.mxu1 %v15079_v35  ;;  %1564 = vmatprep.subr.bf16.mxu0 %v15080_v36  ;;  %v15151_v35 = vld [vmem:[#allocation5 + $0x38] ss:$12 sps:$4 sm:$0xff]   ;;  %v15154_v36 = vld [vmem:[#allocation5 + $0x31c] ss:$12 sps:$4 sm:$0xff]  }
 0x10a   : > { %1607 = vmatprep.subr.bf16.mxu1 %v15082_v37  ;;  %v15155_v37 = vld [vmem:[#allocation5 + $0xe0] ss:$12 sps:$4 sm:$0xff]   ;;  %v15192_v9 = vld [vmem:[#allocation5 + $0x3d8] ss:$12 sps:$4 sm:$0xff]  }
 0x10c   : > { %1565 = vmatpush2.bf16.msra.mxu0 %v15084_v38  ;;  %v15152_v38 = vld [vmem:[#allocation5 + $0x318] ss:$12 sps:$4 sm:$0xff]  }
 0x10d   : > { %1608 = vmatpush2.bf16.msra.mxu1 %v15085_v39  ;;  %1566 = vmatprep.subr.bf16.mxu0 %v15086_v40  ;;  %v15156_v39 = vld [vmem:[#allocation5 + $0x20] ss:$12 sps:$4 sm:$0xff]   ;;  %v15159_v40 = vld [vmem:[#allocation5 + $0x304] ss:$12 sps:$4 sm:$0xff]  }
 0x10e   : > { %1609 = vmatprep.subr.bf16.mxu1 %v15088_v41  ;;  %v15160_v41 = vld [vmem:[#allocation5 + $0xc8] ss:$12 sps:$4 sm:$0xff]  }
 0x110   : > { %1567 = vmatpush2.bf16.msra.mxu0 %v15090_v42  ;;  %v15157_v42 = vld [vmem:[#allocation5 + $0x300] ss:$12 sps:$4 sm:$0xff]  }
 0x111   : > { %1610 = vmatpush2.bf16.msra.mxu1 %v15091_v43  ;;  %1568 = vmatprep.subr.bf16.mxu0 %v15092_v44  ;;  %v15161_v43 = vld [vmem:[#allocation5 + $0x8] ss:$12 sps:$4 sm:$0xff]   ;;  %v15164_v44 = vld [vmem:[#allocation5 + $0x46c] ss:$12 sps:$4 sm:$0xff]  }
 0x112   : > { %1611 = vmatprep.subr.bf16.mxu1 %v15094_v45  ;;  %v15165_v45 = vld [vmem:[#allocation5 + $0x2f0] ss:$12 sps:$4 sm:$0xff]  }
 0x114   : > { %1569 = vmatpush2.bf16.msra.mxu0 %v15096_v47  ;;  %v15166_v47 = vld [vmem:[#allocation5 + $0x230] ss:$12 sps:$4 sm:$0xff]  }
 0x115   : > { %1612 = vmatpush2.bf16.msra.mxu1 %v15097_v48  ;;  %1570 = vmatprep.subr.bf16.mxu0 %v15098_v53  ;;  %v15169_v48 = vld [vmem:[#allocation5 + $0x454] ss:$12 sps:$4 sm:$0xff]   ;;  %v573_v53 = vld [vmem:[%s19692_s0 + $0x58] sm:$0xff] }
 0x116   : > { %1613 = vmatprep.subr.bf16.mxu1 %v15100_v54  ;;  %v15174_v54 = vld [vmem:[#allocation5 + $0x43c] ss:$12 sps:$4 sm:$0xff]  }
 0x118   : > { %1571 = vmatpush2.bf16.msra.mxu0 %v15102_v56 }
 0x119   : > { %1614 = vmatpush2.bf16.msra.mxu1 %v15103_v57  ;;  %1572 = vmatprep.subr.bf16.mxu0 %v15104_v58  ;;  %v15175_v57 = vld [vmem:[#allocation5 + $0x2c0] ss:$12 sps:$4 sm:$0xff]   ;;  %v15172_v58 = vld [vmem:[#allocation5 + $0x438] ss:$12 sps:$4 sm:$0xff]  }
 0x11a   : > { %1615 = vmatprep.subr.bf16.mxu1 %v15106_v59  ;;  %v15176_v59 = vld [vmem:[#allocation5 + $0x200] ss:$12 sps:$4 sm:$0xff]  }
 0x11c   : > { %1573 = vmatpush2.bf16.msra.mxu0 %v15108_v60  ;;  %v15179_v60 = vld [vmem:[#allocation5 + $0x424] ss:$12 sps:$4 sm:$0xff]  }
 0x11d   : > { %1616 = vmatpush2.bf16.msra.mxu1 %v15109_v61  ;;  %1574 = vmatprep.subr.bf16.mxu0 %v15110_v62  ;;  %v15180_v61 = vld [vmem:[#allocation5 + $0x2a8] ss:$12 sps:$4 sm:$0xff]   ;;  %v15177_v62 = vld [vmem:[#allocation5 + $0x420] ss:$12 sps:$4 sm:$0xff]  }
 0x11e   : > { %1617 = vmatprep.subr.bf16.mxu1 %v15112_v63  ;;  %v15181_v63 = vld [vmem:[#allocation5 + $0x1e8] ss:$12 sps:$4 sm:$0xff]  }
 0x120   : > { %1575 = vmatpush2.bf16.msra.mxu0 %v15114_v0  ;;  %v15184_v0 = vld [vmem:[#allocation5 + $0x40c] ss:$12 sps:$4 sm:$0xff]  }
 0x121   : > { %1618 = vmatpush2.bf16.msra.mxu1 %v15115_v1  ;;  %1576 = vmatprep.subr.bf16.mxu0 %v15116_v2  ;;  %v15185_v1 = vld [vmem:[#allocation5 + $0x290] ss:$12 sps:$4 sm:$0xff]   ;;  %v15182_v2 = vld [vmem:[#allocation5 + $0x408] ss:$12 sps:$4 sm:$0xff]  }
 0x122   : > { %1619 = vmatprep.subr.bf16.mxu1 %v15118_v3  ;;  %v15186_v3 = vld [vmem:[#allocation5 + $0x1d0] ss:$12 sps:$4 sm:$0xff]  }
 0x124   : > { %1577 = vmatpush2.bf16.msra.mxu0 %v15120_v4  ;;  %v15190_v4 = vld [vmem:[#allocation5 + $0x278] ss:$12 sps:$4 sm:$0xff]  }
 0x125   : > { %1620 = vmatpush2.bf16.msra.mxu1 %v15121_v5  ;;  %1632 = vmatprep.subr.bf16.mxu0 %v15124_v8  ;;  %v15187_v5 = vld [vmem:[#allocation5 + $0x3f0] ss:$12 sps:$4 sm:$0xff]   ;;  %v15195_v8 = vld [vmem:[#allocation5 + $0x260] ss:$12 sps:$4 sm:$0xff]  }
 0x126   : > { %14457 = vmatprep.subr.bf16.mxu1 %v15125_v11  ;;  %v15199_v11 = vld [vmem:[#allocation5 + $0x3c4] ss:$12 sps:$4 sm:$0xff]  }
 0x127   : > { %1579 = vmatmul.mubr.bf16.vlgmr.msra.gmra.mxu0 %v17685_v13 }
 0x128   : > { %1622 = vmatmul.mubr.bf16.vlgmr.msra.gmra.mxu1 %v17687_v14  ;;  %1633 = vmatpush1.bf16.msra.mxu0 %v15122_v12  ;;  %v15200_v12 = vld [vmem:[#allocation5 + $0x248] ss:$12 sps:$4 sm:$0xff]  }
 0x129   : > { %14458 = vmatpush3.bf16.msra.mxu1 %v15126_v15  ;;  %1634 = vmatprep.subr.bf16.mxu0 %v15129_v16  ;;  %v15201_v15 = vld [vmem:[#allocation5 + $0x188] ss:$12 sps:$4 sm:$0xff]  }
 0x12a   : > { %14459 = vmatprep.subr.bf16.mxu1 %v15130_v17  ;;  %1707 = vmatprep.mubr.bf16.mxu1 %v17661_v50  ;;  %v567_v50 = vld [vmem:[%s19692_s0 + $0x28] sm:$0xff]  ;;  %v566_v16 = vld [vmem:[%s19692_s0 + $0x20] sm:$0xff]  ;;  %v572_v17 = vld [vmem:[%s19692_s0 + $0x50] sm:$0xff] }
 0x12b   : > { %v17699_v56 = vpack.c.bf16 %v573_v53, %v567_v50 }
 0x12c   : > { %1635 = vmatpush1.bf16.msra.mxu0 %v15127_v18  ;;  %v15202_v18 = vld [vmem:[#allocation5 + $0x470] ss:$12 sps:$4 sm:$0xff]  }
 0x12d   : > { %14460 = vmatpush3.bf16.msra.mxu1 %v15131_v19  ;;  %1636 = vmatprep.subr.bf16.mxu0 %v15134_v20  ;;  %v776_v19 = vpack.c.bf16 %v572_v17, %v566_v16  ;;  %v15203_v20 = vld [vmem:[#allocation5 + $0x3b0] ss:$12 sps:$4 sm:$0xff]  }
 0x12e   : > { %14461 = vmatprep.subr.bf16.mxu1 %v15135_v21  ;;  %1664 = vmatprep.mubr.bf16.mxu0 %v17699_v56  ;;  %v15204_v21 = vld [vmem:[#allocation5 + $0x458] ss:$12 sps:$4 sm:$0xff]  }
 0x130   : > { %1637 = vmatpush1.bf16.msra.mxu0 %v15132_v22  ;;  %v15205_v22 = vld [vmem:[#allocation5 + $0x398] ss:$12 sps:$4 sm:$0xff]  }
 0x131   : > { %14462 = vmatpush3.bf16.msra.mxu1 %v15136_v23  ;;  %1638 = vmatprep.subr.bf16.mxu0 %v15139_v24  ;;  %v15206_v23 = vld [vmem:[#allocation5 + $0x440] ss:$12 sps:$4 sm:$0xff]  }
 0x132   : > { %14463 = vmatprep.subr.bf16.mxu1 %v15140_v25  ;;  %v15207_v24 = vld [vmem:[#allocation5 + $0x380] ss:$12 sps:$4 sm:$0xff]   ;;  %v15208_v25 = vld [vmem:[#allocation5 + $0x428] ss:$12 sps:$4 sm:$0xff]  }
 0x134   : > { %1639 = vmatpush1.bf16.msra.mxu0 %v15137_v26  ;;  %v15209_v26 = vld [vmem:[#allocation5 + $0x368] ss:$12 sps:$4 sm:$0xff]  }
 0x135   : > { %14464 = vmatpush3.bf16.msra.mxu1 %v15141_v27  ;;  %1640 = vmatprep.subr.bf16.mxu0 %v15144_v28  ;;  %v15210_v27 = vld [vmem:[#allocation5 + $0x410] ss:$12 sps:$4 sm:$0xff]  }
 0x136   : > { %14465 = vmatprep.subr.bf16.mxu1 %v15145_v29  ;;  %v15211_v28 = vld [vmem:[#allocation5 + $0x350] ss:$12 sps:$4 sm:$0xff]   ;;  %v15212_v29 = vld [vmem:[#allocation5 + $0x3f8] ss:$12 sps:$4 sm:$0xff]  }
 0x138   : > { %1641 = vmatpush1.bf16.msra.mxu0 %v15142_v30  ;;  %v15214_v30 = vld [vmem:[#allocation5 + $0x3e0] ss:$12 sps:$4 sm:$0xff]  }
 0x139   : > { %14466 = vmatpush3.bf16.msra.mxu1 %v15146_v31  ;;  %1642 = vmatprep.subr.bf16.mxu0 %v15149_v32  ;;  %v15215_v31 = vld [vmem:[#allocation5 + $0x320] ss:$12 sps:$4 sm:$0xff]   ;;  %v15216_v32 = vld [vmem:[#allocation5 + $0x3c8] ss:$12 sps:$4 sm:$0xff]  }
 0x13a   : > { %14467 = vmatprep.subr.bf16.mxu1 %v15150_v33  ;;  %v15217_v33 = vld [vmem:[#allocation5 + $0x308] ss:$12 sps:$4 sm:$0xff]  }
 0x13c   : > { %1643 = vmatpush1.bf16.msra.mxu0 %v15147_v34 }
 0x13d   : > { %14468 = vmatpush3.bf16.msra.mxu1 %v15151_v35  ;;  %1644 = vmatprep.subr.bf16.mxu0 %v15154_v36 }
 0x13e   : > { %14469 = vmatprep.subr.bf16.mxu1 %v15155_v37  ;;  %v766_v37 = vld [vmem:[%s19749_s20] sm:$0xff] }
 0x140   : > { %1645 = vmatpush1.bf16.msra.mxu0 %v15152_v38  ;;  %v767_v38 = vld [vmem:[%s19749_s20 + $0x8] sm:$0xff] }
 0x141   : > { %14470 = vmatpush3.bf16.msra.mxu1 %v15156_v39  ;;  %1646 = vmatprep.subr.bf16.mxu0 %v15159_v40 }
 0x142   : > { %14471 = vmatprep.subr.bf16.mxu1 %v15160_v41 }
 0x144   : > { %1647 = vmatpush1.bf16.msra.mxu0 %v15157_v42  ;;  %v769_v42 = vld [vmem:[%s19749_s20 + $0x18] sm:$0xff] }
 0x145   : > { %14472 = vmatpush3.bf16.msra.mxu1 %v15161_v43  ;;  %1648 = vmatprep.subr.bf16.mxu0 %v15164_v44  ;;  %v770_v44 = vld [vmem:[%s19749_s20 + $0x20] sm:$0xff] }
 0x146   : > { %14479 = vmatprep.subr.bf16.mxu1 %v15165_v45 }
 0x148   : > { %1708 = vmatmul.mubr.bf16.vlgmr.msra.gmra.mxu1 %v17685_v13  ;;  %1649 = vmatpush2.bf16.msra.mxu0 %v15162_v46  ;;  %v15197_v13 = vld [vmem:[#allocation5 + $0x3c0] ss:$12 sps:$4 sm:$0xff]  }
 0x149   : > { %14480 = vmatpush3.bf16.msra.mxu1 %v15166_v47  ;;  %1650 = vmatprep.subr.bf16.mxu0 %v15169_v48 }
 0x14a   : > { %14481 = vmatprep.subr.bf16.mxu1 %v15170_v49  ;;  %1748 = vmatprep.mubr.bf16.mxu1 %v17669_v55  ;;  %v15189_v55 = vld [vmem:[#allocation5 + $0x3f4] ss:$12 sps:$4 sm:$0xff]  }
 0x14c   : > { %1651 = vmatpush2.bf16.msra.mxu0 %v15167_v51 }
 0x14d   : > { %14482 = vmatpush3.bf16.msra.mxu1 %v15171_v52  ;;  %1652 = vmatprep.subr.bf16.mxu0 %v15174_v54 }
 0x14e   : > { %14483 = vmatprep.subr.bf16.mxu1 %v15175_v57 }
 0x150   : > { %1653 = vmatpush2.bf16.msra.mxu0 %v15172_v58 }
 0x151   : > { %14484 = vmatpush3.bf16.msra.mxu1 %v15176_v59  ;;  %1654 = vmatprep.subr.bf16.mxu0 %v15179_v60 }
 0x152   : > { %14485 = vmatprep.subr.bf16.mxu1 %v15180_v61 }
 0x154   : > { %1655 = vmatpush2.bf16.msra.mxu0 %v15177_v62 }
 0x155   : > { %14486 = vmatpush3.bf16.msra.mxu1 %v15181_v63  ;;  %1656 = vmatprep.subr.bf16.mxu0 %v15184_v0 }
 0x156   : > { %14487 = vmatprep.subr.bf16.mxu1 %v15185_v1 }
 0x158   : > { %1657 = vmatpush2.bf16.msra.mxu0 %v15182_v2 }
 0x159   : > { %14488 = vmatpush3.bf16.msra.mxu1 %v15186_v3  ;;  %1658 = vmatprep.subr.bf16.mxu0 %v15189_v55 }
 0x15a   : > { %14489 = vmatprep.subr.bf16.mxu1 %v15190_v4 }
 0x15c   : > { %1659 = vmatpush2.bf16.msra.mxu0 %v15187_v5  ;;  %v768_v5 = vld [vmem:[%s19749_s20 + $0x10] sm:$0xff] }
 0x15d   : > { %14490 = vmatpush3.bf16.msra.mxu1 %v15191_v6  ;;  %1660 = vmatprep.subr.bf16.mxu0 %v15194_v7 }
 0x15e   : > { %14491 = vmatprep.subr.bf16.mxu1 %v15195_v8 }
 0x160   : > { %1661 = vmatpush2.bf16.msra.mxu0 %v15192_v9 }
 0x161   : > { %14492 = vmatpush3.bf16.msra.mxu1 %v15196_v10  ;;  %1662 = vmatprep.subr.bf16.mxu0 %v15199_v11 }
 0x162   : > { %14493 = vmatprep.subr.bf16.mxu1 %v15200_v12  ;;  %v771_v12 = vld [vmem:[%s19749_s20 + $0x28] sm:$0xff] }
 0x164   : > { %1663 = vmatpush2.bf16.msra.mxu0 %v15197_v13 }
 0x165   : > { %14494 = vmatpush3.bf16.msra.mxu1 %v15201_v15  ;;  %14501 = vmatprep.subr.bf16.mxu0 %v15202_v18 }
 0x167   : > { %1665 = vmatmul.mubr.bf16.vlgmr.msra.gmra.mxu0 %v776_v19 }
 0x168   : > { %1749 = vmatmul.mubr.bf16.vlgmr.msra.gmra.mxu1 %v17687_v14  ;;  %14502 = vmatpush3.bf16.msra.mxu0 %v15203_v20  ;;  %v15213_v14 = vld [vmem:[#allocation5 + $0x338] ss:$12 sps:$4 sm:$0xff]  }
 0x169   : > { %1789 = vmatprep.mubr.bf16.mxu0 %v17699_v56  ;;  %14503 = vmatprep.subr.bf16.mxu0 %v15204_v21 }
 0x16c   : > { %14504 = vmatpush3.bf16.msra.mxu0 %v15205_v22 }
 0x16d   : > { %14505 = vmatprep.subr.bf16.mxu0 %v15206_v23 }
 0x170   : > { %14506 = vmatpush3.bf16.msra.mxu0 %v15207_v24 }
 0x171   : > { %14507 = vmatprep.subr.bf16.mxu0 %v15208_v25 }
 0x174   : > { %14508 = vmatpush3.bf16.msra.mxu0 %v15209_v26 }
 0x175   : > { %14509 = vmatprep.subr.bf16.mxu0 %v15210_v27 }
 0x178   : > { %14510 = vmatpush3.bf16.msra.mxu0 %v15211_v28 }
 0x179   : > { %14511 = vmatprep.subr.bf16.mxu0 %v15212_v29 }
 0x17c   : > { %14512 = vmatpush3.bf16.msra.mxu0 %v15213_v14 }
 0x17d   : > { %14513 = vmatprep.subr.bf16.mxu0 %v15214_v30 }
 0x180   : > { %14514 = vmatpush3.bf16.msra.mxu0 %v15215_v31 }
 0x181   : > { %14515 = vmatprep.subr.bf16.mxu0 %v15216_v32 }
 0x184   : > { %14516 = vmatpush3.bf16.msra.mxu0 %v15217_v33 }
 0x187   : > { %1790 = vmatmul.mubr.bf16.vlgmr.msra.gmra.mxu0 %v776_v19 }
 0x1e7   : > { %v1580_v34 = vpop.f32.mrf.mxu0 }
 0x1e8   : > { %v1623_v36 = vpop.f32.mrf.mxu1  ;;  %v1581_v41 = vadd.f32 %v1580_v34, %v766_v37 }
 0x1e9   : > { %v1582_v35 = vpop.f32.mrf.mxu0 }
 0x1ea   : > { %v1625_v40 = vpop.f32.mrf.mxu1  ;;  %v1583_v43 = vadd.f32 %v1582_v35, %v767_v38  ;;  %v1624_v47 = vadd.f32 %v1623_v36, %v1581_v41 }
 0x1eb   : > { %v1584_v39 = vpop.f32.mrf.mxu0 }
 0x1ec   : > { %v1627_v46 = vpop.f32.mrf.mxu1  ;;  %v1585_v48 = vadd.f32 %v1584_v39, %v769_v42  ;;  %v1626_v50 = vadd.f32 %v1625_v40, %v1583_v43 }
 0x1ed   : > { %v1586_v45 = vpop.f32.mrf.mxu0 }
 0x1ee   : > { %v1587_v51 = vadd.f32 %v1586_v45, %v770_v44  ;;  %v1629_v53 = vpop.f32.mrf.mxu1  ;;  %v1628_v56 = vadd.f32 %v1627_v46, %v1585_v48 }
 0x1f0   : > { %v1630_v60 = vadd.f32 %v1629_v53, %v1587_v51 }
 0x208   : > { %v14473_v58 = vpop.f32.mrf.mxu1 }
 0x20a   : > { %v14474_v0 = vpop.f32.mrf.mxu1 }
 0x20b   : > { %v14475_v4 = vadd.f32 %v14474_v0, %v14473_v58 }
 0x20c   : > { %v14476_v1 = vpop.f32.mrf.mxu1 }
 0x20d   : > { %v1710_v7 = vadd.f32 %v14475_v4, %v768_v5 }
 0x20e   : > { %v14477_v2 = vpop.f32.mrf.mxu1 }
 0x20f   : > { %v14478_v11 = vadd.f32 %v14477_v2, %v14476_v1 }
 0x211   : > { %v1713_v19 = vadd.f32 %v14478_v11, %v771_v12 }
 0x227   : > { %v1666_v49 = vpop.f32.mrf.mxu0 }
 0x228   : > { %v1667_v52 = vadd.f32 %v1666_v49, %v1624_v47  ;;  %v14495_v3 = vpop.f32.mrf.mxu1 }
 0x229   : > { %v1668_v54 = vpop.f32.mrf.mxu0 }
 0x22a   : > { %1798 = vst [vmem:[#allocation2 + $0x28] sm:$0xff] %v1667_v52  ;;  %v1669_v57 = vadd.f32 %v1668_v54, %v1626_v50  ;;  %v14496_v55 = vpop.f32.mrf.mxu1 }
 0x22b   : > { %v1670_v59 = vpop.f32.mrf.mxu0  ;;  %v14497_v8 = vadd.f32 %v14496_v55, %v14495_v3 }
 0x22c   : > { %1799 = vst [vmem:[#allocation2 + $0x10] sm:$0xff] %v1669_v57  ;;  %v1671_v61 = vadd.f32 %v1670_v59, %v1628_v56  ;;  %v14498_v6 = vpop.f32.mrf.mxu1 }
 0x22d   : > { %v1672_v62 = vpop.f32.mrf.mxu0  ;;  %v1751_v15 = vadd.f32 %v14497_v8, %v1710_v7 }
 0x22e   : > { %1801 = vst [vmem:[#allocation2] sm:$0xff] %v1671_v61  ;;  %v1673_v63 = vadd.f32 %v1672_v62, %v1630_v60  ;;  %v14499_v9 = vpop.f32.mrf.mxu1 }
 0x22f   : > { %v14500_v16 = vadd.f32 %v14499_v9, %v14498_v6 }
 0x230   : > { %1802 = vst [vmem:[#allocation2 + $0x18] sm:$0xff] %v1673_v63 }
 0x231   : > { %v1754_v22 = vadd.f32 %v14500_v16, %v1713_v19 }
 0x247   : > { %v14517_v10 = vpop.f32.mrf.mxu0 }
 0x249   : > { %v14518_v13 = vpop.f32.mrf.mxu0 }
 0x24a   : > { %v14519_v17 = vadd.f32 %v14518_v13, %v14517_v10 }
 0x24b   : > { %v14520_v18 = vpop.f32.mrf.mxu0 }
 0x24c   : > { %v1792_v20 = vadd.f32 %v14519_v17, %v1751_v15 }
 0x24d   : > { %v14521_v21 = vpop.f32.mrf.mxu0 }
 0x24e   : > { %1800 = vst [vmem:[#allocation2 + $0x8] sm:$0xff] %v1792_v20  ;;  %v14522_v23 = vadd.f32 %v14521_v21, %v14520_v18 }
 0x250   : > { %v1795_v24 = vadd.f32 %v14522_v23, %v1754_v22 }
 0x252   : > { %1803 = vst [vmem:[#allocation2 + $0x20] sm:$0xff] %v1795_v24 }
 0x253 PF: > { %v1822_v25 = vld [vmem:[#allocation2 + $0x28] sm:$0xff]  ;;  %v1823_v26 = vld [vmem:[#allocation2 + $0x10] sm:$0xff]  ;;  %v1825_v29 = vld [vmem:[#allocation2] sm:$0xff]  ;;  %vm17299_vm0 = vmmov 0   ;;  %vm5513_vm1 = vcmask 1043456   ;;  %vm5483_vm3 = vcmask 64512  }
 0x254   : > { %v1828_v28 = vadd.f32 %v1823_v26, %v1822_v25  ;;  %v1826_v14 = vld [vmem:[#allocation2 + $0x18] sm:$0xff]  ;;  %v15218_v34 = vld [vmem:[%s17623_s19 + $0x3f4] ss:$72 sps:$4 sm:$0xff]   ;;  %v15220_v35 = vld [vmem:[%s17623_s19 + $0x3f0] ss:$72 sps:$4 sm:$0xff]   ;;  %p14454_p11 = scmp.ne.s32.totalorder %s17374_s17, 1 }
 0x255   : > { %v1824_v27 = vld [vmem:[#allocation2 + $0x8] sm:$0xff]  ;;  %v1832_v31 = vadd.f32 %v1826_v14, %v1825_v29  ;;  %v15221_v36 = vld [vmem:[%s17623_s19 + $0x364] ss:$72 sps:$4 sm:$0xff]   ;;  %4574 = vmatprep.subr.bf16.mxu0 %v15218_v34  ;;  %v15223_v37 = vld [vmem:[%s17623_s19 + $0x360] ss:$72 sps:$4 sm:$0xff]  }
 0x256   : > { %v1829_v32 = vadd.f32 %v1828_v28, %v1824_v27  ;;  %4575 = vmatpush1.bf16.msra.mxu0 %v15220_v35  ;;  %v15224_v38 = vld [vmem:[%s17623_s19 + $0x2d4] ss:$72 sps:$4 sm:$0xff]   ;;  %v15226_v39 = vld [vmem:[%s17623_s19 + $0x2d0] ss:$72 sps:$4 sm:$0xff]   ;;  %v15227_v41 = vld [vmem:[%s17623_s19 + $0x244] ss:$72 sps:$4 sm:$0xff]  }
 0x257   : > { %4576 = vmatprep.subr.bf16.mxu0 %v15221_v36  ;;  %v15242_v40 = vld [vmem:[%s17623_s19 + $0xcf4] ss:$72 sps:$4 sm:$0xff]   ;;  %v15246_v42 = vld [vmem:[%s17623_s19 + $0xcf0] ss:$72 sps:$4 sm:$0xff]   ;;  %v15229_v43 = vld [vmem:[%s17623_s19 + $0x240] ss:$72 sps:$4 sm:$0xff]  }
 0x258   : > { %1830 = vadd.xlane.f32.xlu0 %v1829_v32  ;;  %4617 = vmatprep.subr.bf16.mxu1 %v15242_v40  ;;  %v15230_v44 = vld [vmem:[%s17623_s19 + $0x1b4] ss:$72 sps:$4 sm:$0xff]   ;;  %v15232_v45 = vld [vmem:[%s17623_s19 + $0x1b0] ss:$72 sps:$4 sm:$0xff]   ;;  %v15233_v46 = vld [vmem:[%s17623_s19 + $0x124] ss:$72 sps:$4 sm:$0xff]  }
 0x259   : > { %v1827_v30 = vld [vmem:[#allocation2 + $0x20] sm:$0xff]  ;;  %4618 = vmatpush1.bf16.msra.mxu1 %v15246_v42  ;;  %v15235_v47 = vld [vmem:[%s17623_s19 + $0x120] ss:$72 sps:$4 sm:$0xff]   ;;  %v15239_v50 = vld [vmem:[%s17623_s19 + $0x4] ss:$72 sps:$4 sm:$0xff]  }
 0x25a   : > { %v1833_v33 = vadd.f32 %v1832_v31, %v1827_v30  ;;  %4577 = vmatpush1.bf16.msra.mxu0 %v15223_v37  ;;  %v15236_v48 = vld [vmem:[%s17623_s19 + $0x94] ss:$72 sps:$4 sm:$0xff]   ;;  %v15238_v49 = vld [vmem:[%s17623_s19 + $0x90] ss:$72 sps:$4 sm:$0xff]   ;;  %v15241_v51 = vld [vmem:[%s17623_s19] ss:$72 sps:$4 sm:$0xff]  }
 0x25b   : > { %4578 = vmatprep.subr.bf16.mxu0 %v15224_v38  ;;  %v15244_v52 = vld [vmem:[%s17623_s19 + $0x874] ss:$72 sps:$4 sm:$0xff]   ;;  %v15247_v53 = vld [vmem:[%s17623_s19 + $0x870] ss:$72 sps:$4 sm:$0xff]   ;;  %v15248_v10 = vld [vmem:[%s17623_s19 + $0xc64] ss:$72 sps:$4 sm:$0xff]  }
 0x25c   : > { %1834 = vadd.xlane.f32.xlu0 %v1833_v33  ;;  %v15250_v11 = vld [vmem:[%s17623_s19 + $0x7e4] ss:$72 sps:$4 sm:$0xff]   ;;  %v15252_v12 = vld [vmem:[%s17623_s19 + $0xc60] ss:$72 sps:$4 sm:$0xff]   ;;  %4619 = vmatprep.subr.bf16.mxu1 %v15248_v10  ;;  %v15254_v15 = vld [vmem:[%s17623_s19 + $0xbd4] ss:$72 sps:$4 sm:$0xff]  }
 0x25d   : > { %v15253_v13 = vld [vmem:[%s17623_s19 + $0x7e0] ss:$72 sps:$4 sm:$0xff]   ;;  %4620 = vmatpush1.bf16.msra.mxu1 %v15252_v12  ;;  %v15256_v16 = vld [vmem:[%s17623_s19 + $0x754] ss:$72 sps:$4 sm:$0xff]   ;;  %v15258_v17 = vld [vmem:[%s17623_s19 + $0xbd0] ss:$72 sps:$4 sm:$0xff]  }
 0x25e   : > { %4579 = vmatpush1.bf16.msra.mxu0 %v15226_v39  ;;  %4621 = vmatprep.subr.bf16.mxu1 %v15254_v15  ;;  %v15259_v18 = vld [vmem:[%s17623_s19 + $0x750] ss:$72 sps:$4 sm:$0xff]   ;;  %v15260_v19 = vld [vmem:[%s17623_s19 + $0xb44] ss:$72 sps:$4 sm:$0xff]   ;;  %v15264_v21 = vld [vmem:[%s17623_s19 + $0xb40] ss:$72 sps:$4 sm:$0xff]  }
 0x25f   : > { %4580 = vmatprep.subr.bf16.mxu0 %v15227_v41  ;;  %v15262_v20 = vld [vmem:[%s17623_s19 + $0x6c4] ss:$72 sps:$4 sm:$0xff]   ;;  %v15265_v22 = vld [vmem:[%s17623_s19 + $0x6c0] ss:$72 sps:$4 sm:$0xff]   ;;  %v15266_v23 = vld [vmem:[%s17623_s19 + $0xab4] ss:$72 sps:$4 sm:$0xff]  }
 0x260   : > { %v15268_v24 = vld [vmem:[%s17623_s19 + $0x634] ss:$72 sps:$4 sm:$0xff]   ;;  %v15274_v28 = vld [vmem:[%s17623_s19 + $0x5a4] ss:$72 sps:$4 sm:$0xff]   ;;  %v15282_v32 = vld [vmem:[%s17623_s19 + $0x990] ss:$72 sps:$4 sm:$0xff]  }
 0x261   : > { %4622 = vmatpush1.bf16.msra.mxu1 %v15258_v17  ;;  %v15280_v31 = vld [vmem:[%s17623_s19 + $0x514] ss:$72 sps:$4 sm:$0xff]   ;;  %v15283_v33 = vld [vmem:[%s17623_s19 + $0x510] ss:$72 sps:$4 sm:$0xff]   ;;  %v15284_v34 = vld [vmem:[%s17623_s19 + $0x904] ss:$72 sps:$4 sm:$0xff]  }
 0x262   : > { %4581 = vmatpush1.bf16.msra.mxu0 %v15229_v43  ;;  %4623 = vmatprep.subr.bf16.mxu1 %v15260_v19  ;;  %v15286_v35 = vld [vmem:[%s17623_s19 + $0x484] ss:$72 sps:$4 sm:$0xff]   ;;  %v15288_v36 = vld [vmem:[%s17623_s19 + $0x900] ss:$72 sps:$4 sm:$0xff]   ;;  %v17297_v39 = vmov 0  }
 0x263   : > { %4582 = vmatprep.subr.bf16.mxu0 %v15230_v44  ;;  %v15289_v37 = vld [vmem:[%s17623_s19 + $0x480] ss:$72 sps:$4 sm:$0xff]   ;;  %v15292_v38 = vld [vmem:[%s17623_s19 + $0x3fc] ss:$72 sps:$4 sm:$0xff]   ;;  %4649 = vmatprep.mubr.bf16.mxu1 %v17297_v39 }
 0x264   : > { %v15295_v40 = vld [vmem:[%s17623_s19 + $0xcfc] ss:$72 sps:$4 sm:$0xff]   ;;  %v15290_v19 = vld [vmem:[%s17623_s19 + $0x3f8] ss:$72 sps:$4 sm:$0xff]  }
 0x265   : > { %4624 = vmatpush1.bf16.msra.mxu1 %v15264_v21 }
 0x266   : > { %4583 = vmatpush1.bf16.msra.mxu0 %v15232_v45  ;;  %4625 = vmatprep.subr.bf16.mxu1 %v15266_v23  ;;  %v15301_v23 = vld [vmem:[%s17623_s19 + $0xc6c] ss:$72 sps:$4 sm:$0xff]  }
 0x267   : > { %4584 = vmatprep.subr.bf16.mxu0 %v15233_v46  ;;  %v1871_v46 = vlaneseq }
 0x26a   : > { %4585 = vmatpush1.bf16.msra.mxu0 %v15235_v47 }
 0x26b   : > { %4586 = vmatprep.subr.bf16.mxu0 %v15236_v48  ;;  %v17805_v48 = vshrl.u32 %v1871_v46, 7 }
 0x26e   : > { %4587 = vmatpush1.bf16.msra.mxu0 %v15238_v49  ;;  %v1804_v49 = vld [vmem:[%s17639_s29] sm:$0xff] }
 0x26f   : > { %4588 = vmatprep.subr.bf16.mxu0 %v15239_v50  ;;  %v17809_v50 = vsub.s32 0, %v17805_v48 }
 0x272   : > { %4589 = vmatpush1.bf16.msra.mxu0 %v15241_v51  ;;  %v1805_v51 = vld [vmem:[%s17639_s29 + $0x8] sm:$0xff] }
 0x273   : > { %4590 = vmatprep.subr.bf16.mxu0 %v15244_v52  ;;  %v1806_v52 = vld [vmem:[%s17639_s29 + $0x10] sm:$0xff] }
 0x276   : > { %4591 = vmatpush2.bf16.msra.mxu0 %v15247_v53 }
 0x277   : > { %4592 = vmatprep.subr.bf16.mxu0 %v15250_v11 }
 0x27a   : > { %4593 = vmatpush2.bf16.msra.mxu0 %v15253_v13 }
 0x27b   : > { %4594 = vmatprep.subr.bf16.mxu0 %v15256_v16 }
 0x27e   : > { %4595 = vmatpush2.bf16.msra.mxu0 %v15259_v18 }
 0x27f   : > { %4596 = vmatprep.subr.bf16.mxu0 %v15262_v20 }
 0x282   : > { %4597 = vmatpush2.bf16.msra.mxu0 %v15265_v22  ;;  %v15298_v22 = vld [vmem:[%s17623_s19 + $0x36c] ss:$72 sps:$4 sm:$0xff]  }
 0x283   : > { %4598 = vmatprep.subr.bf16.mxu0 %v15268_v24  ;;  %v15296_v24 = vld [vmem:[%s17623_s19 + $0x368] ss:$72 sps:$4 sm:$0xff]  }
 0x2e1   : > { %v1831_v54 = vpop.xlane.xlu0 %1830 }
 0x2e2   : > { %v1837_v56 = vmul.f32 0.0026041667, %v1831_v54  ;;  %v17814_v54 = vsub.s32 1, %v17805_v48 }
 0x2e4   : > { %v17749_v57 = vsub.f32 %v1822_v25, %v1837_v56  ;;  %v17751_v58 = vsub.f32 %v1823_v26, %v1837_v56  ;;  %v17753_v59 = vsub.f32 %v1824_v27, %v1837_v56  ;;  %v15270_v25 = vld [vmem:[%s17623_s19 + $0xab0] ss:$72 sps:$4 sm:$0xff]   ;;  %v15272_v27 = vld [vmem:[%s17623_s19 + $0xa24] ss:$72 sps:$4 sm:$0xff]  }
 0x2e5   : > { %v1835_v60 = vpop.xlane.xlu0 %1834  ;;  %v15271_v26 = vld [vmem:[%s17623_s19 + $0x630] ss:$72 sps:$4 sm:$0xff]   ;;  %4626 = vmatpush1.bf16.msra.mxu1 %v15270_v25 }
 0x2e6   : > { %v1838_v61 = vmul.f32 0.0026041667, %v1835_v60  ;;  %v1845_v62 = vmul.f32 %v17749_v57, %v17749_v57  ;;  %v1846_v63 = vmul.f32 %v17751_v58, %v17751_v58  ;;  %v1847_v0 = vmul.f32 %v17753_v59, %v17753_v59  ;;  %4599 = vmatpush2.bf16.msra.mxu0 %v15271_v26  ;;  %4627 = vmatprep.subr.bf16.mxu1 %v15272_v27  ;;  %v15299_v25 = vld [vmem:[%s17623_s19 + $0xc68] ss:$72 sps:$4 sm:$0xff]   ;;  %v15304_v26 = vld [vmem:[%s17623_s19 + $0x2dc] ss:$72 sps:$4 sm:$0xff]  }
 0x2e7   : > { %4600 = vmatprep.subr.bf16.mxu0 %v15274_v28  ;;  %v1874_v60 = vrot.slane %v1804_v49, %v17809_v50  ;;  %v15307_v27 = vld [vmem:[%s17623_s19 + $0xbdc] ss:$72 sps:$4 sm:$0xff]   ;;  %v15302_v28 = vld [vmem:[%s17623_s19 + $0x2d8] ss:$72 sps:$4 sm:$0xff]  }
 0x2e8   : > { %v17761_v1 = vsub.f32 %v1825_v29, %v1838_v61  ;;  %v17763_v2 = vsub.f32 %v1826_v14, %v1838_v61  ;;  %v17765_v3 = vsub.f32 %v1827_v30, %v1838_v61  ;;  %v1851_v55 = vadd.f32 %v1846_v63, %v1845_v62  ;;  %v15276_v29 = vld [vmem:[%s17623_s19 + $0xa20] ss:$72 sps:$4 sm:$0xff]   ;;  %v15278_v30 = vld [vmem:[%s17623_s19 + $0x994] ss:$72 sps:$4 sm:$0xff]  }
 0x2e9   : > { %v15277_v14 = vld [vmem:[%s17623_s19 + $0x5a0] ss:$72 sps:$4 sm:$0xff]   ;;  %4628 = vmatpush1.bf16.msra.mxu1 %v15276_v29  ;;  %v1878_v63 = vrot.slane %v1805_v51, %v17809_v50 }
 0x2ea   : > { %v1852_v4 = vadd.f32 %v1851_v55, %v1847_v0  ;;  %v1848_v5 = vmul.f32 %v17761_v1, %v17761_v1  ;;  %v1849_v6 = vmul.f32 %v17763_v2, %v17763_v2  ;;  %v1850_v7 = vmul.f32 %v17765_v3, %v17765_v3  ;;  %4601 = vmatpush2.bf16.msra.mxu0 %v15277_v14  ;;  %v15305_v29 = vld [vmem:[%s17623_s19 + $0xbd8] ss:$72 sps:$4 sm:$0xff]   ;;  %v15310_v14 = vld [vmem:[%s17623_s19 + $0x24c] ss:$72 sps:$4 sm:$0xff]  }
 0x2eb   : > { %4629 = vmatprep.subr.bf16.mxu1 %v15278_v30  ;;  %4602 = vmatprep.subr.bf16.mxu0 %v15280_v31  ;;  %v1882_v0 = vrot.slane %v1806_v52, %v17809_v50  ;;  %v15313_v30 = vld [vmem:[%s17623_s19 + $0xb4c] ss:$72 sps:$4 sm:$0xff]   ;;  %v15308_v31 = vld [vmem:[%s17623_s19 + $0x248] ss:$72 sps:$4 sm:$0xff]  }
 0x2ec   : > { %1853 = vadd.xlane.f32.xlu1 %v1852_v4  ;;  %v1855_v8 = vadd.f32 %v1849_v6, %v1848_v5  ;;  %v1892_v4 = vrot.slane %v1804_v49, %v17814_v54  ;;  %v1896_v6 = vrot.slane %v1805_v51, %v17814_v54  ;;  %v15337_v49 = vld [vmem:[%s17623_s19 + $0x90c] ss:$72 sps:$4 sm:$0xff]   ;;  %v15332_v51 = vld [vmem:[%s17623_s19 + $0x8] ss:$72 sps:$4 sm:$0xff]  }
 0x2ed   : > { %4630 = vmatpush1.bf16.msra.mxu1 %v15282_v32  ;;  %v15311_v32 = vld [vmem:[%s17623_s19 + $0xb48] ss:$72 sps:$4 sm:$0xff]  }
 0x2ee   : > { %v1856_v9 = vadd.f32 %v1855_v8, %v1850_v7  ;;  %4603 = vmatpush2.bf16.msra.mxu0 %v15283_v33  ;;  %4631 = vmatprep.subr.bf16.mxu1 %v15284_v34  ;;  %v1900_v7 = vrot.slane %v1806_v52, %v17814_v54  ;;  %v15316_v33 = vld [vmem:[%s17623_s19 + $0x1bc] ss:$72 sps:$4 sm:$0xff]   ;;  %v15335_v52 = vld [vmem:[%s17623_s19 + $0x908] ss:$72 sps:$4 sm:$0xff]  }
 0x2ef   : > { %4604 = vmatprep.subr.bf16.mxu0 %v15286_v35  ;;  %v15319_v34 = vld [vmem:[%s17623_s19 + $0xabc] ss:$72 sps:$4 sm:$0xff]   ;;  %v15314_v35 = vld [vmem:[%s17623_s19 + $0x1b8] ss:$72 sps:$4 sm:$0xff]  }
 0x2f0   : > { %1857 = vadd.xlane.f32.xlu1 %v1856_v9 }
 0x2f1   : > { %4632 = vmatpush1.bf16.msra.mxu1 %v15288_v36  ;;  %v15317_v36 = vld [vmem:[%s17623_s19 + $0xab8] ss:$72 sps:$4 sm:$0xff]  }
 0x2f2   : > { %4605 = vmatpush2.bf16.msra.mxu0 %v15289_v37  ;;  %4660 = vmatprep.subr.bf16.mxu1 %v15292_v38  ;;  %v15322_v37 = vld [vmem:[%s17623_s19 + $0x12c] ss:$72 sps:$4 sm:$0xff]  }
 0x2f3   : > { %4703 = vmatprep.subr.bf16.mxu0 %v15295_v40  ;;  %v15325_v38 = vld [vmem:[%s17623_s19 + $0xa2c] ss:$72 sps:$4 sm:$0xff]   ;;  %v15320_v40 = vld [vmem:[%s17623_s19 + $0x128] ss:$72 sps:$4 sm:$0xff]  }
 0x375   : > { %v1854_v41 = vpop.xlane.xlu1 %1853 }
 0x376   : > { %v1859_v42 = vmul.f32 0.0026041667, %v1854_v41  ;;  %v15323_v41 = vld [vmem:[%s17623_s19 + $0xa28] ss:$72 sps:$4 sm:$0xff]  }
 0x378   : > { %v1861_v43 = vadd.f32 1e-06, %v1859_v42  ;;  %v15328_v42 = vld [vmem:[%s17623_s19 + $0x9c] ss:$72 sps:$4 sm:$0xff]  }
 0x379   : > { %v1858_v44 = vpop.xlane.xlu1 %1857 }
 0x37a   : > { %16874 = vrsqrt.f32 %v1861_v43  ;;  %v1860_v45 = vmul.f32 0.0026041667, %v1858_v44  ;;  %v15331_v43 = vld [vmem:[%s17623_s19 + $0x99c] ss:$72 sps:$4 sm:$0xff]   ;;  %v15326_v44 = vld [vmem:[%s17623_s19 + $0x98] ss:$72 sps:$4 sm:$0xff]  }
 0x37c   : > { %v1862_v47 = vadd.f32 1e-06, %v1860_v45  ;;  %v15329_v45 = vld [vmem:[%s17623_s19 + $0x998] ss:$72 sps:$4 sm:$0xff]  }
 0x37e   : > { %16876 = vrsqrt.f32 %v1862_v47  ;;  %v15334_v47 = vld [vmem:[%s17623_s19 + $0xc] ss:$72 sps:$4 sm:$0xff]  }
 0x387   : > { %v16875_v53 = vpop.eup %16874 }
 0x388   : > { %v1865_v56 = vmul.f32 %v16875_v53, %v17749_v57  ;;  %v1866_v61 = vmul.f32 %v16875_v53, %v17751_v58  ;;  %v1867_v62 = vmul.f32 %v16875_v53, %v17753_v59  ;;  %v15340_v53 = vld [vmem:[%s17623_s19 + $0x87c] ss:$72 sps:$4 sm:$0xff]  }
 0x38a   : > { %v1883_v5 = vmul.f32 %v1874_v60, %v1865_v56  ;;  %v1884_v8 = vmul.f32 %v1878_v63, %v1866_v61  ;;  %v1885_v58 = vmul.f32 %v1882_v0, %v1867_v62  ;;  %v15343_v56 = vld [vmem:[%s17623_s19 + $0x404] ss:$72 sps:$4 sm:$0xff]   ;;  %v15341_v61 = vld [vmem:[%s17623_s19 + $0x400] ss:$72 sps:$4 sm:$0xff]  }
 0x38b   : > { %v16877_v55 = vpop.eup %16876  ;;  %v15346_v62 = vld [vmem:[%s17623_s19 + $0x7ec] ss:$72 sps:$4 sm:$0xff]  }
 0x38c   : > { %v1868_v57 = vmul.f32 %v16877_v55, %v17761_v1  ;;  %v1869_v59 = vmul.f32 %v16877_v55, %v17763_v2  ;;  %v1870_v9 = vmul.f32 %v16877_v55, %v17765_v3  ;;  %v1901_v13 = vadd.f32 %v1892_v4, %v1883_v5  ;;  %v15293_v2 = vld [vmem:[%s17623_s19 + $0xcf8] ss:$72 sps:$4 sm:$0xff]  }
 0x38d   : > { %v1902_v16 = vadd.f32 %v1896_v6, %v1884_v8  ;;  %v1903_v17 = vadd.f32 %v1900_v7, %v1885_v58  ;;  %v15347_v55 = vld [vmem:[%s17623_s19 + $0x370] ss:$72 sps:$4 sm:$0xff]   ;;  %v15361_v58 = vld [vmem:[%s17623_s19 + $0x254] ss:$72 sps:$4 sm:$0xff]  }
 0x38e   : > { %v1886_v10 = vmul.f32 %v1874_v60, %v1868_v57  ;;  %v1887_v11 = vmul.f32 %v1878_v63, %v1869_v59  ;;  %v1888_v12 = vmul.f32 %v1882_v0, %v1870_v9  ;;  %v15338_v60 = vld [vmem:[%s17623_s19 + $0x878] ss:$72 sps:$4 sm:$0xff]   ;;  %v15349_v63 = vld [vmem:[%s17623_s19 + $0x374] ss:$72 sps:$4 sm:$0xff]   ;;  %v15344_v0 = vld [vmem:[%s17623_s19 + $0x7e8] ss:$72 sps:$4 sm:$0xff]  }
 0x38f   : > { %v15350_v5 = vld [vmem:[%s17623_s19 + $0x758] ss:$72 sps:$4 sm:$0xff]   ;;  %v15358_v57 = vld [vmem:[%s17623_s19 + $0x6cc] ss:$72 sps:$4 sm:$0xff]   ;;  %v15356_v8 = vld [vmem:[%s17623_s19 + $0x6c8] ss:$72 sps:$4 sm:$0xff]  }
 0x390   : > { %v1904_v15 = vadd.f32 %v1892_v4, %v1886_v10  ;;  %v1905_v18 = vadd.f32 %v1896_v6, %v1887_v11  ;;  %v1906_v1 = vadd.f32 %v1900_v7, %v1888_v12  ;;  %v15352_v4 = vld [vmem:[%s17623_s19 + $0x75c] ss:$72 sps:$4 sm:$0xff]   ;;  %v15353_v7 = vld [vmem:[%s17623_s19 + $0x2e0] ss:$72 sps:$4 sm:$0xff]   ;;  %v15359_v59 = vld [vmem:[%s17623_s19 + $0x250] ss:$72 sps:$4 sm:$0xff]  }
 0x391   : > { %v15355_v6 = vld [vmem:[%s17623_s19 + $0x2e4] ss:$72 sps:$4 sm:$0xff]   ;;  %v15362_v10 = vld [vmem:[%s17623_s19 + $0x638] ss:$72 sps:$4 sm:$0xff]  }
 0x392   : > { %v17829_v20 = vpack.c.bf16 %v1904_v15, %v1901_v13  ;;  %v17832_v21 = vpack.c.bf16 %v1905_v18, %v1902_v16  ;;  %v17834_v3 = vpack.c.bf16 %v1906_v1, %v1903_v17  ;;  %v15364_v9 = vld [vmem:[%s17623_s19 + $0x63c] ss:$72 sps:$4 sm:$0xff]   ;;  %v15365_v12 = vld [vmem:[%s17623_s19 + $0x1c0] ss:$72 sps:$4 sm:$0xff]   ;;  %v15370_v13 = vld [vmem:[%s17623_s19 + $0x5ac] ss:$72 sps:$4 sm:$0xff]  }
 0x393   : > { %v15367_v11 = vld [vmem:[%s17623_s19 + $0x1c4] ss:$72 sps:$4 sm:$0xff]   ;;  %v15368_v15 = vld [vmem:[%s17623_s19 + $0x5a8] ss:$72 sps:$4 sm:$0xff]   ;;  %v15373_v16 = vld [vmem:[%s17623_s19 + $0x134] ss:$72 sps:$4 sm:$0xff]  }
 0x394   : > { %4606 = vmatprep.mubr.bf16.mxu0 %v17832_v21  ;;  %4650 = vmatmul.mubr.bf16.vlgmr.msra.gmra.mxu1 %v17834_v3  ;;  %v15371_v17 = vld [vmem:[%s17623_s19 + $0x130] ss:$72 sps:$4 sm:$0xff]   ;;  %v15376_v18 = vld [vmem:[%s17623_s19 + $0x51c] ss:$72 sps:$4 sm:$0xff]  }
 0x395   : > { %4661 = vmatpush1.bf16.msra.mxu1 %v15290_v19  ;;  %4607 = vmatmul.mubr.bf16.vlgmr.msra.gmra.mxu0 %v17829_v20  ;;  %v15374_v1 = vld [vmem:[%s17623_s19 + $0x518] ss:$72 sps:$4 sm:$0xff]   ;;  %v15379_v19 = vld [vmem:[%s17623_s19 + $0xa4] ss:$72 sps:$4 sm:$0xff]  }
 0x396   : > { %4692 = vmatprep.mubr.bf16.mxu1 %v17832_v21  ;;  %4704 = vmatpush1.bf16.msra.mxu0 %v15293_v2  ;;  %v15377_v2 = vld [vmem:[%s17623_s19 + $0xa0] ss:$72 sps:$4 sm:$0xff]  }
 0x397   : > { %4662 = vmatprep.subr.bf16.mxu1 %v15298_v22  ;;  %4705 = vmatprep.subr.bf16.mxu0 %v15301_v23  ;;  %v15382_v22 = vld [vmem:[%s17623_s19 + $0x48c] ss:$72 sps:$4 sm:$0xff]   ;;  %v15380_v23 = vld [vmem:[%s17623_s19 + $0x488] ss:$72 sps:$4 sm:$0xff]  }
 0x398   : > { %4735 = vmatprep.mubr.bf16.mxu0 %v17297_v39 }
 0x399   : > { %4663 = vmatpush1.bf16.msra.mxu1 %v15296_v24  ;;  %v15385_v24 = vld [vmem:[%s17623_s19 + $0x14] ss:$72 sps:$4 sm:$0xff]  }
 0x39a   : > { %4706 = vmatpush1.bf16.msra.mxu0 %v15299_v25  ;;  %4664 = vmatprep.subr.bf16.mxu1 %v15304_v26  ;;  %v15383_v25 = vld [vmem:[%s17623_s19 + $0x10] ss:$72 sps:$4 sm:$0xff]   ;;  %v15388_v26 = vld [vmem:[%s17623_s19 + $0xd04] ss:$72 sps:$4 sm:$0xff]  }
 0x39b   : > { %4707 = vmatprep.subr.bf16.mxu0 %v15307_v27  ;;  %v15386_v27 = vld [vmem:[%s17623_s19 + $0xd00] ss:$72 sps:$4 sm:$0xff]  }
 0x39d   : > { %4665 = vmatpush1.bf16.msra.mxu1 %v15302_v28  ;;  %v15391_v28 = vld [vmem:[%s17623_s19 + $0x884] ss:$72 sps:$4 sm:$0xff]  }
 0x39e   : > { %4708 = vmatpush1.bf16.msra.mxu0 %v15305_v29  ;;  %4666 = vmatprep.subr.bf16.mxu1 %v15310_v14  ;;  %v15389_v29 = vld [vmem:[%s17623_s19 + $0x880] ss:$72 sps:$4 sm:$0xff]   ;;  %v15394_v14 = vld [vmem:[%s17623_s19 + $0xc74] ss:$72 sps:$4 sm:$0xff]  }
 0x39f   : > { %4709 = vmatprep.subr.bf16.mxu0 %v15313_v30  ;;  %v15397_v30 = vld [vmem:[%s17623_s19 + $0x7f4] ss:$72 sps:$4 sm:$0xff]  }
 0x3a1   : > { %4667 = vmatpush1.bf16.msra.mxu1 %v15308_v31  ;;  %v15392_v31 = vld [vmem:[%s17623_s19 + $0xc70] ss:$72 sps:$4 sm:$0xff]  }
 0x3a2   : > { %4710 = vmatpush1.bf16.msra.mxu0 %v15311_v32  ;;  %4668 = vmatprep.subr.bf16.mxu1 %v15316_v33  ;;  %v15395_v32 = vld [vmem:[%s17623_s19 + $0x7f0] ss:$72 sps:$4 sm:$0xff]   ;;  %v15400_v33 = vld [vmem:[%s17623_s19 + $0xbe4] ss:$72 sps:$4 sm:$0xff]  }
 0x3a3   : > { %4711 = vmatprep.subr.bf16.mxu0 %v15319_v34  ;;  %v15403_v34 = vld [vmem:[%s17623_s19 + $0x764] ss:$72 sps:$4 sm:$0xff]  }
 0x3a5   : > { %4669 = vmatpush1.bf16.msra.mxu1 %v15314_v35  ;;  %v15398_v35 = vld [vmem:[%s17623_s19 + $0xbe0] ss:$72 sps:$4 sm:$0xff]  }
 0x3a6   : > { %4712 = vmatpush1.bf16.msra.mxu0 %v15317_v36  ;;  %4670 = vmatprep.subr.bf16.mxu1 %v15322_v37  ;;  %v15401_v36 = vld [vmem:[%s17623_s19 + $0x760] ss:$72 sps:$4 sm:$0xff]   ;;  %v15406_v37 = vld [vmem:[%s17623_s19 + $0xb54] ss:$72 sps:$4 sm:$0xff]  }
 0x3a7   : > { %4713 = vmatprep.subr.bf16.mxu0 %v15325_v38  ;;  %v15409_v38 = vld [vmem:[%s17623_s19 + $0x6d4] ss:$72 sps:$4 sm:$0xff]  }
 0x3a9   : > { %4671 = vmatpush1.bf16.msra.mxu1 %v15320_v40  ;;  %v15404_v40 = vld [vmem:[%s17623_s19 + $0xb50] ss:$72 sps:$4 sm:$0xff]  }
 0x3aa   : > { %4714 = vmatpush1.bf16.msra.mxu0 %v15323_v41  ;;  %4672 = vmatprep.subr.bf16.mxu1 %v15328_v42  ;;  %v15407_v41 = vld [vmem:[%s17623_s19 + $0x6d0] ss:$72 sps:$4 sm:$0xff]   ;;  %v15412_v42 = vld [vmem:[%s17623_s19 + $0xac4] ss:$72 sps:$4 sm:$0xff]  }
 0x3ab   : > { %4715 = vmatprep.subr.bf16.mxu0 %v15331_v43  ;;  %v15415_v43 = vld [vmem:[%s17623_s19 + $0x644] ss:$72 sps:$4 sm:$0xff]  }
 0x3ad   : > { %4673 = vmatpush1.bf16.msra.mxu1 %v15326_v44  ;;  %v15410_v44 = vld [vmem:[%s17623_s19 + $0xac0] ss:$72 sps:$4 sm:$0xff]  }
 0x3ae   : > { %4716 = vmatpush1.bf16.msra.mxu0 %v15329_v45  ;;  %4674 = vmatprep.subr.bf16.mxu1 %v15334_v47  ;;  %v15413_v45 = vld [vmem:[%s17623_s19 + $0x640] ss:$72 sps:$4 sm:$0xff]   ;;  %v15418_v47 = vld [vmem:[%s17623_s19 + $0xa34] ss:$72 sps:$4 sm:$0xff]  }
 0x3af   : > { %4717 = vmatprep.subr.bf16.mxu0 %v15337_v49  ;;  %v15421_v49 = vld [vmem:[%s17623_s19 + $0x5b4] ss:$72 sps:$4 sm:$0xff]  }
 0x3b1   : > { %4675 = vmatpush1.bf16.msra.mxu1 %v15332_v51  ;;  %v15416_v51 = vld [vmem:[%s17623_s19 + $0xa30] ss:$72 sps:$4 sm:$0xff]  }
 0x3b2   : > { %4718 = vmatpush1.bf16.msra.mxu0 %v15335_v52  ;;  %4676 = vmatprep.subr.bf16.mxu1 %v15340_v53  ;;  %v15419_v52 = vld [vmem:[%s17623_s19 + $0x5b0] ss:$72 sps:$4 sm:$0xff]   ;;  %v15424_v53 = vld [vmem:[%s17623_s19 + $0x9a4] ss:$72 sps:$4 sm:$0xff]  }
 0x3b3   : > { %4746 = vmatprep.subr.bf16.mxu0 %v15343_v56  ;;  %v15427_v56 = vld [vmem:[%s17623_s19 + $0x524] ss:$72 sps:$4 sm:$0xff]  }
 0x3b5   : > { %4677 = vmatpush2.bf16.msra.mxu1 %v15338_v60  ;;  %4736 = vmatmul.mubr.bf16.vlgmr.msra.gmra.mxu0 %v17834_v3  ;;  %v15422_v60 = vld [vmem:[%s17623_s19 + $0x9a0] ss:$72 sps:$4 sm:$0xff]  }
 0x3b6   : > { %4747 = vmatpush1.bf16.msra.mxu0 %v15341_v61  ;;  %4778 = vmatprep.mubr.bf16.mxu0 %v17832_v21  ;;  %v15425_v61 = vld [vmem:[%s17623_s19 + $0x520] ss:$72 sps:$4 sm:$0xff]  }
 0x3b7   : > { %4678 = vmatprep.subr.bf16.mxu1 %v15346_v62  ;;  %4748 = vmatprep.subr.bf16.mxu0 %v15349_v63  ;;  %v15430_v62 = vld [vmem:[%s17623_s19 + $0x914] ss:$72 sps:$4 sm:$0xff]  }
 0x3b8   : > { %v15433_v63 = vld [vmem:[%s17623_s19 + $0x494] ss:$72 sps:$4 sm:$0xff]  }
 0x3b9   : > { %4679 = vmatpush2.bf16.msra.mxu1 %v15344_v0  ;;  %v15428_v0 = vld [vmem:[%s17623_s19 + $0x910] ss:$72 sps:$4 sm:$0xff]  }
 0x3ba   : > { %4749 = vmatpush1.bf16.msra.mxu0 %v15347_v55  ;;  %4680 = vmatprep.subr.bf16.mxu1 %v15352_v4  ;;  %v15431_v55 = vld [vmem:[%s17623_s19 + $0x490] ss:$72 sps:$4 sm:$0xff]   ;;  %v15436_v4 = vld [vmem:[%s17623_s19 + $0x40c] ss:$72 sps:$4 sm:$0xff]  }
 0x3bb   : > { %4750 = vmatprep.subr.bf16.mxu0 %v15355_v6  ;;  %v15434_v6 = vld [vmem:[%s17623_s19 + $0x408] ss:$72 sps:$4 sm:$0xff]  }
 0x3bd   : > { %4681 = vmatpush2.bf16.msra.mxu1 %v15350_v5  ;;  %v15439_v5 = vld [vmem:[%s17623_s19 + $0xd0c] ss:$72 sps:$4 sm:$0xff]  }
 0x3be   : > { %4751 = vmatpush1.bf16.msra.mxu0 %v15353_v7  ;;  %4682 = vmatprep.subr.bf16.mxu1 %v15358_v57  ;;  %v15437_v7 = vld [vmem:[%s17623_s19 + $0xd08] ss:$72 sps:$4 sm:$0xff]   ;;  %v15442_v57 = vld [vmem:[%s17623_s19 + $0x37c] ss:$72 sps:$4 sm:$0xff]  }
 0x3bf   : > { %4752 = vmatprep.subr.bf16.mxu0 %v15361_v58  ;;  %v15440_v58 = vld [vmem:[%s17623_s19 + $0x378] ss:$72 sps:$4 sm:$0xff]  }
 0x3c1   : > { %4683 = vmatpush2.bf16.msra.mxu1 %v15356_v8  ;;  %v15445_v8 = vld [vmem:[%s17623_s19 + $0xc7c] ss:$72 sps:$4 sm:$0xff]  }
 0x3c2   : > { %4753 = vmatpush1.bf16.msra.mxu0 %v15359_v59  ;;  %4684 = vmatprep.subr.bf16.mxu1 %v15364_v9  ;;  %v15443_v59 = vld [vmem:[%s17623_s19 + $0xc78] ss:$72 sps:$4 sm:$0xff]   ;;  %v15448_v9 = vld [vmem:[%s17623_s19 + $0x2ec] ss:$72 sps:$4 sm:$0xff]  }
 0x3c3   : > { %4754 = vmatprep.subr.bf16.mxu0 %v15367_v11  ;;  %v15451_v11 = vld [vmem:[%s17623_s19 + $0xbec] ss:$72 sps:$4 sm:$0xff]  }
 0x3c5   : > { %4685 = vmatpush2.bf16.msra.mxu1 %v15362_v10  ;;  %v15446_v10 = vld [vmem:[%s17623_s19 + $0x2e8] ss:$72 sps:$4 sm:$0xff]  }
 0x3c6   : > { %4755 = vmatpush1.bf16.msra.mxu0 %v15365_v12  ;;  %4686 = vmatprep.subr.bf16.mxu1 %v15370_v13  ;;  %v15449_v12 = vld [vmem:[%s17623_s19 + $0xbe8] ss:$72 sps:$4 sm:$0xff]   ;;  %v15454_v13 = vld [vmem:[%s17623_s19 + $0x25c] ss:$72 sps:$4 sm:$0xff]  }
 0x3c7   : > { %4756 = vmatprep.subr.bf16.mxu0 %v15373_v16  ;;  %v15452_v16 = vld [vmem:[%s17623_s19 + $0x258] ss:$72 sps:$4 sm:$0xff]  }
 0x3c9   : > { %4687 = vmatpush2.bf16.msra.mxu1 %v15368_v15  ;;  %v15457_v15 = vld [vmem:[%s17623_s19 + $0xb5c] ss:$72 sps:$4 sm:$0xff]  }
 0x3ca   : > { %4757 = vmatpush1.bf16.msra.mxu0 %v15371_v17  ;;  %4688 = vmatprep.subr.bf16.mxu1 %v15376_v18  ;;  %v15455_v17 = vld [vmem:[%s17623_s19 + $0xb58] ss:$72 sps:$4 sm:$0xff]   ;;  %v15460_v18 = vld [vmem:[%s17623_s19 + $0x1cc] ss:$72 sps:$4 sm:$0xff]  }
 0x3cb   : > { %4758 = vmatprep.subr.bf16.mxu0 %v15379_v19  ;;  %v15458_v19 = vld [vmem:[%s17623_s19 + $0x1c8] ss:$72 sps:$4 sm:$0xff]  }
 0x3cd   : > { %4689 = vmatpush2.bf16.msra.mxu1 %v15374_v1  ;;  %v15463_v1 = vld [vmem:[%s17623_s19 + $0xacc] ss:$72 sps:$4 sm:$0xff]  }
 0x3ce   : > { %4759 = vmatpush1.bf16.msra.mxu0 %v15377_v2  ;;  %4690 = vmatprep.subr.bf16.mxu1 %v15382_v22  ;;  %v15461_v2 = vld [vmem:[%s17623_s19 + $0xac8] ss:$72 sps:$4 sm:$0xff]   ;;  %v15466_v22 = vld [vmem:[%s17623_s19 + $0x13c] ss:$72 sps:$4 sm:$0xff]  }
 0x3cf   : > { %4760 = vmatprep.subr.bf16.mxu0 %v15385_v24  ;;  %v15464_v24 = vld [vmem:[%s17623_s19 + $0x138] ss:$72 sps:$4 sm:$0xff]  }
 0x3d1   : > { %4691 = vmatpush2.bf16.msra.mxu1 %v15380_v23  ;;  %v15469_v23 = vld [vmem:[%s17623_s19 + $0xa3c] ss:$72 sps:$4 sm:$0xff]  }
 0x3d2   : > { %4761 = vmatpush1.bf16.msra.mxu0 %v15383_v25  ;;  %4789 = vmatprep.subr.bf16.mxu1 %v15388_v26  ;;  %v15467_v25 = vld [vmem:[%s17623_s19 + $0xa38] ss:$72 sps:$4 sm:$0xff]   ;;  %v15472_v26 = vld [vmem:[%s17623_s19 + $0xac] ss:$72 sps:$4 sm:$0xff]  }
 0x3d3   : > { %4762 = vmatprep.subr.bf16.mxu0 %v15391_v28  ;;  %v15470_v28 = vld [vmem:[%s17623_s19 + $0xa8] ss:$72 sps:$4 sm:$0xff]  }
 0x3d4   : > { %4693 = vmatmul.mubr.bf16.vlgmr.msra.gmra.mxu1 %v17829_v20 }
 0x3d5   : > { %4790 = vmatpush1.bf16.msra.mxu1 %v15386_v27  ;;  %4821 = vmatprep.mubr.bf16.mxu1 %v17297_v39  ;;  %v15475_v27 = vld [vmem:[%s17623_s19 + $0x9ac] ss:$72 sps:$4 sm:$0xff]  }
 0x3d6   : > { %4763 = vmatpush2.bf16.msra.mxu0 %v15389_v29  ;;  %4791 = vmatprep.subr.bf16.mxu1 %v15394_v14  ;;  %v15473_v29 = vld [vmem:[%s17623_s19 + $0x9a8] ss:$72 sps:$4 sm:$0xff]   ;;  %v15478_v14 = vld [vmem:[%s17623_s19 + $0x1c] ss:$72 sps:$4 sm:$0xff]  }
 0x3d7   : > { %4764 = vmatprep.subr.bf16.mxu0 %v15397_v30  ;;  %v15481_v30 = vld [vmem:[%s17623_s19 + $0x91c] ss:$72 sps:$4 sm:$0xff]  }
 0x3d9   : > { %4792 = vmatpush1.bf16.msra.mxu1 %v15392_v31  ;;  %v15476_v31 = vld [vmem:[%s17623_s19 + $0x18] ss:$72 sps:$4 sm:$0xff]  }
 0x3da   : > { %4765 = vmatpush2.bf16.msra.mxu0 %v15395_v32  ;;  %4793 = vmatprep.subr.bf16.mxu1 %v15400_v33  ;;  %v15479_v32 = vld [vmem:[%s17623_s19 + $0x918] ss:$72 sps:$4 sm:$0xff]   ;;  %v15484_v33 = vld [vmem:[%s17623_s19 + $0x88c] ss:$72 sps:$4 sm:$0xff]  }
 0x3db   : > { %4766 = vmatprep.subr.bf16.mxu0 %v15403_v34  ;;  %v15487_v34 = vld [vmem:[%s17623_s19 + $0x414] ss:$72 sps:$4 sm:$0xff]  }
 0x3dd   : > { %4794 = vmatpush1.bf16.msra.mxu1 %v15398_v35  ;;  %v15482_v35 = vld [vmem:[%s17623_s19 + $0x888] ss:$72 sps:$4 sm:$0xff]  }
 0x3de   : > { %4767 = vmatpush2.bf16.msra.mxu0 %v15401_v36  ;;  %4795 = vmatprep.subr.bf16.mxu1 %v15406_v37  ;;  %v15485_v36 = vld [vmem:[%s17623_s19 + $0x410] ss:$72 sps:$4 sm:$0xff]   ;;  %v15490_v37 = vld [vmem:[%s17623_s19 + $0x7fc] ss:$72 sps:$4 sm:$0xff]  }
 0x3df   : > { %4768 = vmatprep.subr.bf16.mxu0 %v15409_v38  ;;  %v15493_v38 = vld [vmem:[%s17623_s19 + $0x384] ss:$72 sps:$4 sm:$0xff]  }
 0x3e1   : > { %4796 = vmatpush1.bf16.msra.mxu1 %v15404_v40  ;;  %v15488_v40 = vld [vmem:[%s17623_s19 + $0x7f8] ss:$72 sps:$4 sm:$0xff]  }
 0x3e2   : > { %4769 = vmatpush2.bf16.msra.mxu0 %v15407_v41  ;;  %4797 = vmatprep.subr.bf16.mxu1 %v15412_v42  ;;  %v15491_v41 = vld [vmem:[%s17623_s19 + $0x380] ss:$72 sps:$4 sm:$0xff]   ;;  %v15496_v42 = vld [vmem:[%s17623_s19 + $0x76c] ss:$72 sps:$4 sm:$0xff]  }
 0x3e3   : > { %4770 = vmatprep.subr.bf16.mxu0 %v15415_v43  ;;  %v15499_v43 = vld [vmem:[%s17623_s19 + $0x2f4] ss:$72 sps:$4 sm:$0xff]  }
 0x3e5   : > { %4798 = vmatpush1.bf16.msra.mxu1 %v15410_v44  ;;  %v15494_v44 = vld [vmem:[%s17623_s19 + $0x768] ss:$72 sps:$4 sm:$0xff]  }
 0x3e6   : > { %4771 = vmatpush2.bf16.msra.mxu0 %v15413_v45  ;;  %4799 = vmatprep.subr.bf16.mxu1 %v15418_v47  ;;  %v15497_v45 = vld [vmem:[%s17623_s19 + $0x2f0] ss:$72 sps:$4 sm:$0xff]   ;;  %v15502_v47 = vld [vmem:[%s17623_s19 + $0x6dc] ss:$72 sps:$4 sm:$0xff]  }
 0x3e7   : > { %4772 = vmatprep.subr.bf16.mxu0 %v15421_v49  ;;  %v15505_v49 = vld [vmem:[%s17623_s19 + $0x264] ss:$72 sps:$4 sm:$0xff]  }
 0x3e9   : > { %4800 = vmatpush1.bf16.msra.mxu1 %v15416_v51  ;;  %v15500_v51 = vld [vmem:[%s17623_s19 + $0x6d8] ss:$72 sps:$4 sm:$0xff]  }
 0x3ea   : > { %4773 = vmatpush2.bf16.msra.mxu0 %v15419_v52  ;;  %4801 = vmatprep.subr.bf16.mxu1 %v15424_v53  ;;  %v15503_v52 = vld [vmem:[%s17623_s19 + $0x260] ss:$72 sps:$4 sm:$0xff]   ;;  %v15508_v53 = vld [vmem:[%s17623_s19 + $0x64c] ss:$72 sps:$4 sm:$0xff]  }
 0x3eb   : > { %4774 = vmatprep.subr.bf16.mxu0 %v15427_v56  ;;  %v15511_v56 = vld [vmem:[%s17623_s19 + $0x1d4] ss:$72 sps:$4 sm:$0xff]  }
 0x3ed   : > { %4802 = vmatpush1.bf16.msra.mxu1 %v15422_v60  ;;  %v15506_v60 = vld [vmem:[%s17623_s19 + $0x648] ss:$72 sps:$4 sm:$0xff]  }
 0x3ee   : > { %4775 = vmatpush2.bf16.msra.mxu0 %v15425_v61  ;;  %4803 = vmatprep.subr.bf16.mxu1 %v15430_v62  ;;  %v15509_v61 = vld [vmem:[%s17623_s19 + $0x1d0] ss:$72 sps:$4 sm:$0xff]   ;;  %v15514_v62 = vld [vmem:[%s17623_s19 + $0x5bc] ss:$72 sps:$4 sm:$0xff]  }
 0x3ef   : > { %4776 = vmatprep.subr.bf16.mxu0 %v15433_v63  ;;  %v15512_v63 = vld [vmem:[%s17623_s19 + $0x5b8] ss:$72 sps:$4 sm:$0xff]  }
 0x3f1   : > { %4804 = vmatpush1.bf16.msra.mxu1 %v15428_v0  ;;  %v15517_v0 = vld [vmem:[%s17623_s19 + $0x144] ss:$72 sps:$4 sm:$0xff]  }
 0x3f2   : > { %4777 = vmatpush2.bf16.msra.mxu0 %v15431_v55  ;;  %4832 = vmatprep.subr.bf16.mxu1 %v15436_v4  ;;  %v15515_v55 = vld [vmem:[%s17623_s19 + $0x140] ss:$72 sps:$4 sm:$0xff]   ;;  %v15520_v4 = vld [vmem:[%s17623_s19 + $0x52c] ss:$72 sps:$4 sm:$0xff]  }
 0x3f3   : > { %4875 = vmatprep.subr.bf16.mxu0 %v15439_v5  ;;  %v15518_v5 = vld [vmem:[%s17623_s19 + $0x528] ss:$72 sps:$4 sm:$0xff]  }
 0x3f4   : > { %4822 = vmatmul.mubr.bf16.vlgmr.msra.gmra.mxu1 %v17834_v3 }
 0x3f5   : > { %4779 = vmatmul.mubr.bf16.vlgmr.msra.gmra.mxu0 %v17829_v20  ;;  %4833 = vmatpush1.bf16.msra.mxu1 %v15434_v6  ;;  %v15523_v6 = vld [vmem:[%s17623_s19 + $0xb4] ss:$72 sps:$4 sm:$0xff]  }
 0x3f6   : > { %4864 = vmatprep.mubr.bf16.mxu1 %v17832_v21  ;;  %4876 = vmatpush1.bf16.msra.mxu0 %v15437_v7  ;;  %v15521_v7 = vld [vmem:[%s17623_s19 + $0xb0] ss:$72 sps:$4 sm:$0xff]  }
 0x3f7   : > { %4834 = vmatprep.subr.bf16.mxu1 %v15442_v57  ;;  %4877 = vmatprep.subr.bf16.mxu0 %v15445_v8  ;;  %v15526_v57 = vld [vmem:[%s17623_s19 + $0x49c] ss:$72 sps:$4 sm:$0xff]   ;;  %v15524_v8 = vld [vmem:[%s17623_s19 + $0x498] ss:$72 sps:$4 sm:$0xff]  }
 0x3f8   : > { %4907 = vmatprep.mubr.bf16.mxu0 %v17297_v39 }
 0x3f9   : > { %4835 = vmatpush1.bf16.msra.mxu1 %v15440_v58  ;;  %v15529_v58 = vld [vmem:[%s17623_s19 + $0x24] ss:$72 sps:$4 sm:$0xff]  }
 0x3fa   : > { %4878 = vmatpush1.bf16.msra.mxu0 %v15443_v59  ;;  %4836 = vmatprep.subr.bf16.mxu1 %v15448_v9  ;;  %v15527_v59 = vld [vmem:[%s17623_s19 + $0x20] ss:$72 sps:$4 sm:$0xff]   ;;  %v15532_v9 = vld [vmem:[%s17623_s19 + $0xd14] ss:$72 sps:$4 sm:$0xff]  }
 0x3fb   : > { %4879 = vmatprep.subr.bf16.mxu0 %v15451_v11  ;;  %v15535_v11 = vld [vmem:[%s17623_s19 + $0x894] ss:$72 sps:$4 sm:$0xff]  }
 0x3fd   : > { %4837 = vmatpush1.bf16.msra.mxu1 %v15446_v10  ;;  %v15530_v10 = vld [vmem:[%s17623_s19 + $0xd10] ss:$72 sps:$4 sm:$0xff]  }
 0x3fe   : > { %4880 = vmatpush1.bf16.msra.mxu0 %v15449_v12  ;;  %4838 = vmatprep.subr.bf16.mxu1 %v15454_v13  ;;  %v15533_v12 = vld [vmem:[%s17623_s19 + $0x890] ss:$72 sps:$4 sm:$0xff]   ;;  %v15538_v13 = vld [vmem:[%s17623_s19 + $0xc84] ss:$72 sps:$4 sm:$0xff]  }
 0x3ff   : > { %4881 = vmatprep.subr.bf16.mxu0 %v15457_v15  ;;  %v15541_v15 = vld [vmem:[%s17623_s19 + $0x804] ss:$72 sps:$4 sm:$0xff]  }
 0x401   : > { %4839 = vmatpush1.bf16.msra.mxu1 %v15452_v16  ;;  %v15536_v16 = vld [vmem:[%s17623_s19 + $0xc80] ss:$72 sps:$4 sm:$0xff]  }
 0x402   : > { %4882 = vmatpush1.bf16.msra.mxu0 %v15455_v17  ;;  %4840 = vmatprep.subr.bf16.mxu1 %v15460_v18  ;;  %v15539_v17 = vld [vmem:[%s17623_s19 + $0x800] ss:$72 sps:$4 sm:$0xff]   ;;  %v15544_v18 = vld [vmem:[%s17623_s19 + $0xbf4] ss:$72 sps:$4 sm:$0xff]  }
 0x403   : > { %4883 = vmatprep.subr.bf16.mxu0 %v15463_v1  ;;  %v15547_v1 = vld [vmem:[%s17623_s19 + $0x774] ss:$72 sps:$4 sm:$0xff]  }
 0x405   : > { %4841 = vmatpush1.bf16.msra.mxu1 %v15458_v19  ;;  %v15542_v19 = vld [vmem:[%s17623_s19 + $0xbf0] ss:$72 sps:$4 sm:$0xff]  }
 0x406   : > { %4884 = vmatpush1.bf16.msra.mxu0 %v15461_v2  ;;  %4842 = vmatprep.subr.bf16.mxu1 %v15466_v22  ;;  %v15545_v2 = vld [vmem:[%s17623_s19 + $0x770] ss:$72 sps:$4 sm:$0xff]   ;;  %v15550_v22 = vld [vmem:[%s17623_s19 + $0xb64] ss:$72 sps:$4 sm:$0xff]  }
 0x407   : > { %4885 = vmatprep.subr.bf16.mxu0 %v15469_v23  ;;  %v15553_v23 = vld [vmem:[%s17623_s19 + $0x6e4] ss:$72 sps:$4 sm:$0xff]  }
 0x409   : > { %4843 = vmatpush1.bf16.msra.mxu1 %v15464_v24  ;;  %v15548_v24 = vld [vmem:[%s17623_s19 + $0xb60] ss:$72 sps:$4 sm:$0xff]  }
 0x40a   : > { %4886 = vmatpush1.bf16.msra.mxu0 %v15467_v25  ;;  %4844 = vmatprep.subr.bf16.mxu1 %v15472_v26  ;;  %v15551_v25 = vld [vmem:[%s17623_s19 + $0x6e0] ss:$72 sps:$4 sm:$0xff]   ;;  %v15556_v26 = vld [vmem:[%s17623_s19 + $0xad4] ss:$72 sps:$4 sm:$0xff]  }
 0x40b   : > { %4887 = vmatprep.subr.bf16.mxu0 %v15475_v27  ;;  %v15559_v27 = vld [vmem:[%s17623_s19 + $0x654] ss:$72 sps:$4 sm:$0xff]  }
 0x40d   : > { %4845 = vmatpush1.bf16.msra.mxu1 %v15470_v28  ;;  %v15554_v28 = vld [vmem:[%s17623_s19 + $0xad0] ss:$72 sps:$4 sm:$0xff]  }
 0x40e   : > { %4888 = vmatpush1.bf16.msra.mxu0 %v15473_v29  ;;  %4846 = vmatprep.subr.bf16.mxu1 %v15478_v14  ;;  %v15557_v29 = vld [vmem:[%s17623_s19 + $0x650] ss:$72 sps:$4 sm:$0xff]   ;;  %v15562_v14 = vld [vmem:[%s17623_s19 + $0xa44] ss:$72 sps:$4 sm:$0xff]  }
 0x40f   : > { %4889 = vmatprep.subr.bf16.mxu0 %v15481_v30  ;;  %v15565_v30 = vld [vmem:[%s17623_s19 + $0x5c4] ss:$72 sps:$4 sm:$0xff]  }
 0x411   : > { %4847 = vmatpush1.bf16.msra.mxu1 %v15476_v31  ;;  %v15560_v31 = vld [vmem:[%s17623_s19 + $0xa40] ss:$72 sps:$4 sm:$0xff]  }
 0x412   : > { %4890 = vmatpush1.bf16.msra.mxu0 %v15479_v32  ;;  %4848 = vmatprep.subr.bf16.mxu1 %v15484_v33  ;;  %v15563_v32 = vld [vmem:[%s17623_s19 + $0x5c0] ss:$72 sps:$4 sm:$0xff]   ;;  %v15568_v33 = vld [vmem:[%s17623_s19 + $0x9b4] ss:$72 sps:$4 sm:$0xff]  }
 0x413   : > { %4918 = vmatprep.subr.bf16.mxu0 %v15487_v34  ;;  %v15571_v34 = vld [vmem:[%s17623_s19 + $0x534] ss:$72 sps:$4 sm:$0xff]  }
 0x415   : > { %4849 = vmatpush2.bf16.msra.mxu1 %v15482_v35  ;;  %4908 = vmatmul.mubr.bf16.vlgmr.msra.gmra.mxu0 %v17834_v3  ;;  %v15566_v35 = vld [vmem:[%s17623_s19 + $0x9b0] ss:$72 sps:$4 sm:$0xff]  }
 0x416   : > { %4919 = vmatpush1.bf16.msra.mxu0 %v15485_v36  ;;  %4950 = vmatprep.mubr.bf16.mxu0 %v17832_v21  ;;  %v15569_v36 = vld [vmem:[%s17623_s19 + $0x530] ss:$72 sps:$4 sm:$0xff]  }
 0x417   : > { %4850 = vmatprep.subr.bf16.mxu1 %v15490_v37  ;;  %4920 = vmatprep.subr.bf16.mxu0 %v15493_v38  ;;  %v15574_v37 = vld [vmem:[%s17623_s19 + $0x924] ss:$72 sps:$4 sm:$0xff]  }
 0x418   : > { %v15577_v38 = vld [vmem:[%s17623_s19 + $0x4a4] ss:$72 sps:$4 sm:$0xff]  }
 0x419   : > { %4851 = vmatpush2.bf16.msra.mxu1 %v15488_v40  ;;  %v15572_v40 = vld [vmem:[%s17623_s19 + $0x920] ss:$72 sps:$4 sm:$0xff]  }
 0x41a   : > { %4921 = vmatpush1.bf16.msra.mxu0 %v15491_v41  ;;  %4852 = vmatprep.subr.bf16.mxu1 %v15496_v42  ;;  %v15575_v41 = vld [vmem:[%s17623_s19 + $0x4a0] ss:$72 sps:$4 sm:$0xff]   ;;  %v15580_v42 = vld [vmem:[%s17623_s19 + $0x41c] ss:$72 sps:$4 sm:$0xff]  }
 0x41b   : > { %4922 = vmatprep.subr.bf16.mxu0 %v15499_v43  ;;  %v15583_v43 = vld [vmem:[%s17623_s19 + $0xd1c] ss:$72 sps:$4 sm:$0xff]  }
 0x41d   : > { %4853 = vmatpush2.bf16.msra.mxu1 %v15494_v44  ;;  %v15578_v44 = vld [vmem:[%s17623_s19 + $0x418] ss:$72 sps:$4 sm:$0xff]  }
 0x41e   : > { %4923 = vmatpush1.bf16.msra.mxu0 %v15497_v45  ;;  %4854 = vmatprep.subr.bf16.mxu1 %v15502_v47  ;;  %v15581_v45 = vld [vmem:[%s17623_s19 + $0xd18] ss:$72 sps:$4 sm:$0xff]   ;;  %v18046_v47 = vsub.s32 6, %v17805_v48 }
 0x41f   : > { %4924 = vmatprep.subr.bf16.mxu0 %v15505_v49  ;;  %v15586_v49 = vld [vmem:[%s17623_s19 + $0x38c] ss:$72 sps:$4 sm:$0xff]  }
 0x421   : > { %4855 = vmatpush2.bf16.msra.mxu1 %v15500_v51  ;;  %v15589_v51 = vld [vmem:[%s17623_s19 + $0xc8c] ss:$72 sps:$4 sm:$0xff]  }
 0x422   : > { %4925 = vmatpush1.bf16.msra.mxu0 %v15503_v52  ;;  %4856 = vmatprep.subr.bf16.mxu1 %v15508_v53  ;;  %v15584_v52 = vld [vmem:[%s17623_s19 + $0x388] ss:$72 sps:$4 sm:$0xff]  }
 0x423   : > { %4926 = vmatprep.subr.bf16.mxu0 %v15511_v56  ;;  %v16978_v53 = vld [vmem:[%s17639_s29 + $0x8] sm:$0xff] }
 0x424   : > { %v18054_v56 = vrot.slane %v16978_v53, %v18046_v47  ;;  %v15661_v53 = vld [vmem:[%s17623_s19 + $0x154] ss:$72 sps:$4 sm:$0xff]  }
 0x425   : > { %4857 = vmatpush2.bf16.msra.mxu1 %v15506_v60  ;;  %v15587_v60 = vld [vmem:[%s17623_s19 + $0xc88] ss:$72 sps:$4 sm:$0xff]  }
 0x426   : > { %4927 = vmatpush1.bf16.msra.mxu0 %v15509_v61  ;;  %4858 = vmatprep.subr.bf16.mxu1 %v15514_v62 }
 0x427   : > { %4928 = vmatprep.subr.bf16.mxu0 %v15517_v0 }
 0x429   : > { %4859 = vmatpush2.bf16.msra.mxu1 %v15512_v63  ;;  %v15592_v63 = vld [vmem:[%s17623_s19 + $0x2fc] ss:$72 sps:$4 sm:$0xff]  }
 0x42a   : > { %4929 = vmatpush1.bf16.msra.mxu0 %v15515_v55  ;;  %4860 = vmatprep.subr.bf16.mxu1 %v15520_v4  ;;  %v15590_v55 = vld [vmem:[%s17623_s19 + $0x2f8] ss:$72 sps:$4 sm:$0xff]   ;;  %v15595_v4 = vld [vmem:[%s17623_s19 + $0xbfc] ss:$72 sps:$4 sm:$0xff]  }
 0x42b   : > { %4930 = vmatprep.subr.bf16.mxu0 %v15523_v6  ;;  %v15593_v6 = vld [vmem:[%s17623_s19 + $0xbf8] ss:$72 sps:$4 sm:$0xff]  }
 0x42d   : > { %4861 = vmatpush2.bf16.msra.mxu1 %v15518_v5 }
 0x42e   : > { %4931 = vmatpush1.bf16.msra.mxu0 %v15521_v7  ;;  %4862 = vmatprep.subr.bf16.mxu1 %v15526_v57  ;;  %v15598_v57 = vld [vmem:[%s17623_s19 + $0x26c] ss:$72 sps:$4 sm:$0xff]  }
 0x42f   : > { %4932 = vmatprep.subr.bf16.mxu0 %v15529_v58  ;;  %v15601_v58 = vld [vmem:[%s17623_s19 + $0xb6c] ss:$72 sps:$4 sm:$0xff]  }
 0x431   : > { %4863 = vmatpush2.bf16.msra.mxu1 %v15524_v8 }
 0x432   : > { %4933 = vmatpush1.bf16.msra.mxu0 %v15527_v59  ;;  %4961 = vmatprep.subr.bf16.mxu1 %v15532_v9  ;;  %v15596_v59 = vld [vmem:[%s17623_s19 + $0x268] ss:$72 sps:$4 sm:$0xff]  }
 0x433   : > { %4934 = vmatprep.subr.bf16.mxu0 %v15535_v11  ;;  %v15599_v9 = vld [vmem:[%s17623_s19 + $0xb68] ss:$72 sps:$4 sm:$0xff]   ;;  %v15607_v11 = vld [vmem:[%s17623_s19 + $0xadc] ss:$72 sps:$4 sm:$0xff]  }
 0x434   : > { %4865 = vmatmul.mubr.bf16.vlgmr.msra.gmra.mxu1 %v17829_v20 }
 0x435   : > { %4962 = vmatpush1.bf16.msra.mxu1 %v15530_v10  ;;  %4993 = vmatprep.mubr.bf16.mxu1 %v17297_v39  ;;  %v15604_v10 = vld [vmem:[%s17623_s19 + $0x1dc] ss:$72 sps:$4 sm:$0xff]  }
 0x436   : > { %4935 = vmatpush2.bf16.msra.mxu0 %v15533_v12  ;;  %4963 = vmatprep.subr.bf16.mxu1 %v15538_v13  ;;  %v15602_v12 = vld [vmem:[%s17623_s19 + $0x1d8] ss:$72 sps:$4 sm:$0xff]  }
 0x437   : > { %4936 = vmatprep.subr.bf16.mxu0 %v15541_v15  ;;  %v15605_v13 = vld [vmem:[%s17623_s19 + $0xad8] ss:$72 sps:$4 sm:$0xff]   ;;  %v15610_v15 = vld [vmem:[%s17623_s19 + $0x14c] ss:$72 sps:$4 sm:$0xff]  }
 0x439   : > { %4964 = vmatpush1.bf16.msra.mxu1 %v15536_v16  ;;  %v15613_v16 = vld [vmem:[%s17623_s19 + $0xa4c] ss:$72 sps:$4 sm:$0xff]  }
 0x43a   : > { %4937 = vmatpush2.bf16.msra.mxu0 %v15539_v17  ;;  %4965 = vmatprep.subr.bf16.mxu1 %v15544_v18  ;;  %v15608_v17 = vld [vmem:[%s17623_s19 + $0x148] ss:$72 sps:$4 sm:$0xff]  }
 0x43b   : > { %4938 = vmatprep.subr.bf16.mxu0 %v15547_v1  ;;  %v15611_v18 = vld [vmem:[%s17623_s19 + $0xa48] ss:$72 sps:$4 sm:$0xff]   ;;  %v15616_v1 = vld [vmem:[%s17623_s19 + $0xbc] ss:$72 sps:$4 sm:$0xff]  }
 0x43d   : > { %4966 = vmatpush1.bf16.msra.mxu1 %v15542_v19  ;;  %v15619_v19 = vld [vmem:[%s17623_s19 + $0x9bc] ss:$72 sps:$4 sm:$0xff]  }
 0x43e   : > { %4939 = vmatpush2.bf16.msra.mxu0 %v15545_v2  ;;  %4967 = vmatprep.subr.bf16.mxu1 %v15550_v22  ;;  %v15614_v2 = vld [vmem:[%s17623_s19 + $0xb8] ss:$72 sps:$4 sm:$0xff]  }
 0x43f   : > { %4940 = vmatprep.subr.bf16.mxu0 %v15553_v23  ;;  %v15617_v22 = vld [vmem:[%s17623_s19 + $0x9b8] ss:$72 sps:$4 sm:$0xff]   ;;  %v15622_v23 = vld [vmem:[%s17623_s19 + $0x2c] ss:$72 sps:$4 sm:$0xff]  }
 0x441   : > { %4968 = vmatpush1.bf16.msra.mxu1 %v15548_v24  ;;  %v15625_v24 = vld [vmem:[%s17623_s19 + $0x92c] ss:$72 sps:$4 sm:$0xff]  }
 0x442   : > { %4941 = vmatpush2.bf16.msra.mxu0 %v15551_v25  ;;  %4969 = vmatprep.subr.bf16.mxu1 %v15556_v26  ;;  %v15620_v25 = vld [vmem:[%s17623_s19 + $0x28] ss:$72 sps:$4 sm:$0xff]  }
 0x443   : > { %4942 = vmatprep.subr.bf16.mxu0 %v15559_v27  ;;  %v15623_v26 = vld [vmem:[%s17623_s19 + $0x928] ss:$72 sps:$4 sm:$0xff]   ;;  %v15628_v27 = vld [vmem:[%s17623_s19 + $0x89c] ss:$72 sps:$4 sm:$0xff]  }
 0x445   : > { %4970 = vmatpush1.bf16.msra.mxu1 %v15554_v28  ;;  %v15631_v28 = vld [vmem:[%s17623_s19 + $0x424] ss:$72 sps:$4 sm:$0xff]  }
 0x446   : > { %4943 = vmatpush2.bf16.msra.mxu0 %v15557_v29  ;;  %4971 = vmatprep.subr.bf16.mxu1 %v15562_v14  ;;  %v15626_v29 = vld [vmem:[%s17623_s19 + $0x898] ss:$72 sps:$4 sm:$0xff]  }
 0x447   : > { %4944 = vmatprep.subr.bf16.mxu0 %v15565_v30  ;;  %v15629_v14 = vld [vmem:[%s17623_s19 + $0x420] ss:$72 sps:$4 sm:$0xff]   ;;  %v15634_v30 = vld [vmem:[%s17623_s19 + $0x80c] ss:$72 sps:$4 sm:$0xff]  }
 0x449   : > { %4972 = vmatpush1.bf16.msra.mxu1 %v15560_v31  ;;  %v15637_v31 = vld [vmem:[%s17623_s19 + $0x394] ss:$72 sps:$4 sm:$0xff]  }
 0x44a   : > { %4945 = vmatpush2.bf16.msra.mxu0 %v15563_v32  ;;  %4973 = vmatprep.subr.bf16.mxu1 %v15568_v33  ;;  %v15632_v32 = vld [vmem:[%s17623_s19 + $0x808] ss:$72 sps:$4 sm:$0xff]  }
 0x44b   : > { %4946 = vmatprep.subr.bf16.mxu0 %v15571_v34  ;;  %v15635_v33 = vld [vmem:[%s17623_s19 + $0x390] ss:$72 sps:$4 sm:$0xff]   ;;  %v15640_v34 = vld [vmem:[%s17623_s19 + $0x77c] ss:$72 sps:$4 sm:$0xff]  }
 0x44d   : > { %4974 = vmatpush1.bf16.msra.mxu1 %v15566_v35  ;;  %v15643_v35 = vld [vmem:[%s17623_s19 + $0x304] ss:$72 sps:$4 sm:$0xff]  }
 0x44e   : > { %4947 = vmatpush2.bf16.msra.mxu0 %v15569_v36  ;;  %4975 = vmatprep.subr.bf16.mxu1 %v15574_v37  ;;  %v15638_v36 = vld [vmem:[%s17623_s19 + $0x778] ss:$72 sps:$4 sm:$0xff]  }
 0x44f   : > { %4948 = vmatprep.subr.bf16.mxu0 %v15577_v38  ;;  %v15641_v37 = vld [vmem:[%s17623_s19 + $0x300] ss:$72 sps:$4 sm:$0xff]   ;;  %v15646_v38 = vld [vmem:[%s17623_s19 + $0x6ec] ss:$72 sps:$4 sm:$0xff]  }
 0x451   : > { %4976 = vmatpush1.bf16.msra.mxu1 %v15572_v40  ;;  %v15649_v40 = vld [vmem:[%s17623_s19 + $0x274] ss:$72 sps:$4 sm:$0xff]  }
 0x452   : > { %4949 = vmatpush2.bf16.msra.mxu0 %v15575_v41  ;;  %5004 = vmatprep.subr.bf16.mxu1 %v15580_v42  ;;  %v15644_v41 = vld [vmem:[%s17623_s19 + $0x6e8] ss:$72 sps:$4 sm:$0xff]  }
 0x453   : > { %5047 = vmatprep.subr.bf16.mxu0 %v15583_v43  ;;  %v15647_v42 = vld [vmem:[%s17623_s19 + $0x270] ss:$72 sps:$4 sm:$0xff]   ;;  %v15652_v43 = vld [vmem:[%s17623_s19 + $0x65c] ss:$72 sps:$4 sm:$0xff]  }
 0x454   : > { %4994 = vmatmul.mubr.bf16.vlgmr.msra.gmra.mxu1 %v17834_v3  ;;  %v18057_v61 = vpop.f32.mrf.mxu1 }
 0x455   : > { %4951 = vmatmul.mubr.bf16.vlgmr.msra.gmra.mxu0 %v17829_v20  ;;  %5005 = vmatpush1.bf16.msra.mxu1 %v15578_v44  ;;  %v18060_v62 = vpop.f32.mrf.mxu0  ;;  %v15655_v44 = vld [vmem:[%s17623_s19 + $0x1e4] ss:$72 sps:$4 sm:$0xff]  }
 0x456   : > { %5036 = vmatprep.mubr.bf16.mxu1 %v17832_v21  ;;  %5048 = vmatpush1.bf16.msra.mxu0 %v15581_v45  ;;  %v4653_v7 = vpop.f32.mrf.mxu1  ;;  %v15650_v45 = vld [vmem:[%s17623_s19 + $0x658] ss:$72 sps:$4 sm:$0xff]  }
 0x457   : > { %v4610_v0 = vpop.f32.mrf.mxu0  ;;  %5006 = vmatprep.subr.bf16.mxu1 %v15586_v49  ;;  %5049 = vmatprep.subr.bf16.mxu0 %v15589_v51  ;;  %v15653_v49 = vld [vmem:[%s17623_s19 + $0x1e0] ss:$72 sps:$4 sm:$0xff]   ;;  %v15658_v51 = vld [vmem:[%s17623_s19 + $0x5cc] ss:$72 sps:$4 sm:$0xff]  }
 0x458   : > { %v4611_v5 = vadd.f32 %v4610_v0, %v18054_v56  ;;  %5079 = vmatprep.mubr.bf16.mxu0 %v17297_v39  ;;  %v15662_v0 = vld [vmem:[%s17623_s19 + $0x538] ss:$72 sps:$4 sm:$0xff]  }
 0x459   : > { %5007 = vmatpush1.bf16.msra.mxu1 %v15584_v52  ;;  %v15656_v52 = vld [vmem:[%s17623_s19 + $0x5c8] ss:$72 sps:$4 sm:$0xff]  }
 0x45a   : > { %v18070_v8 = vadd.f32 %v4653_v7, %v4611_v5  ;;  %5050 = vmatpush1.bf16.msra.mxu0 %v15587_v60  ;;  %5008 = vmatprep.subr.bf16.mxu1 %v15592_v63  ;;  %v15659_v60 = vld [vmem:[%s17623_s19 + $0x150] ss:$72 sps:$4 sm:$0xff]   ;;  %v15664_v63 = vld [vmem:[%s17623_s19 + $0x53c] ss:$72 sps:$4 sm:$0xff]   ;;  %v15670_v5 = vld [vmem:[%s17623_s19 + $0x4ac] ss:$72 sps:$4 sm:$0xff]  }
 0x45b   : > { %5051 = vmatprep.subr.bf16.mxu0 %v15595_v4  ;;  %v15665_v4 = vld [vmem:[%s17623_s19 + $0xc0] ss:$72 sps:$4 sm:$0xff]   ;;  %v15673_v7 = vld [vmem:[%s17623_s19 + $0x34] ss:$72 sps:$4 sm:$0xff]  }
 0x45d   : > { %5009 = vmatpush1.bf16.msra.mxu1 %v15590_v55  ;;  %v15667_v55 = vld [vmem:[%s17623_s19 + $0xc4] ss:$72 sps:$4 sm:$0xff]  }
 0x45e   : > { %5052 = vmatpush1.bf16.msra.mxu0 %v15593_v6  ;;  %5010 = vmatprep.subr.bf16.mxu1 %v15598_v57  ;;  %v15668_v6 = vld [vmem:[%s17623_s19 + $0x4a8] ss:$72 sps:$4 sm:$0xff]   ;;  %v18124_v57 = vpop.f32.mrf.mxu0 }
 0x45f   : > { %5053 = vmatprep.subr.bf16.mxu0 %v15601_v58  ;;  %v18126_v58 = vpop.f32.mrf.mxu1 }
 0x461   : > { %5011 = vmatpush1.bf16.msra.mxu1 %v15596_v59  ;;  %v15671_v59 = vld [vmem:[%s17623_s19 + $0x30] ss:$72 sps:$4 sm:$0xff]  }
 0x462   : > { %5054 = vmatpush1.bf16.msra.mxu0 %v15599_v9  ;;  %5012 = vmatprep.subr.bf16.mxu1 %v15604_v10  ;;  %v15676_v9 = vld [vmem:[%s17623_s19 + $0xd24] ss:$72 sps:$4 sm:$0xff]  }
 0x463   : > { %5055 = vmatprep.subr.bf16.mxu0 %v15607_v11  ;;  %v15679_v10 = vld [vmem:[%s17623_s19 + $0x8a4] ss:$72 sps:$4 sm:$0xff]   ;;  %v15674_v11 = vld [vmem:[%s17623_s19 + $0xd20] ss:$72 sps:$4 sm:$0xff]  }
 0x465   : > { %5013 = vmatpush1.bf16.msra.mxu1 %v15602_v12  ;;  %v1807_v12 = vld [vmem:[%s17639_s29 + $0x18] sm:$0xff] }
 0x466   : > { %5056 = vmatpush1.bf16.msra.mxu0 %v15605_v13  ;;  %5014 = vmatprep.subr.bf16.mxu1 %v15610_v15  ;;  %v18133_v13 = vpop.f32.mrf.mxu0  ;;  %v15677_v15 = vld [vmem:[%s17623_s19 + $0x8a0] ss:$72 sps:$4 sm:$0xff]  }
 0x467   : > { %5057 = vmatprep.subr.bf16.mxu0 %v15613_v16  ;;  %v15682_v16 = vld [vmem:[%s17623_s19 + $0xc94] ss:$72 sps:$4 sm:$0xff]  }
 0x469   : > { %5015 = vmatpush1.bf16.msra.mxu1 %v15608_v17  ;;  %v15685_v17 = vld [vmem:[%s17623_s19 + $0x814] ss:$72 sps:$4 sm:$0xff]  }
 0x46a   : > { %5058 = vmatpush1.bf16.msra.mxu0 %v15611_v18  ;;  %5016 = vmatprep.subr.bf16.mxu1 %v15616_v1  ;;  %v18138_v18 = vpop.f32.mrf.mxu1 }
 0x46b   : > { %5059 = vmatprep.subr.bf16.mxu0 %v15619_v19  ;;  %v18143_v19 = vrot.slane %v1807_v12, %v18046_v47  ;;  %v1809_v12 = vld [vmem:[%s17639_s29 + $0x28] sm:$0xff] }
 0x46d   : > { %5017 = vmatpush1.bf16.msra.mxu1 %v15614_v2  ;;  %v15680_v2 = vld [vmem:[%s17623_s19 + $0xc90] ss:$72 sps:$4 sm:$0xff]  }
 0x46e   : > { %5060 = vmatpush1.bf16.msra.mxu0 %v15617_v22  ;;  %5018 = vmatprep.subr.bf16.mxu1 %v15622_v23  ;;  %v15683_v23 = vld [vmem:[%s17623_s19 + $0x810] ss:$72 sps:$4 sm:$0xff]  }
 0x46f   : > { %5061 = vmatprep.subr.bf16.mxu0 %v15625_v24 }
 0x471   : > { %5019 = vmatpush1.bf16.msra.mxu1 %v15620_v25 }
 0x472   : > { %5062 = vmatpush1.bf16.msra.mxu0 %v15623_v26  ;;  %5020 = vmatprep.subr.bf16.mxu1 %v15628_v27  ;;  %v15688_v26 = vld [vmem:[%s17623_s19 + $0xc04] ss:$72 sps:$4 sm:$0xff]  }
 0x473   : > { %5090 = vmatprep.subr.bf16.mxu0 %v15631_v28  ;;  %v16979_v27 = vld [vmem:[%s17639_s29 + $0x10] sm:$0xff] }
 0x474   : > { %v18154_v28 = vrot.slane %v16979_v27, %v18046_v47 }
 0x475   : > { %5021 = vmatpush2.bf16.msra.mxu1 %v15626_v29  ;;  %5080 = vmatmul.mubr.bf16.vlgmr.msra.gmra.mxu0 %v17834_v3  ;;  %v18140_v1 = vpop.f32.mrf.mxu0 }
 0x476   : > { %5091 = vmatpush1.bf16.msra.mxu0 %v15629_v14  ;;  %5122 = vmatprep.mubr.bf16.mxu0 %v17832_v21  ;;  %v15691_v14 = vld [vmem:[%s17623_s19 + $0x784] ss:$72 sps:$4 sm:$0xff]  }
 0x477   : > { %5022 = vmatprep.subr.bf16.mxu1 %v15634_v30  ;;  %5092 = vmatprep.subr.bf16.mxu0 %v15637_v31  ;;  %v4739_v24 = vpop.f32.mrf.mxu0 }
 0x479   : > { %5023 = vmatpush2.bf16.msra.mxu1 %v15632_v32 }
 0x47a   : > { %5093 = vmatpush1.bf16.msra.mxu0 %v15635_v33  ;;  %5024 = vmatprep.subr.bf16.mxu1 %v15640_v34  ;;  %v15686_v33 = vld [vmem:[%s17623_s19 + $0xc00] ss:$72 sps:$4 sm:$0xff]   ;;  %v4741_v34 = vpop.f32.mrf.mxu0 }
 0x47b   : > { %5094 = vmatprep.subr.bf16.mxu0 %v15643_v35  ;;  %v15689_v35 = vld [vmem:[%s17623_s19 + $0x780] ss:$72 sps:$4 sm:$0xff]  }
 0x47d   : > { %5025 = vmatpush2.bf16.msra.mxu1 %v15638_v36  ;;  %v15694_v36 = vld [vmem:[%s17623_s19 + $0xb74] ss:$72 sps:$4 sm:$0xff]  }
 0x47e   : > { %5095 = vmatpush1.bf16.msra.mxu0 %v15641_v37  ;;  %5026 = vmatprep.subr.bf16.mxu1 %v15646_v38  ;;  %v15697_v38 = vld [vmem:[%s17623_s19 + $0x6f4] ss:$72 sps:$4 sm:$0xff]  }
 0x47f   : > { %5096 = vmatprep.subr.bf16.mxu0 %v15649_v40  ;;  %v15692_v40 = vld [vmem:[%s17623_s19 + $0xb70] ss:$72 sps:$4 sm:$0xff]  }
 0x481   : > { %5027 = vmatpush2.bf16.msra.mxu1 %v15644_v41  ;;  %v15695_v41 = vld [vmem:[%s17623_s19 + $0x6f0] ss:$72 sps:$4 sm:$0xff]  }
 0x482   : > { %5097 = vmatpush1.bf16.msra.mxu0 %v15647_v42  ;;  %5028 = vmatprep.subr.bf16.mxu1 %v15652_v43  ;;  %v15700_v42 = vld [vmem:[%s17623_s19 + $0xae4] ss:$72 sps:$4 sm:$0xff]  }
 0x483   : > { %5098 = vmatprep.subr.bf16.mxu0 %v15655_v44  ;;  %v15703_v43 = vld [vmem:[%s17623_s19 + $0x664] ss:$72 sps:$4 sm:$0xff]   ;;  %v15698_v44 = vld [vmem:[%s17623_s19 + $0xae0] ss:$72 sps:$4 sm:$0xff]  }
 0x485   : > { %5029 = vmatpush2.bf16.msra.mxu1 %v15650_v45  ;;  %v15701_v45 = vld [vmem:[%s17623_s19 + $0x660] ss:$72 sps:$4 sm:$0xff]  }
 0x486   : > { %5099 = vmatpush1.bf16.msra.mxu0 %v15653_v49  ;;  %5030 = vmatprep.subr.bf16.mxu1 %v15658_v51  ;;  %v15706_v49 = vld [vmem:[%s17623_s19 + $0xa54] ss:$72 sps:$4 sm:$0xff]  }
 0x487   : > { %5100 = vmatprep.subr.bf16.mxu0 %v15661_v53  ;;  %v15709_v51 = vld [vmem:[%s17623_s19 + $0x5d4] ss:$72 sps:$4 sm:$0xff]   ;;  %v15707_v53 = vld [vmem:[%s17623_s19 + $0x5d0] ss:$72 sps:$4 sm:$0xff]  }
 0x489   : > { %5031 = vmatpush2.bf16.msra.mxu1 %v15656_v52  ;;  %v15704_v52 = vld [vmem:[%s17623_s19 + $0xa50] ss:$72 sps:$4 sm:$0xff]  }
 0x48a   : > { %5101 = vmatpush1.bf16.msra.mxu0 %v15659_v60  ;;  %5032 = vmatprep.subr.bf16.mxu1 %v15664_v63  ;;  %v15712_v60 = vld [vmem:[%s17623_s19 + $0x9c4] ss:$72 sps:$4 sm:$0xff]  }
 0x48b   : > { %5102 = vmatprep.subr.bf16.mxu0 %v15667_v55  ;;  %v15715_v63 = vld [vmem:[%s17623_s19 + $0x544] ss:$72 sps:$4 sm:$0xff]   ;;  %v15713_v55 = vld [vmem:[%s17623_s19 + $0x540] ss:$72 sps:$4 sm:$0xff]  }
 0x48d   : > { %5033 = vmatpush2.bf16.msra.mxu1 %v15662_v0  ;;  %v15710_v0 = vld [vmem:[%s17623_s19 + $0x9c0] ss:$72 sps:$4 sm:$0xff]  }
 0x48e   : > { %5103 = vmatpush1.bf16.msra.mxu0 %v15665_v4  ;;  %5034 = vmatprep.subr.bf16.mxu1 %v15670_v5  ;;  %v15718_v4 = vld [vmem:[%s17623_s19 + $0x934] ss:$72 sps:$4 sm:$0xff]  }
 0x48f   : > { %5104 = vmatprep.subr.bf16.mxu0 %v15673_v7  ;;  %v15721_v5 = vld [vmem:[%s17623_s19 + $0x4b4] ss:$72 sps:$4 sm:$0xff]   ;;  %v15719_v7 = vld [vmem:[%s17623_s19 + $0x4b0] ss:$72 sps:$4 sm:$0xff]  }
 0x491   : > { %5035 = vmatpush2.bf16.msra.mxu1 %v15668_v6  ;;  %v15716_v6 = vld [vmem:[%s17623_s19 + $0x930] ss:$72 sps:$4 sm:$0xff]  }
 0x492   : > { %5105 = vmatpush1.bf16.msra.mxu0 %v15671_v59  ;;  %5133 = vmatprep.subr.bf16.mxu1 %v15676_v9  ;;  %v15724_v59 = vld [vmem:[%s17623_s19 + $0x42c] ss:$72 sps:$4 sm:$0xff]  }
 0x493   : > { %5106 = vmatprep.subr.bf16.mxu0 %v15679_v10  ;;  %v1808_v9 = vld [vmem:[%s17639_s29 + $0x20] sm:$0xff] }
 0x494   : > { %v18146_v22 = vpop.f32.mrf.mxu1  ;;  %5037 = vmatmul.mubr.bf16.vlgmr.msra.gmra.mxu1 %v17829_v20  ;;  %v15727_v10 = vld [vmem:[%s17623_s19 + $0xd2c] ss:$72 sps:$4 sm:$0xff]  }
 0x495   : > { %5134 = vmatpush1.bf16.msra.mxu1 %v15674_v11  ;;  %5165 = vmatprep.mubr.bf16.mxu1 %v17297_v39  ;;  %v15722_v11 = vld [vmem:[%s17623_s19 + $0x428] ss:$72 sps:$4 sm:$0xff]  }
 0x496   : > { %v4696_v25 = vpop.f32.mrf.mxu1  ;;  %5107 = vmatpush2.bf16.msra.mxu0 %v15677_v15  ;;  %5135 = vmatprep.subr.bf16.mxu1 %v15682_v16  ;;  %v2361_v16 = vrot.slane %v1808_v9, %v18046_v47  ;;  %v15760_v9 = vld [vmem:[%s17623_s19 + $0xcc] ss:$72 sps:$4 sm:$0xff]  }
 0x497   : > { %v4697_v29 = vadd.f32 %v4696_v25, %v18143_v19  ;;  %5108 = vmatprep.subr.bf16.mxu0 %v15685_v17  ;;  %v15725_v17 = vld [vmem:[%s17623_s19 + $0xd28] ss:$72 sps:$4 sm:$0xff]  }
 0x498   : > { %v4698_v30 = vpop.f32.mrf.mxu1 }
 0x499   : > { %v18158_v31 = vadd.f32 %v4739_v24, %v4697_v29  ;;  %v4699_v32 = vadd.f32 %v4698_v30, %v18154_v28  ;;  %5136 = vmatpush1.bf16.msra.mxu1 %v15680_v2  ;;  %v18194_v2 = vpop.f32.mrf.mxu0  ;;  %v15733_v24 = vld [vmem:[%s17623_s19 + $0xc9c] ss:$72 sps:$4 sm:$0xff]   ;;  %v15728_v29 = vld [vmem:[%s17623_s19 + $0x398] ss:$72 sps:$4 sm:$0xff]  }
 0x49a   : > { %5109 = vmatpush2.bf16.msra.mxu0 %v15683_v23  ;;  %5137 = vmatprep.subr.bf16.mxu1 %v15688_v26  ;;  %v18190_v15 = vpop.f32.mrf.mxu1  ;;  %v15730_v23 = vld [vmem:[%s17623_s19 + $0x39c] ss:$72 sps:$4 sm:$0xff]   ;;  %v18200_v26 = vrot.slane %v1809_v12, %v18046_v47  ;;  %v15731_v30 = vld [vmem:[%s17623_s19 + $0xc98] ss:$72 sps:$4 sm:$0xff]   ;;  %v15761_v12 = vld [vmem:[%s17623_s19 + $0x9c8] ss:$72 sps:$4 sm:$0xff]  }
 0x49b   : > { %v18164_v37 = vadd.f32 %v4741_v34, %v4699_v32  ;;  %5110 = vmatprep.subr.bf16.mxu0 %v15691_v14  ;;  %v15736_v32 = vld [vmem:[%s17623_s19 + $0x30c] ss:$72 sps:$4 sm:$0xff]  }
 0x49d   : > { %5138 = vmatpush1.bf16.msra.mxu1 %v15686_v33 }
 0x49e   : > { %5111 = vmatpush2.bf16.msra.mxu0 %v15689_v35  ;;  %5139 = vmatprep.subr.bf16.mxu1 %v15694_v36  ;;  %v15739_v35 = vld [vmem:[%s17623_s19 + $0xc0c] ss:$72 sps:$4 sm:$0xff]  }
 0x49f   : > { %5112 = vmatprep.subr.bf16.mxu0 %v15697_v38 }
 0x4a1   : > { %5140 = vmatpush1.bf16.msra.mxu1 %v15692_v40 }
 0x4a2   : > { %5113 = vmatpush2.bf16.msra.mxu0 %v15695_v41  ;;  %5141 = vmatprep.subr.bf16.mxu1 %v15700_v42  ;;  %v15734_v41 = vld [vmem:[%s17623_s19 + $0x308] ss:$72 sps:$4 sm:$0xff]  }
 0x4a3   : > { %5114 = vmatprep.subr.bf16.mxu0 %v15703_v43 }
 0x4a5   : > { %5142 = vmatpush1.bf16.msra.mxu1 %v15698_v44  ;;  %v15737_v44 = vld [vmem:[%s17623_s19 + $0xc08] ss:$72 sps:$4 sm:$0xff]  }
 0x4a6   : > { %5115 = vmatpush2.bf16.msra.mxu0 %v15701_v45  ;;  %5143 = vmatprep.subr.bf16.mxu1 %v15706_v49  ;;  %v15742_v45 = vld [vmem:[%s17623_s19 + $0x27c] ss:$72 sps:$4 sm:$0xff]  }
 0x4a7   : > { %5116 = vmatprep.subr.bf16.mxu0 %v15709_v51  ;;  %v15745_v51 = vld [vmem:[%s17623_s19 + $0xb7c] ss:$72 sps:$4 sm:$0xff]  }
 0x4a9   : > { %5144 = vmatpush1.bf16.msra.mxu1 %v15704_v52 }
 0x4aa   : > { %5117 = vmatpush2.bf16.msra.mxu0 %v15707_v53  ;;  %5145 = vmatprep.subr.bf16.mxu1 %v15712_v60  ;;  %v15740_v53 = vld [vmem:[%s17623_s19 + $0x278] ss:$72 sps:$4 sm:$0xff]  }
 0x4ab   : > { %5118 = vmatprep.subr.bf16.mxu0 %v15715_v63  ;;  %v15743_v60 = vld [vmem:[%s17623_s19 + $0xb78] ss:$72 sps:$4 sm:$0xff]   ;;  %v15748_v63 = vld [vmem:[%s17623_s19 + $0x1ec] ss:$72 sps:$4 sm:$0xff]  }
 0x4ad   : > { %5146 = vmatpush1.bf16.msra.mxu1 %v15710_v0  ;;  %v15751_v0 = vld [vmem:[%s17623_s19 + $0xaec] ss:$72 sps:$4 sm:$0xff]  }
 0x4ae   : > { %5119 = vmatpush2.bf16.msra.mxu0 %v15713_v55  ;;  %5147 = vmatprep.subr.bf16.mxu1 %v15718_v4  ;;  %v15746_v55 = vld [vmem:[%s17623_s19 + $0x1e8] ss:$72 sps:$4 sm:$0xff]  }
 0x4af   : > { %5120 = vmatprep.subr.bf16.mxu0 %v15721_v5  ;;  %v15749_v4 = vld [vmem:[%s17623_s19 + $0xae8] ss:$72 sps:$4 sm:$0xff]   ;;  %v15754_v5 = vld [vmem:[%s17623_s19 + $0x15c] ss:$72 sps:$4 sm:$0xff]  }
 0x4b1   : > { %5148 = vmatpush1.bf16.msra.mxu1 %v15716_v6  ;;  %v15757_v6 = vld [vmem:[%s17623_s19 + $0xa5c] ss:$72 sps:$4 sm:$0xff]  }
 0x4b2   : > { %5121 = vmatpush2.bf16.msra.mxu0 %v15719_v7  ;;  %5176 = vmatprep.subr.bf16.mxu1 %v15724_v59  ;;  %v15752_v7 = vld [vmem:[%s17623_s19 + $0x158] ss:$72 sps:$4 sm:$0xff]  }
 0x4b3   : > { %5219 = vmatprep.subr.bf16.mxu0 %v15727_v10  ;;  %v15755_v59 = vld [vmem:[%s17623_s19 + $0xa58] ss:$72 sps:$4 sm:$0xff]   ;;  %v15763_v10 = vld [vmem:[%s17623_s19 + $0x9cc] ss:$72 sps:$4 sm:$0xff]  }
 0x4b4   : > { %v4823_v25 = vpop.f32.mrf.mxu1  ;;  %5166 = vmatmul.mubr.bf16.vlgmr.msra.gmra.mxu1 %v17834_v3 }
 0x4b5   : > { %v4780_v27 = vpop.f32.mrf.mxu0  ;;  %5123 = vmatmul.mubr.bf16.vlgmr.msra.gmra.mxu0 %v17829_v20  ;;  %5177 = vmatpush1.bf16.msra.mxu1 %v15722_v11  ;;  %v15758_v11 = vld [vmem:[%s17623_s19 + $0xc8] ss:$72 sps:$4 sm:$0xff]  }
 0x4b6   : > { %v4781_v14 = vadd.f32 %v4780_v27, %v2361_v16  ;;  %5208 = vmatprep.mubr.bf16.mxu1 %v17832_v21  ;;  %5220 = vmatpush1.bf16.msra.mxu0 %v15725_v17  ;;  %v4825_v33 = vpop.f32.mrf.mxu1  ;;  %v15769_v17 = vld [vmem:[%s17623_s19 + $0x93c] ss:$72 sps:$4 sm:$0xff]  }
 0x4b7   : > { %v4782_v34 = vpop.f32.mrf.mxu0  ;;  %5178 = vmatprep.subr.bf16.mxu1 %v15730_v23  ;;  %5221 = vmatprep.subr.bf16.mxu0 %v15733_v24  ;;  %v15764_v23 = vld [vmem:[%s17623_s19 + $0x38] ss:$72 sps:$4 sm:$0xff]   ;;  %v15775_v27 = vld [vmem:[%s17623_s19 + $0x434] ss:$72 sps:$4 sm:$0xff]  }
 0x4b8   : > { %v18208_v36 = vadd.f32 %v4823_v25, %v4781_v14  ;;  %v4783_v38 = vadd.f32 %v4782_v34, %v18200_v26  ;;  %5251 = vmatprep.mubr.bf16.mxu0 %v17297_v39  ;;  %v4827_v49 = vpop.f32.mrf.mxu1  ;;  %v15767_v24 = vld [vmem:[%s17623_s19 + $0x938] ss:$72 sps:$4 sm:$0xff]   ;;  %v15772_v25 = vld [vmem:[%s17623_s19 + $0x8ac] ss:$72 sps:$4 sm:$0xff]  }
 0x4b9   : > { %v4784_v40 = vpop.f32.mrf.mxu0  ;;  %5179 = vmatpush1.bf16.msra.mxu1 %v15728_v29  ;;  %v15770_v29 = vld [vmem:[%s17623_s19 + $0x8a8] ss:$72 sps:$4 sm:$0xff]  }
 0x4ba   : > { %v18213_v42 = vadd.f32 %v4825_v33, %v4783_v38  ;;  %v4785_v43 = vadd.f32 %v4784_v40, %v2361_v16  ;;  %5222 = vmatpush1.bf16.msra.mxu0 %v15731_v30  ;;  %5180 = vmatprep.subr.bf16.mxu1 %v15736_v32  ;;  %v15766_v16 = vld [vmem:[%s17623_s19 + $0x3c] ss:$72 sps:$4 sm:$0xff]   ;;  %v15773_v14 = vld [vmem:[%s17623_s19 + $0x430] ss:$72 sps:$4 sm:$0xff]   ;;  %v15779_v34 = vld [vmem:[%s17623_s19 + $0x3a0] ss:$72 sps:$4 sm:$0xff]  }
 0x4bb   : > { %5223 = vmatprep.subr.bf16.mxu0 %v15739_v35  ;;  %v15778_v30 = vld [vmem:[%s17623_s19 + $0x81c] ss:$72 sps:$4 sm:$0xff]   ;;  %v15776_v33 = vld [vmem:[%s17623_s19 + $0x818] ss:$72 sps:$4 sm:$0xff]   ;;  %v15784_v35 = vld [vmem:[%s17623_s19 + $0x78c] ss:$72 sps:$4 sm:$0xff]  }
 0x4bc   : > { %v18218_v52 = vadd.f32 %v4827_v49, %v4785_v43  ;;  %v15781_v32 = vld [vmem:[%s17623_s19 + $0x3a4] ss:$72 sps:$4 sm:$0xff]   ;;  %v15787_v38 = vld [vmem:[%s17623_s19 + $0x314] ss:$72 sps:$4 sm:$0xff]   ;;  %v15782_v40 = vld [vmem:[%s17623_s19 + $0x788] ss:$72 sps:$4 sm:$0xff]  }
 0x4bd   : > { %5181 = vmatpush1.bf16.msra.mxu1 %v15734_v41  ;;  %v15785_v41 = vld [vmem:[%s17623_s19 + $0x310] ss:$72 sps:$4 sm:$0xff]   ;;  %v15790_v43 = vld [vmem:[%s17623_s19 + $0x6fc] ss:$72 sps:$4 sm:$0xff]   ;;  %v15796_v49 = vld [vmem:[%s17623_s19 + $0x66c] ss:$72 sps:$4 sm:$0xff]  }
 0x4be   : > { %5224 = vmatpush1.bf16.msra.mxu0 %v15737_v44  ;;  %5182 = vmatprep.subr.bf16.mxu1 %v15742_v45  ;;  %v15793_v44 = vld [vmem:[%s17623_s19 + $0x284] ss:$72 sps:$4 sm:$0xff]   ;;  %v15791_v45 = vld [vmem:[%s17623_s19 + $0x280] ss:$72 sps:$4 sm:$0xff]  }
 0x4bf   : > { %5225 = vmatprep.subr.bf16.mxu0 %v15745_v51  ;;  %v15799_v51 = vld [vmem:[%s17623_s19 + $0x1f4] ss:$72 sps:$4 sm:$0xff]  }
 0x4c1   : > { %5183 = vmatpush1.bf16.msra.mxu1 %v15740_v53  ;;  %v15794_v53 = vld [vmem:[%s17623_s19 + $0x668] ss:$72 sps:$4 sm:$0xff]  }
 0x4c2   : > { %5226 = vmatpush1.bf16.msra.mxu0 %v15743_v60  ;;  %5184 = vmatprep.subr.bf16.mxu1 %v15748_v63  ;;  %v15797_v60 = vld [vmem:[%s17623_s19 + $0x1f0] ss:$72 sps:$4 sm:$0xff]   ;;  %v15802_v63 = vld [vmem:[%s17623_s19 + $0x5dc] ss:$72 sps:$4 sm:$0xff]  }
 0x4c3   : > { %5227 = vmatprep.subr.bf16.mxu0 %v15751_v0  ;;  %v15805_v0 = vld [vmem:[%s17623_s19 + $0x164] ss:$72 sps:$4 sm:$0xff]  }
 0x4c5   : > { %5185 = vmatpush1.bf16.msra.mxu1 %v15746_v55  ;;  %v15800_v55 = vld [vmem:[%s17623_s19 + $0x5d8] ss:$72 sps:$4 sm:$0xff]  }
 0x4c6   : > { %5228 = vmatpush1.bf16.msra.mxu0 %v15749_v4  ;;  %5186 = vmatprep.subr.bf16.mxu1 %v15754_v5  ;;  %v15803_v4 = vld [vmem:[%s17623_s19 + $0x160] ss:$72 sps:$4 sm:$0xff]   ;;  %v15808_v5 = vld [vmem:[%s17623_s19 + $0x54c] ss:$72 sps:$4 sm:$0xff]  }
 0x4c7   : > { %5229 = vmatprep.subr.bf16.mxu0 %v15757_v6  ;;  %v15811_v6 = vld [vmem:[%s17623_s19 + $0xd4] ss:$72 sps:$4 sm:$0xff]  }
 0x4c9   : > { %5187 = vmatpush1.bf16.msra.mxu1 %v15752_v7  ;;  %v15806_v7 = vld [vmem:[%s17623_s19 + $0x548] ss:$72 sps:$4 sm:$0xff]  }
 0x4ca   : > { %5230 = vmatpush1.bf16.msra.mxu0 %v15755_v59  ;;  %5188 = vmatprep.subr.bf16.mxu1 %v15760_v9  ;;  %v15809_v59 = vld [vmem:[%s17623_s19 + $0xd0] ss:$72 sps:$4 sm:$0xff]   ;;  %v15814_v9 = vld [vmem:[%s17623_s19 + $0x4bc] ss:$72 sps:$4 sm:$0xff]  }
 0x4cb   : > { %5231 = vmatprep.subr.bf16.mxu0 %v15763_v10  ;;  %v15817_v10 = vld [vmem:[%s17623_s19 + $0x44] ss:$72 sps:$4 sm:$0xff]  }
 0x4cd   : > { %5189 = vmatpush1.bf16.msra.mxu1 %v15758_v11  ;;  %v15812_v11 = vld [vmem:[%s17623_s19 + $0x4b8] ss:$72 sps:$4 sm:$0xff]  }
 0x4ce   : > { %5232 = vmatpush1.bf16.msra.mxu0 %v15761_v12  ;;  %5190 = vmatprep.subr.bf16.mxu1 %v15766_v16  ;;  %v15815_v12 = vld [vmem:[%s17623_s19 + $0x40] ss:$72 sps:$4 sm:$0xff]   ;;  %v15820_v16 = vld [vmem:[%s17623_s19 + $0xd34] ss:$72 sps:$4 sm:$0xff]  }
 0x4cf   : > { %5233 = vmatprep.subr.bf16.mxu0 %v15769_v17  ;;  %v15823_v17 = vld [vmem:[%s17623_s19 + $0x8b4] ss:$72 sps:$4 sm:$0xff]  }
 0x4d1   : > { %5191 = vmatpush1.bf16.msra.mxu1 %v15764_v23  ;;  %v1811_v23 = vld [vmem:[%s17639_s29 + $0x38] sm:$0xff] }
 0x4d2   : > { %5234 = vmatpush1.bf16.msra.mxu0 %v15767_v24  ;;  %5192 = vmatprep.subr.bf16.mxu1 %v15772_v25  ;;  %v15818_v24 = vld [vmem:[%s17623_s19 + $0xd30] ss:$72 sps:$4 sm:$0xff]   ;;  %v18276_v25 = vpop.f32.mrf.mxu1 }
 0x4d3   : > { %5262 = vmatprep.subr.bf16.mxu0 %v15775_v27  ;;  %v18278_v27 = vpop.f32.mrf.mxu0 }
 0x4d5   : > { %5193 = vmatpush2.bf16.msra.mxu1 %v15770_v29  ;;  %5252 = vmatmul.mubr.bf16.vlgmr.msra.gmra.mxu0 %v17834_v3  ;;  %v15821_v29 = vld [vmem:[%s17623_s19 + $0x8b0] ss:$72 sps:$4 sm:$0xff]  }
 0x4d6   : > { %5263 = vmatpush1.bf16.msra.mxu0 %v15773_v14  ;;  %5294 = vmatprep.mubr.bf16.mxu0 %v17832_v21  ;;  %v15788_v21 = vld [vmem:[%s17623_s19 + $0x6f8] ss:$72 sps:$4 sm:$0xff]   ;;  %v15826_v14 = vld [vmem:[%s17623_s19 + $0xca4] ss:$72 sps:$4 sm:$0xff]  }
 0x4d7   : > { %5194 = vmatprep.subr.bf16.mxu1 %v15778_v30  ;;  %5264 = vmatprep.subr.bf16.mxu0 %v15781_v32  ;;  %v18283_v30 = vrot.slane %v1811_v23, %v18046_v47  ;;  %v15829_v32 = vld [vmem:[%s17623_s19 + $0x824] ss:$72 sps:$4 sm:$0xff]   ;;  %v15854_v23 = vld [vmem:[%s17623_s19 + $0x9d0] ss:$72 sps:$4 sm:$0xff]  }
 0x4d9   : > { %5195 = vmatpush2.bf16.msra.mxu1 %v15776_v33  ;;  %v18286_v33 = vpop.f32.mrf.mxu0 }
 0x4da   : > { %5265 = vmatpush1.bf16.msra.mxu0 %v15779_v34  ;;  %5196 = vmatprep.subr.bf16.mxu1 %v15784_v35  ;;  %v15824_v35 = vld [vmem:[%s17623_s19 + $0xca0] ss:$72 sps:$4 sm:$0xff]  }
 0x4db   : > { %5266 = vmatprep.subr.bf16.mxu0 %v15787_v38 }
 0x4dd   : > { %5197 = vmatpush2.bf16.msra.mxu1 %v15782_v40  ;;  %v15827_v40 = vld [vmem:[%s17623_s19 + $0x820] ss:$72 sps:$4 sm:$0xff]  }
 0x4de   : > { %5267 = vmatpush1.bf16.msra.mxu0 %v15785_v41  ;;  %5198 = vmatprep.subr.bf16.mxu1 %v15790_v43  ;;  %v15832_v41 = vld [vmem:[%s17623_s19 + $0xc14] ss:$72 sps:$4 sm:$0xff]  }
 0x4df   : > { %5268 = vmatprep.subr.bf16.mxu0 %v15793_v44  ;;  %v15835_v44 = vld [vmem:[%s17623_s19 + $0x794] ss:$72 sps:$4 sm:$0xff]  }
 0x4e1   : > { %5199 = vmatpush2.bf16.msra.mxu1 %v15788_v21  ;;  %v4911_v21 = vpop.f32.mrf.mxu0 }
 0x4e2   : > { %5269 = vmatpush1.bf16.msra.mxu0 %v15791_v45  ;;  %5200 = vmatprep.subr.bf16.mxu1 %v15796_v49  ;;  %v15830_v49 = vld [vmem:[%s17623_s19 + $0xc10] ss:$72 sps:$4 sm:$0xff]  }
 0x4e3   : > { %5270 = vmatprep.subr.bf16.mxu0 %v15799_v51  ;;  %v15833_v51 = vld [vmem:[%s17623_s19 + $0x790] ss:$72 sps:$4 sm:$0xff]  }
 0x4e5   : > { %5201 = vmatpush2.bf16.msra.mxu1 %v15794_v53  ;;  %v15838_v53 = vld [vmem:[%s17623_s19 + $0xb84] ss:$72 sps:$4 sm:$0xff]  }
 0x4e6   : > { %5271 = vmatpush1.bf16.msra.mxu0 %v15797_v60  ;;  %5202 = vmatprep.subr.bf16.mxu1 %v15802_v63  ;;  %v15841_v60 = vld [vmem:[%s17623_s19 + $0x704] ss:$72 sps:$4 sm:$0xff]   ;;  %v15836_v63 = vld [vmem:[%s17623_s19 + $0xb80] ss:$72 sps:$4 sm:$0xff]  }
 0x4e7   : > { %5272 = vmatprep.subr.bf16.mxu0 %v15805_v0  ;;  %v15839_v0 = vld [vmem:[%s17623_s19 + $0x700] ss:$72 sps:$4 sm:$0xff]  }
 0x4e9   : > { %5203 = vmatpush2.bf16.msra.mxu1 %v15800_v55  ;;  %v15844_v55 = vld [vmem:[%s17623_s19 + $0xaf4] ss:$72 sps:$4 sm:$0xff]  }
 0x4ea   : > { %5273 = vmatpush1.bf16.msra.mxu0 %v15803_v4  ;;  %5204 = vmatprep.subr.bf16.mxu1 %v15808_v5  ;;  %v15847_v4 = vld [vmem:[%s17623_s19 + $0x674] ss:$72 sps:$4 sm:$0xff]   ;;  %v15842_v5 = vld [vmem:[%s17623_s19 + $0xaf0] ss:$72 sps:$4 sm:$0xff]  }
 0x4eb   : > { %5274 = vmatprep.subr.bf16.mxu0 %v15811_v6  ;;  %v15845_v6 = vld [vmem:[%s17623_s19 + $0x670] ss:$72 sps:$4 sm:$0xff]  }
 0x4ed   : > { %5205 = vmatpush2.bf16.msra.mxu1 %v15806_v7  ;;  %v15850_v7 = vld [vmem:[%s17623_s19 + $0xa64] ss:$72 sps:$4 sm:$0xff]  }
 0x4ee   : > { %5275 = vmatpush1.bf16.msra.mxu0 %v15809_v59  ;;  %5206 = vmatprep.subr.bf16.mxu1 %v15814_v9  ;;  %v15853_v59 = vld [vmem:[%s17623_s19 + $0x5e4] ss:$72 sps:$4 sm:$0xff]  }
 0x4ef   : > { %5276 = vmatprep.subr.bf16.mxu0 %v15817_v10  ;;  %v1810_v9 = vld [vmem:[%s17639_s29 + $0x30] sm:$0xff] }
 0x4f0   : > { %v15848_v10 = vld [vmem:[%s17623_s19 + $0xa60] ss:$72 sps:$4 sm:$0xff]  }
 0x4f1   : > { %5207 = vmatpush2.bf16.msra.mxu1 %v15812_v11  ;;  %v15851_v11 = vld [vmem:[%s17623_s19 + $0x5e0] ss:$72 sps:$4 sm:$0xff]  }
 0x4f2   : > { %5277 = vmatpush1.bf16.msra.mxu0 %v15815_v12  ;;  %5305 = vmatprep.subr.bf16.mxu1 %v15820_v16  ;;  %v15856_v12 = vld [vmem:[%s17623_s19 + $0x9d4] ss:$72 sps:$4 sm:$0xff]   ;;  %v2369_v16 = vrot.slane %v1810_v9, %v18046_v47 }
 0x4f3   : > { %5278 = vmatprep.subr.bf16.mxu0 %v15823_v17  ;;  %v15859_v17 = vld [vmem:[%s17623_s19 + $0x554] ss:$72 sps:$4 sm:$0xff]  }
 0x4f4   : > { %v4866_v34 = vpop.f32.mrf.mxu1  ;;  %5209 = vmatmul.mubr.bf16.vlgmr.msra.gmra.mxu1 %v17829_v20 }
 0x4f5   : > { %5306 = vmatpush1.bf16.msra.mxu1 %v15818_v24  ;;  %5337 = vmatprep.mubr.bf16.mxu1 %v17297_v39  ;;  %v15857_v24 = vld [vmem:[%s17623_s19 + $0x550] ss:$72 sps:$4 sm:$0xff]  }
 0x4f6   : > { %v4868_v38 = vpop.f32.mrf.mxu1  ;;  %5279 = vmatpush2.bf16.msra.mxu0 %v15821_v29  ;;  %5307 = vmatprep.subr.bf16.mxu1 %v15826_v14  ;;  %v15862_v29 = vld [vmem:[%s17623_s19 + $0x944] ss:$72 sps:$4 sm:$0xff]   ;;  %v4867_v14 = vadd.f32 %v4866_v34, %v2369_v16 }
 0x4f7   : > { %v4869_v43 = vadd.f32 %v4868_v38, %v18283_v30  ;;  %5280 = vmatprep.subr.bf16.mxu0 %v15829_v32  ;;  %v15865_v32 = vld [vmem:[%s17623_s19 + $0x4c4] ss:$72 sps:$4 sm:$0xff]  }
 0x4f8   : > { %v1813_v34 = vld [vmem:[%s17639_s29 + $0x48] sm:$0xff] }
 0x4f9   : > { %v18295_v45 = vadd.f32 %v4911_v21, %v4869_v43  ;;  %5308 = vmatpush1.bf16.msra.mxu1 %v15824_v35  ;;  %v16980_v35 = vld [vmem:[%s17639_s29] sm:$0xff]  ;;  %v4910_v21 = vadd.f32 %v18286_v33, %v4867_v14 }
 0x4fa   : > { %5281 = vmatpush2.bf16.msra.mxu0 %v15827_v40  ;;  %5309 = vmatprep.subr.bf16.mxu1 %v15832_v41  ;;  %v2345_v38 = vrot.slane %v16980_v35, %v18046_v47  ;;  %v15860_v40 = vld [vmem:[%s17623_s19 + $0x940] ss:$72 sps:$4 sm:$0xff]   ;;  %v4870_v41 = vpop.f32.mrf.mxu1 }
 0x4fb   : > { %5282 = vmatprep.subr.bf16.mxu0 %v15835_v44  ;;  %v15863_v43 = vld [vmem:[%s17623_s19 + $0x4c0] ss:$72 sps:$4 sm:$0xff]   ;;  %v4913_v44 = vpop.f32.mrf.mxu0 }
 0x4fd   : > { %5310 = vmatpush1.bf16.msra.mxu1 %v15830_v49  ;;  %v1812_v49 = vld [vmem:[%s17639_s29 + $0x40] sm:$0xff] }
 0x4fe   : > { %5283 = vmatpush2.bf16.msra.mxu0 %v15833_v51  ;;  %5311 = vmatprep.subr.bf16.mxu1 %v15838_v53  ;;  %v4609_v51 = vadd.f32 %v18060_v62, %v2345_v38  ;;  %v18327_v53 = vpop.f32.mrf.mxu1  ;;  %v2381_v62 = vrot.slane %v1813_v34, %v18046_v47 }
 0x4ff   : > { %5284 = vmatprep.subr.bf16.mxu0 %v15841_v60  ;;  %v17298_v60 = vmov 0.0  }
 0x501   : > { %5312 = vmatpush1.bf16.msra.mxu1 %v15836_v63  ;;  %v2377_v63 = vrot.slane %v1812_v49, %v18046_v47 }
 0x502   : > { %5285 = vmatpush2.bf16.msra.mxu0 %v15839_v0  ;;  %5313 = vmatprep.subr.bf16.mxu1 %v15844_v55  ;;  %v18331_v0 = vpop.f32.mrf.mxu0  ;;  %v5395_v55 = vpack.c.bf16 %v4910_v21, %v4910_v21 }
 0x503   : > { %5286 = vmatprep.subr.bf16.mxu0 %v15847_v4  ;;  %v4871_v4 = vadd.f32 %v4870_v41, %v2369_v16  ;;  %v4613_v16 = vadd.f32 %v18124_v57, %v2345_v38 }
 0x505   : > { %5314 = vmatpush1.bf16.msra.mxu1 %v15842_v5  ;;  %v4652_v5 = vadd.f32 %v18057_v61, %v4609_v51  ;;  %v4656_v57 = vadd.f32 %v18126_v58, %v4613_v16 }
 0x506   : > { %5287 = vmatpush2.bf16.msra.mxu0 %v15845_v6  ;;  %5315 = vmatprep.subr.bf16.mxu1 %v15850_v7 }
 0x507   : > { %5288 = vmatprep.subr.bf16.mxu0 %v15853_v59  ;;  %v4914_v59 = vadd.f32 %v4913_v44, %v4871_v4  ;;  %v5393_v61 = vpack.c.bf16 %v4652_v5, %v4652_v5  ;;  %v5394_v38 = vpack.c.bf16 %v4656_v57, %v4656_v57 }
 0x509   : > { %5316 = vmatpush1.bf16.msra.mxu1 %v15848_v10 }
 0x50a   : > { %5289 = vmatpush2.bf16.msra.mxu0 %v15851_v11  ;;  %5317 = vmatprep.subr.bf16.mxu1 %v15856_v12 }
 0x50b   : > { %5290 = vmatprep.subr.bf16.mxu0 %v15859_v17 }
 0x50d   : > { %5318 = vmatpush1.bf16.msra.mxu1 %v15854_v23 }
 0x50e   : > { %5291 = vmatpush2.bf16.msra.mxu0 %v15857_v24  ;;  %5319 = vmatprep.subr.bf16.mxu1 %v15862_v29  ;;  %v5396_v29 = vpack.c.bf16 %v4914_v59, %v4914_v59 }
 0x50f   : > { %5292 = vmatprep.subr.bf16.mxu0 %v15865_v32 }
 0x511   : > { %5320 = vmatpush1.bf16.msra.mxu1 %v15860_v40 }
 0x512   : > { %5293 = vmatpush2.bf16.msra.mxu0 %v15863_v43  ;;  %14769 = vmatprep.subr.bf16.mxu1 %v17298_v60  ;;  %v1815_v43 = vld [vmem:[%s17639_s29 + $0x58] sm:$0xff] }
 0x513   : > { %14817 = vmatprep.subr.bf16.mxu0 %v17298_v60  ;;  %v2389_v21 = vrot.slane %v1815_v43, %v18046_v47 }
 0x514   : > { %v4995_v33 = vpop.f32.mrf.mxu1  ;;  %5338 = vmatmul.mubr.bf16.vlgmr.msra.gmra.mxu1 %v17834_v3 }
 0x515   : > { %v4952_v6 = vpop.f32.mrf.mxu0  ;;  %5295 = vmatmul.mubr.bf16.vlgmr.msra.gmra.mxu0 %v17829_v20  ;;  %14770 = vmatpush3.bf16.xpose.msra.mxu1 %v5395_v55  ;;  %v4695_v20 = vadd.f32 %v18146_v22, %v18154_v28 }
 0x516   : > { %v4953_v7 = vadd.f32 %v4952_v6, %v2377_v63  ;;  %14771 = vmatprep.mubr.msk.bf16.mxu1 %vm17299_vm0, %v17298_v60  ;;  %14775 = vmatprep.subr.bf16.mxu1 %v17298_v60  ;;  %v4997_v9 = vpop.f32.mrf.mxu1 }
 0x517   : > { %v4954_v10 = vpop.f32.mrf.mxu0  ;;  %14819 = vmatprep.mubr.msk.bf16.mxu0 %vm17299_vm0, %v17298_v60  ;;  %v4738_v22 = vadd.f32 %v18140_v1, %v4695_v20  ;;  %v1814_v1 = vld [vmem:[%s17639_s29 + $0x50] sm:$0xff] }
 0x518   : > { %v4996_v3 = vadd.f32 %v4995_v33, %v4953_v7  ;;  %v4955_v11 = vadd.f32 %v4954_v10, %v2381_v62  ;;  %v4999_v14 = vpop.f32.mrf.mxu1  ;;  %v2385_v44 = vrot.slane %v1814_v1, %v18046_v47 }
 0x519   : > { %v4956_v12 = vpop.f32.mrf.mxu0  ;;  %v5825_v28 = vpack.c.bf16 %v4738_v22, %v4738_v22 }
 0x51a   : > { %v5827_v17 = vpack.c.bf16 %v4996_v3, %v4996_v3  ;;  %v18346_v23 = vadd.f32 %v4997_v9, %v4955_v11  ;;  %v4957_v24 = vadd.f32 %v4956_v12, %v2377_v63  ;;  %v18365_v58 = vpop.f32.mrf.mxu1  ;;  %v1816_v11 = vld [vmem:[%s17639_s29 + $0x60] sm:$0xff] }
 0x51b   : > { %v4958_v32 = vpop.f32.mrf.mxu0  ;;  %v2393_v20 = vrot.slane %v1816_v11, %v18046_v47 }
 0x51c   : > { %v18348_v35 = vadd.f32 %v4999_v14, %v4957_v24  ;;  %v18350_v40 = vadd.f32 %v4958_v32, %v2381_v62  ;;  %14772 = vmatmul.mubr.bf16.vlgmr.msra.gmra.mxu1 %v5393_v61  ;;  %14818 = vmatpush3.bf16.xpose.msra.mxu0 %v5827_v17  ;;  %v1817_v61 = vld [vmem:[%s17639_s29 + $0x68] sm:$0xff] }
 0x51d   : > { %14776 = vmatpush3.bf16.xpose.msra.mxu1 %v5396_v29  ;;  %14777 = vmatprep.mubr.msk.bf16.mxu1 %vm17299_vm0, %v17298_v60  ;;  %v2397_v16 = vrot.slane %v1817_v61, %v18046_v47 }
 0x51e   : > { %14781 = vmatprep.subr.bf16.mxu1 %v17298_v60  ;;  %14829 = vmatprep.subr.bf16.mxu0 %v17298_v60 }
 0x523   : > { %14820 = vmatmul.mubr.bf16.vlgmr.msra.gmra.mxu0 %v5825_v28 }
 0x524   : > { %14778 = vmatmul.mubr.bf16.vlgmr.msra.gmra.mxu1 %v5394_v38  ;;  %14831 = vmatprep.mubr.msk.bf16.mxu0 %vm17299_vm0, %v17298_v60 }
 0x525   : > { %14783 = vmatprep.mubr.msk.bf16.mxu1 %vm17299_vm0, %v17298_v60 }
 0x535   : > { %v5081_v41 = vpop.f32.mrf.mxu0 }
 0x537   : > { %v5083_v49 = vpop.f32.mrf.mxu0 }
 0x539   : > { %v5085_v33 = vpop.f32.mrf.mxu0 }
 0x53b   : > { %v5087_v10 = vpop.f32.mrf.mxu0 }
 0x554   : > { %v5038_v51 = vpop.f32.mrf.mxu1 }
 0x555   : > { %v5039_v34 = vadd.f32 %v5038_v51, %v2385_v44  ;;  %v1818_v51 = vld [vmem:[%s17639_s29 + $0x70] sm:$0xff] }
 0x556   : > { %v5040_v63 = vpop.f32.mrf.mxu1 }
 0x557   : > { %v18368_v55 = vadd.f32 %v5081_v41, %v5039_v34  ;;  %v5041_v4 = vadd.f32 %v5040_v63, %v2389_v21  ;;  %v1819_v63 = vld [vmem:[%s17639_s29 + $0x78] sm:$0xff] }
 0x558   : > { %v5042_v62 = vpop.f32.mrf.mxu1 }
 0x559   : > { %v18370_v5 = vadd.f32 %v5083_v49, %v5041_v4  ;;  %v5043_v6 = vadd.f32 %v5042_v62, %v2385_v44  ;;  %v2401_v4 = vrot.slane %v1818_v51, %v18046_v47  ;;  %v2405_v62 = vrot.slane %v1819_v63, %v18046_v47 }
 0x55a   : > { %v5044_v7 = vpop.f32.mrf.mxu1 }
 0x55b   : > { %v18372_v59 = vadd.f32 %v5085_v33, %v5043_v6  ;;  %v5045_v9 = vadd.f32 %v5044_v7, %v2389_v21 }
 0x55d   : > { %v18374_v3 = vadd.f32 %v5087_v10, %v5045_v9 }
 0x574   : > { %v5167_v12 = vpop.f32.mrf.mxu1 }
 0x575   : > { %v5124_v17 = vpop.f32.mrf.mxu0 }
 0x576   : > { %v5125_v24 = vadd.f32 %v5124_v17, %v2393_v20  ;;  %v5169_v29 = vpop.f32.mrf.mxu1 }
 0x577   : > { %v5126_v14 = vpop.f32.mrf.mxu0 }
 0x578   : > { %v5168_v32 = vadd.f32 %v5167_v12, %v5125_v24  ;;  %v5127_v22 = vadd.f32 %v5126_v14, %v2397_v16  ;;  %v5171_v41 = vpop.f32.mrf.mxu1 }
 0x579   : > { %v5128_v57 = vpop.f32.mrf.mxu0 }
 0x57a   : > { %v5508_v28 = vpack.c.bf16 %v5168_v32, %v5168_v32  ;;  %v18380_v38 = vadd.f32 %v5169_v29, %v5127_v22  ;;  %v5129_v1 = vadd.f32 %v5128_v57, %v2393_v20  ;;  %v18391_v33 = vpop.f32.mrf.mxu1 }
 0x57b   : > { %v5130_v43 = vpop.f32.mrf.mxu0 }
 0x57c   : > { %v18382_v44 = vadd.f32 %v5171_v41, %v5129_v1  ;;  %v18384_v21 = vadd.f32 %v5130_v43, %v2397_v16  ;;  %v5515_v49 = vsel %vm5513_vm1, %v5508_v28, 0  ;;  %v1820_v1 = vld [vmem:[%s17639_s29 + $0x80] sm:$0xff]  ;;  %v1821_v41 = vld [vmem:[%s17639_s29 + $0x88] sm:$0xff] }
 0x57d   : > { %14782 = vmatpush3.bf16.msra.mxu1 %v5515_v49  ;;  %v2409_v43 = vrot.slane %v1820_v1, %v18046_v47  ;;  %v2413_v51 = vrot.slane %v1821_v41, %v18046_v47 }
 0x57e   : > { %14787 = vmatprep.subr.bf16.mxu1 %v17298_v60 }
 0x595   : > { %v5253_v34 = vpop.f32.mrf.mxu0 }
 0x597   : > { %v5255_v6 = vpop.f32.mrf.mxu0 }
 0x599   : > { %v5257_v20 = vpop.f32.mrf.mxu0 }
 0x59b   : > { %v5259_v57 = vpop.f32.mrf.mxu0 }
 0x5b4   : > { %v5210_v7 = vpop.f32.mrf.mxu1 }
 0x5b5   : > { %v5211_v9 = vadd.f32 %v5210_v7, %v2401_v4 }
 0x5b6   : > { %v5212_v10 = vpop.f32.mrf.mxu1 }
 0x5b7   : > { %v5254_v11 = vadd.f32 %v5253_v34, %v5211_v9  ;;  %v5213_v61 = vadd.f32 %v5212_v10, %v2405_v62  ;;  %v18409_v10 = vand.u32 127, %v1871_v46 }
 0x5b8   : > { %v5214_v12 = vpop.f32.mrf.mxu1 }
 0x5b9   : > { %v5937_v16 = vpack.c.bf16 %v5254_v11, %v5254_v11  ;;  %v18394_v17 = vadd.f32 %v5255_v6, %v5213_v61  ;;  %v5215_v24 = vadd.f32 %v5214_v12, %v2401_v4  ;;  %vm5386_vm2 = vcmp.lt.s32.totalorder %v18409_v10, 5 }
 0x5ba   : > { %v5216_v29 = vpop.f32.mrf.mxu1 }
 0x5bb   : > { %v18396_v14 = vadd.f32 %v5257_v20, %v5215_v24  ;;  %v5217_v32 = vadd.f32 %v5216_v29, %v2405_v62  ;;  %v5943_v22 = vsel %vm5513_vm1, %v5937_v16, 0 }
 0x5bc   : > { %14830 = vmatpush3.bf16.msra.mxu0 %v5943_v22 }
 0x5bd   : > { %v18399_v28 = vadd.f32 %v5259_v57, %v5217_v32  ;;  %14841 = vmatprep.subr.bf16.mxu0 %v17298_v60 }
 0x5d4   : > { %v5339_v49 = vpop.f32.mrf.mxu1 }
 0x5d5   : > { %v5296_v34 = vpop.f32.mrf.mxu0 }
 0x5d6   : > { %v5297_v63 = vadd.f32 %v5296_v34, %v2409_v43  ;;  %v5341_v4 = vpop.f32.mrf.mxu1 }
 0x5d7   : > { %v5298_v6 = vpop.f32.mrf.mxu0 }
 0x5d8   : > { %v18406_v62 = vadd.f32 %v5339_v49, %v5297_v63  ;;  %v5299_v7 = vadd.f32 %v5298_v6, %v2413_v51  ;;  %v5343_v9 = vpop.f32.mrf.mxu1 }
 0x5d9   : > { %v5300_v11 = vpop.f32.mrf.mxu0 }
 0x5da   : > { %v18411_v61 = vadd.f32 %v5341_v4, %v5299_v7  ;;  %v5301_v20 = vadd.f32 %v5300_v11, %v2409_v43  ;;  %v18413_v12 = vpop.f32.mrf.mxu1 }
 0x5db   : > { %v5302_v16 = vpop.f32.mrf.mxu0 }
 0x5dc   : > { %v18415_v24 = vadd.f32 %v5343_v9, %v5301_v20  ;;  %v18417_v47 = vadd.f32 %v5302_v16, %v2413_v51  ;;  %v5431_v29 = vpop.f32.mrf.mxu1 }
 0x5dd   : > { %v5477_v32 = vmul.f32 0.125, %v5431_v29 }
 0x5de   : > { %v14773_v22 = vpop.f32.mrf.mxu1 }
 0x5df   : > { %v5481_v46 = vsel %vm5386_vm2, %v5477_v32, -1e+30 }
 0x5e0   : > { %v5434_v57 = vpop.f32.mrf.mxu1  ;;  %v5484_v1 = vsel %vm5483_vm3, %v5481_v46, -inf }
 0x5e1   : > { %5485 = vmax.xlane.f32.xlu0 %v5484_v1 }
 0x5e2   : > { %v14774_v41 = vpop.f32.mrf.mxu1 }
 0x5e3   : > { %v18423_v43 = vpop.f32.mrf.mxu0 }
 0x5e4   : > { %v5471_v49 = vpop.f32.mrf.mxu1 }
 0x5e5   : > { %v5478_v34 = vmul.f32 0.125, %v5471_v49  ;;  %v14821_v51 = vpop.f32.mrf.mxu0 }
 0x5e6   : > { %v14779_v63 = vpop.f32.mrf.mxu1 }
 0x5e7   : > { %v5866_v4 = vpop.f32.mrf.mxu0  ;;  %v5482_v6 = vsel %vm5386_vm2, %v5478_v34, -1e+30 }
 0x5e8   : > { %v5474_v7 = vpop.f32.mrf.mxu1  ;;  %v5487_v9 = vsel %vm5483_vm3, %v5482_v6, -inf }
 0x5e9   : > { %v14822_v11 = vpop.f32.mrf.mxu0  ;;  %5488 = vmax.xlane.f32.xlu1 %v5487_v9 }
 0x5ea   : > { %v14780_v20 = vpop.f32.mrf.mxu1 }
 0x66a   : > { %v5486_v16 = vpop.xlane.xlu0 %5485 }
 0x66b   : > { %v5490_v29 = vsub.f32 %v5481_v46, %v5486_v16  ;;  %v5509_v46 = vpack.c.bf16 %v18382_v44, %v18382_v44  ;;  %v4873_v44 = vadd.f32 %v18327_v53, %v18283_v30  ;;  %v5723_v53 = vpack.c.bf16 %v18380_v38, %v18380_v38 }
 0x66d   : > { %v5492_v32 = vmul.f32 1.442695, %v5490_v29  ;;  %v5561_v11 = vsel %vm5513_vm1, %v5509_v46, 0 }
 0x66f   : > { %16878 = vpow2.f32 %v5492_v32  ;;  %v5613_v32 = vpack.c.bf16 %v18295_v45, %v18295_v45 }
 0x672   : > { %v5489_v22 = vpop.xlane.xlu1 %5488 }
 0x673   : > { %v5491_v57 = vsub.f32 %v5482_v6, %v5489_v22  ;;  %v4916_v22 = vadd.f32 %v18331_v0, %v4873_v44 }
 0x675   : > { %v5494_v1 = vmul.f32 1.442695, %v5491_v57  ;;  %v5611_v57 = vpack.c.bf16 %v18070_v8, %v18070_v8  ;;  %v5614_v45 = vpack.c.bf16 %v4916_v22, %v4916_v22  ;;  %v5729_v8 = vsel %vm5513_vm1, %v5723_v53, 0 }
 0x677   : > { %16880 = vpow2.f32 %v5494_v1  ;;  %v4615_v1 = vadd.f32 %v18133_v13, %v18054_v56 }
 0x679   : > { %v4658_v30 = vadd.f32 %v18138_v18, %v4615_v1 }
 0x67b   : > { %v5612_v0 = vpack.c.bf16 %v4658_v30, %v4658_v30 }
 0x67c   : > { %v16879_v41 = vpop.eup %16878 }
 0x67d   : > { %v5496_v49 = vsel %vm5483_vm3, %v16879_v41, 0.0 }
 0x67e   : > { %5497 = vadd.xlane.f32.xlu0 %v5496_v49 }
 0x684   : > { %v16881_v51 = vpop.eup %16880 }
 0x685   : > { %v5499_v34 = vsel %vm5483_vm3, %v16881_v51, 0.0 }
 0x686   : > { %5500 = vadd.xlane.f32.xlu1 %v5499_v34 }
 0x707   : > { %v5498_v63 = vpop.xlane.xlu0 %5497 }
 0x708   : > { %16882 = vrcp.f32 %v5498_v63 }
 0x70f   : > { %v5501_v4 = vpop.xlane.xlu1 %5500 }
 0x710   : > { %16884 = vrcp.f32 %v5501_v4 }
 0x715   : > { %v16883_v7 = vpop.eup %16882 }
 0x716   : > { %v5504_v9 = vmul.f32 %v16883_v7, %v16879_v41 }
 0x718   : > { %v5506_v6 = vpack.c.bf16 %v5504_v9, %v5504_v9 }
 0x71a   : > { %14784 = vmatmul.mubr.msk.bf16.vlgmr.msra.gmra.mxu1 %vm5483_vm3, %v5506_v6 }
 0x71b   : > { %14788 = vmatpush3.bf16.msra.mxu1 %v5561_v11  ;;  %14789 = vmatprep.mubr.msk.bf16.mxu1 %vm17299_vm0, %v17298_v60 }
 0x71c   : > { %14793 = vmatprep.subr.bf16.mxu1 %v17298_v60 }
 0x71d   : > { %v16885_v20 = vpop.eup %16884 }
 0x71e   : > { %v5505_v16 = vmul.f32 %v16885_v20, %v16881_v51 }
 0x720   : > { %v5507_v29 = vpack.c.bf16 %v5505_v16, %v5505_v16 }
 0x722   : > { %14790 = vmatmul.mubr.msk.bf16.vlgmr.msra.gmra.mxu1 %vm5483_vm3, %v5507_v29 }
 0x723   : > { %14794 = vmatpush3.bf16.xpose.msra.mxu1 %v5613_v32  ;;  %14795 = vmatprep.mubr.msk.bf16.mxu1 %vm17299_vm0, %v17298_v60 }
 0x724   : > { %14799 = vmatprep.subr.bf16.mxu1 %v17298_v60 }
 0x72a   : > { %14796 = vmatmul.mubr.bf16.vlgmr.msra.gmra.mxu1 %v5611_v57 }
 0x72b   : > { %14800 = vmatpush3.bf16.xpose.msra.mxu1 %v5614_v45  ;;  %14801 = vmatprep.mubr.msk.bf16.mxu1 %vm17299_vm0, %v17298_v60 }
 0x72c   : > { %14805 = vmatprep.subr.bf16.mxu1 %v17298_v60 }
 0x732   : > { %14802 = vmatmul.mubr.bf16.vlgmr.msra.gmra.mxu1 %v5612_v0 }
 0x733   : > { %14806 = vmatpush3.bf16.msra.mxu1 %v5729_v8  ;;  %14807 = vmatprep.mubr.msk.bf16.mxu1 %vm17299_vm0, %v17298_v60 }
 0x734   : > { %14811 = vmatprep.subr.bf16.mxu1 %v17298_v60 }
 0x7da   : > { %v5551_v56 = vpop.f32.mrf.mxu1 }
 0x7dc   : > { %v14785_v13 = vpop.f32.mrf.mxu1 }
 0x7dd   : > { %v5909_v13 = vmul.f32 0.125, %v18423_v43 }
 0x7de   : > { %v5554_v41 = vpop.f32.mrf.mxu1 }
 0x7e0   : > { %v14786_v49 = vpop.f32.mrf.mxu1 }
 0x7e2   : > { %v5597_v18 = vpop.f32.mrf.mxu1 }
 0x7e3   : > { %v18460_v51 = vpack.c.bf16 %v5597_v18, %v5551_v56  ;;  %v5911_v18 = vsel %vm5386_vm2, %v5909_v13, -1e+30  ;;  %v6039_v13 = vpack.c.bf16 %v18158_v31, %v18158_v31 }
 0x7e4   : > { %v14791_v34 = vpop.f32.mrf.mxu1 }
 0x7e5   : > { %v5913_v34 = vsel %vm5483_vm3, %v5911_v18, -inf }
 0x7e6   : > { %v5600_v63 = vpop.f32.mrf.mxu1 }
 0x7e8   : > { %v14792_v38 = vpop.f32.mrf.mxu1 }
 0x7ea   : > { %v5649_v4 = vpop.f32.mrf.mxu1 }
 0x7eb   : > { %v5695_v7 = vmul.f32 0.125, %v5649_v4 }
 0x7ec   : > { %v14797_v46 = vpop.f32.mrf.mxu1 }
 0x7ed   : > { %v5697_v9 = vsel %vm5386_vm2, %v5695_v7, -1e+30 }
 0x7ee   : > { %v5652_v6 = vpop.f32.mrf.mxu1  ;;  %v5699_v11 = vsel %vm5483_vm3, %v5697_v9, -inf }
 0x7ef   : > { %5700 = vmax.xlane.f32.xlu0 %v5699_v11  ;;  %v5174_v6 = vadd.f32 %v18391_v33, %v18384_v21 }
 0x7f0   : > { %v14798_v20 = vpop.f32.mrf.mxu1 }
 0x7f1   : > { %v5724_v20 = vpack.c.bf16 %v5174_v6, %v5174_v6 }
 0x7f2   : > { %v5689_v16 = vpop.f32.mrf.mxu1 }
 0x7f3   : > { %v5696_v29 = vmul.f32 0.125, %v5689_v16 }
 0x7f4   : > { %v14803_v32 = vpop.f32.mrf.mxu1 }
 0x7f5   : > { %v5698_v44 = vsel %vm5386_vm2, %v5696_v29, -1e+30  ;;  %v5775_v32 = vsel %vm5513_vm1, %v5724_v20, 0 }
 0x7f6   : > { %v5692_v22 = vpop.f32.mrf.mxu1  ;;  %v5702_v57 = vsel %vm5483_vm3, %v5698_v44, -inf }
 0x7f7   : > { %5703 = vmax.xlane.f32.xlu1 %v5702_v57 }
 0x7f8   : > { %v14804_v1 = vpop.f32.mrf.mxu1 }
 0x7f9   : > { %v5828_v1 = vpack.c.bf16 %v18348_v35, %v18348_v35 }
 0x878   : > { %v5701_v45 = vpop.xlane.xlu0 %5700 }
 0x879   : > { %v5705_v30 = vsub.f32 %v5697_v9, %v5701_v45  ;;  %v5938_v45 = vpack.c.bf16 %v18396_v14, %v18396_v14  ;;  %v6041_v14 = vpack.c.bf16 %v18346_v23, %v18346_v23 }
 0x87b   : > { %v5707_v53 = vmul.f32 1.442695, %v5705_v30  ;;  %v5826_v30 = vpack.c.bf16 %v18164_v37, %v18164_v37  ;;  %v6151_v37 = vpack.c.bf16 %v18394_v17, %v18394_v17 }
 0x87d   : > { %16886 = vpow2.f32 %v5707_v53  ;;  %v5989_v53 = vsel %vm5513_vm1, %v5938_v45, 0 }
 0x880   : > { %v5704_v0 = vpop.xlane.xlu1 %5703 }
 0x881   : > { %v5706_v8 = vsub.f32 %v5698_v44, %v5704_v0 }
 0x883   : > { %v5709_v56 = vmul.f32 1.442695, %v5706_v8 }
 0x885   : > { %16888 = vpow2.f32 %v5709_v56 }
 0x88a   : > { %v16887_v41 = vpop.eup %16886 }
 0x88b   : > { %v5711_v49 = vsel %vm5483_vm3, %v16887_v41, 0.0 }
 0x88c   : > { %5712 = vadd.xlane.f32.xlu0 %v5711_v49 }
 0x890   : > { %5914 = vmax.xlane.f32.xlu0 %v5913_v34 }
 0x892   : > { %v16889_v63 = vpop.eup %16888 }
 0x893   : > { %v5714_v38 = vsel %vm5483_vm3, %v16889_v63, 0.0 }
 0x894   : > { %5715 = vadd.xlane.f32.xlu1 %v5714_v38 }
 0x915   : > { %v5713_v4 = vpop.xlane.xlu0 %5712 }
 0x916   : > { %16890 = vrcp.f32 %v5713_v4 }
 0x919   : > { %v5915_v7 = vpop.xlane.xlu0 %5914 }
 0x91a   : > { %v5919_v46 = vsub.f32 %v5911_v18, %v5915_v7 }
 0x91c   : > { %v5921_v9 = vmul.f32 1.442695, %v5919_v46 }
 0x91d   : > { %v5716_v43 = vpop.xlane.xlu1 %5715 }
 0x91e   : > { %16892 = vpow2.f32 %v5921_v9 }
 0x91f   : > { %16894 = vrcp.f32 %v5716_v43 }
 0x923   : > { %v16891_v11 = vpop.eup %16890 }
 0x924   : > { %v5719_v16 = vmul.f32 %v16891_v11, %v16887_v41  ;;  %v6157_v41 = vsel %vm5513_vm1, %v6151_v37, 0 }
 0x926   : > { %v5721_v29 = vpack.c.bf16 %v5719_v16, %v5719_v16 }
 0x928   : > { %14808 = vmatmul.mubr.msk.bf16.vlgmr.msra.gmra.mxu1 %vm5483_vm3, %v5721_v29 }
 0x929   : > { %14812 = vmatpush3.bf16.msra.mxu1 %v5775_v32  ;;  %14813 = vmatprep.mubr.msk.bf16.mxu1 %vm17299_vm0, %v17298_v60 }
 0x92a   : > { %14823 = vmatprep.subr.bf16.mxu1 %v17298_v60 }
 0x92b   : > { %v16893_v44 = vpop.eup %16892 }
 0x92c   : > { %v16895_v22 = vpop.eup %16894  ;;  %v5925_v57 = vsel %vm5483_vm3, %v16893_v44, 0.0 }
 0x92d   : > { %5926 = vadd.xlane.f32.xlu0 %v5925_v57  ;;  %v5720_v21 = vmul.f32 %v16895_v22, %v16889_v63 }
 0x92f   : > { %v5722_v33 = vpack.c.bf16 %v5720_v21, %v5720_v21 }
 0x931   : > { %14814 = vmatmul.mubr.msk.bf16.vlgmr.msra.gmra.mxu1 %vm5483_vm3, %v5722_v33 }
 0x932   : > { %14824 = vmatpush3.bf16.xpose.msra.mxu1 %v5828_v1  ;;  %14825 = vmatprep.mubr.msk.bf16.mxu1 %vm17299_vm0, %v17298_v60 }
 0x933   : > { %14835 = vmatprep.subr.bf16.mxu1 %v17298_v60 }
 0x939   : > { %14826 = vmatmul.mubr.bf16.vlgmr.msra.gmra.mxu1 %v5826_v30 }
 0x93a   : > { %14836 = vmatpush3.bf16.msra.mxu1 %v5989_v53  ;;  %14837 = vmatprep.mubr.msk.bf16.mxu1 %vm17299_vm0, %v17298_v60 }
 0x93b   : > { %14847 = vmatprep.subr.bf16.mxu1 %v17298_v60 }
 0x9b6   : > { %v5927_v35 = vpop.xlane.xlu0 %5926 }
 0x9b7   : > { %16896 = vrcp.f32 %v5927_v35 }
 0x9c4   : > { %v16897_v0 = vpop.eup %16896 }
 0x9c5   : > { %v5933_v8 = vmul.f32 %v16897_v0, %v16893_v44 }
 0x9c7   : > { %v5935_v56 = vpack.c.bf16 %v5933_v8, %v5933_v8 }
 0x9c9   : > { %14832 = vmatmul.mubr.msk.bf16.vlgmr.msra.gmra.mxu0 %vm5483_vm3, %v5935_v56 }
 0x9ca   : > { %14842 = vmatpush3.bf16.xpose.msra.mxu0 %v6041_v14  ;;  %14843 = vmatprep.mubr.msk.bf16.mxu0 %vm17299_vm0, %v17298_v60 }
 0x9cb   : > { %14853 = vmatprep.subr.bf16.mxu0 %v17298_v60 }
 0x9d1   : > { %14844 = vmatmul.mubr.bf16.vlgmr.msra.gmra.mxu0 %v6039_v13 }
 0x9d2   : > { %14854 = vmatpush3.bf16.msra.mxu0 %v6157_v41  ;;  %14855 = vmatprep.mubr.msk.bf16.mxu0 %vm17299_vm0, %v17298_v60 }
 0x9d3   : > { %14865 = vmatprep.subr.bf16.mxu0 %v17298_v60 }
 0x9e8   : > { %v5765_v23 = vpop.f32.mrf.mxu1 }
 0x9ea   : > { %v14809_v49 = vpop.f32.mrf.mxu1 }
 0x9ec   : > { %v5768_v18 = vpop.f32.mrf.mxu1 }
 0x9ed   : > { %v5002_v18 = vadd.f32 %v18365_v58, %v18350_v40  ;;  %v6152_v40 = vpack.c.bf16 %v18399_v28, %v18399_v28  ;;  %v6365_v28 = vpack.c.bf16 %v18406_v62, %v18406_v62 }
 0x9ee   : > { %v14810_v34 = vpop.f32.mrf.mxu1 }
 0x9f1   : > { %v5811_v63 = vpop.f32.mrf.mxu1 }
 0x9f2   : > { %v18510_v38 = vpack.c.bf16 %v5811_v63, %v5765_v23 }
 0x9f3   : > { %v14815_v17 = vpop.f32.mrf.mxu1 }
 0x9f4   : > { %v4701_v17 = vadd.f32 %v18190_v15, %v18143_v19 }
 0x9f5   : > { %v5814_v4 = vpop.f32.mrf.mxu1 }
 0x9f7   : > { %v14816_v7 = vpop.f32.mrf.mxu1 }
 0x9f8   : > { %v6042_v7 = vpack.c.bf16 %v5002_v18, %v5002_v18 }
 0x9f9   : > { %v5903_v31 = vpop.f32.mrf.mxu1 }
 0x9fa   : > { %v5910_v46 = vmul.f32 0.125, %v5903_v31  ;;  %v4744_v31 = vadd.f32 %v18194_v2, %v4701_v17 }
 0x9fb   : > { %v14827_v9 = vpop.f32.mrf.mxu1 }
 0x9fc   : > { %v5912_v43 = vsel %vm5386_vm2, %v5910_v46, -1e+30  ;;  %v6040_v58 = vpack.c.bf16 %v4744_v31, %v4744_v31  ;;  %v6203_v46 = vsel %vm5513_vm1, %v6152_v40, 0 }
 0x9fd   : > { %v5906_v6 = vpop.f32.mrf.mxu1  ;;  %v5916_v11 = vsel %vm5483_vm3, %v5912_v43, -inf }
 0x9fe   : > { %5917 = vmax.xlane.f32.xlu1 %v5916_v11  ;;  %v6253_v6 = vpack.c.bf16 %v18208_v36, %v18208_v36  ;;  %v6371_v11 = vsel %vm5513_vm1, %v6365_v28, 0 }
 0x9ff   : > { %v14828_v20 = vpop.f32.mrf.mxu1 }
 0xa87   : > { %v5918_v16 = vpop.xlane.xlu1 %5917 }
 0xa88   : > { %v5920_v29 = vsub.f32 %v5912_v43, %v5918_v16  ;;  %v6255_v43 = vpack.c.bf16 %v18368_v55, %v18368_v55 }
 0xa89   : > { %v18515_v32 = vpop.f32.mrf.mxu0 }
 0xa8a   : > { %v5923_v44 = vmul.f32 1.442695, %v5920_v29 }
 0xa8b   : > { %v14833_v22 = vpop.f32.mrf.mxu0 }
 0xa8c   : > { %16898 = vpow2.f32 %v5923_v44 }
 0xa8d   : > { %v5982_v57 = vpop.f32.mrf.mxu0 }
 0xa8f   : > { %v14834_v21 = vpop.f32.mrf.mxu0 }
 0xa91   : > { %v6077_v33 = vpop.f32.mrf.mxu0 }
 0xa92   : > { %v6123_v1 = vmul.f32 0.125, %v6077_v33 }
 0xa93   : > { %v14845_v45 = vpop.f32.mrf.mxu0 }
 0xa94   : > { %v6125_v30 = vsel %vm5386_vm2, %v6123_v1, -1e+30 }
 0xa95   : > { %v6080_v53 = vpop.f32.mrf.mxu0  ;;  %v6127_v35 = vsel %vm5483_vm3, %v6125_v30, -inf }
 0xa96   : > { %6128 = vmax.xlane.f32.xlu0 %v6127_v35 }
 0xa97   : > { %v14846_v0 = vpop.f32.mrf.mxu0 }
 0xa99   : > { %v16899_v8 = vpop.eup %16898 }
 0xa9a   : > { %v5928_v56 = vsel %vm5483_vm3, %v16899_v8, 0.0 }
 0xa9b   : > { %5929 = vadd.xlane.f32.xlu1 %v5928_v56 }
 0xb1f   : > { %v6129_v14 = vpop.xlane.xlu0 %6128 }
 0xb20   : > { %v6133_v37 = vsub.f32 %v6125_v30, %v6129_v14 }
 0xb22   : > { %v6135_v13 = vmul.f32 1.442695, %v6133_v37 }
 0xb24   : > { %16900 = vpow2.f32 %v6135_v13  ;;  %v5930_v41 = vpop.xlane.xlu1 %5929 }
 0xb25   : > { %16902 = vrcp.f32 %v5930_v41 }
 0xb31   : > { %v16901_v23 = vpop.eup %16900 }
 0xb32   : > { %v16903_v49 = vpop.eup %16902  ;;  %v6139_v34 = vsel %vm5483_vm3, %v16901_v23, 0.0 }
 0xb33   : > { %6140 = vadd.xlane.f32.xlu0 %v6139_v34  ;;  %v5934_v63 = vmul.f32 %v16903_v49, %v16899_v8 }
 0xb35   : > { %v5936_v4 = vpack.c.bf16 %v5934_v63, %v5934_v63 }
 0xb37   : > { %14838 = vmatmul.mubr.msk.bf16.vlgmr.msra.gmra.mxu1 %vm5483_vm3, %v5936_v4 }
 0xb38   : > { %14848 = vmatpush3.bf16.xpose.msra.mxu1 %v6042_v7  ;;  %14849 = vmatprep.mubr.msk.bf16.mxu1 %vm17299_vm0, %v17298_v60 }
 0xb39   : > { %14859 = vmatprep.subr.bf16.mxu1 %v17298_v60 }
 0xb3f   : > { %14850 = vmatmul.mubr.bf16.vlgmr.msra.gmra.mxu1 %v6040_v58 }
 0xb40   : > { %14860 = vmatpush3.bf16.msra.mxu1 %v6203_v46  ;;  %14861 = vmatprep.mubr.msk.bf16.mxu1 %vm17299_vm0, %v17298_v60 }
 0xb41   : > { %14871 = vmatprep.subr.bf16.mxu1 %v17298_v60 }
 0xbbc   : > { %v6141_v19 = vpop.xlane.xlu0 %6140 }
 0xbbd   : > { %16904 = vrcp.f32 %v6141_v19 }
 0xbca   : > { %v16905_v15 = vpop.eup %16904 }
 0xbcb   : > { %v6147_v9 = vmul.f32 %v16905_v15, %v16901_v23  ;;  %v6256_v15 = vpack.c.bf16 %v18372_v59, %v18372_v59 }
 0xbcd   : > { %v6149_v2 = vpack.c.bf16 %v6147_v9, %v6147_v9  ;;  %v6366_v9 = vpack.c.bf16 %v18415_v24, %v18415_v24  ;;  %v6469_v24 = vpack.c.bf16 %v18370_v5, %v18370_v5 }
 0xbcf   : > { %14856 = vmatmul.mubr.msk.bf16.vlgmr.msra.gmra.mxu0 %vm5483_vm3, %v6149_v2  ;;  %v6254_v2 = vpack.c.bf16 %v18218_v52, %v18218_v52  ;;  %v6579_v52 = vpack.c.bf16 %v18411_v61, %v18411_v61 }
 0xbd0   : > { %14866 = vmatpush3.bf16.xpose.msra.mxu0 %v6255_v43  ;;  %14867 = vmatprep.mubr.msk.bf16.mxu0 %vm17299_vm0, %v17298_v60  ;;  %v6417_v43 = vsel %vm5513_vm1, %v6366_v9, 0 }
 0xbd1   : > { %14877 = vmatprep.subr.bf16.mxu0 %v17298_v60 }
 0xbd7   : > { %14868 = vmatmul.mubr.bf16.vlgmr.msra.gmra.mxu0 %v6253_v6 }
 0xbd8   : > { %14878 = vmatpush3.bf16.msra.mxu0 %v6371_v11  ;;  %14879 = vmatprep.mubr.msk.bf16.mxu0 %vm17299_vm0, %v17298_v60 }
 0xbd9   : > { %14889 = vmatprep.subr.bf16.mxu0 %v17298_v60 }
 0xbf7   : > { %v18551_v55 = vpop.f32.mrf.mxu1 }
 0xbf9   : > { %v14839_v20 = vpop.f32.mrf.mxu1 }
 0xbfa   : > { %v6467_v20 = vpack.c.bf16 %v18213_v42, %v18213_v42 }
 0xbfb   : > { %v6028_v16 = vpop.f32.mrf.mxu1 }
 0xbfc   : > { %v6585_v16 = vsel %vm5513_vm1, %v6579_v52, 0  ;;  %v15869_v52 = vld [vmem:[%s17629_s12 + $0x90] ss:$12 sps:$4 sm:$0xff]  }
 0xbfd   : > { %v14840_v29 = vpop.f32.mrf.mxu1 }
 0xbff   : > { %v6117_v44 = vpop.f32.mrf.mxu1 }
 0xc00   : > { %v6124_v22 = vmul.f32 0.125, %v6117_v44 }
 0xc01   : > { %v14851_v62 = vpop.f32.mrf.mxu1 }
 0xc02   : > { %v6126_v36 = vsel %vm5386_vm2, %v6124_v22, -1e+30 }
 0xc03   : > { %v6120_v57 = vpop.f32.mrf.mxu1  ;;  %v6130_v21 = vsel %vm5483_vm3, %v6126_v36, -inf }
 0xc04   : > { %6131 = vmax.xlane.f32.xlu1 %v6130_v21 }
 0xc05   : > { %v14852_v33 = vpop.f32.mrf.mxu1 }
 0xc8d   : > { %v6132_v1 = vpop.xlane.xlu1 %6131 }
 0xc8e   : > { %v6134_v45 = vsub.f32 %v6126_v36, %v6132_v1 }
 0xc8f   : > { %v18556_v30 = vpop.f32.mrf.mxu0 }
 0xc90   : > { %v6137_v53 = vmul.f32 1.442695, %v6134_v45 }
 0xc91   : > { %v14857_v35 = vpop.f32.mrf.mxu0 }
 0xc92   : > { %16906 = vpow2.f32 %v6137_v53 }
 0xc93   : > { %v6196_v0 = vpop.f32.mrf.mxu0 }
 0xc95   : > { %v14858_v8 = vpop.f32.mrf.mxu0 }
 0xc97   : > { %v6291_v56 = vpop.f32.mrf.mxu0 }
 0xc98   : > { %v6337_v14 = vmul.f32 0.125, %v6291_v56 }
 0xc99   : > { %v14869_v37 = vpop.f32.mrf.mxu0 }
 0xc9a   : > { %v6339_v13 = vsel %vm5386_vm2, %v6337_v14, -1e+30 }
 0xc9b   : > { %v6294_v41 = vpop.f32.mrf.mxu0  ;;  %v6341_v23 = vsel %vm5483_vm3, %v6339_v13, -inf }
 0xc9c   : > { %6342 = vmax.xlane.f32.xlu0 %v6341_v23 }
 0xc9d   : > { %v14870_v49 = vpop.f32.mrf.mxu0 }
 0xc9f   : > { %v16907_v18 = vpop.eup %16906 }
 0xca0   : > { %v6142_v34 = vsel %vm5483_vm3, %v16907_v18, 0.0 }
 0xca1   : > { %6143 = vadd.xlane.f32.xlu1 %v6142_v34 }
 0xd25   : > { %v6343_v63 = vpop.xlane.xlu0 %6342 }
 0xd26   : > { %v6347_v17 = vsub.f32 %v6339_v13, %v6343_v63 }
 0xd28   : > { %v6349_v4 = vmul.f32 1.442695, %v6347_v17 }
 0xd2a   : > { %16908 = vpow2.f32 %v6349_v4  ;;  %v6144_v7 = vpop.xlane.xlu1 %6143 }
 0xd2b   : > { %16910 = vrcp.f32 %v6144_v7 }
 0xd37   : > { %v16909_v31 = vpop.eup %16908 }
 0xd38   : > { %v16911_v40 = vpop.eup %16910  ;;  %v6353_v58 = vsel %vm5483_vm3, %v16909_v31, 0.0 }
 0xd39   : > { %6354 = vadd.xlane.f32.xlu0 %v6353_v58  ;;  %v6148_v46 = vmul.f32 %v16911_v40, %v16907_v18 }
 0xd3b   : > { %v6150_v19 = vpack.c.bf16 %v6148_v46, %v6148_v46 }
 0xd3d   : > { %14862 = vmatmul.mubr.msk.bf16.vlgmr.msra.gmra.mxu1 %vm5483_vm3, %v6150_v19 }
 0xd3e   : > { %14872 = vmatpush3.bf16.xpose.msra.mxu1 %v6256_v15  ;;  %14873 = vmatprep.mubr.msk.bf16.mxu1 %vm17299_vm0, %v17298_v60  ;;  %v4787_v15 = vadd.f32 %v18278_v27, %v18200_v26 }
 0xd3f   : > { %14883 = vmatprep.subr.bf16.mxu1 %v17298_v60 }
 0xd45   : > { %14874 = vmatmul.mubr.bf16.vlgmr.msra.gmra.mxu1 %v6254_v2  ;;  %v6470_v2 = vpack.c.bf16 %v18374_v3, %v18374_v3 }
 0xd46   : > { %14884 = vmatpush3.bf16.msra.mxu1 %v6417_v43  ;;  %14885 = vmatprep.mubr.msk.bf16.mxu1 %vm17299_vm0, %v17298_v60  ;;  %v5346_v43 = vadd.f32 %v18413_v12, %v18417_v47 }
 0xd47   : > { %14895 = vmatprep.subr.bf16.mxu1 %v17298_v60 }
 0xd48   : > { %v6580_v26 = vpack.c.bf16 %v5346_v43, %v5346_v43 }
 0xd4a   : > { %v6631_v3 = vsel %vm5513_vm1, %v6580_v26, 0 }
 0xdc2   : > { %v6355_v59 = vpop.xlane.xlu0 %6354 }
 0xdc3   : > { %16912 = vrcp.f32 %v6355_v59  ;;  %v4830_v59 = vadd.f32 %v18276_v25, %v4787_v15 }
 0xdc5   : > { %v6468_v27 = vpack.c.bf16 %v4830_v59, %v4830_v59 }
 0xdd0   : > { %v16913_v28 = vpop.eup %16912 }
 0xdd1   : > { %v6361_v6 = vmul.f32 %v16913_v28, %v16909_v31  ;;  %v15868_v28 = vld [vmem:[%s17629_s12 + $0xac] ss:$12 sps:$4 sm:$0xff]  }
 0xdd3   : > { %v6363_v11 = vpack.c.bf16 %v6361_v6, %v6361_v6  ;;  %v15866_v6 = vld [vmem:[%s17629_s12 + $0xa8] ss:$12 sps:$4 sm:$0xff]  }
 0xdd5   : > { %14880 = vmatmul.mubr.msk.bf16.vlgmr.msra.gmra.mxu0 %vm5483_vm3, %v6363_v11 }
 0xdd6   : > { %14890 = vmatpush3.bf16.xpose.msra.mxu0 %v6469_v24  ;;  %14891 = vmatprep.mubr.msk.bf16.mxu0 %vm17299_vm0, %v17298_v60  ;;  %v15871_v24 = vld [vmem:[%s17629_s12 + $0x94] ss:$12 sps:$4 sm:$0xff]  }
 0xdd7   : > { %14901 = vmatprep.subr.bf16.mxu0 %v17298_v60 }
 0xddd   : > { %14892 = vmatmul.mubr.bf16.vlgmr.msra.gmra.mxu0 %v6467_v20  ;;  %v15872_v20 = vld [vmem:[%s17629_s12 + $0x78] ss:$12 sps:$4 sm:$0xff]  }
 0xdde   : > { %14902 = vmatpush3.bf16.msra.mxu0 %v6585_v16  ;;  %14903 = vmatprep.mubr.msk.bf16.mxu0 %vm17299_vm0, %v17298_v60  ;;  %v15877_v16 = vld [vmem:[%s17629_s12 + $0x64] ss:$12 sps:$4 sm:$0xff]  }
 0xddf   : > { %7665 = vmatprep.subr.bf16.mxu0 %v15868_v28 }
 0xdfd   : > { %v18590_v5 = vpop.f32.mrf.mxu1 }
 0xdff   : > { %v14863_v29 = vpop.f32.mrf.mxu1 }
 0xe00   : > { %v15875_v29 = vld [vmem:[%s17629_s12 + $0x60] ss:$12 sps:$4 sm:$0xff]  }
 0xe01   : > { %v6242_v44 = vpop.f32.mrf.mxu1 }
 0xe02   : > { %v15880_v44 = vld [vmem:[%s17629_s12 + $0x4c] ss:$12 sps:$4 sm:$0xff]  }
 0xe03   : > { %v14864_v22 = vpop.f32.mrf.mxu1 }
 0xe04   : > { %v15878_v22 = vld [vmem:[%s17629_s12 + $0x48] ss:$12 sps:$4 sm:$0xff]  }
 0xe05   : > { %v6331_v62 = vpop.f32.mrf.mxu1 }
 0xe06   : > { %v6338_v36 = vmul.f32 0.125, %v6331_v62  ;;  %v15883_v62 = vld [vmem:[%s17629_s12 + $0x34] ss:$12 sps:$4 sm:$0xff]  }
 0xe07   : > { %v14875_v57 = vpop.f32.mrf.mxu1 }
 0xe08   : > { %v6340_v61 = vsel %vm5386_vm2, %v6338_v36, -1e+30  ;;  %v15881_v36 = vld [vmem:[%s17629_s12 + $0x30] ss:$12 sps:$4 sm:$0xff]  }
 0xe09   : > { %v6334_v21 = vpop.f32.mrf.mxu1  ;;  %v6344_v42 = vsel %vm5483_vm3, %v6340_v61, -inf  ;;  %v15886_v57 = vld [vmem:[%s17629_s12 + $0x1c] ss:$12 sps:$4 sm:$0xff]  }
 0xe0a   : > { %6345 = vmax.xlane.f32.xlu1 %v6344_v42  ;;  %v15889_v21 = vld [vmem:[%s17629_s12 + $0x4] ss:$12 sps:$4 sm:$0xff]   ;;  %v15887_v42 = vld [vmem:[%s17629_s12] ss:$12 sps:$4 sm:$0xff]  }
 0xe0b   : > { %v14876_v33 = vpop.f32.mrf.mxu1 }
 0xe0c   : > { %v15892_v33 = vld [vmem:[%s17629_s12 + $0x16c] ss:$12 sps:$4 sm:$0xff]  }
 0xe93   : > { %v6346_v1 = vpop.xlane.xlu1 %6345 }
 0xe94   : > { %v6348_v45 = vsub.f32 %v6340_v61, %v6346_v1  ;;  %v15884_v61 = vld [vmem:[%s17629_s12 + $0x18] ss:$12 sps:$4 sm:$0xff]   ;;  %v15890_v1 = vld [vmem:[%s17629_s12 + $0x168] ss:$12 sps:$4 sm:$0xff]  }
 0xe95   : > { %v18595_v53 = vpop.f32.mrf.mxu0 }
 0xe96   : > { %v6351_v35 = vmul.f32 1.442695, %v6348_v45  ;;  %v15895_v45 = vld [vmem:[%s17629_s12 + $0x154] ss:$12 sps:$4 sm:$0xff]  }
 0xe97   : > { %v14881_v0 = vpop.f32.mrf.mxu0 }
 0xe98   : > { %16914 = vpow2.f32 %v6351_v35  ;;  %v15893_v35 = vld [vmem:[%s17629_s12 + $0x150] ss:$12 sps:$4 sm:$0xff]  }
 0xe99   : > { %v6410_v8 = vpop.f32.mrf.mxu0  ;;  %v15898_v0 = vld [vmem:[%s17629_s12 + $0x13c] ss:$12 sps:$4 sm:$0xff]  }
 0xe9a   : > { %v15896_v8 = vld [vmem:[%s17629_s12 + $0x138] ss:$12 sps:$4 sm:$0xff]  }
 0xe9b   : > { %v14882_v56 = vpop.f32.mrf.mxu0 }
 0xe9c   : > { %v15901_v56 = vld [vmem:[%s17629_s12 + $0x124] ss:$12 sps:$4 sm:$0xff]  }
 0xe9d   : > { %v6505_v14 = vpop.f32.mrf.mxu0 }
 0xe9e   : > { %v6551_v37 = vmul.f32 0.125, %v6505_v14 }
 0xe9f   : > { %v14893_v13 = vpop.f32.mrf.mxu0 }
 0xea0   : > { %v6553_v41 = vsel %vm5386_vm2, %v6551_v37, -1e+30  ;;  %v15899_v37 = vld [vmem:[%s17629_s12 + $0x120] ss:$12 sps:$4 sm:$0xff]  }
 0xea1   : > { %v6508_v23 = vpop.f32.mrf.mxu0  ;;  %v6555_v49 = vsel %vm5483_vm3, %v6553_v41, -inf }
 0xea2   : > { %6556 = vmax.xlane.f32.xlu0 %v6555_v49  ;;  %v15902_v49 = vld [vmem:[%s17629_s12 + $0x108] ss:$12 sps:$4 sm:$0xff]  }
 0xea3   : > { %v14894_v18 = vpop.f32.mrf.mxu0 }
 0xea5   : > { %v16915_v34 = vpop.eup %16914 }
 0xea6   : > { %v6356_v63 = vsel %vm5483_vm3, %v16915_v34, 0.0 }
 0xea7   : > { %6357 = vadd.xlane.f32.xlu1 %v6356_v63 }
 0xf2b   : > { %v6557_v17 = vpop.xlane.xlu0 %6556 }
 0xf2c   : > { %v6561_v4 = vsub.f32 %v6553_v41, %v6557_v17  ;;  %v15904_v41 = vld [vmem:[%s17629_s12 + $0x10c] ss:$12 sps:$4 sm:$0xff]  }
 0xf2e   : > { %v6563_v7 = vmul.f32 1.442695, %v6561_v4  ;;  %v15905_v4 = vld [vmem:[%s17629_s12 + $0xf0] ss:$12 sps:$4 sm:$0xff]  }
 0xf30   : > { %16916 = vpow2.f32 %v6563_v7  ;;  %v6358_v31 = vpop.xlane.xlu1 %6357 }
 0xf31   : > { %16918 = vrcp.f32 %v6358_v31  ;;  %v15910_v31 = vld [vmem:[%s17629_s12 + $0xdc] ss:$12 sps:$4 sm:$0xff]  }
 0xf3d   : > { %v16917_v40 = vpop.eup %16916 }
 0xf3e   : > { %v16919_v58 = vpop.eup %16918  ;;  %v6567_v46 = vsel %vm5483_vm3, %v16917_v40, 0.0 }
 0xf3f   : > { %6568 = vadd.xlane.f32.xlu0 %v6567_v46  ;;  %v6362_v19 = vmul.f32 %v16919_v58, %v16915_v34  ;;  %v15907_v34 = vld [vmem:[%s17629_s12 + $0xf4] ss:$12 sps:$4 sm:$0xff]  }
 0xf41   : > { %v6364_v9 = vpack.c.bf16 %v6362_v19, %v6362_v19  ;;  %v15908_v19 = vld [vmem:[%s17629_s12 + $0xd8] ss:$12 sps:$4 sm:$0xff]  }
 0xf43   : > { %14886 = vmatmul.mubr.msk.bf16.vlgmr.msra.gmra.mxu1 %vm5483_vm3, %v6364_v9  ;;  %v15913_v9 = vld [vmem:[%s17629_s12 + $0xc4] ss:$12 sps:$4 sm:$0xff]  }
 0xf44   : > { %14896 = vmatpush3.bf16.xpose.msra.mxu1 %v6470_v2  ;;  %14897 = vmatprep.mubr.msk.bf16.mxu1 %vm17299_vm0, %v17298_v60  ;;  %v15911_v2 = vld [vmem:[%s17629_s12 + $0xc0] ss:$12 sps:$4 sm:$0xff]  }
 0xf45   : > { %14907 = vmatprep.subr.bf16.mxu1 %v17298_v60 }
 0xf4b   : > { %14898 = vmatmul.mubr.bf16.vlgmr.msra.gmra.mxu1 %v6468_v27 }
 0xf4c   : > { %14908 = vmatpush3.bf16.msra.mxu1 %v6631_v3  ;;  %14909 = vmatprep.mubr.msk.bf16.mxu1 %vm17299_vm0, %v17298_v60  ;;  %v15874_v60 = vld [vmem:[%s17629_s12 + $0x7c] ss:$12 sps:$4 sm:$0xff]  }
 0xfc8   : > { %v6569_v12 = vpop.xlane.xlu0 %6568 }
 0xfc9   : > { %16920 = vrcp.f32 %v6569_v12 }
 0xfd6   : > { %v16921_v25 = vpop.eup %16920 }
 0xfd7   : > { %v6575_v47 = vmul.f32 %v16921_v25, %v16917_v40 }
 0xfd9   : > { %v6577_v11 = vpack.c.bf16 %v6575_v47, %v6575_v47  ;;  %v15916_v47 = vld [vmem:[%s17629_s12 + $0x22c] ss:$12 sps:$4 sm:$0xff]  }
 0xfda   : > { %7708 = vmatprep.subr.bf16.mxu1 %v15916_v47  ;;  %v16027_v47 = vld [vmem:[%s17629_s12 + $0x420] ss:$12 sps:$4 sm:$0xff]  }
 0xfdb   : > { %14904 = vmatmul.mubr.msk.bf16.vlgmr.msra.gmra.mxu0 %vm5483_vm3, %v6577_v11 }
 0xfdc   : > { %7666 = vmatpush1.bf16.msra.mxu0 %v15866_v6  ;;  %7697 = vmatprep.mubr.bf16.mxu0 %v18510_v38 }
 0xfdd   : > { %7667 = vmatprep.subr.bf16.mxu0 %v15871_v24 }
 0xfe0   : > { %7668 = vmatpush1.bf16.msra.mxu0 %v15869_v52  ;;  %v15914_v52 = vld [vmem:[%s17629_s12 + $0x228] ss:$12 sps:$4 sm:$0xff]  }
 0xfe1   : > { %7669 = vmatprep.subr.bf16.mxu0 %v15874_v60 }
 0xfe4   : > { %7670 = vmatpush1.bf16.msra.mxu0 %v15872_v20  ;;  %v15919_v20 = vld [vmem:[%s17629_s12 + $0x214] ss:$12 sps:$4 sm:$0xff]  }
 0xfe5   : > { %7671 = vmatprep.subr.bf16.mxu0 %v15877_v16  ;;  %v18664_v16 = vpack.c.bf16 %v18590_v5, %v18556_v30  ;;  %v15997_v30 = vld [vmem:[%s17629_s12 + $0x390] ss:$12 sps:$4 sm:$0xff]  }
 0xfe6   : > { %v16002_v5 = vld [vmem:[%s17629_s12 + $0x37c] ss:$12 sps:$4 sm:$0xff]  }
 0xfe8   : > { %7672 = vmatpush1.bf16.msra.mxu0 %v15875_v29  ;;  %v15994_v29 = vld [vmem:[%s17629_s12 + $0x3a8] ss:$12 sps:$4 sm:$0xff]  }
 0xfe9   : > { %7673 = vmatprep.subr.bf16.mxu0 %v15880_v44  ;;  %v15996_v44 = vld [vmem:[%s17629_s12 + $0x3ac] ss:$12 sps:$4 sm:$0xff]  }
 0xfec   : > { %7674 = vmatpush1.bf16.msra.mxu0 %v15878_v22  ;;  %v15917_v22 = vld [vmem:[%s17629_s12 + $0x210] ss:$12 sps:$4 sm:$0xff]  }
 0xfed   : > { %7675 = vmatprep.subr.bf16.mxu0 %v15883_v62  ;;  %v15999_v62 = vld [vmem:[%s17629_s12 + $0x394] ss:$12 sps:$4 sm:$0xff]  }
 0xff0   : > { %7676 = vmatpush1.bf16.msra.mxu0 %v15881_v36  ;;  %v15922_v36 = vld [vmem:[%s17629_s12 + $0x1fc] ss:$12 sps:$4 sm:$0xff]  }
 0xff1   : > { %7677 = vmatprep.subr.bf16.mxu0 %v15886_v57  ;;  %v15920_v57 = vld [vmem:[%s17629_s12 + $0x1f8] ss:$12 sps:$4 sm:$0xff]  }
 0xff4   : > { %7678 = vmatpush1.bf16.msra.mxu0 %v15884_v61  ;;  %v15925_v61 = vld [vmem:[%s17629_s12 + $0x1e4] ss:$12 sps:$4 sm:$0xff]  }
 0xff5   : > { %7679 = vmatprep.subr.bf16.mxu0 %v15889_v21  ;;  %v16000_v21 = vld [vmem:[%s17629_s12 + $0x378] ss:$12 sps:$4 sm:$0xff]  }
 0xff8   : > { %7680 = vmatpush1.bf16.msra.mxu0 %v15887_v42  ;;  %v16005_v42 = vld [vmem:[%s17629_s12 + $0x364] ss:$12 sps:$4 sm:$0xff]  }
 0xff9   : > { %7681 = vmatprep.subr.bf16.mxu0 %v15892_v33  ;;  %v15923_v33 = vld [vmem:[%s17629_s12 + $0x1e0] ss:$12 sps:$4 sm:$0xff]  }
 0xffc   : > { %7682 = vmatpush2.bf16.msra.mxu0 %v15890_v1  ;;  %v15928_v1 = vld [vmem:[%s17629_s12 + $0x1cc] ss:$12 sps:$4 sm:$0xff]  }
 0xffd   : > { %7683 = vmatprep.subr.bf16.mxu0 %v15895_v45  ;;  %v16003_v45 = vld [vmem:[%s17629_s12 + $0x360] ss:$12 sps:$4 sm:$0xff]  }
0x1000   : > { %7684 = vmatpush2.bf16.msra.mxu0 %v15893_v35  ;;  %v16008_v35 = vld [vmem:[%s17629_s12 + $0x34c] ss:$12 sps:$4 sm:$0xff]  }
0x1001   : > { %7685 = vmatprep.subr.bf16.mxu0 %v15898_v0  ;;  %v15926_v0 = vld [vmem:[%s17629_s12 + $0x1c8] ss:$12 sps:$4 sm:$0xff]  }
0x1003   : > { %v18641_v14 = vpop.f32.mrf.mxu1 }
0x1004   : > { %7686 = vmatpush2.bf16.msra.mxu0 %v15896_v8  ;;  %v15931_v8 = vld [vmem:[%s17629_s12 + $0x1b4] ss:$12 sps:$4 sm:$0xff]  }
0x1005   : > { %v14887_v13 = vpop.f32.mrf.mxu1  ;;  %7687 = vmatprep.subr.bf16.mxu0 %v15901_v56  ;;  %v16006_v56 = vld [vmem:[%s17629_s12 + $0x348] ss:$12 sps:$4 sm:$0xff]  }
0x1006   : > { %v15929_v13 = vld [vmem:[%s17629_s12 + $0x1b0] ss:$12 sps:$4 sm:$0xff]  }
0x1007   : > { %v6456_v23 = vpop.f32.mrf.mxu1 }
0x1008   : > { %7688 = vmatpush2.bf16.msra.mxu0 %v15899_v37  ;;  %v16011_v37 = vld [vmem:[%s17629_s12 + $0x334] ss:$12 sps:$4 sm:$0xff]   ;;  %v16009_v23 = vld [vmem:[%s17629_s12 + $0x330] ss:$12 sps:$4 sm:$0xff]  }
0x1009   : > { %v14888_v18 = vpop.f32.mrf.mxu1  ;;  %7689 = vmatprep.subr.bf16.mxu0 %v15904_v41  ;;  %v15934_v41 = vld [vmem:[%s17629_s12 + $0x19c] ss:$12 sps:$4 sm:$0xff]  }
0x100a   : > { %v15932_v18 = vld [vmem:[%s17629_s12 + $0x198] ss:$12 sps:$4 sm:$0xff]  }
0x100b   : > { %v6545_v63 = vpop.f32.mrf.mxu1 }
0x100c   : > { %v6552_v17 = vmul.f32 0.125, %v6545_v63  ;;  %7690 = vmatpush2.bf16.msra.mxu0 %v15902_v49  ;;  %v16014_v49 = vld [vmem:[%s17629_s12 + $0x31c] ss:$12 sps:$4 sm:$0xff]   ;;  %v16012_v63 = vld [vmem:[%s17629_s12 + $0x318] ss:$12 sps:$4 sm:$0xff]  }
0x100d   : > { %v14899_v7 = vpop.f32.mrf.mxu1  ;;  %7691 = vmatprep.subr.bf16.mxu0 %v15907_v34  ;;  %v15937_v34 = vld [vmem:[%s17629_s12 + $0x184] ss:$12 sps:$4 sm:$0xff]  }
0x100e   : > { %v6554_v40 = vsel %vm5386_vm2, %v6552_v17, -1e+30  ;;  %v16017_v17 = vld [vmem:[%s17629_s12 + $0x304] ss:$12 sps:$4 sm:$0xff]   ;;  %v15940_v7 = vld [vmem:[%s17629_s12 + $0x2ec] ss:$12 sps:$4 sm:$0xff]  }
0x100f   : > { %v6548_v58 = vpop.f32.mrf.mxu1  ;;  %v6558_v46 = vsel %vm5483_vm3, %v6554_v40, -inf }
0x1010   : > { %7692 = vmatpush2.bf16.msra.mxu0 %v15905_v4  ;;  %6559 = vmax.xlane.f32.xlu1 %v6558_v46  ;;  %v15935_v4 = vld [vmem:[%s17629_s12 + $0x180] ss:$12 sps:$4 sm:$0xff]   ;;  %v15938_v58 = vld [vmem:[%s17629_s12 + $0x2e8] ss:$12 sps:$4 sm:$0xff]  }
0x1011   : > { %v14900_v15 = vpop.f32.mrf.mxu1  ;;  %7693 = vmatprep.subr.bf16.mxu0 %v15910_v31  ;;  %v16015_v31 = vld [vmem:[%s17629_s12 + $0x300] ss:$12 sps:$4 sm:$0xff]  }
0x1012   : > { %v15943_v46 = vld [vmem:[%s17629_s12 + $0x2d4] ss:$12 sps:$4 sm:$0xff]  }
0x1013   : > { %v16023_v15 = vld [vmem:[%s17629_s12 + $0x454] ss:$12 sps:$4 sm:$0xff]  }
0x1014   : > { %7694 = vmatpush2.bf16.msra.mxu0 %v15908_v19  ;;  %v16018_v19 = vld [vmem:[%s17629_s12 + $0x468] ss:$12 sps:$4 sm:$0xff]  }
0x1015   : > { %7695 = vmatprep.subr.bf16.mxu0 %v15913_v9  ;;  %v15941_v9 = vld [vmem:[%s17629_s12 + $0x2d0] ss:$12 sps:$4 sm:$0xff]  }
0x1018   : > { %7696 = vmatpush2.bf16.msra.mxu0 %v15911_v2  ;;  %v15946_v2 = vld [vmem:[%s17629_s12 + $0x2bc] ss:$12 sps:$4 sm:$0xff]  }
0x1019   : > { %7751 = vmatprep.subr.bf16.mxu0 %v15996_v44  ;;  %v16033_v44 = vld [vmem:[%s17629_s12 + $0x3f0] ss:$12 sps:$4 sm:$0xff]  }
0x101b   : > { %7698 = vmatmul.mubr.bf16.vlgmr.msra.gmra.mxu0 %v18460_v51 }
0x101c   : > { %7752 = vmatpush1.bf16.msra.mxu0 %v15994_v29  ;;  %v15958_v29 = vld [vmem:[%s17629_s12 + $0x25c] ss:$12 sps:$4 sm:$0xff]  }
0x101d   : > { %7753 = vmatprep.subr.bf16.mxu0 %v15999_v62  ;;  %v15956_v62 = vld [vmem:[%s17629_s12 + $0x258] ss:$12 sps:$4 sm:$0xff]  }
0x1020   : > { %7754 = vmatpush1.bf16.msra.mxu0 %v15997_v30  ;;  %v16036_v30 = vld [vmem:[%s17629_s12 + $0x3d8] ss:$12 sps:$4 sm:$0xff]  }
0x1021   : > { %7755 = vmatprep.subr.bf16.mxu0 %v16002_v5  ;;  %v16041_v5 = vld [vmem:[%s17629_s12 + $0x3c4] ss:$12 sps:$4 sm:$0xff]  }
0x1024   : > { %7756 = vmatpush1.bf16.msra.mxu0 %v16000_v21  ;;  %v16039_v21 = vld [vmem:[%s17629_s12 + $0x3c0] ss:$12 sps:$4 sm:$0xff]  }
0x1025   : > { %7757 = vmatprep.subr.bf16.mxu0 %v16005_v42  ;;  %v15963_v42 = vld [vmem:[%s17629_s12 + $0xb0] ss:$12 sps:$4 sm:$0xff]  }
0x1028   : > { %7758 = vmatpush1.bf16.msra.mxu0 %v16003_v45  ;;  %v15965_v45 = vld [vmem:[%s17629_s12 + $0x98] ss:$12 sps:$4 sm:$0xff]  }
0x1029   : > { %7759 = vmatprep.subr.bf16.mxu0 %v16008_v35  ;;  %v15966_v35 = vld [vmem:[%s17629_s12 + $0x140] ss:$12 sps:$4 sm:$0xff]  }
0x102c   : > { %7760 = vmatpush1.bf16.msra.mxu0 %v16006_v56  ;;  %v15970_v56 = vld [vmem:[%s17629_s12 + $0x110] ss:$12 sps:$4 sm:$0xff]  }
0x102d   : > { %7761 = vmatprep.subr.bf16.mxu0 %v16011_v37  ;;  %v15972_v37 = vld [vmem:[%s17629_s12 + $0xf8] ss:$12 sps:$4 sm:$0xff]  }
0x1030   : > { %7762 = vmatpush1.bf16.msra.mxu0 %v16009_v23  ;;  %v15975_v23 = vld [vmem:[%s17629_s12 + $0x20] ss:$12 sps:$4 sm:$0xff]  }
0x1031   : > { %7763 = vmatprep.subr.bf16.mxu0 %v16014_v49  ;;  %v15976_v49 = vld [vmem:[%s17629_s12 + $0xc8] ss:$12 sps:$4 sm:$0xff]  }
0x1034   : > { %7764 = vmatpush1.bf16.msra.mxu0 %v16012_v63  ;;  %v15979_v63 = vld [vmem:[%s17629_s12 + $0x230] ss:$12 sps:$4 sm:$0xff]  }
0x1035   : > { %7765 = vmatprep.subr.bf16.mxu0 %v16017_v17  ;;  %v15980_v17 = vld [vmem:[%s17629_s12 + $0x2d8] ss:$12 sps:$4 sm:$0xff]  }
0x1038   : > { %7766 = vmatpush1.bf16.msra.mxu0 %v16015_v31  ;;  %v15983_v31 = vld [vmem:[%s17629_s12 + $0x200] ss:$12 sps:$4 sm:$0xff]  }
0x1099   : > { %v6560_v43 = vpop.xlane.xlu1 %6559 }
0x109a   : > { %v6562_v59 = vsub.f32 %v6554_v40, %v6560_v43  ;;  %v16020_v40 = vld [vmem:[%s17629_s12 + $0x46c] ss:$12 sps:$4 sm:$0xff]   ;;  %v16021_v43 = vld [vmem:[%s17629_s12 + $0x450] ss:$12 sps:$4 sm:$0xff]  }
0x109b   : > { %v18656_v10 = vpop.f32.mrf.mxu0  ;;  %7767 = vmatprep.subr.bf16.mxu0 %v16020_v40  ;;  %v15984_v40 = vld [vmem:[%s17629_s12 + $0x2a8] ss:$12 sps:$4 sm:$0xff]  }
0x109c   : > { %v6565_v26 = vmul.f32 1.442695, %v6562_v59  ;;  %7768 = vmatpush2.bf16.msra.mxu0 %v16018_v19  ;;  %v16026_v59 = vld [vmem:[%s17629_s12 + $0x43c] ss:$12 sps:$4 sm:$0xff]   ;;  %v15989_v19 = vld [vmem:[%s17629_s12 + $0x1b8] ss:$12 sps:$4 sm:$0xff]  }
0x109d   : > { %v14905_v27 = vpop.f32.mrf.mxu0  ;;  %7769 = vmatprep.subr.bf16.mxu0 %v16023_v15  ;;  %v15990_v15 = vld [vmem:[%s17629_s12 + $0x260] ss:$12 sps:$4 sm:$0xff]  }
0x109e   : > { %16922 = vpow2.f32 %v6565_v26  ;;  %v15944_v26 = vld [vmem:[%s17629_s12 + $0x2b8] ss:$12 sps:$4 sm:$0xff]  }
0x109f   : > { %v6624_v28 = vpop.f32.mrf.mxu0  ;;  %v15949_v27 = vld [vmem:[%s17629_s12 + $0x2a4] ss:$12 sps:$4 sm:$0xff]  }
0x10a0   : > { %7770 = vmatpush2.bf16.msra.mxu0 %v16021_v43  ;;  %v16024_v28 = vld [vmem:[%s17629_s12 + $0x438] ss:$12 sps:$4 sm:$0xff]   ;;  %v15993_v43 = vld [vmem:[%s17629_s12 + $0x188] ss:$12 sps:$4 sm:$0xff]  }
0x10a1   : > { %v14906_v3 = vpop.f32.mrf.mxu0  ;;  %7771 = vmatprep.subr.bf16.mxu0 %v16026_v59 }
0x10a2   : > { %v16029_v3 = vld [vmem:[%s17629_s12 + $0x424] ss:$12 sps:$4 sm:$0xff]  }
0x10a4   : > { %7772 = vmatpush2.bf16.msra.mxu0 %v16024_v28  ;;  %v6883_v28 = vpack.c.bf16 %v18641_v14, %v18595_v53  ;;  %v16048_v53 = vld [vmem:[%s17629_s12 + $0x428] ss:$12 sps:$4 sm:$0xff]  }
0x10a5   : > { %7773 = vmatprep.subr.bf16.mxu0 %v16029_v3  ;;  %v16049_v14 = vld [vmem:[%s17629_s12 + $0x368] ss:$12 sps:$4 sm:$0xff]  }
0x10a8   : > { %7774 = vmatpush2.bf16.msra.mxu0 %v16027_v47  ;;  %v16045_v47 = vld [vmem:[%s17629_s12 + $0x398] ss:$12 sps:$4 sm:$0xff]  }
0x10ab   : > { %v16923_v12 = vpop.eup %16922 }
0x10ac   : > { %v6570_v25 = vsel %vm5483_vm3, %v16923_v12, 0.0 }
0x10ad   : > { %6571 = vadd.xlane.f32.xlu1 %v6570_v25  ;;  %v15952_v25 = vld [vmem:[%s17629_s12 + $0x28c] ss:$12 sps:$4 sm:$0xff]  }
0x1136   : > { %v6572_v6 = vpop.xlane.xlu1 %6571 }
0x1137   : > { %16924 = vrcp.f32 %v6572_v6  ;;  %v16032_v6 = vld [vmem:[%s17629_s12 + $0x40c] ss:$12 sps:$4 sm:$0xff]  }
0x1138   : > { %7775 = vmatprep.subr.bf16.mxu0 %v16032_v6 }
0x1144   : > { %v16925_v11 = vpop.eup %16924 }
0x1145   : > { %v6576_v24 = vmul.f32 %v16925_v11, %v16923_v12  ;;  %v15947_v12 = vld [vmem:[%s17629_s12 + $0x2a0] ss:$12 sps:$4 sm:$0xff]   ;;  %v15950_v11 = vld [vmem:[%s17629_s12 + $0x288] ss:$12 sps:$4 sm:$0xff]  }
0x1147   : > { %v6578_v60 = vpack.c.bf16 %v6576_v24, %v6576_v24  ;;  %v15955_v24 = vld [vmem:[%s17629_s12 + $0x274] ss:$12 sps:$4 sm:$0xff]  }
0x1149   : > { %14910 = vmatmul.mubr.msk.bf16.vlgmr.msra.gmra.mxu1 %vm5483_vm3, %v6578_v60  ;;  %v16035_v60 = vld [vmem:[%s17629_s12 + $0x3f4] ss:$12 sps:$4 sm:$0xff]  }
0x114a   : > { %7709 = vmatpush1.bf16.msra.mxu1 %v15914_v52  ;;  %7740 = vmatprep.mubr.bf16.mxu1 %v18664_v16  ;;  %v16030_v52 = vld [vmem:[%s17629_s12 + $0x408] ss:$12 sps:$4 sm:$0xff]  }
0x114b   : > { %7710 = vmatprep.subr.bf16.mxu1 %v15919_v20  ;;  %v15953_v20 = vld [vmem:[%s17629_s12 + $0x270] ss:$12 sps:$4 sm:$0xff]   ;;  %7776 = vmatpush2.bf16.msra.mxu0 %v16030_v52 }
0x114c   : > { %7777 = vmatprep.subr.bf16.mxu0 %v16035_v60  ;;  %v16051_v52 = vld [vmem:[%s17629_s12 + $0x350] ss:$12 sps:$4 sm:$0xff]   ;;  %v16052_v60 = vld [vmem:[%s17629_s12 + $0x3f8] ss:$12 sps:$4 sm:$0xff]  }
0x114e   : > { %7711 = vmatpush1.bf16.msra.mxu1 %v15917_v22  ;;  %v16038_v22 = vld [vmem:[%s17629_s12 + $0x3dc] ss:$12 sps:$4 sm:$0xff]  }
0x114f   : > { %7712 = vmatprep.subr.bf16.mxu1 %v15922_v36  ;;  %v15961_v36 = vld [vmem:[%s17629_s12 + $0x244] ss:$12 sps:$4 sm:$0xff]   ;;  %7778 = vmatpush2.bf16.msra.mxu0 %v16033_v44  ;;  %v16055_v44 = vld [vmem:[%s17629_s12 + $0x320] ss:$12 sps:$4 sm:$0xff]  }
0x1150   : > { %7779 = vmatprep.subr.bf16.mxu0 %v16038_v22  ;;  %v16056_v22 = vld [vmem:[%s17629_s12 + $0x3c8] ss:$12 sps:$4 sm:$0xff]  }
0x1152   : > { %7713 = vmatpush1.bf16.msra.mxu1 %v15920_v57  ;;  %v15959_v57 = vld [vmem:[%s17629_s12 + $0x240] ss:$12 sps:$4 sm:$0xff]  }
0x1153   : > { %7714 = vmatprep.subr.bf16.mxu1 %v15925_v61  ;;  %v15962_v61 = vld [vmem:[%s17629_s12 + $0x170] ss:$12 sps:$4 sm:$0xff]   ;;  %7780 = vmatpush2.bf16.msra.mxu0 %v16036_v30 }
0x1154   : > { %7781 = vmatprep.subr.bf16.mxu0 %v16041_v5 }
0x1156   : > { %7715 = vmatpush1.bf16.msra.mxu1 %v15923_v33  ;;  %v18733_v33 = vpack.c.bf16 %v18551_v55, %v18515_v32  ;;  %v15967_v32 = vld [vmem:[%s17629_s12 + $0x80] ss:$12 sps:$4 sm:$0xff]   ;;  %v15968_v55 = vld [vmem:[%s17629_s12 + $0x128] ss:$12 sps:$4 sm:$0xff]  }
0x1157   : > { %7716 = vmatprep.subr.bf16.mxu1 %v15928_v1  ;;  %v15964_v1 = vld [vmem:[%s17629_s12 + $0x158] ss:$12 sps:$4 sm:$0xff]   ;;  %7782 = vmatpush2.bf16.msra.mxu0 %v16039_v21 }
0x115a   : > { %7717 = vmatpush1.bf16.msra.mxu1 %v15926_v0  ;;  %v16042_v0 = vld [vmem:[%s17629_s12 + $0x470] ss:$12 sps:$4 sm:$0xff]  }
0x115b   : > { %7718 = vmatprep.subr.bf16.mxu1 %v15931_v8  ;;  %14615 = vmatprep.subr.bf16.mxu0 %v16042_v0  ;;  %v15969_v8 = vld [vmem:[%s17629_s12 + $0x68] ss:$12 sps:$4 sm:$0xff]  }
0x115e   : > { %7719 = vmatpush1.bf16.msra.mxu1 %v15929_v13  ;;  %v15973_v13 = vld [vmem:[%s17629_s12 + $0x38] ss:$12 sps:$4 sm:$0xff]  }
0x115f   : > { %7720 = vmatprep.subr.bf16.mxu1 %v15934_v41  ;;  %v15974_v41 = vld [vmem:[%s17629_s12 + $0xe0] ss:$12 sps:$4 sm:$0xff]  }
0x1162   : > { %7721 = vmatpush1.bf16.msra.mxu1 %v15932_v18  ;;  %v15977_v18 = vld [vmem:[%s17629_s12 + $0x8] ss:$12 sps:$4 sm:$0xff]  }
0x1163   : > { %7722 = vmatprep.subr.bf16.mxu1 %v15937_v34  ;;  %v15978_v34 = vld [vmem:[%s17629_s12 + $0x2f0] ss:$12 sps:$4 sm:$0xff]  }
0x1166   : > { %7723 = vmatpush1.bf16.msra.mxu1 %v15935_v4  ;;  %v15981_v4 = vld [vmem:[%s17629_s12 + $0x218] ss:$12 sps:$4 sm:$0xff]  }
0x1167   : > { %7724 = vmatprep.subr.bf16.mxu1 %v15940_v7  ;;  %v15982_v7 = vld [vmem:[%s17629_s12 + $0x2c0] ss:$12 sps:$4 sm:$0xff]  }
0x116a   : > { %7725 = vmatpush2.bf16.msra.mxu1 %v15938_v58  ;;  %v15985_v58 = vld [vmem:[%s17629_s12 + $0x1e8] ss:$12 sps:$4 sm:$0xff]  }
0x116b   : > { %7726 = vmatprep.subr.bf16.mxu1 %v15943_v46  ;;  %v15987_v46 = vld [vmem:[%s17629_s12 + $0x1d0] ss:$12 sps:$4 sm:$0xff]  }
0x116e   : > { %7727 = vmatpush2.bf16.msra.mxu1 %v15941_v9  ;;  %v15991_v9 = vld [vmem:[%s17629_s12 + $0x1a0] ss:$12 sps:$4 sm:$0xff]  }
0x116f   : > { %7728 = vmatprep.subr.bf16.mxu1 %v15946_v2  ;;  %v15992_v2 = vld [vmem:[%s17629_s12 + $0x248] ss:$12 sps:$4 sm:$0xff]  }
0x1172   : > { %7729 = vmatpush2.bf16.msra.mxu1 %v15944_v26 }
0x1173   : > { %7730 = vmatprep.subr.bf16.mxu1 %v15949_v27  ;;  %v16043_v27 = vld [vmem:[%s17629_s12 + $0x3b0] ss:$12 sps:$4 sm:$0xff]  }
0x1176   : > { %7731 = vmatpush2.bf16.msra.mxu1 %v15947_v12  ;;  %v16044_v12 = vld [vmem:[%s17629_s12 + $0x458] ss:$12 sps:$4 sm:$0xff]  }
0x1177   : > { %7732 = vmatprep.subr.bf16.mxu1 %v15952_v25 }
0x117a   : > { %7733 = vmatpush2.bf16.msra.mxu1 %v15950_v11  ;;  %v16047_v11 = vld [vmem:[%s17629_s12 + $0x380] ss:$12 sps:$4 sm:$0xff]  }
0x117b   : > { %7734 = vmatprep.subr.bf16.mxu1 %v15955_v24  ;;  %v16050_v24 = vld [vmem:[%s17629_s12 + $0x410] ss:$12 sps:$4 sm:$0xff]  }
0x117e   : > { %7735 = vmatpush2.bf16.msra.mxu1 %v15953_v20  ;;  %v16053_v20 = vld [vmem:[%s17629_s12 + $0x338] ss:$12 sps:$4 sm:$0xff]  }
0x117f   : > { %7736 = vmatprep.subr.bf16.mxu1 %v15958_v29  ;;  %v16054_v29 = vld [vmem:[%s17629_s12 + $0x3e0] ss:$12 sps:$4 sm:$0xff]  }
0x1182   : > { %7737 = vmatpush2.bf16.msra.mxu1 %v15956_v62  ;;  %v16057_v62 = vld [vmem:[%s17629_s12 + $0x308] ss:$12 sps:$4 sm:$0xff]  }
0x1183   : > { %7738 = vmatprep.subr.bf16.mxu1 %v15961_v36 }
0x1186   : > { %7739 = vmatpush2.bf16.msra.mxu1 %v15959_v57 }
0x1187   : > { %14571 = vmatprep.subr.bf16.mxu1 %v15962_v61  ;;  %v7699_v61 = vpop.f32.mrf.mxu0 }
0x1189   : > { %7741 = vmatmul.mubr.bf16.vlgmr.msra.gmra.mxu1 %v18733_v33 }
0x118a   : > { %14572 = vmatpush3.bf16.msra.mxu1 %v15963_v42  ;;  %7826 = vmatprep.mubr.bf16.mxu1 %v18510_v38  ;;  %v15971_v38 = vld [vmem:[%s17629_s12 + $0x50] ss:$12 sps:$4 sm:$0xff]   ;;  %v7701_v42 = vpop.f32.mrf.mxu0 }
0x118b   : > { %14573 = vmatprep.subr.bf16.mxu1 %v15964_v1 }
0x118c   : > { %v7703_v1 = vpop.f32.mrf.mxu0 }
0x118e   : > { %14574 = vmatpush3.bf16.msra.mxu1 %v15965_v45 }
0x118f   : > { %14575 = vmatprep.subr.bf16.mxu1 %v15966_v35  ;;  %v7705_v35 = vpop.f32.mrf.mxu0 }
0x1192   : > { %14576 = vmatpush3.bf16.msra.mxu1 %v15967_v32 }
0x1193   : > { %14577 = vmatprep.subr.bf16.mxu1 %v15968_v55 }
0x1196   : > { %14578 = vmatpush3.bf16.msra.mxu1 %v15969_v8  ;;  %v6887_v8 = vsub.s32 4, %v17805_v48 }
0x1197   : > { %14579 = vmatprep.subr.bf16.mxu1 %v15970_v56 }
0x119a   : > { %14580 = vmatpush3.bf16.msra.mxu1 %v15971_v38  ;;  %v18792_v38 = vld [vmem:[%s17639_s29 + $0x8] sm:$0xff] }
0x119b   : > { %14581 = vmatprep.subr.bf16.mxu1 %v15972_v37  ;;  %v6892_v37 = vrot.slane %v18792_v38, %v6887_v8 }
0x119e   : > { %14582 = vmatpush3.bf16.msra.mxu1 %v15973_v13 }
0x119f   : > { %14583 = vmatprep.subr.bf16.mxu1 %v15974_v41  ;;  %v18796_v41 = vld [vmem:[%s17639_s29] sm:$0xff] }
0x11a2   : > { %14584 = vmatpush3.bf16.msra.mxu1 %v15975_v23  ;;  %v6888_v23 = vrot.slane %v18796_v41, %v6887_v8 }
0x11a3   : > { %14585 = vmatprep.subr.bf16.mxu1 %v15976_v49 }
0x11a6   : > { %14586 = vmatpush3.bf16.msra.mxu1 %v15977_v18  ;;  %v7702_v18 = vadd.f32 %v7701_v42, %v6892_v37 }
0x11a7   : > { %14593 = vmatprep.subr.bf16.mxu1 %v15978_v34 }
0x11a9   : > { %7827 = vmatmul.mubr.bf16.vlgmr.msra.gmra.mxu1 %v18460_v51  ;;  %v15986_v51 = vld [vmem:[%s17629_s12 + $0x290] ss:$12 sps:$4 sm:$0xff]  }
0x11aa   : > { %14594 = vmatpush3.bf16.msra.mxu1 %v15979_v63  ;;  %7867 = vmatprep.mubr.bf16.mxu1 %v18664_v16  ;;  %v15988_v16 = vld [vmem:[%s17629_s12 + $0x278] ss:$12 sps:$4 sm:$0xff]   ;;  %v7700_v63 = vadd.f32 %v7699_v61, %v6888_v23 }
0x11ab   : > { %14595 = vmatprep.subr.bf16.mxu1 %v15980_v17 }
0x11ae   : > { %14596 = vmatpush3.bf16.msra.mxu1 %v15981_v4  ;;  %v18800_v4 = vld [vmem:[%s17639_s29 + $0x10] sm:$0xff] }
0x11af   : > { %14597 = vmatprep.subr.bf16.mxu1 %v15982_v7  ;;  %v6896_v7 = vrot.slane %v18800_v4, %v6887_v8  ;;  %v16061_v8 = vld [vmem:[%s17631_s15 + $0x240] ss:$48 sps:$4 sm:$0xff]  }
0x11b2   : > { %14598 = vmatpush3.bf16.msra.mxu1 %v15983_v31 }
0x11b3   : > { %14599 = vmatprep.subr.bf16.mxu1 %v15984_v40 }
0x11b6   : > { %14600 = vmatpush3.bf16.msra.mxu1 %v15985_v58  ;;  %v7706_v58 = vadd.f32 %v7705_v35, %v6892_v37  ;;  %v16082_v37 = vld [vmem:[%s17631_s15 + $0x8a0] ss:$48 sps:$4 sm:$0xff]  }
0x11b7   : > { %14601 = vmatprep.subr.bf16.mxu1 %v15986_v51 }
0x11ba   : > { %14602 = vmatpush3.bf16.msra.mxu1 %v15987_v46 }
0x11bb   : > { %14603 = vmatprep.subr.bf16.mxu1 %v15988_v16 }
0x11be   : > { %14604 = vmatpush3.bf16.msra.mxu1 %v15989_v19 }
0x11bf   : > { %14605 = vmatprep.subr.bf16.mxu1 %v15990_v15  ;;  %v7704_v15 = vadd.f32 %v7703_v1, %v6888_v23  ;;  %v16064_v23 = vld [vmem:[%s17631_s15 + $0x1e0] ss:$48 sps:$4 sm:$0xff]  }
0x11c2   : > { %14606 = vmatpush3.bf16.msra.mxu1 %v15991_v9 }
0x11c3   : > { %14607 = vmatprep.subr.bf16.mxu1 %v15992_v2 }
0x11c6   : > { %14608 = vmatpush3.bf16.msra.mxu1 %v15993_v43 }
0x11c9   : > { %7868 = vmatmul.mubr.bf16.vlgmr.msra.gmra.mxu1 %v18733_v33 }
0x1209   : > { %v6667_v59 = vpop.f32.mrf.mxu1 }
0x120a   : > { %v6884_v26 = vpack.c.bf16 %v6667_v59, %v18656_v10  ;;  %v16046_v10 = vld [vmem:[%s17629_s12 + $0x440] ss:$12 sps:$4 sm:$0xff]   ;;  %s19750_s12 = sld [smem:[#allocation30_spill]] (!%p14454_p11) }
0x120b   : > { %v14911_v3 = vpop.f32.mrf.mxu1 }
0x120c   : > { %7783 = vmatprep.mubr.bf16.mxu0 %v6884_v26 }
0x120d   : > { %v6670_v25 = vpop.f32.mrf.mxu1  ;;  %7784 = vmatmul.mubr.bf16.vlgmr.msra.gmra.mxu0 %v6883_v28 }
0x120e   : > { %14616 = vmatpush3.bf16.msra.mxu0 %v16043_v27  ;;  %7908 = vmatprep.mubr.bf16.mxu0 %v6884_v26  ;;  %v16984_v25 = vld [vmem:[#allocation2 + $0x10] sm:$0xff] }
0x120f   : > { %v14912_v6 = vpop.f32.mrf.mxu1  ;;  %14617 = vmatprep.subr.bf16.mxu0 %v16044_v12 }
0x1212   : > { %14618 = vmatpush3.bf16.msra.mxu0 %v16045_v47 }
0x1213   : > { %14619 = vmatprep.subr.bf16.mxu0 %v16046_v10 }
0x1216   : > { %14620 = vmatpush3.bf16.msra.mxu0 %v16047_v11 }
0x1217   : > { %14621 = vmatprep.subr.bf16.mxu0 %v16048_v53 }
0x121a   : > { %14622 = vmatpush3.bf16.msra.mxu0 %v16049_v14  ;;  %v16985_v14 = vld [vmem:[#allocation2 + $0x28] sm:$0xff] }
0x121b   : > { %14623 = vmatprep.subr.bf16.mxu0 %v16050_v24 }
0x121e   : > { %14624 = vmatpush3.bf16.msra.mxu0 %v16051_v52 }
0x121f   : > { %14625 = vmatprep.subr.bf16.mxu0 %v16052_v60 }
0x1222   : > { %14626 = vmatpush3.bf16.msra.mxu0 %v16053_v20 }
0x1223   : > { %14627 = vmatprep.subr.bf16.mxu0 %v16054_v29 }
0x1226   : > { %14628 = vmatpush3.bf16.msra.mxu0 %v16055_v44  ;;  %v16986_v44 = vld [vmem:[#allocation2 + $0x18] sm:$0xff] }
0x1227   : > { %14629 = vmatprep.subr.bf16.mxu0 %v16056_v22 }
0x122a   : > { %14630 = vmatpush3.bf16.msra.mxu0 %v16057_v62  ;;  %v16987_v62 = vld [vmem:[#allocation2 + $0x8] sm:$0xff] }
0x122d   : > { %7909 = vmatmul.mubr.bf16.vlgmr.msra.gmra.mxu0 %v6883_v28 }
0x122e   : > { %9855 = vmatprep.mubr.bf16.mxu0 %v17297_v39 }
0x1249   : > { %v7742_v36 = vpop.f32.mrf.mxu1 }
0x124a   : > { %v7743_v51 = vadd.f32 %v7742_v36, %v7700_v63  ;;  %v16070_v63 = vld [vmem:[%s17631_s15 + $0x120] ss:$48 sps:$4 sm:$0xff]  }
0x124b   : > { %v7744_v30 = vpop.f32.mrf.mxu1 }
0x124c   : > { %v7745_v17 = vadd.f32 %v7744_v30, %v7702_v18  ;;  %v16067_v18 = vld [vmem:[%s17631_s15 + $0x180] ss:$48 sps:$4 sm:$0xff]  }
0x124d   : > { %v7746_v5 = vpop.f32.mrf.mxu1 }
0x124e   : > { %v7747_v27 = vadd.f32 %v7746_v5, %v7704_v15 }
0x124f   : > { %v7748_v57 = vpop.f32.mrf.mxu1 }
0x1250   : > { %v7749_v43 = vadd.f32 %v7748_v57, %v7706_v58  ;;  %v16988_v57 = vld [vmem:[#allocation2] sm:$0xff] }
0x1251   : > { %v16081_v58 = vld [vmem:[%s17631_s15 + $0x4] ss:$48 sps:$4 sm:$0xff]  }
0x1269   : > { %v14587_v21 = vpop.f32.mrf.mxu1 }
0x126b   : > { %v14588_v33 = vpop.f32.mrf.mxu1 }
0x126c   : > { %v14589_v31 = vadd.f32 %v14588_v33, %v14587_v21  ;;  %v16989_v33 = vld [vmem:[#allocation2 + $0x20] sm:$0xff] }
0x126d   : > { %v14590_v45 = vpop.f32.mrf.mxu1 }
0x126e   : > { %v7829_v59 = vadd.f32 %v14589_v31, %v6896_v7  ;;  %v16078_v31 = vld [vmem:[%s17631_s15 + $0x64] ss:$48 sps:$4 sm:$0xff]  }
0x126f   : > { %v14591_v0 = vpop.f32.mrf.mxu1 }
0x1270   : > { %v14592_v9 = vadd.f32 %v14591_v0, %v14590_v45  ;;  %v16058_v0 = vld [vmem:[%s17631_s15 + $0x2a0] ss:$48 sps:$4 sm:$0xff]  }
0x1272   : > { %v7832_v11 = vadd.f32 %v14592_v9, %v6896_v7  ;;  %v16073_v7 = vld [vmem:[%s17631_s15 + $0xc0] ss:$48 sps:$4 sm:$0xff]  }
0x1289   : > { %v14609_v55 = vpop.f32.mrf.mxu1 }
0x128b   : > { %v14610_v13 = vpop.f32.mrf.mxu1 }
0x128c   : > { %v14611_v46 = vadd.f32 %v14610_v13, %v14609_v55  ;;  %v16063_v55 = vld [vmem:[%s17631_s15 + $0x244] ss:$48 sps:$4 sm:$0xff]  }
0x128d   : > { %v14612_v34 = vpop.f32.mrf.mxu1  ;;  %v16084_v13 = vld [vmem:[%s17631_s15 + $0x8a4] ss:$48 sps:$4 sm:$0xff]  }
0x128e   : > { %v7870_v12 = vadd.f32 %v14611_v46, %v7829_v59  ;;  %9823 = vmatprep.subr.bf16.mxu0 %v16084_v13  ;;  %v16087_v46 = vld [vmem:[%s17631_s15 + $0x5a4] ss:$48 sps:$4 sm:$0xff]  }
0x128f   : > { %v14613_v16 = vpop.f32.mrf.mxu1  ;;  %9824 = vmatpush1.bf16.msra.mxu0 %v16082_v37  ;;  %v16114_v37 = vld [vmem:[%s17631_s15 + $0x6c4] ss:$48 sps:$4 sm:$0xff]  }
0x1290   : > { %v14614_v28 = vadd.f32 %v14613_v16, %v14612_v34  ;;  %v16072_v34 = vld [vmem:[%s17631_s15 + $0x124] ss:$48 sps:$4 sm:$0xff]   ;;  %v16085_v16 = vld [vmem:[%s17631_s15 + $0x5a0] ss:$48 sps:$4 sm:$0xff]  }
0x1291   : > { %v16117_v13 = vld [vmem:[%s17631_s15 + $0x3c4] ss:$48 sps:$4 sm:$0xff]  }
0x1292   : > { %v7873_v20 = vadd.f32 %v14614_v28, %v7832_v11 }
0x12cd   : > { %v7785_v32 = vpop.f32.mrf.mxu0 }
0x12ce   : > { %v7786_v26 = vadd.f32 %v7785_v32, %v7743_v51  ;;  %v16060_v32 = vld [vmem:[%s17631_s15 + $0x2a4] ss:$48 sps:$4 sm:$0xff]   ;;  %v16079_v51 = vld [vmem:[%s17631_s15] ss:$48 sps:$4 sm:$0xff]  }
0x12cf   : > { %v7787_v56 = vpop.f32.mrf.mxu0  ;;  %9780 = vmatprep.subr.bf16.mxu1 %v16060_v32  ;;  %v16108_v32 = vld [vmem:[%s17631_s15 + $0x724] ss:$48 sps:$4 sm:$0xff]  }
0x12d0   : > { %v7788_v19 = vadd.f32 %v7787_v56, %v7745_v17  ;;  %v18805_v24 = vadd.f32 %v16985_v14, %v7786_v26  ;;  %9781 = vmatpush1.bf16.msra.mxu1 %v16058_v0  ;;  %v16066_v56 = vld [vmem:[%s17631_s15 + $0x1e4] ss:$48 sps:$4 sm:$0xff]  }
0x12d1   : > { %v7789_v49 = vpop.f32.mrf.mxu0  ;;  %9782 = vmatprep.subr.bf16.mxu1 %v16063_v55  ;;  %v16075_v17 = vld [vmem:[%s17631_s15 + $0xc4] ss:$48 sps:$4 sm:$0xff]   ;;  %v16106_v55 = vld [vmem:[%s17631_s15 + $0x720] ss:$48 sps:$4 sm:$0xff]  }
0x12d2   : > { %v18803_v47 = vadd.f32 %v16984_v25, %v7788_v19  ;;  %v7790_v52 = vadd.f32 %v7789_v49, %v7747_v27  ;;  %v16069_v49 = vld [vmem:[%s17631_s15 + $0x184] ss:$48 sps:$4 sm:$0xff]  }
0x12d3   : > { %v7791_v40 = vpop.f32.mrf.mxu0  ;;  %v16105_v0 = vld [vmem:[%s17631_s15 + $0x484] ss:$48 sps:$4 sm:$0xff]  }
0x12d4   : > { %v7792_v6 = vadd.f32 %v7791_v40, %v7749_v43  ;;  %v7923_v5 = vadd.f32 %v18803_v47, %v18805_v24  ;;  %v18813_v61 = vadd.f32 %v16988_v57, %v7790_v52  ;;  %9783 = vmatpush1.bf16.msra.mxu1 %v16061_v8  ;;  %v16076_v40 = vld [vmem:[%s17631_s15 + $0x60] ss:$48 sps:$4 sm:$0xff]   ;;  %v16111_v8 = vld [vmem:[%s17631_s15 + $0x424] ss:$48 sps:$4 sm:$0xff]  }
0x12d5   : > { %9784 = vmatprep.subr.bf16.mxu1 %v16066_v56  ;;  %v16094_v57 = vld [vmem:[%s17631_s15 + $0x7e0] ss:$48 sps:$4 sm:$0xff]  }
0x12d6   : > { %v18807_v22 = vadd.f32 %v16986_v44, %v7792_v6  ;;  %v16088_v44 = vld [vmem:[%s17631_s15 + $0x840] ss:$48 sps:$4 sm:$0xff]  }
0x12d7   : > { %v16109_v56 = vld [vmem:[%s17631_s15 + $0x420] ss:$48 sps:$4 sm:$0xff]  }
0x12d8   : > { %v7927_v45 = vadd.f32 %v18807_v22, %v18813_v61  ;;  %9785 = vmatpush1.bf16.msra.mxu1 %v16064_v23  ;;  %v16112_v23 = vld [vmem:[%s17631_s15 + $0x6c0] ss:$48 sps:$4 sm:$0xff]  }
0x12d9   : > { %9786 = vmatprep.subr.bf16.mxu1 %v16069_v49  ;;  %v16115_v49 = vld [vmem:[%s17631_s15 + $0x3c0] ss:$48 sps:$4 sm:$0xff]  }
0x12dc   : > { %9787 = vmatpush1.bf16.msra.mxu1 %v16067_v18  ;;  %v16120_v18 = vld [vmem:[%s17631_s15 + $0x664] ss:$48 sps:$4 sm:$0xff]  }
0x12dd   : > { %9788 = vmatprep.subr.bf16.mxu1 %v16072_v34  ;;  %v16123_v34 = vld [vmem:[%s17631_s15 + $0x364] ss:$48 sps:$4 sm:$0xff]  }
0x12e0   : > { %9789 = vmatpush1.bf16.msra.mxu1 %v16070_v63  ;;  %v16118_v63 = vld [vmem:[%s17631_s15 + $0x660] ss:$48 sps:$4 sm:$0xff]  }
0x12e1   : > { %9790 = vmatprep.subr.bf16.mxu1 %v16075_v17  ;;  %v16121_v17 = vld [vmem:[%s17631_s15 + $0x360] ss:$48 sps:$4 sm:$0xff]  }
0x12e4   : > { %9791 = vmatpush1.bf16.msra.mxu1 %v16073_v7  ;;  %v16126_v7 = vld [vmem:[%s17631_s15 + $0x604] ss:$48 sps:$4 sm:$0xff]  }
0x12e5   : > { %9792 = vmatprep.subr.bf16.mxu1 %v16078_v31  ;;  %v16129_v31 = vld [vmem:[%s17631_s15 + $0x304] ss:$48 sps:$4 sm:$0xff]  }
0x12e8   : > { %9793 = vmatpush1.bf16.msra.mxu1 %v16076_v40  ;;  %v16124_v40 = vld [vmem:[%s17631_s15 + $0x600] ss:$48 sps:$4 sm:$0xff]  }
0x12e9   : > { %9794 = vmatprep.subr.bf16.mxu1 %v16081_v58  ;;  %v16127_v58 = vld [vmem:[%s17631_s15 + $0x300] ss:$48 sps:$4 sm:$0xff]  }
0x12ec   : > { %9795 = vmatpush1.bf16.msra.mxu1 %v16079_v51  ;;  %v16132_v51 = vld [vmem:[%s17631_s15 + $0x2ac] ss:$48 sps:$4 sm:$0xff]  }
0x12ed   : > { %v14631_v2 = vpop.f32.mrf.mxu0  ;;  %9796 = vmatprep.subr.bf16.mxu1 %v16087_v46  ;;  %v16135_v46 = vld [vmem:[%s17631_s15 + $0x8ac] ss:$48 sps:$4 sm:$0xff]  }
0x12ef   : > { %v14632_v3 = vpop.f32.mrf.mxu0 }
0x12f0   : > { %v14633_v10 = vadd.f32 %v14632_v3, %v14631_v2  ;;  %9797 = vmatpush2.bf16.msra.mxu1 %v16085_v16 }
0x12f1   : > { %v14634_v53 = vpop.f32.mrf.mxu0 }
0x12f2   : > { %v7911_v60 = vadd.f32 %v14633_v10, %v7870_v12 }
0x12f3   : > { %v14635_v29 = vpop.f32.mrf.mxu0 }
0x12f4   : > { %v18809_v36 = vadd.f32 %v16987_v62, %v7911_v60  ;;  %v14636_v30 = vadd.f32 %v14635_v29, %v14634_v53  ;;  %v16090_v29 = vld [vmem:[%s17631_s15 + $0x844] ss:$48 sps:$4 sm:$0xff]  }
0x12f5   : > { %v16093_v62 = vld [vmem:[%s17631_s15 + $0x544] ss:$48 sps:$4 sm:$0xff]   ;;  %9825 = vmatprep.subr.bf16.mxu0 %v16090_v29 }
0x12f6   : > { %v7914_v21 = vadd.f32 %v14636_v30, %v7873_v20  ;;  %v7924_v42 = vadd.f32 %v7923_v5, %v18809_v36  ;;  %v16091_v30 = vld [vmem:[%s17631_s15 + $0x540] ss:$48 sps:$4 sm:$0xff]   ;;  %9798 = vmatprep.subr.bf16.mxu1 %v16093_v62  ;;  %9826 = vmatpush1.bf16.msra.mxu0 %v16088_v44  ;;  %v16096_v5 = vld [vmem:[%s17631_s15 + $0x7e4] ss:$48 sps:$4 sm:$0xff]  }
0x12f7   : > { %9799 = vmatpush2.bf16.msra.mxu1 %v16091_v30  ;;  %9827 = vmatprep.subr.bf16.mxu0 %v16096_v5 }
0x12f8   : > { %v18816_v1 = vadd.f32 %v16989_v33, %v7914_v21  ;;  %7925 = vadd.xlane.f32.xlu0 %v7924_v42  ;;  %v16099_v21 = vld [vmem:[%s17631_s15 + $0x4e4] ss:$48 sps:$4 sm:$0xff]   ;;  %v16097_v42 = vld [vmem:[%s17631_s15 + $0x4e0] ss:$48 sps:$4 sm:$0xff]  }
0x12f9   : > { %9800 = vmatprep.subr.bf16.mxu1 %v16099_v21  ;;  %v16102_v33 = vld [vmem:[%s17631_s15 + $0x784] ss:$48 sps:$4 sm:$0xff]  }
0x12fa   : > { %v7928_v35 = vadd.f32 %v7927_v45, %v18816_v1  ;;  %9828 = vmatpush1.bf16.msra.mxu0 %v16094_v57  ;;  %v16100_v45 = vld [vmem:[%s17631_s15 + $0x780] ss:$48 sps:$4 sm:$0xff]  }
0x12fb   : > { %9801 = vmatpush2.bf16.msra.mxu1 %v16097_v42  ;;  %9829 = vmatprep.subr.bf16.mxu0 %v16102_v33 }
0x12fc   : > { %7929 = vadd.xlane.f32.xlu1 %v7928_v35  ;;  %v16103_v35 = vld [vmem:[%s17631_s15 + $0x480] ss:$48 sps:$4 sm:$0xff]   ;;  %9802 = vmatprep.subr.bf16.mxu1 %v16105_v0  ;;  %v16130_v0 = vld [vmem:[%s17631_s15 + $0x2a8] ss:$48 sps:$4 sm:$0xff]  }
0x12fe   : > { %9830 = vmatpush1.bf16.msra.mxu0 %v16100_v45 }
0x12ff   : > { %9803 = vmatpush2.bf16.msra.mxu1 %v16103_v35  ;;  %9831 = vmatprep.subr.bf16.mxu0 %v16108_v32 }
0x1300   : > { %9804 = vmatprep.subr.bf16.mxu1 %v16111_v8 }
0x1302   : > { %9832 = vmatpush1.bf16.msra.mxu0 %v16106_v55 }
0x1303   : > { %9805 = vmatpush2.bf16.msra.mxu1 %v16109_v56  ;;  %9833 = vmatprep.subr.bf16.mxu0 %v16114_v37  ;;  %v16138_v56 = vld [vmem:[%s17631_s15 + $0x24c] ss:$48 sps:$4 sm:$0xff]  }
0x1304   : > { %9806 = vmatprep.subr.bf16.mxu1 %v16117_v13  ;;  %v16141_v37 = vld [vmem:[%s17631_s15 + $0x84c] ss:$48 sps:$4 sm:$0xff]   ;;  %v16136_v13 = vld [vmem:[%s17631_s15 + $0x248] ss:$48 sps:$4 sm:$0xff]  }
0x1306   : > { %9834 = vmatpush1.bf16.msra.mxu0 %v16112_v23  ;;  %v16139_v23 = vld [vmem:[%s17631_s15 + $0x848] ss:$48 sps:$4 sm:$0xff]  }
0x1307   : > { %9807 = vmatpush2.bf16.msra.mxu1 %v16115_v49  ;;  %9835 = vmatprep.subr.bf16.mxu0 %v16120_v18  ;;  %v16144_v49 = vld [vmem:[%s17631_s15 + $0x1ec] ss:$48 sps:$4 sm:$0xff]  }
0x1308   : > { %9808 = vmatprep.subr.bf16.mxu1 %v16123_v34  ;;  %v16147_v18 = vld [vmem:[%s17631_s15 + $0x7ec] ss:$48 sps:$4 sm:$0xff]   ;;  %v16142_v34 = vld [vmem:[%s17631_s15 + $0x1e8] ss:$48 sps:$4 sm:$0xff]  }
0x130a   : > { %9836 = vmatpush1.bf16.msra.mxu0 %v16118_v63  ;;  %v16145_v63 = vld [vmem:[%s17631_s15 + $0x7e8] ss:$48 sps:$4 sm:$0xff]  }
0x130b   : > { %9809 = vmatpush2.bf16.msra.mxu1 %v16121_v17  ;;  %9837 = vmatprep.subr.bf16.mxu0 %v16126_v7  ;;  %v16150_v17 = vld [vmem:[%s17631_s15 + $0x18c] ss:$48 sps:$4 sm:$0xff]  }
0x130c   : > { %9810 = vmatprep.subr.bf16.mxu1 %v16129_v31  ;;  %v16153_v7 = vld [vmem:[%s17631_s15 + $0x78c] ss:$48 sps:$4 sm:$0xff]   ;;  %v16148_v31 = vld [vmem:[%s17631_s15 + $0x188] ss:$48 sps:$4 sm:$0xff]  }
0x130e   : > { %9838 = vmatpush1.bf16.msra.mxu0 %v16124_v40  ;;  %v16151_v40 = vld [vmem:[%s17631_s15 + $0x788] ss:$48 sps:$4 sm:$0xff]  }
0x130f   : > { %9811 = vmatpush2.bf16.msra.mxu1 %v16127_v58  ;;  %9866 = vmatprep.subr.bf16.mxu0 %v16132_v51  ;;  %v16156_v58 = vld [vmem:[%s17631_s15 + $0x12c] ss:$48 sps:$4 sm:$0xff]  }
0x1310   : > { %9909 = vmatprep.subr.bf16.mxu1 %v16135_v46  ;;  %v16159_v51 = vld [vmem:[%s17631_s15 + $0x72c] ss:$48 sps:$4 sm:$0xff]   ;;  %v16154_v46 = vld [vmem:[%s17631_s15 + $0x128] ss:$48 sps:$4 sm:$0xff]  }
0x1381   : > { %v7926_v19 = vpop.xlane.xlu0 %7925 }
0x1382   : > { %v7931_v15 = vmul.f32 0.0026041667, %v7926_v19 }
0x1384   : > { %v18842_v9 = vsub.f32 %v18805_v24, %v7931_v15  ;;  %v18845_v2 = vsub.f32 %v18803_v47, %v7931_v15  ;;  %v18848_v43 = vsub.f32 %v18809_v36, %v7931_v15 }
0x1385   : > { %v7930_v59 = vpop.xlane.xlu1 %7929 }
0x1386   : > { %v7932_v26 = vmul.f32 0.0026041667, %v7930_v59  ;;  %v7939_v27 = vmul.f32 %v18842_v9, %v18842_v9  ;;  %v7940_v28 = vmul.f32 %v18845_v2, %v18845_v2  ;;  %v7941_v3 = vmul.f32 %v18848_v43, %v18848_v43 }
0x1388   : > { %v18857_v12 = vsub.f32 %v18813_v61, %v7932_v26  ;;  %v18860_v25 = vsub.f32 %v18807_v22, %v7932_v26  ;;  %v18863_v6 = vsub.f32 %v18816_v1, %v7932_v26  ;;  %v7945_v10 = vadd.f32 %v7940_v28, %v7939_v27 }
0x1389   : > { %v18902_v28 = vsub.s32 2, %v17805_v48 }
0x138a   : > { %v7946_v11 = vadd.f32 %v7945_v10, %v7941_v3  ;;  %v7942_v53 = vmul.f32 %v18857_v12, %v18857_v12  ;;  %v7943_v14 = vmul.f32 %v18860_v25, %v18860_v25  ;;  %v7944_v52 = vmul.f32 %v18863_v6, %v18863_v6 }
0x138b   : > { %v7985_v10 = vsub.s32 3, %v17805_v48 }
0x138c   : > { %7947 = vadd.xlane.f32.xlu0 %v7946_v11  ;;  %v7949_v60 = vadd.f32 %v7943_v14, %v7942_v53  ;;  %v7972_v53 = vrot.slane %v18792_v38, %v18902_v28 }
0x138d   : > { %v7990_v44 = vrot.slane %v18792_v38, %v7985_v10  ;;  %v7994_v62 = vrot.slane %v18800_v4, %v7985_v10 }
0x138e   : > { %v7950_v20 = vadd.f32 %v7949_v60, %v7944_v52  ;;  %v7976_v52 = vrot.slane %v18800_v4, %v18902_v28 }
0x1390   : > { %7951 = vadd.xlane.f32.xlu1 %v7950_v20  ;;  %v7968_v20 = vrot.slane %v18796_v41, %v18902_v28 }
0x1415   : > { %v7948_v16 = vpop.xlane.xlu0 %7947 }
0x1416   : > { %v7953_v19 = vmul.f32 0.0026041667, %v7948_v16  ;;  %v16157_v16 = vld [vmem:[%s17631_s15 + $0x728] ss:$48 sps:$4 sm:$0xff]  }
0x1418   : > { %v7955_v15 = vadd.f32 1e-06, %v7953_v19  ;;  %v16162_v19 = vld [vmem:[%s17631_s15 + $0xcc] ss:$48 sps:$4 sm:$0xff]  }
0x1419   : > { %v7952_v59 = vpop.xlane.xlu1 %7951 }
0x141a   : > { %16926 = vrsqrt.f32 %v7955_v15  ;;  %v7954_v26 = vmul.f32 0.0026041667, %v7952_v59  ;;  %v16165_v15 = vld [vmem:[%s17631_s15 + $0x6cc] ss:$48 sps:$4 sm:$0xff]   ;;  %v16160_v59 = vld [vmem:[%s17631_s15 + $0xc8] ss:$48 sps:$4 sm:$0xff]  }
0x141c   : > { %v7956_v27 = vadd.f32 1e-06, %v7954_v26  ;;  %v16163_v26 = vld [vmem:[%s17631_s15 + $0x6c8] ss:$48 sps:$4 sm:$0xff]  }
0x141e   : > { %16928 = vrsqrt.f32 %v7956_v27  ;;  %v16168_v27 = vld [vmem:[%s17631_s15 + $0x6c] ss:$48 sps:$4 sm:$0xff]  }
0x1427   : > { %v16927_v3 = vpop.eup %16926 }
0x1428   : > { %v7960_v11 = vmul.f32 %v16927_v3, %v18845_v2  ;;  %v7961_v14 = vmul.f32 %v16927_v3, %v18848_v43  ;;  %v7959_v60 = vmul.f32 %v16927_v3, %v18842_v9  ;;  %v7986_v9 = vrot.slane %v18796_v41, %v7985_v10  ;;  %v16133_v41 = vld [vmem:[%s17631_s15 + $0x8a8] ss:$48 sps:$4 sm:$0xff]   ;;  %v16171_v3 = vld [vmem:[%s17631_s15 + $0x66c] ss:$48 sps:$4 sm:$0xff]  }
0x1429   : > { %v16166_v10 = vld [vmem:[%s17631_s15 + $0x68] ss:$48 sps:$4 sm:$0xff]  }
0x142a   : > { %v7978_v30 = vmul.f32 %v7972_v53, %v7960_v11  ;;  %v7979_v43 = vmul.f32 %v7976_v52, %v7961_v14  ;;  %v7977_v21 = vmul.f32 %v7968_v20, %v7959_v60  ;;  %v16169_v11 = vld [vmem:[%s17631_s15 + $0x668] ss:$48 sps:$4 sm:$0xff]   ;;  %v16177_v14 = vld [vmem:[%s17631_s15 + $0x60c] ss:$48 sps:$4 sm:$0xff]  }
0x142b   : > { %v16929_v29 = vpop.eup %16928  ;;  %v16175_v60 = vld [vmem:[%s17631_s15 + $0x608] ss:$48 sps:$4 sm:$0xff]  }
0x142c   : > { %v7963_v2 = vmul.f32 %v16929_v29, %v18860_v25  ;;  %v7964_v5 = vmul.f32 %v16929_v29, %v18863_v6  ;;  %v7962_v57 = vmul.f32 %v16929_v29, %v18857_v12  ;;  %v7996_v45 = vadd.f32 %v7990_v44, %v7978_v30  ;;  %v16183_v29 = vld [vmem:[%s17631_s15 + $0x2b4] ss:$48 sps:$4 sm:$0xff]  }
0x142d   : > { %v7997_v4 = vadd.f32 %v7994_v62, %v7979_v43  ;;  %v7995_v6 = vadd.f32 %v7986_v9, %v7977_v21  ;;  %v16189_v30 = vld [vmem:[%s17631_s15 + $0x254] ss:$48 sps:$4 sm:$0xff]   ;;  %v16187_v43 = vld [vmem:[%s17631_s15 + $0x250] ss:$48 sps:$4 sm:$0xff]  }
0x142e   : > { %v7981_v42 = vmul.f32 %v7972_v53, %v7963_v2  ;;  %v7982_v33 = vmul.f32 %v7976_v52, %v7964_v5  ;;  %v7980_v38 = vmul.f32 %v7968_v20, %v7962_v57  ;;  %v16174_v53 = vld [vmem:[%s17631_s15 + $0xc] ss:$48 sps:$4 sm:$0xff]   ;;  %v16172_v52 = vld [vmem:[%s17631_s15 + $0x8] ss:$48 sps:$4 sm:$0xff]   ;;  %v16195_v21 = vld [vmem:[%s17631_s15 + $0x1f4] ss:$48 sps:$4 sm:$0xff]  }
0x142f   : > { %v16180_v20 = vld [vmem:[%s17631_s15 + $0x5ac] ss:$48 sps:$4 sm:$0xff]   ;;  %v16184_v5 = vld [vmem:[%s17631_s15 + $0x548] ss:$48 sps:$4 sm:$0xff]  }
0x1430   : > { %v7999_v35 = vadd.f32 %v7990_v44, %v7981_v42  ;;  %v8000_v25 = vadd.f32 %v7994_v62, %v7982_v33  ;;  %v7998_v32 = vadd.f32 %v7986_v9, %v7980_v38  ;;  %v16178_v44 = vld [vmem:[%s17631_s15 + $0x5a8] ss:$48 sps:$4 sm:$0xff]   ;;  %v16181_v62 = vld [vmem:[%s17631_s15 + $0x2b0] ss:$48 sps:$4 sm:$0xff]   ;;  %v16186_v2 = vld [vmem:[%s17631_s15 + $0x54c] ss:$48 sps:$4 sm:$0xff]  }
0x1431   : > { %v16192_v57 = vld [vmem:[%s17631_s15 + $0x4ec] ss:$48 sps:$4 sm:$0xff]   ;;  %v16190_v9 = vld [vmem:[%s17631_s15 + $0x4e8] ss:$48 sps:$4 sm:$0xff]   ;;  %v16193_v42 = vld [vmem:[%s17631_s15 + $0x1f0] ss:$48 sps:$4 sm:$0xff]  }
0x1432   : > { %v18921_v55 = vpack.c.bf16 %v7999_v35, %v7996_v45  ;;  %v18923_v12 = vpack.c.bf16 %v8000_v25, %v7997_v4  ;;  %v18926_v8 = vpack.c.bf16 %v7998_v32, %v7995_v6  ;;  %v16198_v33 = vld [vmem:[%s17631_s15 + $0x48c] ss:$48 sps:$4 sm:$0xff]   ;;  %v16201_v38 = vld [vmem:[%s17631_s15 + $0x194] ss:$48 sps:$4 sm:$0xff]   ;;  %v16196_v45 = vld [vmem:[%s17631_s15 + $0x488] ss:$48 sps:$4 sm:$0xff]  }
0x1433   : > { %v16199_v35 = vld [vmem:[%s17631_s15 + $0x190] ss:$48 sps:$4 sm:$0xff]   ;;  %v16204_v4 = vld [vmem:[%s17631_s15 + $0x42c] ss:$48 sps:$4 sm:$0xff]   ;;  %v16207_v25 = vld [vmem:[%s17631_s15 + $0x134] ss:$48 sps:$4 sm:$0xff]  }
0x1434   : > { %9812 = vmatprep.mubr.bf16.mxu1 %v18921_v55  ;;  %9856 = vmatmul.mubr.bf16.vlgmr.msra.gmra.mxu0 %v18923_v12  ;;  %v16205_v6 = vld [vmem:[%s17631_s15 + $0x130] ss:$48 sps:$4 sm:$0xff]   ;;  %v16210_v32 = vld [vmem:[%s17631_s15 + $0x3cc] ss:$48 sps:$4 sm:$0xff]  }
0x1435   : > { %9867 = vmatpush1.bf16.msra.mxu0 %v16130_v0  ;;  %9813 = vmatmul.mubr.bf16.vlgmr.msra.gmra.mxu1 %v18926_v8  ;;  %v16202_v0 = vld [vmem:[%s17631_s15 + $0x428] ss:$48 sps:$4 sm:$0xff]  }
0x1436   : > { %9898 = vmatprep.mubr.bf16.mxu0 %v18921_v55  ;;  %9910 = vmatpush1.bf16.msra.mxu1 %v16133_v41  ;;  %v16213_v41 = vld [vmem:[%s17631_s15 + $0xd4] ss:$48 sps:$4 sm:$0xff]  }
0x1437   : > { %9868 = vmatprep.subr.bf16.mxu0 %v16138_v56  ;;  %9911 = vmatprep.subr.bf16.mxu1 %v16141_v37  ;;  %v16208_v56 = vld [vmem:[%s17631_s15 + $0x3c8] ss:$48 sps:$4 sm:$0xff]   ;;  %v16211_v37 = vld [vmem:[%s17631_s15 + $0xd0] ss:$48 sps:$4 sm:$0xff]  }
0x1438   : > { %9941 = vmatprep.mubr.bf16.mxu1 %v17297_v39 }
0x1439   : > { %9869 = vmatpush1.bf16.msra.mxu0 %v16136_v13  ;;  %v16216_v13 = vld [vmem:[%s17631_s15 + $0x36c] ss:$48 sps:$4 sm:$0xff]  }
0x143a   : > { %9912 = vmatpush1.bf16.msra.mxu1 %v16139_v23  ;;  %9870 = vmatprep.subr.bf16.mxu0 %v16144_v49  ;;  %v16219_v23 = vld [vmem:[%s17631_s15 + $0x74] ss:$48 sps:$4 sm:$0xff]   ;;  %v16214_v49 = vld [vmem:[%s17631_s15 + $0x368] ss:$48 sps:$4 sm:$0xff]  }
0x143b   : > { %9913 = vmatprep.subr.bf16.mxu1 %v16147_v18  ;;  %v16217_v18 = vld [vmem:[%s17631_s15 + $0x70] ss:$48 sps:$4 sm:$0xff]  }
0x143d   : > { %9871 = vmatpush1.bf16.msra.mxu0 %v16142_v34  ;;  %v16222_v34 = vld [vmem:[%s17631_s15 + $0x30c] ss:$48 sps:$4 sm:$0xff]  }
0x143e   : > { %9914 = vmatpush1.bf16.msra.mxu1 %v16145_v63  ;;  %9872 = vmatprep.subr.bf16.mxu0 %v16150_v17  ;;  %v16225_v63 = vld [vmem:[%s17631_s15 + $0x14] ss:$48 sps:$4 sm:$0xff]   ;;  %v16220_v17 = vld [vmem:[%s17631_s15 + $0x308] ss:$48 sps:$4 sm:$0xff]  }
0x143f   : > { %9915 = vmatprep.subr.bf16.mxu1 %v16153_v7  ;;  %v16223_v7 = vld [vmem:[%s17631_s15 + $0x10] ss:$48 sps:$4 sm:$0xff]  }
0x1441   : > { %9873 = vmatpush1.bf16.msra.mxu0 %v16148_v31  ;;  %v16228_v31 = vld [vmem:[%s17631_s15 + $0x8b4] ss:$48 sps:$4 sm:$0xff]  }
0x1442   : > { %9916 = vmatpush1.bf16.msra.mxu1 %v16151_v40  ;;  %9874 = vmatprep.subr.bf16.mxu0 %v16156_v58  ;;  %v16231_v40 = vld [vmem:[%s17631_s15 + $0x5b4] ss:$48 sps:$4 sm:$0xff]   ;;  %v16226_v58 = vld [vmem:[%s17631_s15 + $0x8b0] ss:$48 sps:$4 sm:$0xff]  }
0x1443   : > { %9917 = vmatprep.subr.bf16.mxu1 %v16159_v51  ;;  %v16229_v51 = vld [vmem:[%s17631_s15 + $0x5b0] ss:$48 sps:$4 sm:$0xff]  }
0x1445   : > { %9875 = vmatpush1.bf16.msra.mxu0 %v16154_v46  ;;  %v16234_v46 = vld [vmem:[%s17631_s15 + $0x854] ss:$48 sps:$4 sm:$0xff]  }
0x1446   : > { %9918 = vmatpush1.bf16.msra.mxu1 %v16157_v16  ;;  %9876 = vmatprep.subr.bf16.mxu0 %v16162_v19  ;;  %v16237_v16 = vld [vmem:[%s17631_s15 + $0x554] ss:$48 sps:$4 sm:$0xff]   ;;  %v16232_v19 = vld [vmem:[%s17631_s15 + $0x850] ss:$48 sps:$4 sm:$0xff]  }
0x1447   : > { %9919 = vmatprep.subr.bf16.mxu1 %v16165_v15  ;;  %v16235_v15 = vld [vmem:[%s17631_s15 + $0x550] ss:$48 sps:$4 sm:$0xff]  }
0x1449   : > { %9877 = vmatpush1.bf16.msra.mxu0 %v16160_v59  ;;  %v16240_v59 = vld [vmem:[%s17631_s15 + $0x7f4] ss:$48 sps:$4 sm:$0xff]  }
0x144a   : > { %9920 = vmatpush1.bf16.msra.mxu1 %v16163_v26  ;;  %9878 = vmatprep.subr.bf16.mxu0 %v16168_v27  ;;  %v16243_v26 = vld [vmem:[%s17631_s15 + $0x4f4] ss:$48 sps:$4 sm:$0xff]   ;;  %v16238_v27 = vld [vmem:[%s17631_s15 + $0x7f0] ss:$48 sps:$4 sm:$0xff]  }
0x144b   : > { %9921 = vmatprep.subr.bf16.mxu1 %v16171_v3  ;;  %v16241_v3 = vld [vmem:[%s17631_s15 + $0x4f0] ss:$48 sps:$4 sm:$0xff]  }
0x144d   : > { %9879 = vmatpush1.bf16.msra.mxu0 %v16166_v10  ;;  %v16246_v10 = vld [vmem:[%s17631_s15 + $0x794] ss:$48 sps:$4 sm:$0xff]  }
0x144e   : > { %9922 = vmatpush1.bf16.msra.mxu1 %v16169_v11  ;;  %9880 = vmatprep.subr.bf16.mxu0 %v16174_v53  ;;  %v16249_v11 = vld [vmem:[%s17631_s15 + $0x494] ss:$48 sps:$4 sm:$0xff]   ;;  %v16244_v53 = vld [vmem:[%s17631_s15 + $0x790] ss:$48 sps:$4 sm:$0xff]  }
0x144f   : > { %9923 = vmatprep.subr.bf16.mxu1 %v16177_v14  ;;  %v16247_v14 = vld [vmem:[%s17631_s15 + $0x490] ss:$48 sps:$4 sm:$0xff]  }
0x1451   : > { %9881 = vmatpush1.bf16.msra.mxu0 %v16172_v52  ;;  %v16252_v52 = vld [vmem:[%s17631_s15 + $0x734] ss:$48 sps:$4 sm:$0xff]  }
0x1452   : > { %9924 = vmatpush1.bf16.msra.mxu1 %v16175_v60  ;;  %9882 = vmatprep.subr.bf16.mxu0 %v16180_v20  ;;  %v16255_v60 = vld [vmem:[%s17631_s15 + $0x434] ss:$48 sps:$4 sm:$0xff]   ;;  %v16250_v20 = vld [vmem:[%s17631_s15 + $0x730] ss:$48 sps:$4 sm:$0xff]  }
0x1453   : > { %9952 = vmatprep.subr.bf16.mxu1 %v16183_v29  ;;  %v16253_v29 = vld [vmem:[%s17631_s15 + $0x430] ss:$48 sps:$4 sm:$0xff]  }
0x1455   : > { %9883 = vmatpush2.bf16.msra.mxu0 %v16178_v44  ;;  %9942 = vmatmul.mubr.bf16.vlgmr.msra.gmra.mxu1 %v18923_v12  ;;  %v16258_v44 = vld [vmem:[%s17631_s15 + $0x6d4] ss:$48 sps:$4 sm:$0xff]  }
0x1456   : > { %9953 = vmatpush1.bf16.msra.mxu1 %v16181_v62  ;;  %9984 = vmatprep.mubr.bf16.mxu1 %v18921_v55  ;;  %v16261_v62 = vld [vmem:[%s17631_s15 + $0x3d4] ss:$48 sps:$4 sm:$0xff]  }
0x1457   : > { %9884 = vmatprep.subr.bf16.mxu0 %v16186_v2  ;;  %9954 = vmatprep.subr.bf16.mxu1 %v16189_v30  ;;  %v16256_v2 = vld [vmem:[%s17631_s15 + $0x6d0] ss:$48 sps:$4 sm:$0xff]  }
0x1458   : > { %v16259_v30 = vld [vmem:[%s17631_s15 + $0x3d0] ss:$48 sps:$4 sm:$0xff]  }
0x1459   : > { %9885 = vmatpush2.bf16.msra.mxu0 %v16184_v5  ;;  %v16264_v5 = vld [vmem:[%s17631_s15 + $0x674] ss:$48 sps:$4 sm:$0xff]  }
0x145a   : > { %9955 = vmatpush1.bf16.msra.mxu1 %v16187_v43  ;;  %9886 = vmatprep.subr.bf16.mxu0 %v16192_v57  ;;  %v16267_v43 = vld [vmem:[%s17631_s15 + $0x374] ss:$48 sps:$4 sm:$0xff]   ;;  %v16262_v57 = vld [vmem:[%s17631_s15 + $0x670] ss:$48 sps:$4 sm:$0xff]  }
0x145b   : > { %9956 = vmatprep.subr.bf16.mxu1 %v16195_v21  ;;  %v16265_v21 = vld [vmem:[%s17631_s15 + $0x370] ss:$48 sps:$4 sm:$0xff]  }
0x145d   : > { %9887 = vmatpush2.bf16.msra.mxu0 %v16190_v9  ;;  %v16270_v9 = vld [vmem:[%s17631_s15 + $0x614] ss:$48 sps:$4 sm:$0xff]  }
0x145e   : > { %9957 = vmatpush1.bf16.msra.mxu1 %v16193_v42  ;;  %9888 = vmatprep.subr.bf16.mxu0 %v16198_v33  ;;  %v16273_v42 = vld [vmem:[%s17631_s15 + $0x314] ss:$48 sps:$4 sm:$0xff]   ;;  %v16268_v33 = vld [vmem:[%s17631_s15 + $0x610] ss:$48 sps:$4 sm:$0xff]  }
0x145f   : > { %9958 = vmatprep.subr.bf16.mxu1 %v16201_v38  ;;  %v16271_v38 = vld [vmem:[%s17631_s15 + $0x310] ss:$48 sps:$4 sm:$0xff]  }
0x1461   : > { %9889 = vmatpush2.bf16.msra.mxu0 %v16196_v45  ;;  %v16276_v45 = vld [vmem:[%s17631_s15 + $0x2bc] ss:$48 sps:$4 sm:$0xff]  }
0x1462   : > { %9959 = vmatpush1.bf16.msra.mxu1 %v16199_v35  ;;  %9890 = vmatprep.subr.bf16.mxu0 %v16204_v4  ;;  %v16279_v35 = vld [vmem:[%s17631_s15 + $0x8bc] ss:$48 sps:$4 sm:$0xff]   ;;  %v16274_v4 = vld [vmem:[%s17631_s15 + $0x2b8] ss:$48 sps:$4 sm:$0xff]  }
0x1463   : > { %9960 = vmatprep.subr.bf16.mxu1 %v16207_v25  ;;  %v16277_v25 = vld [vmem:[%s17631_s15 + $0x8b8] ss:$48 sps:$4 sm:$0xff]  }
0x1465   : > { %9891 = vmatpush2.bf16.msra.mxu0 %v16202_v0  ;;  %v16282_v0 = vld [vmem:[%s17631_s15 + $0x25c] ss:$48 sps:$4 sm:$0xff]  }
0x1466   : > { %9961 = vmatpush1.bf16.msra.mxu1 %v16205_v6  ;;  %9892 = vmatprep.subr.bf16.mxu0 %v16210_v32  ;;  %v16285_v6 = vld [vmem:[%s17631_s15 + $0x85c] ss:$48 sps:$4 sm:$0xff]   ;;  %v16280_v32 = vld [vmem:[%s17631_s15 + $0x258] ss:$48 sps:$4 sm:$0xff]  }
0x1467   : > { %9962 = vmatprep.subr.bf16.mxu1 %v16213_v41  ;;  %v16283_v41 = vld [vmem:[%s17631_s15 + $0x858] ss:$48 sps:$4 sm:$0xff]  }
0x1469   : > { %9893 = vmatpush2.bf16.msra.mxu0 %v16208_v56  ;;  %v16288_v56 = vld [vmem:[%s17631_s15 + $0x1fc] ss:$48 sps:$4 sm:$0xff]  }
0x146a   : > { %9963 = vmatpush1.bf16.msra.mxu1 %v16211_v37  ;;  %9894 = vmatprep.subr.bf16.mxu0 %v16216_v13  ;;  %v16291_v37 = vld [vmem:[%s17631_s15 + $0x7fc] ss:$48 sps:$4 sm:$0xff]   ;;  %v16286_v13 = vld [vmem:[%s17631_s15 + $0x1f8] ss:$48 sps:$4 sm:$0xff]  }
0x146b   : > { %9964 = vmatprep.subr.bf16.mxu1 %v16219_v23  ;;  %v16289_v23 = vld [vmem:[%s17631_s15 + $0x7f8] ss:$48 sps:$4 sm:$0xff]  }
0x146d   : > { %9895 = vmatpush2.bf16.msra.mxu0 %v16214_v49  ;;  %v16294_v49 = vld [vmem:[%s17631_s15 + $0x19c] ss:$48 sps:$4 sm:$0xff]  }
0x146e   : > { %9965 = vmatpush1.bf16.msra.mxu1 %v16217_v18  ;;  %9896 = vmatprep.subr.bf16.mxu0 %v16222_v34  ;;  %v16297_v18 = vld [vmem:[%s17631_s15 + $0x79c] ss:$48 sps:$4 sm:$0xff]   ;;  %v16292_v34 = vld [vmem:[%s17631_s15 + $0x198] ss:$48 sps:$4 sm:$0xff]  }
0x146f   : > { %9966 = vmatprep.subr.bf16.mxu1 %v16225_v63  ;;  %v16295_v63 = vld [vmem:[%s17631_s15 + $0x798] ss:$48 sps:$4 sm:$0xff]  }
0x1471   : > { %9897 = vmatpush2.bf16.msra.mxu0 %v16220_v17  ;;  %v16300_v17 = vld [vmem:[%s17631_s15 + $0x13c] ss:$48 sps:$4 sm:$0xff]  }
0x1472   : > { %9967 = vmatpush1.bf16.msra.mxu1 %v16223_v7  ;;  %9995 = vmatprep.subr.bf16.mxu0 %v16228_v31  ;;  %v16303_v7 = vld [vmem:[%s17631_s15 + $0x73c] ss:$48 sps:$4 sm:$0xff]   ;;  %v16298_v31 = vld [vmem:[%s17631_s15 + $0x138] ss:$48 sps:$4 sm:$0xff]  }
0x1473   : > { %9968 = vmatprep.subr.bf16.mxu1 %v16231_v40  ;;  %v16301_v40 = vld [vmem:[%s17631_s15 + $0x738] ss:$48 sps:$4 sm:$0xff]  }
0x1474   : > { %9899 = vmatmul.mubr.bf16.vlgmr.msra.gmra.mxu0 %v18926_v8 }
0x1475   : > { %9996 = vmatpush1.bf16.msra.mxu0 %v16226_v58  ;;  %10027 = vmatprep.mubr.bf16.mxu0 %v17297_v39  ;;  %v16306_v58 = vld [vmem:[%s17631_s15 + $0xdc] ss:$48 sps:$4 sm:$0xff]  }
0x1476   : > { %9969 = vmatpush2.bf16.msra.mxu1 %v16229_v51  ;;  %9997 = vmatprep.subr.bf16.mxu0 %v16234_v46  ;;  %v16309_v51 = vld [vmem:[%s17631_s15 + $0x6dc] ss:$48 sps:$4 sm:$0xff]   ;;  %v16304_v46 = vld [vmem:[%s17631_s15 + $0xd8] ss:$48 sps:$4 sm:$0xff]  }
0x1477   : > { %9970 = vmatprep.subr.bf16.mxu1 %v16237_v16  ;;  %v16307_v16 = vld [vmem:[%s17631_s15 + $0x6d8] ss:$48 sps:$4 sm:$0xff]  }
0x1479   : > { %9998 = vmatpush1.bf16.msra.mxu0 %v16232_v19  ;;  %v16312_v19 = vld [vmem:[%s17631_s15 + $0x7c] ss:$48 sps:$4 sm:$0xff]  }
0x147a   : > { %9971 = vmatpush2.bf16.msra.mxu1 %v16235_v15  ;;  %9999 = vmatprep.subr.bf16.mxu0 %v16240_v59  ;;  %v16315_v15 = vld [vmem:[%s17631_s15 + $0x67c] ss:$48 sps:$4 sm:$0xff]   ;;  %v16310_v59 = vld [vmem:[%s17631_s15 + $0x78] ss:$48 sps:$4 sm:$0xff]  }
0x147b   : > { %9972 = vmatprep.subr.bf16.mxu1 %v16243_v26  ;;  %v16313_v26 = vld [vmem:[%s17631_s15 + $0x678] ss:$48 sps:$4 sm:$0xff]  }
0x147d   : > { %10000 = vmatpush1.bf16.msra.mxu0 %v16238_v27  ;;  %v16318_v27 = vld [vmem:[%s17631_s15 + $0x1c] ss:$48 sps:$4 sm:$0xff]  }
0x147e   : > { %9973 = vmatpush2.bf16.msra.mxu1 %v16241_v3  ;;  %10001 = vmatprep.subr.bf16.mxu0 %v16246_v10  ;;  %v16321_v3 = vld [vmem:[%s17631_s15 + $0x61c] ss:$48 sps:$4 sm:$0xff]   ;;  %v16316_v10 = vld [vmem:[%s17631_s15 + $0x18] ss:$48 sps:$4 sm:$0xff]  }
0x147f   : > { %9974 = vmatprep.subr.bf16.mxu1 %v16249_v11  ;;  %v16319_v11 = vld [vmem:[%s17631_s15 + $0x618] ss:$48 sps:$4 sm:$0xff]  }
0x1481   : > { %10002 = vmatpush1.bf16.msra.mxu0 %v16244_v53  ;;  %v16324_v53 = vld [vmem:[%s17631_s15 + $0x5bc] ss:$48 sps:$4 sm:$0xff]  }
0x1482   : > { %9975 = vmatpush2.bf16.msra.mxu1 %v16247_v14  ;;  %10003 = vmatprep.subr.bf16.mxu0 %v16252_v52  ;;  %v16327_v14 = vld [vmem:[%s17631_s15 + $0x2c4] ss:$48 sps:$4 sm:$0xff]   ;;  %v16322_v52 = vld [vmem:[%s17631_s15 + $0x5b8] ss:$48 sps:$4 sm:$0xff]  }
0x1483   : > { %9976 = vmatprep.subr.bf16.mxu1 %v16255_v60  ;;  %v16325_v60 = vld [vmem:[%s17631_s15 + $0x2c0] ss:$48 sps:$4 sm:$0xff]  }
0x1485   : > { %10004 = vmatpush1.bf16.msra.mxu0 %v16250_v20  ;;  %v16330_v20 = vld [vmem:[%s17631_s15 + $0x55c] ss:$48 sps:$4 sm:$0xff]  }
0x1486   : > { %9977 = vmatpush2.bf16.msra.mxu1 %v16253_v29  ;;  %10005 = vmatprep.subr.bf16.mxu0 %v16258_v44  ;;  %v16333_v29 = vld [vmem:[%s17631_s15 + $0x264] ss:$48 sps:$4 sm:$0xff]   ;;  %v16328_v44 = vld [vmem:[%s17631_s15 + $0x558] ss:$48 sps:$4 sm:$0xff]  }
0x1487   : > { %9978 = vmatprep.subr.bf16.mxu1 %v16261_v62  ;;  %v16331_v62 = vld [vmem:[%s17631_s15 + $0x260] ss:$48 sps:$4 sm:$0xff]  }
0x1489   : > { %10006 = vmatpush1.bf16.msra.mxu0 %v16256_v2  ;;  %v16336_v2 = vld [vmem:[%s17631_s15 + $0x4fc] ss:$48 sps:$4 sm:$0xff]  }
0x148a   : > { %9979 = vmatpush2.bf16.msra.mxu1 %v16259_v30  ;;  %10007 = vmatprep.subr.bf16.mxu0 %v16264_v5  ;;  %v16339_v30 = vld [vmem:[%s17631_s15 + $0x204] ss:$48 sps:$4 sm:$0xff]   ;;  %v16334_v5 = vld [vmem:[%s17631_s15 + $0x4f8] ss:$48 sps:$4 sm:$0xff]  }
0x148b   : > { %9980 = vmatprep.subr.bf16.mxu1 %v16267_v43  ;;  %v16337_v43 = vld [vmem:[%s17631_s15 + $0x200] ss:$48 sps:$4 sm:$0xff]  }
0x148d   : > { %10008 = vmatpush1.bf16.msra.mxu0 %v16262_v57  ;;  %v16342_v57 = vld [vmem:[%s17631_s15 + $0x49c] ss:$48 sps:$4 sm:$0xff]  }
0x148e   : > { %9981 = vmatpush2.bf16.msra.mxu1 %v16265_v21  ;;  %10009 = vmatprep.subr.bf16.mxu0 %v16270_v9  ;;  %v16345_v21 = vld [vmem:[%s17631_s15 + $0x1a4] ss:$48 sps:$4 sm:$0xff]   ;;  %v16340_v9 = vld [vmem:[%s17631_s15 + $0x498] ss:$48 sps:$4 sm:$0xff]  }
0x148f   : > { %9982 = vmatprep.subr.bf16.mxu1 %v16273_v42  ;;  %v16343_v42 = vld [vmem:[%s17631_s15 + $0x1a0] ss:$48 sps:$4 sm:$0xff]  }
0x1491   : > { %10010 = vmatpush1.bf16.msra.mxu0 %v16268_v33  ;;  %v16348_v33 = vld [vmem:[%s17631_s15 + $0x43c] ss:$48 sps:$4 sm:$0xff]  }
0x1492   : > { %9983 = vmatpush2.bf16.msra.mxu1 %v16271_v38  ;;  %10038 = vmatprep.subr.bf16.mxu0 %v16276_v45  ;;  %v16351_v38 = vld [vmem:[%s17631_s15 + $0x144] ss:$48 sps:$4 sm:$0xff]   ;;  %v16346_v45 = vld [vmem:[%s17631_s15 + $0x438] ss:$48 sps:$4 sm:$0xff]  }
0x1493   : > { %10081 = vmatprep.subr.bf16.mxu1 %v16279_v35  ;;  %v16349_v35 = vld [vmem:[%s17631_s15 + $0x140] ss:$48 sps:$4 sm:$0xff]  }
0x1494   : > { %10028 = vmatmul.mubr.bf16.vlgmr.msra.gmra.mxu0 %v18923_v12 }
0x1495   : > { %9985 = vmatmul.mubr.bf16.vlgmr.msra.gmra.mxu1 %v18926_v8  ;;  %10039 = vmatpush1.bf16.msra.mxu0 %v16274_v4  ;;  %v16354_v4 = vld [vmem:[%s17631_s15 + $0x3dc] ss:$48 sps:$4 sm:$0xff]  }
0x1496   : > { %10070 = vmatprep.mubr.bf16.mxu0 %v18921_v55  ;;  %10082 = vmatpush1.bf16.msra.mxu1 %v16277_v25  ;;  %v16357_v25 = vld [vmem:[%s17631_s15 + $0xe4] ss:$48 sps:$4 sm:$0xff]  }
0x1497   : > { %10040 = vmatprep.subr.bf16.mxu0 %v16282_v0  ;;  %10083 = vmatprep.subr.bf16.mxu1 %v16285_v6  ;;  %v16352_v0 = vld [vmem:[%s17631_s15 + $0x3d8] ss:$48 sps:$4 sm:$0xff]   ;;  %v16355_v6 = vld [vmem:[%s17631_s15 + $0xe0] ss:$48 sps:$4 sm:$0xff]  }
0x1498   : > { %10113 = vmatprep.mubr.bf16.mxu1 %v17297_v39 }
0x1499   : > { %10041 = vmatpush1.bf16.msra.mxu0 %v16280_v32  ;;  %v16360_v32 = vld [vmem:[%s17631_s15 + $0x37c] ss:$48 sps:$4 sm:$0xff]  }
0x149a   : > { %10084 = vmatpush1.bf16.msra.mxu1 %v16283_v41  ;;  %10042 = vmatprep.subr.bf16.mxu0 %v16288_v56  ;;  %v16363_v41 = vld [vmem:[%s17631_s15 + $0x84] ss:$48 sps:$4 sm:$0xff]   ;;  %v16358_v56 = vld [vmem:[%s17631_s15 + $0x378] ss:$48 sps:$4 sm:$0xff]  }
0x149b   : > { %10085 = vmatprep.subr.bf16.mxu1 %v16291_v37  ;;  %v16361_v37 = vld [vmem:[%s17631_s15 + $0x80] ss:$48 sps:$4 sm:$0xff]  }
0x149d   : > { %10043 = vmatpush1.bf16.msra.mxu0 %v16286_v13  ;;  %v16366_v13 = vld [vmem:[%s17631_s15 + $0x31c] ss:$48 sps:$4 sm:$0xff]  }
0x149e   : > { %10086 = vmatpush1.bf16.msra.mxu1 %v16289_v23  ;;  %10044 = vmatprep.subr.bf16.mxu0 %v16294_v49  ;;  %v16369_v23 = vld [vmem:[%s17631_s15 + $0x24] ss:$48 sps:$4 sm:$0xff]   ;;  %v16364_v49 = vld [vmem:[%s17631_s15 + $0x318] ss:$48 sps:$4 sm:$0xff]  }
0x149f   : > { %10087 = vmatprep.subr.bf16.mxu1 %v16297_v18  ;;  %v16367_v18 = vld [vmem:[%s17631_s15 + $0x20] ss:$48 sps:$4 sm:$0xff]  }
0x14a1   : > { %10045 = vmatpush1.bf16.msra.mxu0 %v16292_v34  ;;  %v16372_v34 = vld [vmem:[%s17631_s15 + $0x8c4] ss:$48 sps:$4 sm:$0xff]  }
0x14a2   : > { %10088 = vmatpush1.bf16.msra.mxu1 %v16295_v63  ;;  %10046 = vmatprep.subr.bf16.mxu0 %v16300_v17  ;;  %v16375_v63 = vld [vmem:[%s17631_s15 + $0x5c4] ss:$48 sps:$4 sm:$0xff]   ;;  %v16370_v17 = vld [vmem:[%s17631_s15 + $0x8c0] ss:$48 sps:$4 sm:$0xff]  }
0x14a3   : > { %10089 = vmatprep.subr.bf16.mxu1 %v16303_v7  ;;  %v16373_v7 = vld [vmem:[%s17631_s15 + $0x5c0] ss:$48 sps:$4 sm:$0xff]  }
0x14a5   : > { %10047 = vmatpush1.bf16.msra.mxu0 %v16298_v31  ;;  %v16378_v31 = vld [vmem:[%s17631_s15 + $0x864] ss:$48 sps:$4 sm:$0xff]  }
0x14a6   : > { %10090 = vmatpush1.bf16.msra.mxu1 %v16301_v40  ;;  %10048 = vmatprep.subr.bf16.mxu0 %v16306_v58  ;;  %v16381_v40 = vld [vmem:[%s17631_s15 + $0x564] ss:$48 sps:$4 sm:$0xff]   ;;  %v16376_v58 = vld [vmem:[%s17631_s15 + $0x860] ss:$48 sps:$4 sm:$0xff]  }
0x14a7   : > { %10091 = vmatprep.subr.bf16.mxu1 %v16309_v51  ;;  %v16379_v51 = vld [vmem:[%s17631_s15 + $0x560] ss:$48 sps:$4 sm:$0xff]  }
0x14a9   : > { %10049 = vmatpush1.bf16.msra.mxu0 %v16304_v46  ;;  %v16384_v46 = vld [vmem:[%s17631_s15 + $0x804] ss:$48 sps:$4 sm:$0xff]  }
0x14aa   : > { %10092 = vmatpush1.bf16.msra.mxu1 %v16307_v16  ;;  %10050 = vmatprep.subr.bf16.mxu0 %v16312_v19  ;;  %v16387_v16 = vld [vmem:[%s17631_s15 + $0x504] ss:$48 sps:$4 sm:$0xff]   ;;  %v16382_v19 = vld [vmem:[%s17631_s15 + $0x800] ss:$48 sps:$4 sm:$0xff]  }
0x14ab   : > { %10093 = vmatprep.subr.bf16.mxu1 %v16315_v15  ;;  %v16385_v15 = vld [vmem:[%s17631_s15 + $0x500] ss:$48 sps:$4 sm:$0xff]  }
0x14ad   : > { %10051 = vmatpush1.bf16.msra.mxu0 %v16310_v59  ;;  %v16390_v59 = vld [vmem:[%s17631_s15 + $0x7a4] ss:$48 sps:$4 sm:$0xff]  }
0x14ae   : > { %10094 = vmatpush1.bf16.msra.mxu1 %v16313_v26  ;;  %10052 = vmatprep.subr.bf16.mxu0 %v16318_v27  ;;  %v16393_v26 = vld [vmem:[%s17631_s15 + $0x4a4] ss:$48 sps:$4 sm:$0xff]   ;;  %v16388_v27 = vld [vmem:[%s17631_s15 + $0x7a0] ss:$48 sps:$4 sm:$0xff]  }
0x14af   : > { %10095 = vmatprep.subr.bf16.mxu1 %v16321_v3  ;;  %v16391_v3 = vld [vmem:[%s17631_s15 + $0x4a0] ss:$48 sps:$4 sm:$0xff]  }
0x14b1   : > { %10053 = vmatpush1.bf16.msra.mxu0 %v16316_v10  ;;  %v16396_v10 = vld [vmem:[%s17631_s15 + $0x744] ss:$48 sps:$4 sm:$0xff]  }
0x14b2   : > { %10096 = vmatpush1.bf16.msra.mxu1 %v16319_v11  ;;  %10054 = vmatprep.subr.bf16.mxu0 %v16324_v53  ;;  %v16399_v11 = vld [vmem:[%s17631_s15 + $0x444] ss:$48 sps:$4 sm:$0xff]   ;;  %v16394_v53 = vld [vmem:[%s17631_s15 + $0x740] ss:$48 sps:$4 sm:$0xff]  }
0x14b3   : > { %10124 = vmatprep.subr.bf16.mxu1 %v16327_v14  ;;  %v16397_v14 = vld [vmem:[%s17631_s15 + $0x440] ss:$48 sps:$4 sm:$0xff]  }
0x14b5   : > { %10055 = vmatpush2.bf16.msra.mxu0 %v16322_v52  ;;  %10114 = vmatmul.mubr.bf16.vlgmr.msra.gmra.mxu1 %v18923_v12  ;;  %v16402_v52 = vld [vmem:[%s17631_s15 + $0x6e4] ss:$48 sps:$4 sm:$0xff]  }
0x14b6   : > { %10125 = vmatpush1.bf16.msra.mxu1 %v16325_v60  ;;  %10156 = vmatprep.mubr.bf16.mxu1 %v18921_v55  ;;  %v16405_v60 = vld [vmem:[%s17631_s15 + $0x3e4] ss:$48 sps:$4 sm:$0xff]  }
0x14b7   : > { %10056 = vmatprep.subr.bf16.mxu0 %v16330_v20  ;;  %10126 = vmatprep.subr.bf16.mxu1 %v16333_v29  ;;  %v16400_v20 = vld [vmem:[%s17631_s15 + $0x6e0] ss:$48 sps:$4 sm:$0xff]  }
0x14b8   : > { %v16403_v29 = vld [vmem:[%s17631_s15 + $0x3e0] ss:$48 sps:$4 sm:$0xff]  }
0x14b9   : > { %10057 = vmatpush2.bf16.msra.mxu0 %v16328_v44  ;;  %v16408_v44 = vld [vmem:[%s17631_s15 + $0x684] ss:$48 sps:$4 sm:$0xff]  }
0x14ba   : > { %10127 = vmatpush1.bf16.msra.mxu1 %v16331_v62  ;;  %10058 = vmatprep.subr.bf16.mxu0 %v16336_v2  ;;  %v16411_v62 = vld [vmem:[%s17631_s15 + $0x384] ss:$48 sps:$4 sm:$0xff]   ;;  %v16406_v2 = vld [vmem:[%s17631_s15 + $0x680] ss:$48 sps:$4 sm:$0xff]  }
0x14bb   : > { %10128 = vmatprep.subr.bf16.mxu1 %v16339_v30  ;;  %v16409_v30 = vld [vmem:[%s17631_s15 + $0x380] ss:$48 sps:$4 sm:$0xff]  }
0x14bd   : > { %10059 = vmatpush2.bf16.msra.mxu0 %v16334_v5  ;;  %v16414_v5 = vld [vmem:[%s17631_s15 + $0x624] ss:$48 sps:$4 sm:$0xff]  }
0x14be   : > { %10129 = vmatpush1.bf16.msra.mxu1 %v16337_v43  ;;  %10060 = vmatprep.subr.bf16.mxu0 %v16342_v57  ;;  %v16417_v43 = vld [vmem:[%s17631_s15 + $0x324] ss:$48 sps:$4 sm:$0xff]   ;;  %v16412_v57 = vld [vmem:[%s17631_s15 + $0x620] ss:$48 sps:$4 sm:$0xff]  }
0x14bf   : > { %10130 = vmatprep.subr.bf16.mxu1 %v16345_v21  ;;  %v16415_v21 = vld [vmem:[%s17631_s15 + $0x320] ss:$48 sps:$4 sm:$0xff]  }
0x14c1   : > { %10061 = vmatpush2.bf16.msra.mxu0 %v16340_v9  ;;  %v16420_v9 = vld [vmem:[%s17631_s15 + $0x2cc] ss:$48 sps:$4 sm:$0xff]  }
0x14c2   : > { %10131 = vmatpush1.bf16.msra.mxu1 %v16343_v42  ;;  %10062 = vmatprep.subr.bf16.mxu0 %v16348_v33  ;;  %v19135_v42 = vsub.s32 7, %v17805_v48  ;;  %v16423_v33 = vld [vmem:[%s17631_s15 + $0x8cc] ss:$48 sps:$4 sm:$0xff]  }
0x14c3   : > { %10132 = vmatprep.subr.bf16.mxu1 %v16351_v38  ;;  %v16418_v38 = vld [vmem:[%s17631_s15 + $0x2c8] ss:$48 sps:$4 sm:$0xff]  }
0x14c5   : > { %10063 = vmatpush2.bf16.msra.mxu0 %v16346_v45  ;;  %v16421_v45 = vld [vmem:[%s17631_s15 + $0x8c8] ss:$48 sps:$4 sm:$0xff]  }
0x14c6   : > { %10133 = vmatpush1.bf16.msra.mxu1 %v16349_v35  ;;  %10064 = vmatprep.subr.bf16.mxu0 %v16354_v4  ;;  %v16990_v35 = vld [vmem:[%s17639_s29] sm:$0xff] }
0x14c7   : > { %10134 = vmatprep.subr.bf16.mxu1 %v16357_v25  ;;  %v8295_v4 = vrot.slane %v16990_v35, %v19135_v42  ;;  %v16426_v25 = vld [vmem:[%s17631_s15 + $0x26c] ss:$48 sps:$4 sm:$0xff]  }
0x14c9   : > { %10065 = vmatpush2.bf16.msra.mxu0 %v16352_v0  ;;  %v16429_v0 = vld [vmem:[%s17631_s15 + $0x86c] ss:$48 sps:$4 sm:$0xff]  }
0x14ca   : > { %10135 = vmatpush1.bf16.msra.mxu1 %v16355_v6  ;;  %10066 = vmatprep.subr.bf16.mxu0 %v16360_v32  ;;  %v16991_v32 = vld [vmem:[%s17639_s29 + $0x8] sm:$0xff] }
0x14cb   : > { %10136 = vmatprep.subr.bf16.mxu1 %v16363_v41  ;;  %v8299_v41 = vrot.slane %v16991_v32, %v19135_v42 }
0x14cd   : > { %10067 = vmatpush2.bf16.msra.mxu0 %v16358_v56 }
0x14ce   : > { %10137 = vmatpush1.bf16.msra.mxu1 %v16361_v37  ;;  %10068 = vmatprep.subr.bf16.mxu0 %v16366_v13  ;;  %v16424_v37 = vld [vmem:[%s17631_s15 + $0x268] ss:$48 sps:$4 sm:$0xff]  }
0x14cf   : > { %10138 = vmatprep.subr.bf16.mxu1 %v16369_v23 }
0x14d1   : > { %10069 = vmatpush2.bf16.msra.mxu0 %v16364_v49  ;;  %v16427_v49 = vld [vmem:[%s17631_s15 + $0x868] ss:$48 sps:$4 sm:$0xff]  }
0x14d2   : > { %10139 = vmatpush1.bf16.msra.mxu1 %v16367_v18  ;;  %10167 = vmatprep.subr.bf16.mxu0 %v16372_v34  ;;  %v16432_v18 = vld [vmem:[%s17631_s15 + $0x20c] ss:$48 sps:$4 sm:$0xff]  }
0x14d3   : > { %10140 = vmatprep.subr.bf16.mxu1 %v16375_v63  ;;  %v16435_v63 = vld [vmem:[%s17631_s15 + $0x80c] ss:$48 sps:$4 sm:$0xff]  }
0x14d4   : > { %10071 = vmatmul.mubr.bf16.vlgmr.msra.gmra.mxu0 %v18926_v8 }
0x14d5   : > { %10168 = vmatpush1.bf16.msra.mxu0 %v16370_v17  ;;  %10199 = vmatprep.mubr.bf16.mxu0 %v17297_v39 }
0x14d6   : > { %10141 = vmatpush2.bf16.msra.mxu1 %v16373_v7  ;;  %10169 = vmatprep.subr.bf16.mxu0 %v16378_v31 }
0x14d7   : > { %10142 = vmatprep.subr.bf16.mxu1 %v16381_v40 }
0x14d9   : > { %10170 = vmatpush1.bf16.msra.mxu0 %v16376_v58 }
0x14da   : > { %10143 = vmatpush2.bf16.msra.mxu1 %v16379_v51  ;;  %10171 = vmatprep.subr.bf16.mxu0 %v16384_v46 }
0x14db   : > { %10144 = vmatprep.subr.bf16.mxu1 %v16387_v16  ;;  %v16433_v16 = vld [vmem:[%s17631_s15 + $0x808] ss:$48 sps:$4 sm:$0xff]  }
0x14dd   : > { %10172 = vmatpush1.bf16.msra.mxu0 %v16382_v19  ;;  %v16438_v19 = vld [vmem:[%s17631_s15 + $0x1ac] ss:$48 sps:$4 sm:$0xff]  }
0x14de   : > { %10145 = vmatpush2.bf16.msra.mxu1 %v16385_v15  ;;  %10173 = vmatprep.subr.bf16.mxu0 %v16390_v59  ;;  %v16441_v59 = vld [vmem:[%s17631_s15 + $0x7ac] ss:$48 sps:$4 sm:$0xff]  }
0x14df   : > { %10146 = vmatprep.subr.bf16.mxu1 %v16393_v26 }
0x14e1   : > { %10174 = vmatpush1.bf16.msra.mxu0 %v16388_v27 }
0x14e2   : > { %10147 = vmatpush2.bf16.msra.mxu1 %v16391_v3  ;;  %10175 = vmatprep.subr.bf16.mxu0 %v16396_v10  ;;  %v16436_v3 = vld [vmem:[%s17631_s15 + $0x1a8] ss:$48 sps:$4 sm:$0xff]  }
0x14e3   : > { %10148 = vmatprep.subr.bf16.mxu1 %v16399_v11 }
0x14e5   : > { %10176 = vmatpush1.bf16.msra.mxu0 %v16394_v53  ;;  %v16439_v53 = vld [vmem:[%s17631_s15 + $0x7a8] ss:$48 sps:$4 sm:$0xff]  }
0x14e6   : > { %10149 = vmatpush2.bf16.msra.mxu1 %v16397_v14  ;;  %10177 = vmatprep.subr.bf16.mxu0 %v16402_v52  ;;  %v16444_v14 = vld [vmem:[%s17631_s15 + $0x14c] ss:$48 sps:$4 sm:$0xff]  }
0x14e7   : > { %10150 = vmatprep.subr.bf16.mxu1 %v16405_v60  ;;  %v16447_v60 = vld [vmem:[%s17631_s15 + $0x74c] ss:$48 sps:$4 sm:$0xff]  }
0x14e9   : > { %10178 = vmatpush1.bf16.msra.mxu0 %v16400_v20 }
0x14ea   : > { %10151 = vmatpush2.bf16.msra.mxu1 %v16403_v29  ;;  %10179 = vmatprep.subr.bf16.mxu0 %v16408_v44  ;;  %v16442_v29 = vld [vmem:[%s17631_s15 + $0x148] ss:$48 sps:$4 sm:$0xff]  }
0x14eb   : > { %10152 = vmatprep.subr.bf16.mxu1 %v16411_v62  ;;  %v16445_v44 = vld [vmem:[%s17631_s15 + $0x748] ss:$48 sps:$4 sm:$0xff]   ;;  %v16450_v62 = vld [vmem:[%s17631_s15 + $0xec] ss:$48 sps:$4 sm:$0xff]  }
0x14ed   : > { %10180 = vmatpush1.bf16.msra.mxu0 %v16406_v2  ;;  %v16453_v2 = vld [vmem:[%s17631_s15 + $0x6ec] ss:$48 sps:$4 sm:$0xff]  }
0x14ee   : > { %10153 = vmatpush2.bf16.msra.mxu1 %v16409_v30  ;;  %10181 = vmatprep.subr.bf16.mxu0 %v16414_v5  ;;  %v16448_v30 = vld [vmem:[%s17631_s15 + $0xe8] ss:$48 sps:$4 sm:$0xff]  }
0x14ef   : > { %10154 = vmatprep.subr.bf16.mxu1 %v16417_v43  ;;  %v16451_v5 = vld [vmem:[%s17631_s15 + $0x6e8] ss:$48 sps:$4 sm:$0xff]   ;;  %v16456_v43 = vld [vmem:[%s17631_s15 + $0x8c] ss:$48 sps:$4 sm:$0xff]  }
0x14f1   : > { %10182 = vmatpush1.bf16.msra.mxu0 %v16412_v57  ;;  %v16459_v57 = vld [vmem:[%s17631_s15 + $0x68c] ss:$48 sps:$4 sm:$0xff]  }
0x14f2   : > { %10155 = vmatpush2.bf16.msra.mxu1 %v16415_v21  ;;  %10210 = vmatprep.subr.bf16.mxu0 %v16420_v9  ;;  %v16454_v9 = vld [vmem:[%s17631_s15 + $0x88] ss:$48 sps:$4 sm:$0xff]  }
0x14f3   : > { %10253 = vmatprep.subr.bf16.mxu1 %v16423_v33  ;;  %v16457_v33 = vld [vmem:[%s17631_s15 + $0x688] ss:$48 sps:$4 sm:$0xff]  }
0x14f4   : > { %10200 = vmatmul.mubr.bf16.vlgmr.msra.gmra.mxu0 %v18923_v12  ;;  %v9857_v6 = vpop.f32.mrf.mxu0 }
0x14f5   : > { %10157 = vmatmul.mubr.bf16.vlgmr.msra.gmra.mxu1 %v18926_v8  ;;  %10211 = vmatpush1.bf16.msra.mxu0 %v16418_v38  ;;  %v9814_v56 = vpop.f32.mrf.mxu1  ;;  %v16462_v38 = vld [vmem:[%s17631_s15 + $0x2c] ss:$48 sps:$4 sm:$0xff]  }
0x14f6   : > { %10242 = vmatprep.mubr.bf16.mxu0 %v18921_v55  ;;  %v9815_v13 = vadd.f32 %v9814_v56, %v8295_v4  ;;  %10254 = vmatpush1.bf16.msra.mxu1 %v16421_v45  ;;  %v9859_v23 = vpop.f32.mrf.mxu0  ;;  %v16430_v55 = vld [vmem:[%s17631_s15 + $0x208] ss:$48 sps:$4 sm:$0xff]   ;;  %v16465_v45 = vld [vmem:[%s17631_s15 + $0x62c] ss:$48 sps:$4 sm:$0xff]  }
0x14f7   : > { %v9816_v34 = vpop.f32.mrf.mxu1  ;;  %10212 = vmatprep.subr.bf16.mxu0 %v16426_v25  ;;  %10255 = vmatprep.subr.bf16.mxu1 %v16429_v0  ;;  %v16460_v0 = vld [vmem:[%s17631_s15 + $0x28] ss:$48 sps:$4 sm:$0xff]  }
0x14f8   : > { %v19153_v17 = vadd.f32 %v9857_v6, %v9815_v13  ;;  %v9817_v7 = vadd.f32 %v9816_v34, %v8299_v41  ;;  %10285 = vmatprep.mubr.bf16.mxu1 %v17297_v39  ;;  %v9861_v51 = vpop.f32.mrf.mxu0  ;;  %v16463_v6 = vld [vmem:[%s17631_s15 + $0x628] ss:$48 sps:$4 sm:$0xff]  }
0x14f9   : > { %10213 = vmatpush1.bf16.msra.mxu0 %v16424_v37  ;;  %v9818_v31 = vpop.f32.mrf.mxu1  ;;  %v16468_v37 = vld [vmem:[%s17631_s15 + $0x5cc] ss:$48 sps:$4 sm:$0xff]  }
0x14fa   : > { %v10320_v40 = vmul.f32 0.70710677, %v19153_v17  ;;  %v19158_v58 = vadd.f32 %v9859_v23, %v9817_v7  ;;  %v9819_v46 = vadd.f32 %v9818_v31, %v8295_v4  ;;  %10256 = vmatpush1.bf16.msra.mxu1 %v16427_v49  ;;  %10214 = vmatprep.subr.bf16.mxu0 %v16432_v18  ;;  %v9863_v11 = vpop.f32.mrf.mxu0  ;;  %v10296_v32 = vmul.f32 0.5, %v19153_v17  ;;  %v16471_v13 = vld [vmem:[%s17637_s28 + $0xac] ss:$12 sps:$4 sm:$0xff]  }
0x14fb   : > { %v9820_v15 = vpop.f32.mrf.mxu1  ;;  %10257 = vmatprep.subr.bf16.mxu1 %v16435_v63  ;;  %v16466_v17 = vld [vmem:[%s17631_s15 + $0x5c8] ss:$48 sps:$4 sm:$0xff]  }
0x14fc   : > { %16930 = verf.f32 %v10320_v40  ;;  %v10321_v39 = vmul.f32 0.70710677, %v19158_v58  ;;  %v9862_v26 = vadd.f32 %v9861_v51, %v9819_v46  ;;  %v9821_v27 = vadd.f32 %v9820_v15, %v8299_v41  ;;  %v16469_v40 = vld [vmem:[%s17637_s28 + $0xa8] ss:$12 sps:$4 sm:$0xff]   ;;  %v16474_v51 = vld [vmem:[%s17631_s15 + $0x56c] ss:$48 sps:$4 sm:$0xff]  }
0x14fd   : > { %10215 = vmatpush1.bf16.msra.mxu0 %v16430_v55  ;;  %v10297_v63 = vmul.f32 0.5, %v19158_v58  ;;  %v16472_v15 = vld [vmem:[%s17631_s15 + $0x568] ss:$48 sps:$4 sm:$0xff]  }
0x14fe   : > { %v10332_v10 = vmul.f32 0.70710677, %v9862_v26  ;;  %10258 = vmatpush1.bf16.msra.mxu1 %v16433_v16  ;;  %10216 = vmatprep.subr.bf16.mxu0 %v16438_v19  ;;  %16932 = verf.f32 %v10321_v39  ;;  %v9864_v52 = vadd.f32 %v9863_v11, %v9821_v27  ;;  %v10308_v41 = vmul.f32 0.5, %v9862_v26  ;;  %v16477_v19 = vld [vmem:[%s17637_s28 + $0x94] ss:$12 sps:$4 sm:$0xff]  }
0x14ff   : > { %10259 = vmatprep.subr.bf16.mxu1 %v16441_v59  ;;  %v16475_v59 = vld [vmem:[%s17637_s28 + $0x90] ss:$12 sps:$4 sm:$0xff]   ;;  %v16478_v27 = vld [vmem:[%s17631_s15 + $0x508] ss:$48 sps:$4 sm:$0xff]  }
0x1500   : > { %16934 = verf.f32 %v10332_v10  ;;  %v10333_v20 = vmul.f32 0.70710677, %v9864_v52  ;;  %v10309_v7 = vmul.f32 0.5, %v9864_v52  ;;  %v16480_v39 = vld [vmem:[%s17631_s15 + $0x50c] ss:$48 sps:$4 sm:$0xff]  }
0x1501   : > { %10217 = vmatpush1.bf16.msra.mxu0 %v16436_v3  ;;  %v16483_v26 = vld [vmem:[%s17637_s28 + $0x7c] ss:$12 sps:$4 sm:$0xff]   ;;  %v16489_v10 = vld [vmem:[%s17637_s28 + $0x64] ss:$12 sps:$4 sm:$0xff]   ;;  %v16495_v52 = vld [vmem:[%s17637_s28 + $0x4c] ss:$12 sps:$4 sm:$0xff]  }
0x1502   : > { %10260 = vmatpush1.bf16.msra.mxu1 %v16439_v53  ;;  %10218 = vmatprep.subr.bf16.mxu0 %v16444_v14  ;;  %16936 = verf.f32 %v10333_v20  ;;  %v16486_v3 = vld [vmem:[%s17631_s15 + $0x4ac] ss:$48 sps:$4 sm:$0xff]   ;;  %v16484_v11 = vld [vmem:[%s17631_s15 + $0x4a8] ss:$48 sps:$4 sm:$0xff]  }
0x1503   : > { %10261 = vmatprep.subr.bf16.mxu1 %v16447_v60  ;;  %v16487_v53 = vld [vmem:[%s17637_s28 + $0x60] ss:$12 sps:$4 sm:$0xff]   ;;  %v16490_v60 = vld [vmem:[%s17631_s15 + $0x448] ss:$48 sps:$4 sm:$0xff]  }
0x1504   : > { %v16492_v14 = vld [vmem:[%s17631_s15 + $0x44c] ss:$48 sps:$4 sm:$0xff]   ;;  %v16493_v20 = vld [vmem:[%s17637_s28 + $0x48] ss:$12 sps:$4 sm:$0xff]  }
0x1505   : > { %10219 = vmatpush1.bf16.msra.mxu0 %v16442_v29  ;;  %v16498_v29 = vld [vmem:[%s17631_s15 + $0x3ec] ss:$48 sps:$4 sm:$0xff]  }
0x1506   : > { %10262 = vmatpush1.bf16.msra.mxu1 %v16445_v44  ;;  %10220 = vmatprep.subr.bf16.mxu0 %v16450_v62  ;;  %v16501_v44 = vld [vmem:[%s17637_s28 + $0x34] ss:$12 sps:$4 sm:$0xff]   ;;  %v16496_v62 = vld [vmem:[%s17631_s15 + $0x3e8] ss:$48 sps:$4 sm:$0xff]  }
0x1507   : > { %10263 = vmatprep.subr.bf16.mxu1 %v16453_v2  ;;  %v16499_v2 = vld [vmem:[%s17637_s28 + $0x30] ss:$12 sps:$4 sm:$0xff]  }
0x1509   : > { %v16931_v21 = vpop.eup %16930  ;;  %10221 = vmatpush1.bf16.msra.mxu0 %v16448_v30  ;;  %v16504_v30 = vld [vmem:[%s17631_s15 + $0x38c] ss:$48 sps:$4 sm:$0xff]  }
0x150a   : > { %10264 = vmatpush1.bf16.msra.mxu1 %v16451_v5  ;;  %10222 = vmatprep.subr.bf16.mxu0 %v16456_v43  ;;  %v10368_v4 = vadd.f32 1.0, %v16931_v21  ;;  %v16507_v5 = vld [vmem:[%s17637_s28 + $0x1c] ss:$12 sps:$4 sm:$0xff]  }
0x150b   : > { %10265 = vmatprep.subr.bf16.mxu1 %v16459_v57  ;;  %v16933_v35 = vpop.eup %16932  ;;  %v16502_v43 = vld [vmem:[%s17631_s15 + $0x388] ss:$48 sps:$4 sm:$0xff]   ;;  %v16510_v21 = vld [vmem:[%s17631_s15 + $0x32c] ss:$48 sps:$4 sm:$0xff]  }
0x150c   : > { %v10369_v23 = vadd.f32 1.0, %v16933_v35  ;;  %v10392_v18 = vmul.f32 %v10368_v4, %v10296_v32  ;;  %v16505_v57 = vld [vmem:[%s17637_s28 + $0x18] ss:$12 sps:$4 sm:$0xff]  }
0x150d   : > { %v16935_v25 = vpop.eup %16934  ;;  %10223 = vmatpush1.bf16.msra.mxu0 %v16454_v9  ;;  %v16513_v9 = vld [vmem:[%s17637_s28 + $0x4] ss:$12 sps:$4 sm:$0xff]   ;;  %v16519_v35 = vld [vmem:[%s17637_s28 + $0x16c] ss:$12 sps:$4 sm:$0xff]  }
0x150e   : > { %v10380_v56 = vadd.f32 1.0, %v16935_v25  ;;  %10266 = vmatpush1.bf16.msra.mxu1 %v16457_v33  ;;  %10224 = vmatprep.subr.bf16.mxu0 %v16462_v38  ;;  %v10393_v46 = vmul.f32 %v10369_v23, %v10297_v63  ;;  %v16508_v33 = vld [vmem:[%s17631_s15 + $0x328] ss:$48 sps:$4 sm:$0xff]   ;;  %v16511_v38 = vld [vmem:[%s17637_s28] ss:$12 sps:$4 sm:$0xff]  }
0x150f   : > { %10267 = vmatprep.subr.bf16.mxu1 %v16465_v45  ;;  %v16937_v49 = vpop.eup %16936  ;;  %v16516_v45 = vld [vmem:[%s17637_s28 + $0x22c] ss:$12 sps:$4 sm:$0xff]   ;;  %v16514_v25 = vld [vmem:[%s17637_s28 + $0x228] ss:$12 sps:$4 sm:$0xff]   ;;  %v16520_v23 = vld [vmem:[%s17637_s28 + $0x210] ss:$12 sps:$4 sm:$0xff]  }
0x1510   : > { %v10404_v34 = vmul.f32 %v10380_v56, %v10308_v41  ;;  %v10381_v31 = vadd.f32 1.0, %v16937_v49  ;;  %v16992_v32 = vld [vmem:[%s17639_s29 + $0x18] sm:$0xff]  ;;  %v16525_v56 = vld [vmem:[%s17637_s28 + $0x154] ss:$12 sps:$4 sm:$0xff]  }
0x1511   : > { %10225 = vmatpush1.bf16.msra.mxu0 %v16460_v0  ;;  %v16517_v0 = vld [vmem:[%s17637_s28 + $0x168] ss:$12 sps:$4 sm:$0xff]   ;;  %v8307_v41 = vrot.slane %v16992_v32, %v19135_v42 }
0x1512   : > { %v19187_v55 = vpack.c.bf16 %v10404_v34, %v10392_v18  ;;  %10268 = vmatpush1.bf16.msra.mxu1 %v16463_v6  ;;  %10226 = vmatprep.subr.bf16.mxu0 %v16468_v37  ;;  %v10405_v16 = vmul.f32 %v10381_v31, %v10309_v7  ;;  %v16522_v6 = vld [vmem:[%s17637_s28 + $0x214] ss:$12 sps:$4 sm:$0xff]   ;;  %v16523_v18 = vld [vmem:[%s17637_s28 + $0x150] ss:$12 sps:$4 sm:$0xff]  }
0x1513   : > { %12360 = vmatprep.subr.bf16.mxu1 %v16471_v13  ;;  %v16528_v34 = vld [vmem:[%s17637_s28 + $0x1fc] ss:$12 sps:$4 sm:$0xff]  }
0x1514   : > { %v19193_v58 = vpack.c.bf16 %v10405_v16, %v10393_v46  ;;  %v16531_v7 = vld [vmem:[%s17637_s28 + $0x13c] ss:$12 sps:$4 sm:$0xff]   ;;  %v16529_v46 = vld [vmem:[%s17637_s28 + $0x138] ss:$12 sps:$4 sm:$0xff]  }
0x1515   : > { %10227 = vmatpush2.bf16.msra.mxu0 %v16466_v17  ;;  %10286 = vmatmul.mubr.bf16.vlgmr.msra.gmra.mxu1 %v18923_v12  ;;  %v16481_v12 = vld [vmem:[%s17637_s28 + $0x78] ss:$12 sps:$4 sm:$0xff]   ;;  %v19224_v4 = vpop.f32.mrf.mxu1 }
0x1516   : > { %12361 = vmatpush1.bf16.msra.mxu1 %v16469_v40  ;;  %10228 = vmatprep.subr.bf16.mxu0 %v16474_v51  ;;  %v16526_v40 = vld [vmem:[%s17637_s28 + $0x1f8] ss:$12 sps:$4 sm:$0xff]  }
0x1517   : > { %12392 = vmatprep.mubr.bf16.mxu1 %v19193_v58  ;;  %12362 = vmatprep.subr.bf16.mxu1 %v16477_v19  ;;  %v9945_v13 = vpop.f32.mrf.mxu1  ;;  %v16534_v16 = vld [vmem:[%s17637_s28 + $0x1e4] ss:$12 sps:$4 sm:$0xff]  }
0x1519   : > { %10229 = vmatpush2.bf16.msra.mxu0 %v16472_v15  ;;  %v19239_v31 = vpop.f32.mrf.mxu1  ;;  %v16537_v15 = vld [vmem:[%s17637_s28 + $0x124] ss:$12 sps:$4 sm:$0xff]  }
0x151a   : > { %12363 = vmatpush1.bf16.msra.mxu1 %v16475_v59  ;;  %10230 = vmatprep.subr.bf16.mxu0 %v16480_v39 }
0x151b   : > { %12364 = vmatprep.subr.bf16.mxu1 %v16483_v26  ;;  %v9949_v39 = vpop.f32.mrf.mxu1  ;;  %v16532_v26 = vld [vmem:[%s17637_s28 + $0x1e0] ss:$12 sps:$4 sm:$0xff]  }
0x151d   : > { %10231 = vmatpush2.bf16.msra.mxu0 %v16478_v27 }
0x151e   : > { %12365 = vmatpush1.bf16.msra.mxu1 %v16481_v12  ;;  %10232 = vmatprep.subr.bf16.mxu0 %v16486_v3  ;;  %v16535_v12 = vld [vmem:[%s17637_s28 + $0x120] ss:$12 sps:$4 sm:$0xff]  }
0x151f   : > { %12366 = vmatprep.subr.bf16.mxu1 %v16489_v10  ;;  %v16540_v3 = vld [vmem:[%s17637_s28 + $0x1cc] ss:$12 sps:$4 sm:$0xff]  }
0x1520   : > { %v16543_v10 = vld [vmem:[%s17637_s28 + $0x10c] ss:$12 sps:$4 sm:$0xff]  }
0x1521   : > { %10233 = vmatpush2.bf16.msra.mxu0 %v16484_v11 }
0x1522   : > { %12367 = vmatpush1.bf16.msra.mxu1 %v16487_v53  ;;  %10234 = vmatprep.subr.bf16.mxu0 %v16492_v14  ;;  %v16538_v53 = vld [vmem:[%s17637_s28 + $0x1c8] ss:$12 sps:$4 sm:$0xff]  }
0x1523   : > { %12368 = vmatprep.subr.bf16.mxu1 %v16495_v52  ;;  %v16541_v14 = vld [vmem:[%s17637_s28 + $0x108] ss:$12 sps:$4 sm:$0xff]  }
0x1524   : > { %v16546_v52 = vld [vmem:[%s17637_s28 + $0x1b4] ss:$12 sps:$4 sm:$0xff]  }
0x1525   : > { %10235 = vmatpush2.bf16.msra.mxu0 %v16490_v60  ;;  %v16549_v60 = vld [vmem:[%s17637_s28 + $0xf4] ss:$12 sps:$4 sm:$0xff]  }
0x1526   : > { %12369 = vmatpush1.bf16.msra.mxu1 %v16493_v20  ;;  %10236 = vmatprep.subr.bf16.mxu0 %v16498_v29  ;;  %v16544_v20 = vld [vmem:[%s17637_s28 + $0x1b0] ss:$12 sps:$4 sm:$0xff]  }
0x1527   : > { %12370 = vmatprep.subr.bf16.mxu1 %v16501_v44  ;;  %v16547_v29 = vld [vmem:[%s17637_s28 + $0xf0] ss:$12 sps:$4 sm:$0xff]  }
0x1528   : > { %v16552_v44 = vld [vmem:[%s17637_s28 + $0x19c] ss:$12 sps:$4 sm:$0xff]  }
0x1529   : > { %10237 = vmatpush2.bf16.msra.mxu0 %v16496_v62  ;;  %v16555_v62 = vld [vmem:[%s17637_s28 + $0xdc] ss:$12 sps:$4 sm:$0xff]  }
0x152a   : > { %12371 = vmatpush1.bf16.msra.mxu1 %v16499_v2  ;;  %10238 = vmatprep.subr.bf16.mxu0 %v16504_v30  ;;  %v16550_v2 = vld [vmem:[%s17637_s28 + $0x198] ss:$12 sps:$4 sm:$0xff]  }
0x152b   : > { %12372 = vmatprep.subr.bf16.mxu1 %v16507_v5  ;;  %v16553_v30 = vld [vmem:[%s17637_s28 + $0xd8] ss:$12 sps:$4 sm:$0xff]  }
0x152c   : > { %v16558_v5 = vld [vmem:[%s17637_s28 + $0x184] ss:$12 sps:$4 sm:$0xff]  }
0x152d   : > { %10239 = vmatpush2.bf16.msra.mxu0 %v16502_v43 }
0x152e   : > { %12373 = vmatpush1.bf16.msra.mxu1 %v16505_v57  ;;  %10240 = vmatprep.subr.bf16.mxu0 %v16510_v21  ;;  %v16561_v57 = vld [vmem:[%s17637_s28 + $0xc4] ss:$12 sps:$4 sm:$0xff]  }
0x152f   : > { %12374 = vmatprep.subr.bf16.mxu1 %v16513_v9  ;;  %v16993_v21 = vld [vmem:[%s17639_s29 + $0x10] sm:$0xff] }
0x1530   : > { %v8303_v9 = vrot.slane %v16993_v21, %v19135_v42 }
0x1531   : > { %10241 = vmatpush2.bf16.msra.mxu0 %v16508_v33  ;;  %v16556_v33 = vld [vmem:[%s17637_s28 + $0x180] ss:$12 sps:$4 sm:$0xff]  }
0x1532   : > { %12375 = vmatpush1.bf16.msra.mxu1 %v16511_v38  ;;  %12403 = vmatprep.subr.bf16.mxu0 %v16516_v45  ;;  %v16559_v45 = vld [vmem:[%s17637_s28 + $0xc0] ss:$12 sps:$4 sm:$0xff]  }
0x1533   : > { %12376 = vmatprep.subr.bf16.mxu1 %v16519_v35  ;;  %v16564_v35 = vld [vmem:[%s17637_s28 + $0x2ec] ss:$12 sps:$4 sm:$0xff]  }
0x1534   : > { %v19232_v37 = vpop.f32.mrf.mxu0  ;;  %10243 = vmatmul.mubr.bf16.vlgmr.msra.gmra.mxu0 %v18926_v8 }
0x1535   : > { %12404 = vmatpush1.bf16.msra.mxu0 %v16514_v25  ;;  %v9901_v32 = vadd.f32 %v19232_v37, %v8303_v9  ;;  %v16573_v37 = vld [vmem:[%s17637_s28 + $0x394] ss:$12 sps:$4 sm:$0xff]  }
0x1536   : > { %v9902_v49 = vpop.f32.mrf.mxu0  ;;  %12377 = vmatpush2.bf16.msra.mxu1 %v16517_v0  ;;  %12405 = vmatprep.subr.bf16.mxu0 %v16522_v6  ;;  %v16567_v6 = vld [vmem:[%s17637_s28 + $0x3ac] ss:$12 sps:$4 sm:$0xff]  }
0x1537   : > { %v9903_v63 = vadd.f32 %v9902_v49, %v8307_v41  ;;  %12378 = vmatprep.subr.bf16.mxu1 %v16525_v56 }
0x1538   : > { %v9904_v17 = vpop.f32.mrf.mxu0 }
0x1539   : > { %v19241_v8 = vadd.f32 %v9945_v13, %v9903_v63  ;;  %12406 = vmatpush1.bf16.msra.mxu0 %v16520_v23  ;;  %v9905_v38 = vadd.f32 %v9904_v17, %v8303_v9  ;;  %v16562_v23 = vld [vmem:[%s17637_s28 + $0x2e8] ss:$12 sps:$4 sm:$0xff]   ;;  %v19280_v17 = vadd.f32 %v19224_v4, %v9901_v32 }
0x153a   : > { %v9906_v51 = vpop.f32.mrf.mxu0  ;;  %12379 = vmatpush2.bf16.msra.mxu1 %v16523_v18  ;;  %12407 = vmatprep.subr.bf16.mxu0 %v16528_v34  ;;  %v16565_v63 = vld [vmem:[%s17637_s28 + $0x3a8] ss:$12 sps:$4 sm:$0xff]  }
0x153b   : > { %v10323_v19 = vmul.f32 0.70710677, %v19241_v8  ;;  %12380 = vmatprep.subr.bf16.mxu1 %v16531_v7  ;;  %v9907_v59 = vadd.f32 %v9906_v51, %v8307_v41  ;;  %v10299_v41 = vmul.f32 0.5, %v19241_v8  ;;  %v19274_v49 = vadd.f32 %v19239_v31, %v9905_v38  ;;  %v16570_v7 = vld [vmem:[%s17637_s28 + $0x2d4] ss:$12 sps:$4 sm:$0xff]   ;;  %v16994_v31 = vld [vmem:[%s17639_s29 + $0x28] sm:$0xff] }
0x153c   : > { %v8315_v51 = vrot.slane %v16994_v31, %v19135_v42  ;;  %v16586_v9 = vld [vmem:[%s17637_s28 + $0x288] ss:$12 sps:$4 sm:$0xff]  }
0x153d   : > { %12408 = vmatpush1.bf16.msra.mxu0 %v16526_v40  ;;  %16938 = verf.f32 %v10323_v19  ;;  %v9950_v27 = vadd.f32 %v9949_v39, %v9907_v59  ;;  %v10334_v19 = vmul.f32 0.70710677, %v19274_v49  ;;  %v16576_v59 = vld [vmem:[%s17637_s28 + $0x2bc] ss:$12 sps:$4 sm:$0xff]   ;;  %v16594_v38 = vld [vmem:[%s17637_s28 + $0x274] ss:$12 sps:$4 sm:$0xff]  }
0x153e   : > { %12381 = vmatpush2.bf16.msra.mxu1 %v16529_v46  ;;  %12409 = vmatprep.subr.bf16.mxu0 %v16534_v16  ;;  %v16568_v16 = vld [vmem:[%s17637_s28 + $0x2d0] ss:$12 sps:$4 sm:$0xff]  }
0x153f   : > { %12382 = vmatprep.subr.bf16.mxu1 %v16537_v15  ;;  %v10335_v11 = vmul.f32 0.70710677, %v9950_v27  ;;  %v10311_v56 = vmul.f32 0.5, %v9950_v27  ;;  %v16571_v15 = vld [vmem:[%s17637_s28 + $0x390] ss:$12 sps:$4 sm:$0xff]  }
0x1540   : > { %v10322_v27 = vmul.f32 0.70710677, %v19280_v17  ;;  %v16603_v32 = vld [vmem:[%s17637_s28 + $0x31c] ss:$12 sps:$4 sm:$0xff]   ;;  %v16995_v31 = vld [vmem:[%s17639_s29 + $0x20] sm:$0xff] }
0x1541   : > { %12410 = vmatpush1.bf16.msra.mxu0 %v16532_v26  ;;  %16940 = verf.f32 %v10335_v11  ;;  %v16579_v26 = vld [vmem:[%s17637_s28 + $0x37c] ss:$12 sps:$4 sm:$0xff]  }
0x1542   : > { %12383 = vmatpush2.bf16.msra.mxu1 %v16535_v12  ;;  %12411 = vmatprep.subr.bf16.mxu0 %v16540_v3  ;;  %16942 = verf.f32 %v10334_v19  ;;  %v10298_v19 = vmul.f32 0.5, %v19280_v17 }
0x1543   : > { %12384 = vmatprep.subr.bf16.mxu1 %v16543_v10  ;;  %v16574_v10 = vld [vmem:[%s17637_s28 + $0x2b8] ss:$12 sps:$4 sm:$0xff]   ;;  %16944 = verf.f32 %v10322_v27 }
0x1545   : > { %12412 = vmatpush1.bf16.msra.mxu0 %v16538_v53 }
0x1546   : > { %12385 = vmatpush2.bf16.msra.mxu1 %v16541_v14  ;;  %12413 = vmatprep.subr.bf16.mxu0 %v16546_v52  ;;  %v16577_v14 = vld [vmem:[%s17637_s28 + $0x378] ss:$12 sps:$4 sm:$0xff]  }
0x1547   : > { %12386 = vmatprep.subr.bf16.mxu1 %v16549_v60  ;;  %v16582_v52 = vld [vmem:[%s17637_s28 + $0x2a4] ss:$12 sps:$4 sm:$0xff]  }
0x1549   : > { %12414 = vmatpush1.bf16.msra.mxu0 %v16544_v20  ;;  %v16585_v20 = vld [vmem:[%s17637_s28 + $0x364] ss:$12 sps:$4 sm:$0xff]  }
0x154a   : > { %12387 = vmatpush2.bf16.msra.mxu1 %v16547_v29  ;;  %12415 = vmatprep.subr.bf16.mxu0 %v16552_v44  ;;  %v16939_v43 = vpop.eup %16938 }
0x154b   : > { %12388 = vmatprep.subr.bf16.mxu1 %v16555_v62  ;;  %v10371_v25 = vadd.f32 1.0, %v16939_v43  ;;  %v16580_v62 = vld [vmem:[%s17637_s28 + $0x2a0] ss:$12 sps:$4 sm:$0xff]  }
0x154d   : > { %12416 = vmatpush1.bf16.msra.mxu0 %v16550_v2  ;;  %v10395_v18 = vmul.f32 %v10371_v25, %v10299_v41  ;;  %v16595_v25 = vld [vmem:[%s17637_s28 + $0x330] ss:$12 sps:$4 sm:$0xff]  }
0x154e   : > { %12389 = vmatpush2.bf16.msra.mxu1 %v16553_v30  ;;  %12417 = vmatprep.subr.bf16.mxu0 %v16558_v5  ;;  %v16941_v0 = vpop.eup %16940  ;;  %v16583_v30 = vld [vmem:[%s17637_s28 + $0x360] ss:$12 sps:$4 sm:$0xff]  }
0x154f   : > { %12390 = vmatprep.subr.bf16.mxu1 %v16561_v57  ;;  %v10383_v13 = vadd.f32 1.0, %v16941_v0  ;;  %v16588_v5 = vld [vmem:[%s17637_s28 + $0x28c] ss:$12 sps:$4 sm:$0xff]   ;;  %v16600_v0 = vld [vmem:[%s17637_s28 + $0x25c] ss:$12 sps:$4 sm:$0xff]  }
0x1550   : > { %v16591_v57 = vld [vmem:[%s17637_s28 + $0x34c] ss:$12 sps:$4 sm:$0xff]  }
0x1551   : > { %12418 = vmatpush1.bf16.msra.mxu0 %v16556_v33  ;;  %v10407_v34 = vmul.f32 %v10383_v13, %v10311_v56  ;;  %v16589_v33 = vld [vmem:[%s17637_s28 + $0x348] ss:$12 sps:$4 sm:$0xff]   ;;  %v16598_v56 = vld [vmem:[%s17637_s28 + $0x258] ss:$12 sps:$4 sm:$0xff]  }
0x1552   : > { %12391 = vmatpush2.bf16.msra.mxu1 %v16559_v45  ;;  %12419 = vmatprep.subr.bf16.mxu0 %v16564_v35  ;;  %v16597_v45 = vld [vmem:[%s17637_s28 + $0x334] ss:$12 sps:$4 sm:$0xff]   ;;  %v16592_v35 = vld [vmem:[%s17637_s28 + $0x270] ss:$12 sps:$4 sm:$0xff]  }
0x1553   : > { %12446 = vmatprep.subr.bf16.mxu1 %v16567_v6  ;;  %v19284_v40 = vpack.c.bf16 %v10407_v34, %v10395_v18  ;;  %v16943_v6 = vpop.eup %16942  ;;  %v16606_v18 = vld [vmem:[%s17637_s28 + $0x244] ss:$12 sps:$4 sm:$0xff]  }
0x1554   : > { %v19282_v8 = vpop.f32.mrf.mxu0  ;;  %v16945_v41 = vpop.eup %16944  ;;  %v10382_v13 = vadd.f32 1.0, %v16943_v6  ;;  %v16609_v34 = vld [vmem:[%s17637_s28 + $0x304] ss:$12 sps:$4 sm:$0xff]   ;;  %v16636_v6 = vld [vmem:[%s17637_s28 + $0x40c] ss:$12 sps:$4 sm:$0xff]  }
0x1555   : > { %v19288_v46 = vpop.f32.mrf.mxu1  ;;  %12393 = vmatmul.mubr.bf16.vlgmr.msra.gmra.mxu1 %v19187_v55  ;;  %12420 = vmatpush2.bf16.msra.mxu0 %v16562_v23  ;;  %v16601_v23 = vld [vmem:[%s17637_s28 + $0x318] ss:$12 sps:$4 sm:$0xff]  }
0x1556   : > { %12435 = vmatprep.mubr.bf16.mxu0 %v19284_v40  ;;  %v10031_v4 = vpop.f32.mrf.mxu0  ;;  %12447 = vmatpush1.bf16.msra.mxu1 %v16565_v63 }
0x1557   : > { %v9988_v39 = vpop.f32.mrf.mxu1  ;;  %12421 = vmatprep.subr.bf16.mxu0 %v16570_v7  ;;  %12448 = vmatprep.subr.bf16.mxu1 %v16573_v37  ;;  %v10370_v7 = vadd.f32 1.0, %v16945_v41  ;;  %v10310_v37 = vmul.f32 0.5, %v19274_v49  ;;  %v16634_v41 = vld [vmem:[%s17637_s28 + $0x408] ss:$12 sps:$4 sm:$0xff]  }
0x1558   : > { %v9989_v12 = vadd.f32 %v9988_v39, %v8315_v51  ;;  %v19303_v53 = vpop.f32.mrf.mxu0 }
0x1559   : > { %v19298_v3 = vpop.f32.mrf.mxu1  ;;  %12422 = vmatpush2.bf16.msra.mxu0 %v16568_v16  ;;  %v16604_v16 = vld [vmem:[%s17637_s28 + $0x240] ss:$12 sps:$4 sm:$0xff]  }
0x155a   : > { %v19301_v11 = vadd.f32 %v10031_v4, %v9989_v12  ;;  %12449 = vmatpush1.bf16.msra.mxu1 %v16571_v15  ;;  %12423 = vmatprep.subr.bf16.mxu0 %v16576_v59  ;;  %v10035_v2 = vpop.f32.mrf.mxu0  ;;  %v10406_v4 = vmul.f32 %v10382_v13, %v10310_v37  ;;  %v16607_v15 = vld [vmem:[%s17637_s28 + $0x300] ss:$12 sps:$4 sm:$0xff]   ;;  %v10394_v12 = vmul.f32 %v10370_v7, %v10298_v19  ;;  %v16649_v37 = vld [vmem:[%s17637_s28 + $0x498] ss:$12 sps:$4 sm:$0xff]  }
0x155b   : > { %v9992_v60 = vpop.f32.mrf.mxu1  ;;  %12450 = vmatprep.subr.bf16.mxu1 %v16579_v26  ;;  %v16615_v59 = vld [vmem:[%s17637_s28 + $0x52c] ss:$12 sps:$4 sm:$0xff]   ;;  %v16642_v13 = vld [vmem:[%s17637_s28 + $0x3f4] ss:$12 sps:$4 sm:$0xff]  }
0x155c   : > { %v10325_v29 = vmul.f32 0.70710677, %v19301_v11  ;;  %v9993_v44 = vadd.f32 %v9992_v60, %v8315_v51  ;;  %v8311_v51 = vrot.slane %v16995_v31, %v19135_v42  ;;  %v16612_v26 = vld [vmem:[%s17637_s28 + $0x46c] ss:$12 sps:$4 sm:$0xff]   ;;  %v10301_v17 = vmul.f32 0.5, %v19301_v11 }
0x155d   : > { %12424 = vmatpush2.bf16.msra.mxu0 %v16574_v10  ;;  %v16613_v60 = vld [vmem:[%s17637_s28 + $0x528] ss:$12 sps:$4 sm:$0xff]  }
0x155e   : > { %12451 = vmatpush1.bf16.msra.mxu1 %v16577_v14  ;;  %12425 = vmatprep.subr.bf16.mxu0 %v16582_v52  ;;  %16946 = verf.f32 %v10325_v29  ;;  %v10036_v43 = vadd.f32 %v10035_v2, %v9993_v44  ;;  %v9991_v39 = vadd.f32 %v19298_v3, %v8311_v51  ;;  %v9987_v10 = vadd.f32 %v19288_v46, %v8311_v51  ;;  %v16610_v3 = vld [vmem:[%s17637_s28 + $0x468] ss:$12 sps:$4 sm:$0xff]   ;;  %v16646_v51 = vld [vmem:[%s17637_s28 + $0x3d8] ss:$12 sps:$4 sm:$0xff]  }
0x155f   : > { %12452 = vmatprep.subr.bf16.mxu1 %v16585_v20  ;;  %v19337_v20 = vpack.c.bf16 %v10406_v4, %v10394_v12  ;;  %v16621_v29 = vld [vmem:[%s17637_s28 + $0x514] ss:$12 sps:$4 sm:$0xff]   ;;  %v16654_v4 = vld [vmem:[%s17637_s28 + $0x3c4] ss:$12 sps:$4 sm:$0xff]  }
0x1560   : > { %v10337_v21 = vmul.f32 0.70710677, %v10036_v43  ;;  %v10313_v14 = vmul.f32 0.5, %v10036_v43  ;;  %v19342_v44 = vadd.f32 %v19303_v53, %v9991_v39  ;;  %v19347_v2 = vadd.f32 %v19282_v8, %v9987_v10  ;;  %v16616_v53 = vld [vmem:[%s17637_s28 + $0x450] ss:$12 sps:$4 sm:$0xff]  }
0x1561   : > { %12426 = vmatpush2.bf16.msra.mxu0 %v16580_v62  ;;  %v16618_v62 = vld [vmem:[%s17637_s28 + $0x454] ss:$12 sps:$4 sm:$0xff]   ;;  %v16627_v43 = vld [vmem:[%s17637_s28 + $0x4fc] ss:$12 sps:$4 sm:$0xff]   ;;  %v16663_v10 = vld [vmem:[%s17637_s28 + $0x6ac] ss:$12 sps:$4 sm:$0xff]  }
0x1562   : > { %12453 = vmatpush1.bf16.msra.mxu1 %v16583_v30  ;;  %12427 = vmatprep.subr.bf16.mxu0 %v16588_v5  ;;  %16948 = verf.f32 %v10337_v21  ;;  %v16619_v5 = vld [vmem:[%s17637_s28 + $0x510] ss:$12 sps:$4 sm:$0xff]   ;;  %v10324_v21 = vmul.f32 0.70710677, %v19347_v2  ;;  %v16655_v39 = vld [vmem:[%s17637_s28 + $0x480] ss:$12 sps:$4 sm:$0xff]  }
0x1563   : > { %12454 = vmatprep.subr.bf16.mxu1 %v16591_v57  ;;  %v10336_v57 = vmul.f32 0.70710677, %v19342_v44  ;;  %v16624_v8 = vld [vmem:[%s17637_s28 + $0x43c] ss:$12 sps:$4 sm:$0xff]  }
0x1565   : > { %12428 = vmatpush2.bf16.msra.mxu0 %v16586_v9  ;;  %v16625_v9 = vld [vmem:[%s17637_s28 + $0x4f8] ss:$12 sps:$4 sm:$0xff]   ;;  %16950 = verf.f32 %v10336_v57  ;;  %v16664_v57 = vld [vmem:[%s17637_s28 + $0x5d0] ss:$12 sps:$4 sm:$0xff]  }
0x1566   : > { %12455 = vmatpush1.bf16.msra.mxu1 %v16589_v33  ;;  %12429 = vmatprep.subr.bf16.mxu0 %v16594_v38  ;;  %v16622_v33 = vld [vmem:[%s17637_s28 + $0x438] ss:$12 sps:$4 sm:$0xff]   ;;  %16952 = verf.f32 %v10324_v21  ;;  %v16667_v21 = vld [vmem:[%s17637_s28 + $0x690] ss:$12 sps:$4 sm:$0xff]  }
0x1567   : > { %12456 = vmatprep.subr.bf16.mxu1 %v16597_v45  ;;  %v16633_v38 = vld [vmem:[%s17637_s28 + $0x4e4] ss:$12 sps:$4 sm:$0xff]  }
0x1568   : > { %v16630_v45 = vld [vmem:[%s17637_s28 + $0x424] ss:$12 sps:$4 sm:$0xff]  }
0x1569   : > { %12430 = vmatpush2.bf16.msra.mxu0 %v16592_v35  ;;  %v16631_v35 = vld [vmem:[%s17637_s28 + $0x4e0] ss:$12 sps:$4 sm:$0xff]  }
0x156a   : > { %12457 = vmatpush1.bf16.msra.mxu1 %v16595_v25  ;;  %12431 = vmatprep.subr.bf16.mxu0 %v16600_v0  ;;  %v16628_v25 = vld [vmem:[%s17637_s28 + $0x420] ss:$12 sps:$4 sm:$0xff]  }
0x156b   : > { %12458 = vmatprep.subr.bf16.mxu1 %v16603_v32  ;;  %v16947_v63 = vpop.eup %16946  ;;  %v16639_v0 = vld [vmem:[%s17637_s28 + $0x4cc] ss:$12 sps:$4 sm:$0xff]   ;;  %v16637_v32 = vld [vmem:[%s17637_s28 + $0x4c8] ss:$12 sps:$4 sm:$0xff]  }
0x156c   : > { %v10373_v49 = vadd.f32 1.0, %v16947_v63  ;;  %v16648_v63 = vld [vmem:[%s17637_s28 + $0x3dc] ss:$12 sps:$4 sm:$0xff]  }
0x156d   : > { %12432 = vmatpush2.bf16.msra.mxu0 %v16598_v56  ;;  %v16645_v56 = vld [vmem:[%s17637_s28 + $0x4b4] ss:$12 sps:$4 sm:$0xff]  }
0x156e   : > { %12459 = vmatpush1.bf16.msra.mxu1 %v16601_v23  ;;  %12433 = vmatprep.subr.bf16.mxu0 %v16606_v18  ;;  %v10397_v46 = vmul.f32 %v10373_v49, %v10301_v17  ;;  %v16643_v23 = vld [vmem:[%s17637_s28 + $0x4b0] ss:$12 sps:$4 sm:$0xff]   ;;  %v16660_v49 = vld [vmem:[%s17637_s28 + $0x5ec] ss:$12 sps:$4 sm:$0xff]  }
0x156f   : > { %12460 = vmatprep.subr.bf16.mxu1 %v16609_v34  ;;  %v16949_v27 = vpop.eup %16948  ;;  %v16640_v18 = vld [vmem:[%s17637_s28 + $0x3f0] ss:$12 sps:$4 sm:$0xff]  }
0x1570   : > { %v10385_v52 = vadd.f32 1.0, %v16949_v27  ;;  %v16651_v34 = vld [vmem:[%s17637_s28 + $0x49c] ss:$12 sps:$4 sm:$0xff]   ;;  %v10300_v27 = vmul.f32 0.5, %v19347_v2  ;;  %v16669_v2 = vld [vmem:[%s17637_s28 + $0x694] ss:$12 sps:$4 sm:$0xff]  }
0x1571   : > { %12434 = vmatpush2.bf16.msra.mxu0 %v16604_v16  ;;  %v16657_v16 = vld [vmem:[%s17637_s28 + $0x484] ss:$12 sps:$4 sm:$0xff]  }
0x1572   : > { %12461 = vmatpush1.bf16.msra.mxu1 %v16607_v15  ;;  %12489 = vmatprep.subr.bf16.mxu0 %v16615_v59  ;;  %v10409_v11 = vmul.f32 %v10385_v52, %v10313_v14  ;;  %v16951_v7 = vpop.eup %16950  ;;  %v10312_v59 = vmul.f32 0.5, %v19342_v44  ;;  %v16996_v52 = vld [vmem:[%s17639_s29 + $0x30] sm:$0xff] }
0x1573   : > { %12462 = vmatprep.subr.bf16.mxu1 %v16612_v26  ;;  %v16953_v31 = vpop.eup %16952  ;;  %v10384_v19 = vadd.f32 1.0, %v16951_v7  ;;  %v16652_v26 = vld [vmem:[%s17637_s28 + $0x3c0] ss:$12 sps:$4 sm:$0xff]  }
0x1574   : > { %12436 = vmatmul.mubr.bf16.vlgmr.msra.gmra.mxu0 %v19337_v20  ;;  %v19349_v30 = vpack.c.bf16 %v10409_v11, %v10397_v46  ;;  %v10372_v15 = vadd.f32 1.0, %v16953_v31  ;;  %v16666_v44 = vld [vmem:[%s17637_s28 + $0x5d4] ss:$12 sps:$4 sm:$0xff]   ;;  %v16997_v11 = vld [vmem:[%s17639_s29 + $0x38] sm:$0xff] }
0x1575   : > { %12490 = vmatpush1.bf16.msra.mxu0 %v16613_v60  ;;  %v10408_v12 = vmul.f32 %v10384_v19, %v10312_v59  ;;  %v10115_v14 = vpop.f32.mrf.mxu1  ;;  %v8319_v60 = vrot.slane %v16996_v52, %v19135_v42  ;;  %v16679_v19 = vld [vmem:[%s17637_s28 + $0x660] ss:$12 sps:$4 sm:$0xff]   ;;  %v16694_v52 = vld [vmem:[%s17637_s28 + $0x558] ss:$12 sps:$4 sm:$0xff]  }
0x1576   : > { %12463 = vmatpush2.bf16.msra.mxu1 %v16610_v3  ;;  %12491 = vmatprep.subr.bf16.mxu0 %v16621_v29  ;;  %v10396_v17 = vmul.f32 %v10372_v15, %v10300_v27  ;;  %v16658_v3 = vld [vmem:[%s17637_s28 + $0x5e8] ss:$12 sps:$4 sm:$0xff]   ;;  %v16687_v15 = vld [vmem:[%s17637_s28 + $0x64c] ss:$12 sps:$4 sm:$0xff]  }
0x1577   : > { %12478 = vmatprep.mubr.bf16.mxu1 %v19349_v30  ;;  %12464 = vmatprep.subr.bf16.mxu1 %v16618_v62  ;;  %v16661_v29 = vld [vmem:[%s17637_s28 + $0x6a8] ss:$12 sps:$4 sm:$0xff]   ;;  %v8323_v62 = vrot.slane %v16997_v11, %v19135_v42  ;;  %v16705_v11 = vld [vmem:[%s17637_s28 + $0x604] ss:$12 sps:$4 sm:$0xff]  }
0x1578   : > { %v19389_v46 = vpack.c.bf16 %v10408_v12, %v10396_v17  ;;  %v16693_v27 = vld [vmem:[%s17637_s28 + $0x634] ss:$12 sps:$4 sm:$0xff]   ;;  %v16688_v12 = vld [vmem:[%s17637_s28 + $0x570] ss:$12 sps:$4 sm:$0xff]  }
0x1579   : > { %12492 = vmatpush1.bf16.msra.mxu0 %v16619_v5  ;;  %v16696_v17 = vld [vmem:[%s17637_s28 + $0x55c] ss:$12 sps:$4 sm:$0xff]  }
0x157a   : > { %12465 = vmatpush2.bf16.msra.mxu1 %v16616_v53  ;;  %12493 = vmatprep.subr.bf16.mxu0 %v16627_v43  ;;  %v10117_v53 = vpop.f32.mrf.mxu1 }
0x157b   : > { %12466 = vmatprep.subr.bf16.mxu1 %v16624_v8 }
0x157d   : > { %12494 = vmatpush1.bf16.msra.mxu0 %v16625_v9  ;;  %v16672_v9 = vld [vmem:[%s17637_s28 + $0x5bc] ss:$12 sps:$4 sm:$0xff]  }
0x157e   : > { %12467 = vmatpush2.bf16.msra.mxu1 %v16622_v33  ;;  %12495 = vmatprep.subr.bf16.mxu0 %v16633_v38 }
0x157f   : > { %12468 = vmatprep.subr.bf16.mxu1 %v16630_v45  ;;  %v16675_v45 = vld [vmem:[%s17637_s28 + $0x67c] ss:$12 sps:$4 sm:$0xff]  }
0x1581   : > { %12496 = vmatpush1.bf16.msra.mxu0 %v16631_v35 }
0x1582   : > { %12469 = vmatpush2.bf16.msra.mxu1 %v16628_v25  ;;  %12497 = vmatprep.subr.bf16.mxu0 %v16639_v0  ;;  %v10119_v25 = vpop.f32.mrf.mxu1 }
0x1583   : > { %12470 = vmatprep.subr.bf16.mxu1 %v16636_v6 }
0x1585   : > { %12498 = vmatpush1.bf16.msra.mxu0 %v16637_v32 }
0x1586   : > { %12471 = vmatpush2.bf16.msra.mxu1 %v16634_v41  ;;  %12499 = vmatprep.subr.bf16.mxu0 %v16645_v56  ;;  %v16670_v41 = vld [vmem:[%s17637_s28 + $0x5b8] ss:$12 sps:$4 sm:$0xff]  }
0x1587   : > { %12472 = vmatprep.subr.bf16.mxu1 %v16642_v13  ;;  %v16673_v13 = vld [vmem:[%s17637_s28 + $0x678] ss:$12 sps:$4 sm:$0xff]  }
0x1589   : > { %12500 = vmatpush1.bf16.msra.mxu0 %v16643_v23  ;;  %v16678_v23 = vld [vmem:[%s17637_s28 + $0x5a4] ss:$12 sps:$4 sm:$0xff]  }
0x158a   : > { %12473 = vmatpush2.bf16.msra.mxu1 %v16640_v18  ;;  %12501 = vmatprep.subr.bf16.mxu0 %v16651_v34 }
0x158b   : > { %12474 = vmatprep.subr.bf16.mxu1 %v16648_v63  ;;  %v16681_v63 = vld [vmem:[%s17637_s28 + $0x664] ss:$12 sps:$4 sm:$0xff]  }
0x158d   : > { %12502 = vmatpush1.bf16.msra.mxu0 %v16649_v37  ;;  %v10121_v37 = vpop.f32.mrf.mxu1 }
0x158e   : > { %12475 = vmatpush2.bf16.msra.mxu1 %v16646_v51  ;;  %12503 = vmatprep.subr.bf16.mxu0 %v16657_v16  ;;  %v16676_v51 = vld [vmem:[%s17637_s28 + $0x5a0] ss:$12 sps:$4 sm:$0xff]  }
0x158f   : > { %12476 = vmatprep.subr.bf16.mxu1 %v16654_v4  ;;  %v16684_v4 = vld [vmem:[%s17637_s28 + $0x58c] ss:$12 sps:$4 sm:$0xff]  }
0x1591   : > { %12504 = vmatpush1.bf16.msra.mxu0 %v16655_v39  ;;  %v16682_v39 = vld [vmem:[%s17637_s28 + $0x588] ss:$12 sps:$4 sm:$0xff]  }
0x1592   : > { %12477 = vmatpush2.bf16.msra.mxu1 %v16652_v26  ;;  %12505 = vmatprep.subr.bf16.mxu0 %v16660_v49  ;;  %v16685_v26 = vld [vmem:[%s17637_s28 + $0x648] ss:$12 sps:$4 sm:$0xff]  }
0x1593   : > { %12532 = vmatprep.subr.bf16.mxu1 %v16663_v10  ;;  %v16690_v49 = vld [vmem:[%s17637_s28 + $0x574] ss:$12 sps:$4 sm:$0xff]   ;;  %v16691_v10 = vld [vmem:[%s17637_s28 + $0x630] ss:$12 sps:$4 sm:$0xff]  }
0x1594   : > { %v10072_v5 = vpop.f32.mrf.mxu0 }
0x1595   : > { %v10073_v43 = vadd.f32 %v10072_v5, %v8319_v60  ;;  %12479 = vmatmul.mubr.bf16.vlgmr.msra.gmra.mxu1 %v19389_v46  ;;  %12506 = vmatpush2.bf16.msra.mxu0 %v16658_v3  ;;  %v16697_v3 = vld [vmem:[%s17637_s28 + $0x618] ss:$12 sps:$4 sm:$0xff]   ;;  %v16700_v5 = vld [vmem:[%s17637_s28 + $0x540] ss:$12 sps:$4 sm:$0xff]  }
0x1596   : > { %v10074_v8 = vpop.f32.mrf.mxu0  ;;  %12533 = vmatpush1.bf16.msra.mxu1 %v16661_v29  ;;  %12507 = vmatprep.subr.bf16.mxu0 %v16666_v44  ;;  %v16702_v29 = vld [vmem:[%s17637_s28 + $0x544] ss:$12 sps:$4 sm:$0xff]  }
0x1597   : > { %v19398_v33 = vadd.f32 %v10115_v14, %v10073_v43  ;;  %v10075_v38 = vadd.f32 %v10074_v8, %v8323_v62  ;;  %12534 = vmatprep.subr.bf16.mxu1 %v16669_v2  ;;  %v16699_v14 = vld [vmem:[%s17637_s28 + $0x61c] ss:$12 sps:$4 sm:$0xff]  }
0x1598   : > { %v10076_v35 = vpop.f32.mrf.mxu0 }
0x1599   : > { %v10326_v0 = vmul.f32 0.70710677, %v19398_v33  ;;  %v19402_v6 = vadd.f32 %v10117_v53, %v10075_v38  ;;  %v10077_v32 = vadd.f32 %v10076_v35, %v8319_v60  ;;  %12508 = vmatpush2.bf16.msra.mxu0 %v16664_v57  ;;  %v16703_v53 = vld [vmem:[%s17637_s28 + $0x600] ss:$12 sps:$4 sm:$0xff]  }
0x159a   : > { %v10078_v56 = vpop.f32.mrf.mxu0  ;;  %12535 = vmatpush1.bf16.msra.mxu1 %v16667_v21  ;;  %12509 = vmatprep.subr.bf16.mxu0 %v16672_v9  ;;  %v16732_v57 = vld [vmem:[%s17637_s28 + $0x82c] ss:$12 sps:$4 sm:$0xff]  }
0x159b   : > { %v10327_v18 = vmul.f32 0.70710677, %v19402_v6  ;;  %v10120_v34 = vadd.f32 %v10119_v25, %v10077_v32  ;;  %12536 = vmatprep.subr.bf16.mxu1 %v16675_v45  ;;  %v10079_v7 = vadd.f32 %v10078_v56, %v8323_v62  ;;  %16954 = verf.f32 %v10326_v0  ;;  %v16708_v38 = vld [vmem:[%s17637_s28 + $0x76c] ss:$12 sps:$4 sm:$0xff]  }
0x159c   : > { %v10303_v45 = vmul.f32 0.5, %v19402_v6  ;;  %v10302_v0 = vmul.f32 0.5, %v19398_v33  ;;  %v16711_v6 = vld [vmem:[%s17637_s28 + $0x754] ss:$12 sps:$4 sm:$0xff]   ;;  %v16999_v33 = vld [vmem:[%s17639_s29 + $0x48] sm:$0xff] }
0x159d   : > { %v10338_v31 = vmul.f32 0.70710677, %v10120_v34  ;;  %12510 = vmatpush2.bf16.msra.mxu0 %v16670_v41  ;;  %16956 = verf.f32 %v10327_v18  ;;  %v10122_v16 = vadd.f32 %v10121_v37, %v10079_v7  ;;  %v10314_v9 = vmul.f32 0.5, %v10120_v34  ;;  %v16998_v41 = vld [vmem:[%s17639_s29 + $0x40] sm:$0xff] }
0x159e   : > { %12537 = vmatpush1.bf16.msra.mxu1 %v16673_v13  ;;  %12511 = vmatprep.subr.bf16.mxu0 %v16678_v23  ;;  %v8327_v56 = vrot.slane %v16998_v41, %v19135_v42  ;;  %v16706_v18 = vld [vmem:[%s17637_s28 + $0x768] ss:$12 sps:$4 sm:$0xff]   ;;  %v8331_v37 = vrot.slane %v16999_v33, %v19135_v42  ;;  %v16729_v33 = vld [vmem:[%s17637_s28 + $0x6c4] ss:$12 sps:$4 sm:$0xff]  }
0x159f   : > { %16958 = verf.f32 %v10338_v31  ;;  %12538 = vmatprep.subr.bf16.mxu1 %v16681_v63  ;;  %v10339_v59 = vmul.f32 0.70710677, %v10122_v16  ;;  %v10315_v35 = vmul.f32 0.5, %v10122_v16  ;;  %v16730_v31 = vld [vmem:[%s17637_s28 + $0x828] ss:$12 sps:$4 sm:$0xff]  }
0x15a0   : > { %v16750_v41 = vld [vmem:[%s17637_s28 + $0x7c8] ss:$12 sps:$4 sm:$0xff]  }
0x15a1   : > { %12512 = vmatpush2.bf16.msra.mxu0 %v16676_v51  ;;  %16960 = verf.f32 %v10339_v59  ;;  %v16709_v59 = vld [vmem:[%s17637_s28 + $0x750] ss:$12 sps:$4 sm:$0xff]  }
0x15a2   : > { %12539 = vmatpush1.bf16.msra.mxu1 %v16679_v19  ;;  %12513 = vmatprep.subr.bf16.mxu0 %v16684_v4  ;;  %v16737_v19 = vld [vmem:[%s17637_s28 + $0x814] ss:$12 sps:$4 sm:$0xff]  }
0x15a3   : > { %12540 = vmatprep.subr.bf16.mxu1 %v16687_v15 }
0x15a5   : > { %12514 = vmatpush2.bf16.msra.mxu0 %v16682_v39 }
0x15a6   : > { %12541 = vmatpush1.bf16.msra.mxu1 %v16685_v26  ;;  %12515 = vmatprep.subr.bf16.mxu0 %v16690_v49  ;;  %v16714_v26 = vld [vmem:[%s17637_s28 + $0x73c] ss:$12 sps:$4 sm:$0xff]  }
0x15a7   : > { %12542 = vmatprep.subr.bf16.mxu1 %v16693_v27 }
0x15a8   : > { %v16955_v60 = vpop.eup %16954 }
0x15a9   : > { %12516 = vmatpush2.bf16.msra.mxu0 %v16688_v12  ;;  %v10374_v21 = vadd.f32 1.0, %v16955_v60  ;;  %v16735_v12 = vld [vmem:[%s17637_s28 + $0x810] ss:$12 sps:$4 sm:$0xff]  }
0x15aa   : > { %12543 = vmatpush1.bf16.msra.mxu1 %v16691_v10  ;;  %12517 = vmatprep.subr.bf16.mxu0 %v16696_v17  ;;  %v16957_v44 = vpop.eup %16956  ;;  %v16742_v17 = vld [vmem:[%s17637_s28 + $0x7fc] ss:$12 sps:$4 sm:$0xff]  }
0x15ab   : > { %12544 = vmatprep.subr.bf16.mxu1 %v16699_v14  ;;  %v10375_v43 = vadd.f32 1.0, %v16957_v44  ;;  %v10398_v34 = vmul.f32 %v10374_v21, %v10302_v0  ;;  %v16715_v21 = vld [vmem:[%s17637_s28 + $0x720] ss:$12 sps:$4 sm:$0xff]   ;;  %v16718_v0 = vld [vmem:[%s17637_s28 + $0x708] ss:$12 sps:$4 sm:$0xff]  }
0x15ac   : > { %v16959_v62 = vpop.eup %16958 }
0x15ad   : > { %v10386_v2 = vadd.f32 1.0, %v16959_v62  ;;  %12518 = vmatpush2.bf16.msra.mxu0 %v16694_v52  ;;  %v10399_v13 = vmul.f32 %v10375_v43, %v10303_v45  ;;  %v16747_v43 = vld [vmem:[%s17637_s28 + $0x7e4] ss:$12 sps:$4 sm:$0xff]   ;;  %v16745_v45 = vld [vmem:[%s17637_s28 + $0x7e0] ss:$12 sps:$4 sm:$0xff]  }
0x15ae   : > { %12545 = vmatpush1.bf16.msra.mxu1 %v16697_v3  ;;  %12519 = vmatprep.subr.bf16.mxu0 %v16702_v29  ;;  %v16961_v8 = vpop.eup %16960  ;;  %v16712_v29 = vld [vmem:[%s17637_s28 + $0x738] ss:$12 sps:$4 sm:$0xff]  }
0x15af   : > { %12546 = vmatprep.subr.bf16.mxu1 %v16705_v11  ;;  %v10387_v25 = vadd.f32 1.0, %v16961_v8  ;;  %v10410_v32 = vmul.f32 %v10386_v2, %v10314_v9  ;;  %v16717_v11 = vld [vmem:[%s17637_s28 + $0x724] ss:$12 sps:$4 sm:$0xff]  }
0x15b1   : > { %12520 = vmatpush2.bf16.msra.mxu0 %v16700_v5  ;;  %v10411_v23 = vmul.f32 %v10387_v25, %v10315_v35  ;;  %v19440_v16 = vpack.c.bf16 %v10410_v32, %v10398_v34  ;;  %v16740_v5 = vld [vmem:[%s17637_s28 + $0x7f8] ss:$12 sps:$4 sm:$0xff]   ;;  %v16723_v32 = vld [vmem:[%s17637_s28 + $0x6f4] ss:$12 sps:$4 sm:$0xff]   ;;  %v16762_v34 = vld [vmem:[%s17637_s28 + $0x79c] ss:$12 sps:$4 sm:$0xff]  }
0x15b2   : > { %12547 = vmatpush1.bf16.msra.mxu1 %v16703_v53  ;;  %12575 = vmatprep.subr.bf16.mxu0 %v16732_v57  ;;  %v16752_v25 = vld [vmem:[%s17637_s28 + $0x7cc] ss:$12 sps:$4 sm:$0xff]  }
0x15b3   : > { %12548 = vmatprep.subr.bf16.mxu1 %v16708_v38  ;;  %v19435_v7 = vpack.c.bf16 %v10411_v23, %v10399_v13  ;;  %v16720_v38 = vld [vmem:[%s17637_s28 + $0x70c] ss:$12 sps:$4 sm:$0xff]   ;;  %v16721_v13 = vld [vmem:[%s17637_s28 + $0x6f0] ss:$12 sps:$4 sm:$0xff]  }
0x15b4   : > { %v10201_v63 = vpop.f32.mrf.mxu0  ;;  %v16726_v23 = vld [vmem:[%s17637_s28 + $0x6dc] ss:$12 sps:$4 sm:$0xff]  }
0x15b5   : > { %v10158_v51 = vpop.f32.mrf.mxu1  ;;  %12521 = vmatprep.mubr.bf16.mxu0 %v19435_v7 }
0x15b6   : > { %v10159_v4 = vadd.f32 %v10158_v51, %v8327_v56  ;;  %v10203_v15 = vpop.f32.mrf.mxu0  ;;  %12549 = vmatpush2.bf16.msra.mxu1 %v16706_v18  ;;  %12522 = vmatmul.mubr.bf16.vlgmr.msra.gmra.mxu0 %v19440_v16  ;;  %v16755_v18 = vld [vmem:[%s17637_s28 + $0x7b0] ss:$12 sps:$4 sm:$0xff]  }
0x15b7   : > { %v10160_v39 = vpop.f32.mrf.mxu1  ;;  %12550 = vmatprep.subr.bf16.mxu1 %v16711_v6  ;;  %12576 = vmatpush1.bf16.msra.mxu0 %v16730_v31  ;;  %v16724_v6 = vld [vmem:[%s17637_s28 + $0x6d8] ss:$12 sps:$4 sm:$0xff]  }
0x15b8   : > { %v19447_v49 = vadd.f32 %v10201_v63, %v10159_v4  ;;  %v10161_v27 = vadd.f32 %v10160_v39, %v8331_v37  ;;  %12577 = vmatprep.subr.bf16.mxu0 %v16737_v19  ;;  %v10205_v60 = vpop.f32.mrf.mxu0  ;;  %v16760_v31 = vld [vmem:[%s17637_s28 + $0x798] ss:$12 sps:$4 sm:$0xff]   ;;  %v16733_v39 = vld [vmem:[%s17637_s28 + $0x170] ss:$12 sps:$4 sm:$0xff]  }
0x15b9   : > { %v10162_v10 = vpop.f32.mrf.mxu1  ;;  %v16767_v19 = vld [vmem:[%s17637_s28 + $0x784] ss:$12 sps:$4 sm:$0xff]  }
0x15ba   : > { %v10328_v14 = vmul.f32 0.70710677, %v19447_v49  ;;  %v19452_v52 = vadd.f32 %v10203_v15, %v10161_v27  ;;  %v10163_v3 = vadd.f32 %v10162_v10, %v8327_v56  ;;  %12551 = vmatpush2.bf16.msra.mxu1 %v16709_v59  ;;  %v10207_v8 = vpop.f32.mrf.mxu0  ;;  %v16757_v56 = vld [vmem:[%s17637_s28 + $0x7b4] ss:$12 sps:$4 sm:$0xff]  }
0x15bb   : > { %v10164_v44 = vpop.f32.mrf.mxu1  ;;  %12552 = vmatprep.subr.bf16.mxu1 %v16714_v26  ;;  %12578 = vmatpush1.bf16.msra.mxu0 %v16735_v12  ;;  %v16727_v15 = vld [vmem:[%s17637_s28 + $0x6c0] ss:$12 sps:$4 sm:$0xff]  }
0x15bc   : > { %v10329_v62 = vmul.f32 0.70710677, %v19452_v52  ;;  %v10206_v2 = vadd.f32 %v10205_v60, %v10163_v3  ;;  %v10165_v53 = vadd.f32 %v10164_v44, %v8331_v37  ;;  %12579 = vmatprep.subr.bf16.mxu0 %v16742_v17  ;;  %16962 = verf.f32 %v10328_v14  ;;  %v16765_v10 = vld [vmem:[%s17637_s28 + $0x780] ss:$12 sps:$4 sm:$0xff]  }
0x15bd   : > { %v10305_v17 = vmul.f32 0.5, %v19452_v52  ;;  %v16772_v3 = vld [vmem:[%s17637_s28 + $0x8ec] ss:$12 sps:$4 sm:$0xff]  }
0x15be   : > { %v10340_v57 = vmul.f32 0.70710677, %v10206_v2  ;;  %12553 = vmatpush2.bf16.msra.mxu1 %v16712_v29  ;;  %16964 = verf.f32 %v10329_v62  ;;  %v10208_v9 = vadd.f32 %v10207_v8, %v10165_v53  ;;  %v10316_v12 = vmul.f32 0.5, %v10206_v2  ;;  %v16734_v53 = vld [vmem:[%s17637_s28 + $0xb0] ss:$12 sps:$4 sm:$0xff]  }
0x15bf   : > { %12554 = vmatprep.subr.bf16.mxu1 %v16717_v11  ;;  %12580 = vmatpush1.bf16.msra.mxu0 %v16740_v5  ;;  %v10304_v29 = vmul.f32 0.5, %v19447_v49  ;;  %v16770_v5 = vld [vmem:[%s17637_s28 + $0x8e8] ss:$12 sps:$4 sm:$0xff]   ;;  %v16738_v49 = vld [vmem:[%s17637_s28 + $0x158] ss:$12 sps:$4 sm:$0xff]  }
0x15c0   : > { %16966 = verf.f32 %v10340_v57  ;;  %v10341_v35 = vmul.f32 0.70710677, %v10208_v9  ;;  %12581 = vmatprep.subr.bf16.mxu0 %v16747_v43  ;;  %v10317_v14 = vmul.f32 0.5, %v10208_v9  ;;  %v16777_v57 = vld [vmem:[%s17637_s28 + $0x8d4] ss:$12 sps:$4 sm:$0xff]  }
0x15c1   : > { %v16775_v8 = vld [vmem:[%s17637_s28 + $0x8d0] ss:$12 sps:$4 sm:$0xff]  }
0x15c2   : > { %12555 = vmatpush2.bf16.msra.mxu1 %v16715_v21  ;;  %16968 = verf.f32 %v10341_v35  ;;  %v16739_v21 = vld [vmem:[%s17637_s28 + $0x98] ss:$12 sps:$4 sm:$0xff]   ;;  %v16782_v9 = vld [vmem:[%s17637_s28 + $0x8bc] ss:$12 sps:$4 sm:$0xff]   ;;  %v16744_v35 = vld [vmem:[%s17637_s28 + $0x80] ss:$12 sps:$4 sm:$0xff]  }
0x15c3   : > { %12556 = vmatprep.subr.bf16.mxu1 %v16720_v38  ;;  %12582 = vmatpush1.bf16.msra.mxu0 %v16745_v45  ;;  %v16743_v38 = vld [vmem:[%s17637_s28 + $0x140] ss:$12 sps:$4 sm:$0xff]   ;;  %v16780_v45 = vld [vmem:[%s17637_s28 + $0x8b8] ss:$12 sps:$4 sm:$0xff]  }
0x15c4   : > { %12583 = vmatprep.subr.bf16.mxu0 %v16752_v25  ;;  %v16787_v25 = vld [vmem:[%s17637_s28 + $0x8a4] ss:$12 sps:$4 sm:$0xff]  }
0x15c6   : > { %12557 = vmatpush2.bf16.msra.mxu1 %v16718_v0  ;;  %v16748_v0 = vld [vmem:[%s17637_s28 + $0x128] ss:$12 sps:$4 sm:$0xff]  }
0x15c7   : > { %12558 = vmatprep.subr.bf16.mxu1 %v16723_v32  ;;  %12584 = vmatpush1.bf16.msra.mxu0 %v16750_v41  ;;  %v16749_v32 = vld [vmem:[%s17637_s28 + $0x68] ss:$12 sps:$4 sm:$0xff]   ;;  %v16792_v41 = vld [vmem:[%s17637_s28 + $0x88c] ss:$12 sps:$4 sm:$0xff]  }
0x15c8   : > { %12585 = vmatprep.subr.bf16.mxu0 %v16757_v56  ;;  %v16753_v56 = vld [vmem:[%s17637_s28 + $0x110] ss:$12 sps:$4 sm:$0xff]  }
0x15c9   : > { %v16963_v63 = vpop.eup %16962 }
0x15ca   : > { %12559 = vmatpush2.bf16.msra.mxu1 %v16721_v13  ;;  %v10376_v27 = vadd.f32 1.0, %v16963_v63  ;;  %v16790_v13 = vld [vmem:[%s17637_s28 + $0x888] ss:$12 sps:$4 sm:$0xff]   ;;  %v16759_v63 = vld [vmem:[%s17637_s28 + $0x38] ss:$12 sps:$4 sm:$0xff]  }
0x15cb   : > { %12560 = vmatprep.subr.bf16.mxu1 %v16726_v23  ;;  %v16965_v37 = vpop.eup %16964  ;;  %12586 = vmatpush1.bf16.msra.mxu0 %v16755_v18  ;;  %v16754_v23 = vld [vmem:[%s17637_s28 + $0x50] ss:$12 sps:$4 sm:$0xff]   ;;  %v16797_v18 = vld [vmem:[%s17637_s28 + $0x874] ss:$12 sps:$4 sm:$0xff]  }
0x15cc   : > { %12587 = vmatprep.subr.bf16.mxu0 %v16762_v34  ;;  %v10377_v59 = vadd.f32 1.0, %v16965_v37  ;;  %v10400_v2 = vmul.f32 %v10376_v27, %v10304_v29  ;;  %v16758_v34 = vld [vmem:[%s17637_s28 + $0xf8] ss:$12 sps:$4 sm:$0xff]   ;;  %v16763_v37 = vld [vmem:[%s17637_s28 + $0xe0] ss:$12 sps:$4 sm:$0xff]  }
0x15cd   : > { %v16967_v51 = vpop.eup %16966 }
0x15ce   : > { %v10388_v4 = vadd.f32 1.0, %v16967_v51  ;;  %12561 = vmatpush2.bf16.msra.mxu1 %v16724_v6  ;;  %v10401_v11 = vmul.f32 %v10377_v59, %v10305_v17  ;;  %v16795_v6 = vld [vmem:[%s17637_s28 + $0x870] ss:$12 sps:$4 sm:$0xff]   ;;  %v16764_v51 = vld [vmem:[%s17637_s28 + $0x20] ss:$12 sps:$4 sm:$0xff]  }
0x15cf   : > { %12562 = vmatprep.subr.bf16.mxu1 %v16729_v33  ;;  %v16969_v26 = vpop.eup %16968  ;;  %12588 = vmatpush1.bf16.msra.mxu0 %v16760_v31  ;;  %v16802_v33 = vld [vmem:[%s17637_s28 + $0x85c] ss:$12 sps:$4 sm:$0xff]   ;;  %v16800_v31 = vld [vmem:[%s17637_s28 + $0x858] ss:$12 sps:$4 sm:$0xff]  }
0x15d0   : > { %v10389_v60 = vadd.f32 1.0, %v16969_v26  ;;  %12589 = vmatprep.subr.bf16.mxu0 %v16767_v19  ;;  %v10412_v44 = vmul.f32 %v10388_v4, %v10316_v12  ;;  %v16807_v19 = vld [vmem:[%s17637_s28 + $0x844] ss:$12 sps:$4 sm:$0xff]   ;;  %v16768_v4 = vld [vmem:[%s17637_s28 + $0xc8] ss:$12 sps:$4 sm:$0xff]  }
0x15d1   : > { %v17000_v26 = vld [vmem:[%s17639_s29 + $0x50] sm:$0xff]  ;;  %v17001_v17 = vld [vmem:[%s17639_s29 + $0x58] sm:$0xff] }
0x15d2   : > { %12563 = vmatpush2.bf16.msra.mxu1 %v16727_v15  ;;  %v10413_v62 = vmul.f32 %v10389_v60, %v10317_v14  ;;  %v19485_v43 = vpack.c.bf16 %v10412_v44, %v10400_v2  ;;  %v16805_v15 = vld [vmem:[%s17637_s28 + $0x840] ss:$12 sps:$4 sm:$0xff]   ;;  %v8335_v27 = vrot.slane %v17000_v26, %v19135_v42  ;;  %v16810_v12 = vld [vmem:[%s17637_s28 + $0x2f0] ss:$12 sps:$4 sm:$0xff]   ;;  %v8339_v14 = vrot.slane %v17001_v17, %v19135_v42 }
0x15d3   : > { %14637 = vmatprep.subr.bf16.mxu1 %v16733_v39  ;;  %12590 = vmatpush1.bf16.msra.mxu0 %v16765_v10  ;;  %v16769_v39 = vld [vmem:[%s17637_s28 + $0x8] ss:$12 sps:$4 sm:$0xff]   ;;  %v16773_v10 = vld [vmem:[%s17637_s28 + $0x470] ss:$12 sps:$4 sm:$0xff]  }
0x15d4   : > { %v19482_v52 = vpack.c.bf16 %v10413_v62, %v10401_v11  ;;  %12591 = vmatprep.subr.bf16.mxu0 %v16772_v3  ;;  %v16774_v44 = vld [vmem:[%s17637_s28 + $0x3b0] ss:$12 sps:$4 sm:$0xff]   ;;  %v16778_v62 = vld [vmem:[%s17637_s28 + $0x458] ss:$12 sps:$4 sm:$0xff]  }
0x15d5   : > { %v10287_v59 = vpop.f32.mrf.mxu1 }
0x15d6   : > { %12564 = vmatprep.mubr.bf16.mxu1 %v19482_v52 }
0x15d7   : > { %12565 = vmatmul.mubr.bf16.vlgmr.msra.gmra.mxu1 %v19485_v43  ;;  %12592 = vmatpush2.bf16.msra.mxu0 %v16770_v5  ;;  %v10289_v3 = vpop.f32.mrf.mxu1 }
0x15d8   : > { %14638 = vmatpush3.bf16.msra.mxu1 %v16734_v53  ;;  %12650 = vmatprep.mubr.bf16.mxu1 %v19193_v58  ;;  %v16785_v58 = vld [vmem:[%s17637_s28 + $0x8a0] ss:$12 sps:$4 sm:$0xff]  }
0x15d9   : > { %14639 = vmatprep.subr.bf16.mxu1 %v16738_v49  ;;  %12593 = vmatprep.subr.bf16.mxu0 %v16777_v57  ;;  %v10291_v49 = vpop.f32.mrf.mxu1 }
0x15db   : > { %12594 = vmatpush2.bf16.msra.mxu0 %v16775_v8 }
0x15dc   : > { %14640 = vmatpush3.bf16.msra.mxu1 %v16739_v21  ;;  %12595 = vmatprep.subr.bf16.mxu0 %v16782_v9  ;;  %v16779_v21 = vld [vmem:[%s17637_s28 + $0x398] ss:$12 sps:$4 sm:$0xff]  }
0x15dd   : > { %14641 = vmatprep.subr.bf16.mxu1 %v16743_v38  ;;  %v16783_v38 = vld [vmem:[%s17637_s28 + $0x440] ss:$12 sps:$4 sm:$0xff]  }
0x15df   : > { %12596 = vmatpush2.bf16.msra.mxu0 %v16780_v45 }
0x15e0   : > { %14642 = vmatpush3.bf16.msra.mxu1 %v16744_v35  ;;  %12597 = vmatprep.subr.bf16.mxu0 %v16787_v25 }
0x15e1   : > { %14643 = vmatprep.subr.bf16.mxu1 %v16748_v0 }
0x15e3   : > { %12598 = vmatpush2.bf16.msra.mxu0 %v16785_v58  ;;  %v16784_v58 = vld [vmem:[%s17637_s28 + $0x380] ss:$12 sps:$4 sm:$0xff]  }
0x15e4   : > { %14644 = vmatpush3.bf16.msra.mxu1 %v16749_v32  ;;  %12599 = vmatprep.subr.bf16.mxu0 %v16792_v41  ;;  %v16788_v32 = vld [vmem:[%s17637_s28 + $0x428] ss:$12 sps:$4 sm:$0xff]  }
0x15e5   : > { %14645 = vmatprep.subr.bf16.mxu1 %v16753_v56  ;;  %v16789_v56 = vld [vmem:[%s17637_s28 + $0x368] ss:$12 sps:$4 sm:$0xff]  }
0x15e7   : > { %12600 = vmatpush2.bf16.msra.mxu0 %v16790_v13  ;;  %v16793_v13 = vld [vmem:[%s17637_s28 + $0x410] ss:$12 sps:$4 sm:$0xff]  }
0x15e8   : > { %14646 = vmatpush3.bf16.msra.mxu1 %v16754_v23  ;;  %12601 = vmatprep.subr.bf16.mxu0 %v16797_v18  ;;  %v16794_v23 = vld [vmem:[%s17637_s28 + $0x350] ss:$12 sps:$4 sm:$0xff]   ;;  %v16798_v18 = vld [vmem:[%s17637_s28 + $0x3f8] ss:$12 sps:$4 sm:$0xff]  }
0x15e9   : > { %14647 = vmatprep.subr.bf16.mxu1 %v16758_v34  ;;  %v16799_v34 = vld [vmem:[%s17637_s28 + $0x338] ss:$12 sps:$4 sm:$0xff]  }
0x15eb   : > { %12602 = vmatpush2.bf16.msra.mxu0 %v16795_v6 }
0x15ec   : > { %14648 = vmatpush3.bf16.msra.mxu1 %v16759_v63  ;;  %12603 = vmatprep.subr.bf16.mxu0 %v16802_v33  ;;  %v16803_v63 = vld [vmem:[%s17637_s28 + $0x3e0] ss:$12 sps:$4 sm:$0xff]  }
0x15ed   : > { %14649 = vmatprep.subr.bf16.mxu1 %v16763_v37 }
0x15ef   : > { %12604 = vmatpush2.bf16.msra.mxu0 %v16800_v31 }
0x15f0   : > { %14650 = vmatpush3.bf16.msra.mxu1 %v16764_v51  ;;  %12605 = vmatprep.subr.bf16.mxu0 %v16807_v19  ;;  %v16804_v51 = vld [vmem:[%s17637_s28 + $0x320] ss:$12 sps:$4 sm:$0xff]   ;;  %v16808_v19 = vld [vmem:[%s17637_s28 + $0x3c8] ss:$12 sps:$4 sm:$0xff]  }
0x15f1   : > { %14651 = vmatprep.subr.bf16.mxu1 %v16768_v4 }
0x15f3   : > { %12606 = vmatpush2.bf16.msra.mxu0 %v16805_v15 }
0x15f4   : > { %v10244_v60 = vpop.f32.mrf.mxu0  ;;  %14652 = vmatpush3.bf16.msra.mxu1 %v16769_v39  ;;  %14659 = vmatprep.subr.bf16.mxu0 %v16810_v12 }
0x15f5   : > { %v10245_v29 = vadd.f32 %v10244_v60, %v8335_v27  ;;  %14681 = vmatprep.subr.bf16.mxu1 %v16773_v10 }
0x15f6   : > { %v10246_v11 = vpop.f32.mrf.mxu0 }
0x15f7   : > { %v10288_v2 = vadd.f32 %v10287_v59, %v10245_v29  ;;  %v10247_v5 = vadd.f32 %v10246_v11, %v8339_v14  ;;  %12651 = vmatmul.mubr.bf16.vlgmr.msra.gmra.mxu1 %v19187_v55  ;;  %v10293_v55 = vpop.f32.mrf.mxu1  ;;  %v16812_v29 = vld [vmem:[%s17637_s28 + $0x770] ss:$12 sps:$4 sm:$0xff]  }
0x15f8   : > { %v10248_v53 = vpop.f32.mrf.mxu0  ;;  %14682 = vmatpush3.bf16.msra.mxu1 %v16774_v44  ;;  %12732 = vmatprep.mubr.bf16.mxu1 %v19349_v30 }
0x15f9   : > { %v10330_v57 = vmul.f32 0.70710677, %v10288_v2  ;;  %v10290_v42 = vadd.f32 %v10289_v3, %v10247_v5  ;;  %v10249_v8 = vadd.f32 %v10248_v53, %v8335_v27  ;;  %14683 = vmatprep.subr.bf16.mxu1 %v16778_v62  ;;  %v10306_v10 = vmul.f32 0.5, %v10288_v2  ;;  %v16811_v62 = vld [vmem:[%s17637_s28 + $0x230] ss:$12 sps:$4 sm:$0xff]  }
0x15fa   : > { %v10250_v9 = vpop.f32.mrf.mxu0  ;;  %v16813_v2 = vld [vmem:[%s17637_s28 + $0x6b0] ss:$12 sps:$4 sm:$0xff]   ;;  %v16814_v53 = vld [vmem:[%s17637_s28 + $0x2d8] ss:$12 sps:$4 sm:$0xff]  }
0x15fb   : > { %v10331_v45 = vmul.f32 0.70710677, %v10290_v42  ;;  %v10292_v35 = vadd.f32 %v10291_v49, %v10249_v8  ;;  %v10251_v25 = vadd.f32 %v10250_v9, %v8339_v14  ;;  %16970 = verf.f32 %v10330_v57  ;;  %v16809_v14 = vld [vmem:[%s17637_s28 + $0x308] ss:$12 sps:$4 sm:$0xff]   ;;  %v16816_v49 = vld [vmem:[%s17637_s28 + $0x758] ss:$12 sps:$4 sm:$0xff]  }
0x15fc   : > { %14684 = vmatpush3.bf16.msra.mxu1 %v16779_v21  ;;  %v10307_v26 = vmul.f32 0.5, %v10290_v42  ;;  %v16815_v57 = vld [vmem:[%s17637_s28 + $0x218] ss:$12 sps:$4 sm:$0xff]   ;;  %v16818_v8 = vld [vmem:[%s17637_s28 + $0x2c0] ss:$12 sps:$4 sm:$0xff]  }
0x15fd   : > { %v10342_v0 = vmul.f32 0.70710677, %v10292_v35  ;;  %16972 = verf.f32 %v10331_v45  ;;  %v10294_v30 = vadd.f32 %v10293_v55, %v10251_v25  ;;  %14685 = vmatprep.subr.bf16.mxu1 %v16783_v38  ;;  %v10318_v39 = vmul.f32 0.5, %v10292_v35  ;;  %v16817_v42 = vld [vmem:[%s17637_s28 + $0x698] ss:$12 sps:$4 sm:$0xff]  }
0x15fe   : > { %v16820_v21 = vld [vmem:[%s17637_s28 + $0x740] ss:$12 sps:$4 sm:$0xff]   ;;  %v16824_v38 = vld [vmem:[%s17637_s28 + $0x728] ss:$12 sps:$4 sm:$0xff]   ;;  %v16826_v35 = vld [vmem:[%s17637_s28 + $0x290] ss:$12 sps:$4 sm:$0xff]  }
0x15ff   : > { %16974 = verf.f32 %v10342_v0  ;;  %v10343_v41 = vmul.f32 0.70710677, %v10294_v30  ;;  %v10319_v27 = vmul.f32 0.5, %v10294_v30  ;;  %v16819_v9 = vld [vmem:[%s17637_s28 + $0x200] ss:$12 sps:$4 sm:$0xff]  }
0x1600   : > { %14686 = vmatpush3.bf16.msra.mxu1 %v16784_v58  ;;  %v16825_v45 = vld [vmem:[%s17637_s28 + $0x668] ss:$12 sps:$4 sm:$0xff]   ;;  %v16828_v25 = vld [vmem:[%s17637_s28 + $0x710] ss:$12 sps:$4 sm:$0xff]   ;;  %v16830_v58 = vld [vmem:[%s17637_s28 + $0x278] ss:$12 sps:$4 sm:$0xff]  }
0x1601   : > { %16976 = verf.f32 %v10343_v41  ;;  %14687 = vmatprep.subr.bf16.mxu1 %v16788_v32  ;;  %v16827_v55 = vld [vmem:[%s17637_s28 + $0x1d0] ss:$12 sps:$4 sm:$0xff]   ;;  %v16832_v30 = vld [vmem:[%s17637_s28 + $0x6f8] ss:$12 sps:$4 sm:$0xff]  }
0x1602   : > { %v16829_v0 = vld [vmem:[%s17637_s28 + $0x650] ss:$12 sps:$4 sm:$0xff]   ;;  %v16831_v32 = vld [vmem:[%s17637_s28 + $0x1b8] ss:$12 sps:$4 sm:$0xff]  }
0x1603   : > { %v16833_v41 = vld [vmem:[%s17637_s28 + $0x638] ss:$12 sps:$4 sm:$0xff]  }
0x1604   : > { %14688 = vmatpush3.bf16.msra.mxu1 %v16789_v56  ;;  %v16834_v56 = vld [vmem:[%s17637_s28 + $0x260] ss:$12 sps:$4 sm:$0xff]  }
0x1605   : > { %14689 = vmatprep.subr.bf16.mxu1 %v16793_v13  ;;  %v16836_v13 = vld [vmem:[%s17637_s28 + $0x6e0] ss:$12 sps:$4 sm:$0xff]  }
0x1608   : > { %14690 = vmatpush3.bf16.msra.mxu1 %v16794_v23  ;;  %v16971_v6 = vpop.eup %16970  ;;  %v16835_v23 = vld [vmem:[%s17637_s28 + $0x1a0] ss:$12 sps:$4 sm:$0xff]  }
0x1609   : > { %14691 = vmatprep.subr.bf16.mxu1 %v16798_v18  ;;  %v10378_v59 = vadd.f32 1.0, %v16971_v6  ;;  %v16837_v18 = vld [vmem:[%s17637_s28 + $0x620] ss:$12 sps:$4 sm:$0xff]   ;;  %v16840_v6 = vld [vmem:[%s17637_s28 + $0x6c8] ss:$12 sps:$4 sm:$0xff]  }
0x160a   : > { %v16973_v33 = vpop.eup %16972 }
0x160b   : > { %v10379_v4 = vadd.f32 1.0, %v16973_v33  ;;  %v10402_v44 = vmul.f32 %v10378_v59, %v10306_v10  ;;  %v16841_v33 = vld [vmem:[%s17637_s28 + $0x608] ss:$12 sps:$4 sm:$0xff]  }
0x160c   : > { %v16975_v37 = vpop.eup %16974  ;;  %14692 = vmatpush3.bf16.msra.mxu1 %v16799_v34  ;;  %v16838_v34 = vld [vmem:[%s17637_s28 + $0x248] ss:$12 sps:$4 sm:$0xff]  }
0x160d   : > { %v10390_v31 = vadd.f32 1.0, %v16975_v37  ;;  %14693 = vmatprep.subr.bf16.mxu1 %v16803_v63  ;;  %v10403_v60 = vmul.f32 %v10379_v4, %v10307_v26  ;;  %v16839_v63 = vld [vmem:[%s17637_s28 + $0x188] ss:$12 sps:$4 sm:$0xff]   ;;  %v16842_v37 = vld [vmem:[%s17637_s28 + $0x5f0] ss:$12 sps:$4 sm:$0xff]  }
0x160e   : > { %v16977_v15 = vpop.eup %16976  ;;  %v16846_v4 = vld [vmem:[%s17637_s28 + $0x5c0] ss:$12 sps:$4 sm:$0xff]   ;;  %v16848_v59 = vld [vmem:[%s17637_s28 + $0x5a8] ss:$12 sps:$4 sm:$0xff]   ;;  %v16853_v26 = vld [vmem:[%s17637_s28 + $0x4b8] ss:$12 sps:$4 sm:$0xff]  }
0x160f   : > { %v10391_v12 = vadd.f32 1.0, %v16977_v15  ;;  %v10414_v17 = vmul.f32 %v10390_v31, %v10318_v39  ;;  %v16843_v31 = vld [vmem:[%s17637_s28 + $0x530] ss:$12 sps:$4 sm:$0xff]   ;;  %v16847_v15 = vld [vmem:[%s17637_s28 + $0x500] ss:$12 sps:$4 sm:$0xff]  }
0x1610   : > { %14694 = vmatpush3.bf16.msra.mxu1 %v16804_v51  ;;  %v16844_v51 = vld [vmem:[%s17637_s28 + $0x5d8] ss:$12 sps:$4 sm:$0xff]   ;;  %v16850_v39 = vld [vmem:[%s17637_s28 + $0x590] ss:$12 sps:$4 sm:$0xff]   ;;  %v16856_v10 = vld [vmem:[%s17637_s28 + $0x548] ss:$12 sps:$4 sm:$0xff]  }
0x1611   : > { %14695 = vmatprep.subr.bf16.mxu1 %v16808_v19  ;;  %v10415_v3 = vmul.f32 %v10391_v12, %v10319_v27  ;;  %v19545_v5 = vpack.c.bf16 %v10414_v17, %v10402_v44  ;;  %v16845_v19 = vld [vmem:[%s17637_s28 + $0x518] ss:$12 sps:$4 sm:$0xff]   ;;  %v16854_v27 = vld [vmem:[%s17637_s28 + $0x560] ss:$12 sps:$4 sm:$0xff]   ;;  %v16857_v17 = vld [vmem:[%s17637_s28 + $0x488] ss:$12 sps:$4 sm:$0xff]  }
0x1612   : > { %v16855_v12 = vld [vmem:[%s17637_s28 + $0x4a0] ss:$12 sps:$4 sm:$0xff]  }
0x1613   : > { %v19542_v11 = vpack.c.bf16 %v10415_v3, %v10403_v60  ;;  %v16859_v60 = vld [vmem:[%s17637_s28 + $0x830] ss:$12 sps:$4 sm:$0xff]   ;;  %v16860_v3 = vld [vmem:[%s17637_s28 + $0x8d8] ss:$12 sps:$4 sm:$0xff]   ;;  %v16862_v44 = vld [vmem:[%s17637_s28 + $0x8c0] ss:$12 sps:$4 sm:$0xff]  }
0x1614   : > { %14696 = vmatpush3.bf16.msra.mxu1 %v16809_v14  ;;  %v16858_v14 = vld [vmem:[%s17637_s28 + $0x8f0] ss:$12 sps:$4 sm:$0xff]  }
0x1615   : > { %12607 = vmatprep.mubr.bf16.mxu0 %v19542_v11  ;;  %14725 = vmatprep.subr.bf16.mxu1 %v16812_v29  ;;  %v16861_v29 = vld [vmem:[%s17637_s28 + $0x818] ss:$12 sps:$4 sm:$0xff]  }
0x1616   : > { %12608 = vmatmul.mubr.bf16.vlgmr.msra.gmra.mxu0 %v19545_v5 }
0x1617   : > { %14660 = vmatpush3.bf16.msra.mxu0 %v16811_v62  ;;  %12733 = vmatmul.mubr.bf16.vlgmr.msra.gmra.mxu1 %v19389_v46  ;;  %v16821_v46 = vld [vmem:[%s17637_s28 + $0x680] ss:$12 sps:$4 sm:$0xff]  }
0x1618   : > { %12691 = vmatprep.mubr.bf16.mxu0 %v19284_v40  ;;  %14726 = vmatpush3.bf16.msra.mxu1 %v16813_v2  ;;  %v16822_v40 = vld [vmem:[%s17637_s28 + $0x2a8] ss:$12 sps:$4 sm:$0xff]   ;;  %v16863_v62 = vld [vmem:[%s17637_s28 + $0x800] ss:$12 sps:$4 sm:$0xff]  }
0x1619   : > { %12814 = vmatprep.mubr.bf16.mxu1 %v19482_v52  ;;  %14661 = vmatprep.subr.bf16.mxu0 %v16814_v53  ;;  %v16823_v52 = vld [vmem:[%s17637_s28 + $0x1e8] ss:$12 sps:$4 sm:$0xff]  }
0x161a   : > { %14727 = vmatprep.subr.bf16.mxu1 %v16816_v49  ;;  %v16864_v2 = vld [vmem:[%s17637_s28 + $0x8a8] ss:$12 sps:$4 sm:$0xff]   ;;  %v16867_v49 = vld [vmem:[%s17637_s28 + $0x7d0] ss:$12 sps:$4 sm:$0xff]  }
0x161b   : > { %14662 = vmatpush3.bf16.msra.mxu0 %v16815_v57  ;;  %v16865_v53 = vld [vmem:[%s17637_s28 + $0x7e8] ss:$12 sps:$4 sm:$0xff]   ;;  %v16869_v57 = vld [vmem:[%s17637_s28 + $0x7b8] ss:$12 sps:$4 sm:$0xff]  }
0x161c   : > { %14728 = vmatpush3.bf16.msra.mxu1 %v16817_v42  ;;  %14663 = vmatprep.subr.bf16.mxu0 %v16818_v8  ;;  %v16870_v42 = vld [vmem:[%s17637_s28 + $0x860] ss:$12 sps:$4 sm:$0xff]  }
0x161d   : > { %14729 = vmatprep.subr.bf16.mxu1 %v16820_v21  ;;  %v16871_v8 = vld [vmem:[%s17637_s28 + $0x7a0] ss:$12 sps:$4 sm:$0xff]   ;;  %v16872_v21 = vld [vmem:[%s17637_s28 + $0x848] ss:$12 sps:$4 sm:$0xff]  }
0x161f   : > { %14664 = vmatpush3.bf16.msra.mxu0 %v16819_v9  ;;  %v16873_v9 = vld [vmem:[%s17637_s28 + $0x788] ss:$12 sps:$4 sm:$0xff]  }
0x1620   : > { %14730 = vmatpush3.bf16.msra.mxu1 %v16821_v46  ;;  %14665 = vmatprep.subr.bf16.mxu0 %v16822_v40  ;;  %v12394_v46 = vpop.f32.mrf.mxu1 }
0x1621   : > { %14731 = vmatprep.subr.bf16.mxu1 %v16824_v38 }
0x1622   : > { %v12396_v40 = vpop.f32.mrf.mxu1 }
0x1623   : > { %14666 = vmatpush3.bf16.msra.mxu0 %v16823_v52 }
0x1624   : > { %14732 = vmatpush3.bf16.msra.mxu1 %v16825_v45  ;;  %14667 = vmatprep.subr.bf16.mxu0 %v16826_v35  ;;  %v12398_v38 = vpop.f32.mrf.mxu1 }
0x1625   : > { %14733 = vmatprep.subr.bf16.mxu1 %v16828_v25 }
0x1626   : > { %v12400_v45 = vpop.f32.mrf.mxu1 }
0x1627   : > { %14668 = vmatpush3.bf16.msra.mxu0 %v16827_v55 }
0x1628   : > { %14734 = vmatpush3.bf16.msra.mxu1 %v16829_v0  ;;  %14669 = vmatprep.subr.bf16.mxu0 %v16830_v58  ;;  %v19620_v58 = vsub.s32 5, %v17805_v48 }
0x1629   : > { %14735 = vmatprep.subr.bf16.mxu1 %v16832_v30 }
0x162b   : > { %14670 = vmatpush3.bf16.msra.mxu0 %v16831_v32 }
0x162c   : > { %14736 = vmatpush3.bf16.msra.mxu1 %v16833_v41  ;;  %14671 = vmatprep.subr.bf16.mxu0 %v16834_v56  ;;  %v17002_v56 = vld [vmem:[%s17639_s29] sm:$0xff] }
0x162d   : > { %14737 = vmatprep.subr.bf16.mxu1 %v16836_v13  ;;  %v10815_v13 = vrot.slane %v17002_v56, %v19620_v58 }
0x162f   : > { %14672 = vmatpush3.bf16.msra.mxu0 %v16835_v23  ;;  %v17003_v23 = vld [vmem:[%s17639_s29 + $0x8] sm:$0xff] }
0x1630   : > { %14738 = vmatpush3.bf16.msra.mxu1 %v16837_v18  ;;  %14673 = vmatprep.subr.bf16.mxu0 %v16838_v34  ;;  %v10819_v18 = vrot.slane %v17003_v23, %v19620_v58 }
0x1631   : > { %14739 = vmatprep.subr.bf16.mxu1 %v16840_v6 }
0x1633   : > { %14674 = vmatpush3.bf16.msra.mxu0 %v16839_v63  ;;  %v12395_v63 = vadd.f32 %v12394_v46, %v10815_v13 }
0x1634   : > { %14740 = vmatpush3.bf16.msra.mxu1 %v16841_v33  ;;  %14703 = vmatprep.subr.bf16.mxu0 %v16842_v37  ;;  %v12437_v52 = vpop.f32.mrf.mxu0  ;;  %v12397_v33 = vadd.f32 %v12396_v40, %v10819_v18 }
0x1635   : > { %v12438_v37 = vadd.f32 %v12437_v52, %v12395_v63 }
0x1636   : > { %12692 = vmatmul.mubr.bf16.vlgmr.msra.gmra.mxu0 %v19337_v20  ;;  %v16849_v20 = vld [vmem:[%s17637_s28 + $0x4e8] ss:$12 sps:$4 sm:$0xff]   ;;  %v12439_v35 = vpop.f32.mrf.mxu0 }
0x1637   : > { %14704 = vmatpush3.bf16.msra.mxu0 %v16843_v31  ;;  %12773 = vmatprep.mubr.bf16.mxu0 %v19435_v7  ;;  %v16851_v7 = vld [vmem:[%s17637_s28 + $0x4d0] ss:$12 sps:$4 sm:$0xff]   ;;  %v12440_v48 = vadd.f32 %v12439_v35, %v12397_v33 }
0x1638   : > { %12815 = vmatmul.mubr.bf16.vlgmr.msra.gmra.mxu1 %v19485_v43  ;;  %14705 = vmatprep.subr.bf16.mxu0 %v16844_v51  ;;  %v16852_v43 = vld [vmem:[%s17637_s28 + $0x578] ss:$12 sps:$4 sm:$0xff]   ;;  %v12441_v55 = vpop.f32.mrf.mxu0 }
0x163a   : > { %v12443_v30 = vpop.f32.mrf.mxu0 }
0x163b   : > { %14706 = vmatpush3.bf16.msra.mxu0 %v16845_v19  ;;  %v12399_v19 = vadd.f32 %v12398_v38, %v10815_v13 }
0x163c   : > { %14707 = vmatprep.subr.bf16.mxu0 %v16846_v4 }
0x163f   : > { %14708 = vmatpush3.bf16.msra.mxu0 %v16847_v15  ;;  %v12401_v15 = vadd.f32 %v12400_v45, %v10819_v18 }
0x1640   : > { %14709 = vmatprep.subr.bf16.mxu0 %v16848_v59  ;;  %v12442_v59 = vadd.f32 %v12441_v55, %v12399_v19 }
0x1643   : > { %14710 = vmatpush3.bf16.msra.mxu0 %v16849_v20 }
0x1644   : > { %14711 = vmatprep.subr.bf16.mxu0 %v16850_v39 }
0x1647   : > { %14712 = vmatpush3.bf16.msra.mxu0 %v16851_v7 }
0x1648   : > { %14713 = vmatprep.subr.bf16.mxu0 %v16852_v43 }
0x164b   : > { %14714 = vmatpush3.bf16.msra.mxu0 %v16853_v26  ;;  %v12444_v26 = vadd.f32 %v12443_v30, %v12401_v15 }
0x164c   : > { %14715 = vmatprep.subr.bf16.mxu0 %v16854_v27 }
0x164f   : > { %14716 = vmatpush3.bf16.msra.mxu0 %v16855_v12 }
0x1650   : > { %14717 = vmatprep.subr.bf16.mxu0 %v16856_v10 }
0x1653   : > { %14718 = vmatpush3.bf16.msra.mxu0 %v16857_v17 }
0x1654   : > { %14747 = vmatprep.subr.bf16.mxu0 %v16858_v14 }
0x1655   : > { %v12480_v25 = vpop.f32.mrf.mxu1 }
0x1656   : > { %12774 = vmatmul.mubr.bf16.vlgmr.msra.gmra.mxu0 %v19440_v16  ;;  %v16866_v16 = vld [vmem:[%s17637_s28 + $0x890] ss:$12 sps:$4 sm:$0xff]   ;;  %v12481_v4 = vadd.f32 %v12480_v25, %v12438_v37 }
0x1657   : > { %14748 = vmatpush3.bf16.msra.mxu0 %v16859_v60  ;;  %12855 = vmatprep.mubr.bf16.mxu0 %v19542_v11  ;;  %v16868_v11 = vld [vmem:[%s17637_s28 + $0x878] ss:$12 sps:$4 sm:$0xff]   ;;  %v12482_v0 = vpop.f32.mrf.mxu1 }
0x1658   : > { %14749 = vmatprep.subr.bf16.mxu0 %v16860_v3  ;;  %v12483_v20 = vadd.f32 %v12482_v0, %v12440_v48 }
0x1659   : > { %v12484_v32 = vpop.f32.mrf.mxu1 }
0x165a   : > { %v12485_v27 = vadd.f32 %v12484_v32, %v12442_v59 }
0x165b   : > { %14750 = vmatpush3.bf16.msra.mxu0 %v16861_v29 }
0x165c   : > { %14751 = vmatprep.subr.bf16.mxu0 %v16862_v44 }
0x165f   : > { %14752 = vmatpush3.bf16.msra.mxu0 %v16863_v62 }
0x1660   : > { %14753 = vmatprep.subr.bf16.mxu0 %v16864_v2 }
0x1663   : > { %14754 = vmatpush3.bf16.msra.mxu0 %v16865_v53 }
0x1664   : > { %14755 = vmatprep.subr.bf16.mxu0 %v16866_v16 }
0x1667   : > { %14756 = vmatpush3.bf16.msra.mxu0 %v16867_v49 }
0x1668   : > { %14757 = vmatprep.subr.bf16.mxu0 %v16868_v11 }
0x166b   : > { %14758 = vmatpush3.bf16.msra.mxu0 %v16869_v57 }
0x166c   : > { %14759 = vmatprep.subr.bf16.mxu0 %v16870_v42 }
0x166f   : > { %14760 = vmatpush3.bf16.msra.mxu0 %v16871_v8 }
0x1670   : > { %14761 = vmatprep.subr.bf16.mxu0 %v16872_v21 }
0x1673   : > { %14762 = vmatpush3.bf16.msra.mxu0 %v16873_v9 }
0x1676   : > { %12856 = vmatmul.mubr.bf16.vlgmr.msra.gmra.mxu0 %v19545_v5  ;;  %v12523_v41 = vpop.f32.mrf.mxu0  ;;  %v12486_v5 = vpop.f32.mrf.mxu1 }
0x1677   : > { %v12524_v39 = vadd.f32 %v12523_v41, %v12481_v4  ;;  %v12487_v14 = vadd.f32 %v12486_v5, %v12444_v26  ;;  %v17004_v41 = vld [vmem:[%s17639_s29 + $0x10] sm:$0xff] }
0x1678   : > { %v12525_v34 = vpop.f32.mrf.mxu0  ;;  %v10823_v56 = vrot.slane %v17004_v41, %v19620_v58 }
0x1679   : > { %v12526_v12 = vadd.f32 %v12525_v34, %v12483_v20 }
0x167a   : > { %v12527_v31 = vpop.f32.mrf.mxu0 }
0x167b   : > { %v12528_v60 = vadd.f32 %v12527_v31, %v12485_v27 }
0x167c   : > { %v12529_v7 = vpop.f32.mrf.mxu0 }
0x167d   : > { %v12530_v2 = vadd.f32 %v12529_v7, %v12487_v14 }
0x1697   : > { %v12566_v6 = vpop.f32.mrf.mxu1 }
0x1698   : > { %v12567_v10 = vadd.f32 %v12566_v6, %v12524_v39 }
0x1699   : > { %v12568_v51 = vpop.f32.mrf.mxu1 }
0x169a   : > { %v12569_v3 = vadd.f32 %v12568_v51, %v12526_v12 }
0x169b   : > { %v12570_v43 = vpop.f32.mrf.mxu1 }
0x169c   : > { %v12571_v53 = vadd.f32 %v12570_v43, %v12528_v60 }
0x169d   : > { %v12572_v44 = vpop.f32.mrf.mxu1 }
0x169e   : > { %v12573_v57 = vadd.f32 %v12572_v44, %v12530_v2 }
0x16b7   : > { %v14653_v40 = vpop.f32.mrf.mxu1 }
0x16b9   : > { %v14654_v38 = vpop.f32.mrf.mxu1 }
0x16ba   : > { %v14655_v13 = vadd.f32 %v14654_v38, %v14653_v40 }
0x16bc   : > { %v12653_v34 = vadd.f32 %v14655_v13, %v10823_v56 }
0x16d6   : > { %v12609_v17 = vpop.f32.mrf.mxu0 }
0x16d7   : > { %v12610_v29 = vadd.f32 %v12609_v17, %v12567_v10 }
0x16d8   : > { %v12611_v62 = vpop.f32.mrf.mxu0 }
0x16d9   : > { %v19627_v16 = vadd.f32 %v12610_v29, %v18805_v24  ;;  %v12612_v49 = vadd.f32 %v12611_v62, %v12569_v3 }
0x16da   : > { %v12613_v11 = vpop.f32.mrf.mxu0 }
0x16db   : > { %12870 = vst [vmem:[#allocation2 + $0x28] sm:$0xff] %v19627_v16  ;;  %v19631_v42 = vadd.f32 %v12612_v49, %v18803_v47  ;;  %v12614_v8 = vadd.f32 %v12613_v11, %v12571_v53  ;;  %v14656_v47 = vpop.f32.mrf.mxu1 }
0x16dc   : > { %v12615_v21 = vpop.f32.mrf.mxu0 }
0x16dd   : > { %12871 = vst [vmem:[#allocation2 + $0x10] sm:$0xff] %v19631_v42  ;;  %v19635_v9 = vadd.f32 %v12614_v8, %v18813_v61  ;;  %v12616_v46 = vadd.f32 %v12615_v21, %v12573_v57  ;;  %v14657_v45 = vpop.f32.mrf.mxu1 }
0x16de   : > { %v14658_v6 = vadd.f32 %v14657_v45, %v14656_v47 }
0x16df   : > { %12873 = vst [vmem:[#allocation2] sm:$0xff] %v19635_v9  ;;  %v19639_v24 = vadd.f32 %v12616_v46, %v18807_v22  ;;  %v14697_v25 = vpop.f32.mrf.mxu1 }
0x16e0   : > { %v12656_v51 = vadd.f32 %v14658_v6, %v10823_v56 }
0x16e1   : > { %12874 = vst [vmem:[#allocation2 + $0x18] sm:$0xff] %v19639_v24  ;;  %v14698_v0 = vpop.f32.mrf.mxu1 }
0x16e2   : > { %v14699_v19 = vadd.f32 %v14698_v0, %v14697_v25 }
0x16e3   : > { %v14700_v30 = vpop.f32.mrf.mxu1 }
0x16e5   : > { %v14701_v22 = vpop.f32.mrf.mxu1 }
0x16e6   : > { %v14702_v39 = vadd.f32 %v14701_v22, %v14700_v30 }
0x16f6   : > { %v14675_v52 = vpop.f32.mrf.mxu0 }
0x16f8   : > { %v14676_v35 = vpop.f32.mrf.mxu0  ;;  %v14741_v18 = vpop.f32.mrf.mxu1 }
0x16f9   : > { %v14677_v23 = vadd.f32 %v14676_v35, %v14675_v52 }
0x16fa   : > { %v14678_v55 = vpop.f32.mrf.mxu0  ;;  %v14742_v31 = vpop.f32.mrf.mxu1 }
0x16fb   : > { %v12694_v33 = vadd.f32 %v14677_v23, %v12653_v34  ;;  %v14743_v26 = vadd.f32 %v14742_v31, %v14741_v18 }
0x16fc   : > { %v14679_v61 = vpop.f32.mrf.mxu0  ;;  %v14744_v20 = vpop.f32.mrf.mxu1 }
0x16fd   : > { %v14680_v37 = vadd.f32 %v14679_v61, %v14678_v55  ;;  %v12735_v59 = vadd.f32 %v14699_v19, %v12694_v33 }
0x16fe   : > { %v14745_v12 = vpop.f32.mrf.mxu1 }
0x16ff   : > { %v12697_v15 = vadd.f32 %v14680_v37, %v12656_v51  ;;  %v14746_v29 = vadd.f32 %v14745_v12, %v14744_v20 }
0x1701   : > { %v12738_v27 = vadd.f32 %v14702_v39, %v12697_v15 }
0x1716   : > { %v14719_v32 = vpop.f32.mrf.mxu0 }
0x1718   : > { %v14720_v5 = vpop.f32.mrf.mxu0 }
0x1719   : > { %v14721_v48 = vadd.f32 %v14720_v5, %v14719_v32 }
0x171a   : > { %v14722_v63 = vpop.f32.mrf.mxu0 }
0x171b   : > { %v12776_v58 = vadd.f32 %v14721_v48, %v12735_v59 }
0x171c   : > { %v14723_v4 = vpop.f32.mrf.mxu0 }
0x171d   : > { %v14724_v7 = vadd.f32 %v14723_v4, %v14722_v63  ;;  %v12817_v14 = vadd.f32 %v14743_v26, %v12776_v58 }
0x171f   : > { %v12779_v17 = vadd.f32 %v14724_v7, %v12738_v27 }
0x1721   : > { %v12820_v53 = vadd.f32 %v14746_v29, %v12779_v17 }
0x1736   : > { %v14763_v43 = vpop.f32.mrf.mxu0 }
0x1738   : > { %v14764_v10 = vpop.f32.mrf.mxu0 }
0x1739   : > { %v14765_v60 = vadd.f32 %v14764_v10, %v14763_v43 }
0x173a   : > { %v14766_v3 = vpop.f32.mrf.mxu0 }
0x173b   : > { %v12858_v44 = vadd.f32 %v14765_v60, %v12817_v14 }
0x173c   : > { %v14767_v62 = vpop.f32.mrf.mxu0 }
0x173d   : > { %v12866_v2 = vadd.f32 %v12858_v44, %v18809_v36  ;;  %v14768_v49 = vadd.f32 %v14767_v62, %v14766_v3 }
0x173f   : > { %12872 = vst [vmem:[#allocation2 + $0x8] sm:$0xff] %v12866_v2  ;;  %v12861_v11 = vadd.f32 %v14768_v49, %v12820_v53  ;;  %12879 = sbr.rel (%p14454_p11) target bundleno = 6276 (0x1884), region = 100 }
0x1741   : > { %v12869_v57 = vadd.f32 %v12861_v11, %v18816_v1 }
0x1743   : > { %12875 = vst [vmem:[#allocation2 + $0x20] sm:$0xff] %v12869_v57 }
0x1744   : > { %v12882_v8 = vadd.f32 %v19631_v42, %v19627_v16  ;;  %v12886_v21 = vadd.f32 %v19639_v24, %v19635_v9 }
0x1746   : > { %v12883_v46 = vadd.f32 %v12882_v8, %v12866_v2  ;;  %v12887_v40 = vadd.f32 %v12886_v21, %v12869_v57 }
0x1748   : > { %12884 = vadd.xlane.f32.xlu0 %v12883_v46 }
0x174c   : > { %12888 = vadd.xlane.f32.xlu0 %v12887_v40 }
0x17d1   : > { %v12885_v36 = vpop.xlane.xlu0 %12884 }
0x17d2   : > { %v12890_v38 = vmul.f32 0.0026041667, %v12885_v36 }
0x17d4   : > { %v12892_v47 = vsub.f32 %v19627_v16, %v12890_v38  ;;  %v12893_v1 = vsub.f32 %v19631_v42, %v12890_v38  ;;  %v12894_v52 = vsub.f32 %v12866_v2, %v12890_v38 }
0x17d5   : > { %v12889_v45 = vpop.xlane.xlu0 %12888 }
0x17d6   : > { %v12891_v35 = vmul.f32 0.0026041667, %v12889_v45  ;;  %v12898_v25 = vmul.f32 %v12892_v47, %v12892_v47  ;;  %v12899_v55 = vmul.f32 %v12893_v1, %v12893_v1  ;;  %v12900_v0 = vmul.f32 %v12894_v52, %v12894_v52 }
0x17d8   : > { %v12895_v61 = vsub.f32 %v19635_v9, %v12891_v35  ;;  %v12896_v30 = vsub.f32 %v19639_v24, %v12891_v35  ;;  %v12897_v32 = vsub.f32 %v12869_v57, %v12891_v35  ;;  %v12904_v41 = vadd.f32 %v12899_v55, %v12898_v25  ;;  %v12880_v9 = vld [vmem:[#allocation15] sm:$0x7]  ;;  %v12881_v24 = vld [vmem:[#allocation16] sm:$0x7] }
0x17d9   : > { %v12928_v37 = vrot.slane %v12880_v9, %v17809_v50  ;;  %v12932_v31 = vrot.slane %v12880_v9, %v17814_v54  ;;  %v12936_v51 = vrot.slane %v12880_v9, %v18902_v28  ;;  %v12950_v48 = vrot.slane %v12881_v24, %v17809_v50 }
0x17da   : > { %v12905_v56 = vadd.f32 %v12904_v41, %v12900_v0  ;;  %v12901_v13 = vmul.f32 %v12895_v61, %v12895_v61  ;;  %v12902_v22 = vmul.f32 %v12896_v30, %v12896_v30  ;;  %v12903_v5 = vmul.f32 %v12897_v32, %v12897_v32 }
0x17db   : > { %v12954_v4 = vrot.slane %v12881_v24, %v17814_v54  ;;  %v12958_v39 = vrot.slane %v12881_v24, %v18902_v28 }
0x17dc   : > { %12906 = vadd.xlane.f32.xlu1 %v12905_v56  ;;  %v12908_v16 = vadd.f32 %v12902_v22, %v12901_v13 }
0x17de   : > { %v12909_v23 = vadd.f32 %v12908_v16, %v12903_v5 }
0x17e0   : > { %12910 = vadd.xlane.f32.xlu1 %v12909_v23 }
0x1865   : > { %v12907_v42 = vpop.xlane.xlu1 %12906 }
0x1866   : > { %v12912_v18 = vmul.f32 0.0026041667, %v12907_v42 }
0x1868   : > { %v12914_v34 = vadd.f32 1e-06, %v12912_v18 }
0x1869   : > { %v12911_v6 = vpop.xlane.xlu1 %12910 }
0x186a   : > { %17005 = vrsqrt.f32 %v12914_v34  ;;  %v12913_v63 = vmul.f32 0.0026041667, %v12911_v6 }
0x186c   : > { %v12915_v33 = vadd.f32 1e-06, %v12913_v63 }
0x186e   : > { %17007 = vrsqrt.f32 %v12915_v33 }
0x1877   : > { %v17006_v19 = vpop.eup %17005 }
0x1878   : > { %v12918_v15 = vmul.f32 %v17006_v19, %v12892_v47  ;;  %v12919_v59 = vmul.f32 %v17006_v19, %v12893_v1  ;;  %v12920_v20 = vmul.f32 %v17006_v19, %v12894_v52 }
0x187a   : > { %v12940_v58 = vmul.f32 %v12928_v37, %v12918_v15  ;;  %v12941_v7 = vmul.f32 %v12932_v31, %v12919_v59  ;;  %v12942_v43 = vmul.f32 %v12936_v51, %v12920_v20 }
0x187b   : > { %v17008_v26 = vpop.eup %17007 }
0x187c   : > { %v12962_v27 = vadd.f32 %v12950_v48, %v12940_v58  ;;  %v12963_v12 = vadd.f32 %v12954_v4, %v12941_v7  ;;  %v12964_v10 = vadd.f32 %v12958_v39, %v12942_v43  ;;  %v12921_v17 = vmul.f32 %v17008_v26, %v12895_v61 }
0x187d   : > { %v12922_v14 = vmul.f32 %v17008_v26, %v12896_v30  ;;  %v12923_v60 = vmul.f32 %v17008_v26, %v12897_v32 }
0x187e   : > { %12968 = vst [vmem:[%s19750_s12] sm:$0xff] %v12962_v27  ;;  %12969 = vst [vmem:[%s19750_s12 + $0x8] sm:$0xff] %v12963_v12  ;;  %v12943_v50 = vmul.f32 %v12928_v37, %v12921_v17 }
0x187f   : > { %12970 = vst [vmem:[%s19750_s12 + $0x10] sm:$0xff] %v12964_v10  ;;  %v12944_v54 = vmul.f32 %v12932_v31, %v12922_v14  ;;  %v12945_v28 = vmul.f32 %v12936_v51, %v12923_v60 }
0x1880   : > { %v12965_v3 = vadd.f32 %v12950_v48, %v12943_v50 }
0x1881   : > { %v12966_v29 = vadd.f32 %v12954_v4, %v12944_v54  ;;  %v12967_v44 = vadd.f32 %v12958_v39, %v12945_v28 }
0x1882   : > { %12971 = vst [vmem:[%s19750_s12 + $0x18] sm:$0xff] %v12965_v3 }
0x1883   : > { %12972 = vst [vmem:[%s19750_s12 + $0x20] sm:$0xff] %v12966_v29  ;;  %12973 = vst [vmem:[%s19750_s12 + $0x28] sm:$0xff] %v12967_v44 }
0x1884 PF: > { %s19751_s16 = sld [smem:[#allocation25_spill]]  ;;  %s19754_s13 = smov %s17273_s14 }
0x1885   : > { %s19752_s10 = sld [smem:[#allocation24_spill]] }
0x1886   : > { %s19753_s15 = sld [smem:[#allocation26_spill]] }
0x188a   : > { %p28_p1 = scmp.ge.s32.totalorder %s19751_s16, 4  }
0x188b   : > { %s19755_s14 = smov %s19752_s10 }
0x188c   :  { %30 = sbr.rel (!%p28_p1) target bundleno = 14 (0xe), region = 165 }
0x1891   :  { %12985 = vsyncpa [#allocation6], 1 }
0x1892   :  { %12987 = vsyncpa [#allocation6 + $0x1], 1 }
0x1893   :  { %12988 = vsyncpa [#allocation8], 1 }
0x1894   :  { %12990 = vsyncpa [#allocation8 + $0x1], 1 }
0x1895   :  { %12991 = vsyncpa [#allocation11], 1 }
0x1896   :  { %12993 = vsyncpa [#allocation11 + $0x1], 1 }
0x1897   :  { %12994 = vsyncpa [#allocation14], 1 }
0x1898   :  { %12996 = vsyncpa [#allocation14 + $0x1], 1 }
0x1899   :  { %12997 = vsyncpa [#allocation17], 1 }

</bundles_post_ra>
